<compile_context>
chip_gen: v5e
topology: v5e:2x2
jax: 0.10.0
libtpu: 0.0.40
codegen_flags: <defaults>
</compile_context>

<pallas_src>
import functools

import jax
import jax.numpy as jnp
from jax.experimental import pallas as pl
from jax.experimental.pallas import tpu as pltpu

LANE = 128

try:
    _VMEM_CAP = int(pltpu.get_tpu_info().vmem_capacity_bytes)
except Exception:  # conservative fallback (v7x-sized)
    _VMEM_CAP = 64 * 1024 * 1024
_VMEM_BUDGET = (_VMEM_CAP * 3) // 8   # target for the tile picker
_VMEM_LIMIT = (_VMEM_CAP * 3) // 4    # scoped limit handed to Mosaic


def _round_up(x, m):
    return (x + m - 1) // m * m


# ----------------------------------------------------------------------------
# Pallas kernel: 3x3 conv (halo tile assembled in VMEM) + BN shift + ReLU,
# optionally with a fused 2x2 max-pool as a second output.
# ----------------------------------------------------------------------------
def _conv_bn_relu_kernel(xm_ref, xh_ref, w_ref, shift_ref, y_ref, *pool_refs,
                         th, wd, cin, cout_p, pool):
    # Assemble the (th+2, W+2, Cin) halo tile (leading-dim concat: cheap).
    xb = jnp.concatenate([xm_ref[0], xh_ref[0]], axis=0)

    taps = [(kh, kw) for kh in range(3) for kw in range(3)]
    if cin == 1:
        # VPU stencil: 9 broadcast FMAs; MXU contraction depth would be only
        # 9 here, so skip the matmul entirely (review item: conv1_1).
        acc = None
        for t, (kh, kw) in enumerate(taps):
            xt = xb[kh:kh + th, kw:kw + wd, :].astype(jnp.float32)  # (th,wd,1)
            contrib = xt * w_ref[t].astype(jnp.float32)             # (1,cout_p)
            acc = contrib if acc is None else acc + contrib
    else:
        # 9 MXU matmuls (K = Cin each), accumulated in f32.
        acc = None
        for t, (kh, kw) in enumerate(taps):
            xt = xb[kh:kh + th, kw:kw + wd, :].reshape(th * wd, cin)
            contrib = jnp.dot(xt, w_ref[t],
                              preferred_element_type=jnp.float32)
            acc = contrib if acc is None else acc + contrib
        acc = acc.reshape(th, wd, cout_p)

    # BN (folded) shift + ReLU epilogue, bf16 store.
    y = jnp.maximum(acc + shift_ref[...], 0.0)
    y_ref[0] = y.astype(y_ref.dtype)

    if pool:
        p_ref, = pool_refs
        yp = y.reshape(th // 2, 2, wd, cout_p).max(axis=1)
        yp = yp.reshape(th // 2, wd // 2, 2, cout_p).max(axis=2)
        p_ref[0] = yp.astype(p_ref.dtype)


def _pick_th(n, h, wd, cin, cout_p, pool):
    """Even divisor of h: prefer the largest tile that still yields >= 4 grid
    steps (v7x: 2 TCs x >= 2 pipelined steps) and fits the VMEM budget."""
    cands = [t for t in range(h, 1, -1) if h % t == 0 and t % 2 == 0]
    if not cands:
        cands = [h]

    def vmem_est(t):
        bf2 = 2  # bytes / bf16
        inp = 2 * (t + 2) * (wd + 2) * cin * bf2        # main+halo, double-buffered
        wgt = 2 * 9 * cin * cout_p * bf2                # resident weights (2 bufs)
        out = 2 * t * wd * cout_p * bf2
        pol = 2 * (t // 2) * (wd // 2) * cout_p * bf2 if pool else 0
        tmp = 4 * t * wd * cout_p * 4                   # f32 acc + relayout slack
        return inp + wgt + out + pol + tmp

    for t in cands:
        if n * (h // t) >= 4 and vmem_est(t) <= _VMEM_BUDGET:
            return t
    for t in cands:
        if vmem_est(t) <= _VMEM_BUDGET:
            return t
    return cands[-1]


def conv3x3_bn_relu(x, w9, shift, *, pool=False):
    """x: (N,H,W,Cin) bf16 NHWC (unpadded).
    w9: (9, Cin, Cout) f32, BN scale already folded; tap order (kh,kw)-major.
    shift: (Cout,) f32 (conv bias + BN fold).
    Returns bf16 NHWC relu(conv(x)+shift); if pool, also its 2x2 max-pool."""
    n, h, wd, cin = x.shape
    cout = w9.shape[-1]
    assert h % 2 == 0 and wd % 2 == 0, "spatial dims must be even"
    assert w9.shape == (9, cin, cout)

    # Lane padding only when Cout is already >= one full lane group (review).
    cout_p = cout if cout < LANE else _round_up(cout, LANE)
    w_k = w9.astype(jnp.bfloat16)
    shift_k = shift.astype(jnp.float32).reshape(1, cout)
    if cout_p != cout:
        w_k = jnp.pad(w_k, ((0, 0), (0, 0), (0, cout_p - cout)))
        shift_k = jnp.pad(shift_k, ((0, 0), (0, cout_p - cout)))

    # Spatial zero-pad: one cheap ~1x pass (replaces the old 9x im2col).
    xp = jnp.pad(x, ((0, 0), (1, 1), (1, 1), (0, 0)))

    th = _pick_th(n, h, wd, cin, cout_p, pool)
    rows = h // th

    kernel = functools.partial(_conv_bn_relu_kernel, th=th, wd=wd, cin=cin,
                               cout_p=cout_p, pool=pool)

    in_specs = [
        # main row-block: padded rows [r*th, r*th + th)
        pl.BlockSpec((1, th, wd + 2, cin), lambda b, r: (b, r, 0, 0)),
        # 2-row halo block: padded rows [(r+1)*th, (r+1)*th + 2)
        pl.BlockSpec((1, 2, wd + 2, cin),
                     lambda b, r: (b, (r + 1) * (th // 2), 0, 0)),
        # weights / shift: constant index -> fetched once, VMEM resident
        pl.BlockSpec((9, cin, cout_p), lambda b, r: (0, 0, 0)),
        pl.BlockSpec((1, cout_p), lambda b, r: (0, 0)),
    ]
    out_shape = [jax.ShapeDtypeStruct((n, h, wd, cout_p), jnp.bfloat16)]
    out_specs = [pl.BlockSpec((1, th, wd, cout_p), lambda b, r: (b, r, 0, 0))]
    if pool:
        out_shape.append(
            jax.ShapeDtypeStruct((n, h // 2, wd // 2, cout_p), jnp.bfloat16))
        out_specs.append(
            pl.BlockSpec((1, th // 2, wd // 2, cout_p),
                         lambda b, r: (b, r, 0, 0)))

    outs = pl.pallas_call(
        kernel,
        out_shape=tuple(out_shape),
        grid_spec=pltpu.PrefetchScalarGridSpec(
            num_scalar_prefetch=0,
            grid=(n, rows),
            in_specs=in_specs,
            out_specs=tuple(out_specs),
        ),
        compiler_params=pltpu.CompilerParams(
            dimension_semantics=("parallel", "parallel"),
            vmem_limit_bytes=int(_VMEM_LIMIT)),
    )(xp, xp, w_k, shift_k)

    y = outs[0]
    if cout_p != cout:
        y = y[..., :cout]
    if pool:
        p = outs[1]
        if cout_p != cout:
            p = p[..., :cout]
        return y, p
    return y


# ----------------------------------------------------------------------------
# Parameters (deterministic init, BN folded into conv) + forward
# ----------------------------------------------------------------------------
def _fold_bn_into_conv(w, b, gamma, beta, mean, var, eps=1e-5):
    """bn(conv(x, w) + b) == conv(x, w * scale) + shift   (inference mode)."""
    scale = gamma / jnp.sqrt(var + eps)
    w_f = w * scale[None, None, None, :]
    shift = beta + scale * (b - mean)
    cin, cout = w.shape[2], w.shape[3]
    return w_f.reshape(9, cin, cout), shift


def init_params(key, n0):
    n1, n2, n3, n4 = n0, 2 * n0, 4 * n0, 8 * n0
    specs = {
        'conv1_1': (1, n1), 'conv1_2': (n1, n1),
        'conv2_1': (n1, n2), 'conv2_2': (n2, n2),
        'conv3_1': (n2, n3), 'conv3_2': (n3, n3),
        'conv4_1': (n3, n4), 'conv4_2': (n4, n4),
    }
    params = {}
    keys = jax.random.split(key, len(specs))
    for kk, (name, (cin, cout)) in zip(keys, specs.items()):
        kw_, kb, kg, kbt, km, kv = jax.random.split(kk, 6)
        w = jax.random.normal(kw_, (3, 3, cin, cout), jnp.float32) * 0.1
        b = jax.random.normal(kb, (cout,), jnp.float32) * 0.1
        gamma = 1.0 + 0.1 * jax.random.normal(kg, (cout,), jnp.float32)
        beta = 0.1 * jax.random.normal(kbt, (cout,), jnp.float32)
        mean = 0.1 * jax.random.normal(km, (cout,), jnp.float32)
        var = jax.random.uniform(kv, (cout,), jnp.float32,
                                 minval=0.5, maxval=1.5)
        params[name] = _fold_bn_into_conv(w, b, gamma, beta, mean, var)
    return params


def encoder_unet_forward(params, x_nchw):
    """x_nchw: (N, 1, H, W) f32. Returns (conv1_2, conv2_2, conv3_2, conv4_2)
    as NCHW f32 — matching PyTorch EncoderUNet.forward (inference-mode BN)."""
    x = jnp.transpose(x_nchw, (0, 2, 3, 1)).astype(jnp.bfloat16)     # NHWC bf16
    c11 = conv3x3_bn_relu(x, *params['conv1_1'])
    c12, p1 = conv3x3_bn_relu(c11, *params['conv1_2'], pool=True)    # pool fused
    c21 = conv3x3_bn_relu(p1, *params['conv2_1'])
    c22, p2 = conv3x3_bn_relu(c21, *params['conv2_2'], pool=True)
    c31 = conv3x3_bn_relu(p2, *params['conv3_1'])
    c32, p3 = conv3x3_bn_relu(c31, *params['conv3_2'], pool=True)
    c41 = conv3x3_bn_relu(p3, *params['conv4_1'])
    c42 = conv3x3_bn_relu(c41, *params['conv4_2'])
    to_nchw = lambda t: jnp.transpose(t, (0, 3, 1, 2)).astype(jnp.float32)
    return tuple(to_nchw(t) for t in (c12, c22, c32, c42))


# ----------------------------------------------------------------------------
# Pure-JAX f32 reference (same folded parameters) for a correctness check.
# ----------------------------------------------------------------------------
def _reference_forward(params, x_nchw):
    def conv(x, w9, shift):
        cin, cout = w9.shape[1], w9.shape[2]
        w = w9.reshape(3, 3, cin, cout)
        y = jax.lax.conv_general_dilated(
            x, w, window_strides=(1, 1), padding='SAME',
            dimension_numbers=('NHWC', 'HWIO', 'NHWC'))
        return jax.nn.relu(y + shift)

    def pool(x):
        n, h, w, c = x.shape
        return jnp.max(x.reshape(n, h // 2, 2, w // 2, 2, c), axis=(2, 4))

    x = jnp.transpose(x_nchw, (0, 2, 3, 1))
    c12 = conv(conv(x, *params['conv1_1']), *params['conv1_2'])
    c22 = conv(conv(pool(c12), *params['conv2_1']), *params['conv2_2'])
    c32 = conv(conv(pool(c22), *params['conv3_1']), *params['conv3_2'])
    c42 = conv(conv(pool(c32), *params['conv4_1']), *params['conv4_2'])
    to_nchw = lambda t: jnp.transpose(t, (0, 3, 1, 2))
    return tuple(to_nchw(t) for t in (c12, c22, c32, c42))


if __name__ == "__main__":
    n0 = 4
    N, H, W = 2, 16, 16

    key = jax.random.PRNGKey(0)
    kp, kx = jax.random.split(key)
    params = init_params(kp, n0)
    x = jax.random.normal(kx, (N, 1, H, W), jnp.float32)

    fwd = jax.jit(encoder_unet_forward)
    outs = jax.block_until_ready(fwd(params, x))

    expected = [(N, 1 * n0, H, W),
                (N, 2 * n0, H // 2, W // 2),
                (N, 4 * n0, H // 4, W // 4),
                (N, 8 * n0, H // 8, W // 8)]
    refs = _reference_forward(params, x)
    for i, (o, r, s) in enumerate(zip(outs, refs, expected)):
        assert o.shape == s, (o.shape, s)
        assert bool(jnp.all(jnp.isfinite(o)))
        ok = bool(jnp.all(jnp.abs(o - r) <= 0.1 + 0.1 * jnp.abs(r)))
        assert ok, f"output {i}: mismatch vs f32 reference (bf16 tolerance)"
    print("KERNEL_OK")
</pallas_src>

<mosaic_0001>
module attributes {stable_mosaic.version = 11 : i64} {
  func.func @_conv_bn_relu_kernel(%arg0: i32, %arg1: i32, %arg2: memref<1x8x18x1xbf16, #tpu.memory_space<vmem>>, %arg3: memref<1x2x18x1xbf16, #tpu.memory_space<vmem>>, %arg4: memref<9x1x4xbf16, #tpu.memory_space<vmem>>, %arg5: memref<1x4xf32, #tpu.memory_space<vmem>>, %arg6: memref<1x8x16x4xbf16, #tpu.memory_space<vmem>>) attributes {dimension_semantics = [#tpu.dimension_semantics<parallel>, #tpu.dimension_semantics<parallel>], iteration_bounds = array<i64: 2, 2>, scalar_prefetch = 0 : i64, scratch_operands = 0 : i64, tpu.core_type = #tpu.core_type<tc>, window_params = [{transform_indices = @transform_0, window_bounds = array<i64: 1, 8, 18, 1>}, {transform_indices = @transform_1, window_bounds = array<i64: 1, 2, 18, 1>}, {pipeline_mode = #tpu.pipeline_mode<synchronous>, transform_indices = @transform_2, window_bounds = array<i64: 9, 1, 4>}, {pipeline_mode = #tpu.pipeline_mode<synchronous>, transform_indices = @transform_3, window_bounds = array<i64: 1, 4>}, {transform_indices = @transform_4, window_bounds = array<i64: 1, 8, 16, 4>}]} {
    %c0 = arith.constant 0 : index
    %c0_0 = arith.constant 0 : index
    %c0_1 = arith.constant 0 : index
    %c0_2 = arith.constant 0 : index
    %0 = vector.load %arg2[%c0, %c0_0, %c0_1, %c0_2] : memref<1x8x18x1xbf16, #tpu.memory_space<vmem>>, vector<1x8x18x1xbf16>
    %1 = vector.shape_cast %0 : vector<1x8x18x1xbf16> to vector<8x18x1xbf16>
    %c0_3 = arith.constant 0 : index
    %c0_4 = arith.constant 0 : index
    %c0_5 = arith.constant 0 : index
    %c0_6 = arith.constant 0 : index
    %2 = vector.load %arg3[%c0_3, %c0_4, %c0_5, %c0_6] : memref<1x2x18x1xbf16, #tpu.memory_space<vmem>>, vector<1x2x18x1xbf16>
    %3 = vector.shape_cast %2 : vector<1x2x18x1xbf16> to vector<2x18x1xbf16>
    %4 = tpu.concatenate %1, %3 in 0 : vector<8x18x1xbf16>, vector<2x18x1xbf16> -> vector<10x18x1xbf16>
    %5 = vector.extract_strided_slice %4 {offsets = [0, 0, 0], sizes = [8, 16, 1], strides = [1, 1, 1]} : vector<10x18x1xbf16> to vector<8x16x1xbf16>
    %6 = arith.extf %5 : vector<8x16x1xbf16> to vector<8x16x1xf32>
    %c0_7 = arith.constant 0 : index
    %c0_8 = arith.constant 0 : index
    %c0_9 = arith.constant 0 : index
    %7 = vector.load %arg4[%c0_7, %c0_8, %c0_9] : memref<9x1x4xbf16, #tpu.memory_space<vmem>>, vector<1x1x4xbf16>
    %8 = vector.shape_cast %7 : vector<1x1x4xbf16> to vector<1x4xbf16>
    %9 = arith.extf %8 : vector<1x4xbf16> to vector<1x4xf32>
    %10 = vector.shape_cast %9 : vector<1x4xf32> to vector<1x1x4xf32>
    %11 = vector.broadcast %6 : vector<8x16x1xf32> to vector<8x16x4xf32>
    %12 = vector.broadcast %10 : vector<1x1x4xf32> to vector<8x16x4xf32>
    %13 = arith.mulf %11, %12 : vector<8x16x4xf32>
    %14 = vector.extract_strided_slice %4 {offsets = [0, 1, 0], sizes = [8, 16, 1], strides = [1, 1, 1]} : vector<10x18x1xbf16> to vector<8x16x1xbf16>
    %15 = arith.extf %14 : vector<8x16x1xbf16> to vector<8x16x1xf32>
    %c1 = arith.constant 1 : index
    %c0_10 = arith.constant 0 : index
    %c0_11 = arith.constant 0 : index
    %16 = vector.load %arg4[%c1, %c0_10, %c0_11] : memref<9x1x4xbf16, #tpu.memory_space<vmem>>, vector<1x1x4xbf16>
    %17 = vector.shape_cast %16 : vector<1x1x4xbf16> to vector<1x4xbf16>
    %18 = arith.extf %17 : vector<1x4xbf16> to vector<1x4xf32>
    %19 = vector.shape_cast %18 : vector<1x4xf32> to vector<1x1x4xf32>
    %20 = vector.broadcast %15 : vector<8x16x1xf32> to vector<8x16x4xf32>
    %21 = vector.broadcast %19 : vector<1x1x4xf32> to vector<8x16x4xf32>
    %22 = arith.mulf %20, %21 : vector<8x16x4xf32>
    %23 = arith.addf %13, %22 : vector<8x16x4xf32>
    %24 = vector.extract_strided_slice %4 {offsets = [0, 2, 0], sizes = [8, 16, 1], strides = [1, 1, 1]} : vector<10x18x1xbf16> to vector<8x16x1xbf16>
    %25 = arith.extf %24 : vector<8x16x1xbf16> to vector<8x16x1xf32>
    %c2 = arith.constant 2 : index
    %c0_12 = arith.constant 0 : index
    %c0_13 = arith.constant 0 : index
    %26 = vector.load %arg4[%c2, %c0_12, %c0_13] : memref<9x1x4xbf16, #tpu.memory_space<vmem>>, vector<1x1x4xbf16>
    %27 = vector.shape_cast %26 : vector<1x1x4xbf16> to vector<1x4xbf16>
    %28 = arith.extf %27 : vector<1x4xbf16> to vector<1x4xf32>
    %29 = vector.shape_cast %28 : vector<1x4xf32> to vector<1x1x4xf32>
    %30 = vector.broadcast %25 : vector<8x16x1xf32> to vector<8x16x4xf32>
    %31 = vector.broadcast %29 : vector<1x1x4xf32> to vector<8x16x4xf32>
    %32 = arith.mulf %30, %31 : vector<8x16x4xf32>
    %33 = arith.addf %23, %32 : vector<8x16x4xf32>
    %34 = vector.extract_strided_slice %4 {offsets = [1, 0, 0], sizes = [8, 16, 1], strides = [1, 1, 1]} : vector<10x18x1xbf16> to vector<8x16x1xbf16>
    %35 = arith.extf %34 : vector<8x16x1xbf16> to vector<8x16x1xf32>
    %c3 = arith.constant 3 : index
    %c0_14 = arith.constant 0 : index
    %c0_15 = arith.constant 0 : index
    %36 = vector.load %arg4[%c3, %c0_14, %c0_15] : memref<9x1x4xbf16, #tpu.memory_space<vmem>>, vector<1x1x4xbf16>
    %37 = vector.shape_cast %36 : vector<1x1x4xbf16> to vector<1x4xbf16>
    %38 = arith.extf %37 : vector<1x4xbf16> to vector<1x4xf32>
    %39 = vector.shape_cast %38 : vector<1x4xf32> to vector<1x1x4xf32>
    %40 = vector.broadcast %35 : vector<8x16x1xf32> to vector<8x16x4xf32>
    %41 = vector.broadcast %39 : vector<1x1x4xf32> to vector<8x16x4xf32>
    %42 = arith.mulf %40, %41 : vector<8x16x4xf32>
    %43 = arith.addf %33, %42 : vector<8x16x4xf32>
    %44 = vector.extract_strided_slice %4 {offsets = [1, 1, 0], sizes = [8, 16, 1], strides = [1, 1, 1]} : vector<10x18x1xbf16> to vector<8x16x1xbf16>
    %45 = arith.extf %44 : vector<8x16x1xbf16> to vector<8x16x1xf32>
    %c4 = arith.constant 4 : index
    %c0_16 = arith.constant 0 : index
    %c0_17 = arith.constant 0 : index
    %46 = vector.load %arg4[%c4, %c0_16, %c0_17] : memref<9x1x4xbf16, #tpu.memory_space<vmem>>, vector<1x1x4xbf16>
    %47 = vector.shape_cast %46 : vector<1x1x4xbf16> to vector<1x4xbf16>
    %48 = arith.extf %47 : vector<1x4xbf16> to vector<1x4xf32>
    %49 = vector.shape_cast %48 : vector<1x4xf32> to vector<1x1x4xf32>
    %50 = vector.broadcast %45 : vector<8x16x1xf32> to vector<8x16x4xf32>
    %51 = vector.broadcast %49 : vector<1x1x4xf32> to vector<8x16x4xf32>
    %52 = arith.mulf %50, %51 : vector<8x16x4xf32>
    %53 = arith.addf %43, %52 : vector<8x16x4xf32>
    %54 = vector.extract_strided_slice %4 {offsets = [1, 2, 0], sizes = [8, 16, 1], strides = [1, 1, 1]} : vector<10x18x1xbf16> to vector<8x16x1xbf16>
    %55 = arith.extf %54 : vector<8x16x1xbf16> to vector<8x16x1xf32>
    %c5 = arith.constant 5 : index
    %c0_18 = arith.constant 0 : index
    %c0_19 = arith.constant 0 : index
    %56 = vector.load %arg4[%c5, %c0_18, %c0_19] : memref<9x1x4xbf16, #tpu.memory_space<vmem>>, vector<1x1x4xbf16>
    %57 = vector.shape_cast %56 : vector<1x1x4xbf16> to vector<1x4xbf16>
    %58 = arith.extf %57 : vector<1x4xbf16> to vector<1x4xf32>
    %59 = vector.shape_cast %58 : vector<1x4xf32> to vector<1x1x4xf32>
    %60 = vector.broadcast %55 : vector<8x16x1xf32> to vector<8x16x4xf32>
    %61 = vector.broadcast %59 : vector<1x1x4xf32> to vector<8x16x4xf32>
    %62 = arith.mulf %60, %61 : vector<8x16x4xf32>
    %63 = arith.addf %53, %62 : vector<8x16x4xf32>
    %64 = vector.extract_strided_slice %4 {offsets = [2, 0, 0], sizes = [8, 16, 1], strides = [1, 1, 1]} : vector<10x18x1xbf16> to vector<8x16x1xbf16>
    %65 = arith.extf %64 : vector<8x16x1xbf16> to vector<8x16x1xf32>
    %c6 = arith.constant 6 : index
    %c0_20 = arith.constant 0 : index
    %c0_21 = arith.constant 0 : index
    %66 = vector.load %arg4[%c6, %c0_20, %c0_21] : memref<9x1x4xbf16, #tpu.memory_space<vmem>>, vector<1x1x4xbf16>
    %67 = vector.shape_cast %66 : vector<1x1x4xbf16> to vector<1x4xbf16>
    %68 = arith.extf %67 : vector<1x4xbf16> to vector<1x4xf32>
    %69 = vector.shape_cast %68 : vector<1x4xf32> to vector<1x1x4xf32>
    %70 = vector.broadcast %65 : vector<8x16x1xf32> to vector<8x16x4xf32>
    %71 = vector.broadcast %69 : vector<1x1x4xf32> to vector<8x16x4xf32>
    %72 = arith.mulf %70, %71 : vector<8x16x4xf32>
    %73 = arith.addf %63, %72 : vector<8x16x4xf32>
    %74 = vector.extract_strided_slice %4 {offsets = [2, 1, 0], sizes = [8, 16, 1], strides = [1, 1, 1]} : vector<10x18x1xbf16> to vector<8x16x1xbf16>
    %75 = arith.extf %74 : vector<8x16x1xbf16> to vector<8x16x1xf32>
    %c7 = arith.constant 7 : index
    %c0_22 = arith.constant 0 : index
    %c0_23 = arith.constant 0 : index
    %76 = vector.load %arg4[%c7, %c0_22, %c0_23] : memref<9x1x4xbf16, #tpu.memory_space<vmem>>, vector<1x1x4xbf16>
    %77 = vector.shape_cast %76 : vector<1x1x4xbf16> to vector<1x4xbf16>
    %78 = arith.extf %77 : vector<1x4xbf16> to vector<1x4xf32>
    %79 = vector.shape_cast %78 : vector<1x4xf32> to vector<1x1x4xf32>
    %80 = vector.broadcast %75 : vector<8x16x1xf32> to vector<8x16x4xf32>
    %81 = vector.broadcast %79 : vector<1x1x4xf32> to vector<8x16x4xf32>
    %82 = arith.mulf %80, %81 : vector<8x16x4xf32>
    %83 = arith.addf %73, %82 : vector<8x16x4xf32>
    %84 = vector.extract_strided_slice %4 {offsets = [2, 2, 0], sizes = [8, 16, 1], strides = [1, 1, 1]} : vector<10x18x1xbf16> to vector<8x16x1xbf16>
    %85 = arith.extf %84 : vector<8x16x1xbf16> to vector<8x16x1xf32>
    %c8 = arith.constant 8 : index
    %c0_24 = arith.constant 0 : index
    %c0_25 = arith.constant 0 : index
    %86 = vector.load %arg4[%c8, %c0_24, %c0_25] : memref<9x1x4xbf16, #tpu.memory_space<vmem>>, vector<1x1x4xbf16>
    %87 = vector.shape_cast %86 : vector<1x1x4xbf16> to vector<1x4xbf16>
    %88 = arith.extf %87 : vector<1x4xbf16> to vector<1x4xf32>
    %89 = vector.shape_cast %88 : vector<1x4xf32> to vector<1x1x4xf32>
    %90 = vector.broadcast %85 : vector<8x16x1xf32> to vector<8x16x4xf32>
    %91 = vector.broadcast %89 : vector<1x1x4xf32> to vector<8x16x4xf32>
    %92 = arith.mulf %90, %91 : vector<8x16x4xf32>
    %93 = arith.addf %83, %92 : vector<8x16x4xf32>
    %c0_26 = arith.constant 0 : index
    %c0_27 = arith.constant 0 : index
    %94 = vector.load %arg5[%c0_26, %c0_27] : memref<1x4xf32, #tpu.memory_space<vmem>>, vector<1x4xf32>
    %95 = vector.shape_cast %94 : vector<1x4xf32> to vector<1x1x4xf32>
    %96 = vector.broadcast %95 : vector<1x1x4xf32> to vector<8x16x4xf32>
    %97 = arith.addf %93, %96 : vector<8x16x4xf32>
    %cst = arith.constant 0.000000e+00 : f32
    %98 = vector.broadcast %cst : f32 to vector<8x16x4xf32>
    %99 = arith.maximumf %97, %98 : vector<8x16x4xf32>
    %100 = arith.truncf %99 : vector<8x16x4xf32> to vector<8x16x4xbf16>
    %c0_28 = arith.constant 0 : index
    %c0_29 = arith.constant 0 : index
    %c0_30 = arith.constant 0 : index
    %c0_31 = arith.constant 0 : index
    %101 = vector.load %arg6[%c0_28, %c0_29, %c0_30, %c0_31] : memref<1x8x16x4xbf16, #tpu.memory_space<vmem>>, vector<1x8x16x4xbf16>
    %102 = vector.shape_cast %101 : vector<1x8x16x4xbf16> to vector<8x16x4xbf16>
    %103 = vector.shape_cast %100 : vector<8x16x4xbf16> to vector<1x8x16x4xbf16>
    tpu.vector_store %arg6[%c0_28, %c0_29, %c0_30, %c0_31], %103 {strides = array<i32>} : memref<1x8x16x4xbf16, #tpu.memory_space<vmem>>, vector<1x8x16x4xbf16>,
    return
  }
  func.func @transform_0(%arg0: i32, %arg1: i32) -> (i32, i32, i32, i32) {
    %c0_i32 = arith.constant 0 : i32
    %c0_i32_0 = arith.constant 0 : i32
    %c0_i32_1 = arith.constant 0 : i32
    return %arg0, %arg1, %c0_i32, %c0_i32_0 : i32, i32, i32, i32
  }
  func.func @transform_1(%arg0: i32, %arg1: i32) -> (i32, i32, i32, i32) {
    %c1_i32 = arith.constant 1 : i32
    %0 = arith.addi %arg1, %c1_i32 : i32
    %c4_i32 = arith.constant 4 : i32
    %1 = arith.muli %0, %c4_i32 : i32
    %c0_i32 = arith.constant 0 : i32
    %c0_i32_0 = arith.constant 0 : i32
    %c0_i32_1 = arith.constant 0 : i32
    return %arg0, %1, %c0_i32, %c0_i32_0 : i32, i32, i32, i32
  }
  func.func @transform_2(%arg0: i32, %arg1: i32) -> (i32, i32, i32) {
    %c0_i32 = arith.constant 0 : i32
    %c0_i32_0 = arith.constant 0 : i32
    %c0_i32_1 = arith.constant 0 : i32
    %c0_i32_2 = arith.constant 0 : i32
    return %c0_i32, %c0_i32_0, %c0_i32_1 : i32, i32, i32
  }
  func.func @transform_3(%arg0: i32, %arg1: i32) -> (i32, i32) {
    %c0_i32 = arith.constant 0 : i32
    %c0_i32_0 = arith.constant 0 : i32
    %c0_i32_1 = arith.constant 0 : i32
    return %c0_i32, %c0_i32_0 : i32, i32
  }
  func.func @transform_4(%arg0: i32, %arg1: i32) -> (i32, i32, i32, i32) {
    %c0_i32 = arith.constant 0 : i32
    %c0_i32_0 = arith.constant 0 : i32
    %c0_i32_1 = arith.constant 0 : i32
    return %arg0, %arg1, %c0_i32, %c0_i32_0 : i32, i32, i32, i32
  }
}

module attributes {stable_mosaic.version = 11 : i64} {
  func.func @_conv_bn_relu_kernel(%arg0: i32, %arg1: i32, %arg2: memref<1x8x18x4xbf16, #tpu.memory_space<vmem>>, %arg3: memref<1x2x18x4xbf16, #tpu.memory_space<vmem>>, %arg4: memref<9x4x4xbf16, #tpu.memory_space<vmem>>, %arg5: memref<1x4xf32, #tpu.memory_space<vmem>>, %arg6: memref<1x8x16x4xbf16, #tpu.memory_space<vmem>>, %arg7: memref<1x4x8x4xbf16, #tpu.memory_space<vmem>>) attributes {dimension_semantics = [#tpu.dimension_semantics<parallel>, #tpu.dimension_semantics<parallel>], iteration_bounds = array<i64: 2, 2>, scalar_prefetch = 0 : i64, scratch_operands = 0 : i64, tpu.core_type = #tpu.core_type<tc>, window_params = [{transform_indices = @transform_0, window_bounds = array<i64: 1, 8, 18, 4>}, {transform_indices = @transform_1, window_bounds = array<i64: 1, 2, 18, 4>}, {pipeline_mode = #tpu.pipeline_mode<synchronous>, transform_indices = @transform_2, window_bounds = array<i64: 9, 4, 4>}, {pipeline_mode = #tpu.pipeline_mode<synchronous>, transform_indices = @transform_3, window_bounds = array<i64: 1, 4>}, {transform_indices = @transform_4, window_bounds = array<i64: 1, 8, 16, 4>}, {transform_indices = @transform_5, window_bounds = array<i64: 1, 4, 8, 4>}]} {
    %c0 = arith.constant 0 : index
    %c0_0 = arith.constant 0 : index
    %c0_1 = arith.constant 0 : index
    %c0_2 = arith.constant 0 : index
    %0 = vector.load %arg2[%c0, %c0_0, %c0_1, %c0_2] : memref<1x8x18x4xbf16, #tpu.memory_space<vmem>>, vector<1x8x18x4xbf16>
    %1 = vector.shape_cast %0 : vector<1x8x18x4xbf16> to vector<8x18x4xbf16>
    %c0_3 = arith.constant 0 : index
    %c0_4 = arith.constant 0 : index
    %c0_5 = arith.constant 0 : index
    %c0_6 = arith.constant 0 : index
    %2 = vector.load %arg3[%c0_3, %c0_4, %c0_5, %c0_6] : memref<1x2x18x4xbf16, #tpu.memory_space<vmem>>, vector<1x2x18x4xbf16>
    %3 = vector.shape_cast %2 : vector<1x2x18x4xbf16> to vector<2x18x4xbf16>
    %4 = tpu.concatenate %1, %3 in 0 : vector<8x18x4xbf16>, vector<2x18x4xbf16> -> vector<10x18x4xbf16>
    %5 = vector.extract_strided_slice %4 {offsets = [0, 0, 0], sizes = [8, 16, 4], strides = [1, 1, 1]} : vector<10x18x4xbf16> to vector<8x16x4xbf16>
    %6 = vector.shape_cast %5 : vector<8x16x4xbf16> to vector<128x4xbf16>
    %c0_7 = arith.constant 0 : index
    %c0_8 = arith.constant 0 : index
    %c0_9 = arith.constant 0 : index
    %7 = vector.load %arg4[%c0_7, %c0_8, %c0_9] : memref<9x4x4xbf16, #tpu.memory_space<vmem>>, vector<1x4x4xbf16>
    %8 = vector.shape_cast %7 : vector<1x4x4xbf16> to vector<4x4xbf16>
    %cst = arith.constant dense<0.000000e+00> : vector<128x4xf32>
    %9 = tpu.matmul %6, %8, %cst {dimension_numbers = #tpu.dot_dimension_numbers<[1], [0], [0], [1], [0, 0, 1, 1], [], []>} : vector<128x4xbf16>, vector<4x4xbf16>, vector<128x4xf32> -> vector<128x4xf32>
    %10 = vector.extract_strided_slice %4 {offsets = [0, 1, 0], sizes = [8, 16, 4], strides = [1, 1, 1]} : vector<10x18x4xbf16> to vector<8x16x4xbf16>
    %11 = vector.shape_cast %10 : vector<8x16x4xbf16> to vector<128x4xbf16>
    %c1 = arith.constant 1 : index
    %c0_10 = arith.constant 0 : index
    %c0_11 = arith.constant 0 : index
    %12 = vector.load %arg4[%c1, %c0_10, %c0_11] : memref<9x4x4xbf16, #tpu.memory_space<vmem>>, vector<1x4x4xbf16>
    %13 = vector.shape_cast %12 : vector<1x4x4xbf16> to vector<4x4xbf16>
    %cst_12 = arith.constant dense<0.000000e+00> : vector<128x4xf32>
    %14 = tpu.matmul %11, %13, %cst_12 {dimension_numbers = #tpu.dot_dimension_numbers<[1], [0], [0], [1], [0, 0, 1, 1], [], []>} : vector<128x4xbf16>, vector<4x4xbf16>, vector<128x4xf32> -> vector<128x4xf32>
    %15 = arith.addf %9, %14 : vector<128x4xf32>
    %16 = vector.extract_strided_slice %4 {offsets = [0, 2, 0], sizes = [8, 16, 4], strides = [1, 1, 1]} : vector<10x18x4xbf16> to vector<8x16x4xbf16>
    %17 = vector.shape_cast %16 : vector<8x16x4xbf16> to vector<128x4xbf16>
    %c2 = arith.constant 2 : index
    %c0_13 = arith.constant 0 : index
    %c0_14 = arith.constant 0 : index
    %18 = vector.load %arg4[%c2, %c0_13, %c0_14] : memref<9x4x4xbf16, #tpu.memory_space<vmem>>, vector<1x4x4xbf16>
    %19 = vector.shape_cast %18 : vector<1x4x4xbf16> to vector<4x4xbf16>
    %cst_15 = arith.constant dense<0.000000e+00> : vector<128x4xf32>
    %20 = tpu.matmul %17, %19, %cst_15 {dimension_numbers = #tpu.dot_dimension_numbers<[1], [0], [0], [1], [0, 0, 1, 1], [], []>} : vector<128x4xbf16>, vector<4x4xbf16>, vector<128x4xf32> -> vector<128x4xf32>
    %21 = arith.addf %15, %20 : vector<128x4xf32>
    %22 = vector.extract_strided_slice %4 {offsets = [1, 0, 0], sizes = [8, 16, 4], strides = [1, 1, 1]} : vector<10x18x4xbf16> to vector<8x16x4xbf16>
    %23 = vector.shape_cast %22 : vector<8x16x4xbf16> to vector<128x4xbf16>
    %c3 = arith.constant 3 : index
    %c0_16 = arith.constant 0 : index
    %c0_17 = arith.constant 0 : index
    %24 = vector.load %arg4[%c3, %c0_16, %c0_17] : memref<9x4x4xbf16, #tpu.memory_space<vmem>>, vector<1x4x4xbf16>
    %25 = vector.shape_cast %24 : vector<1x4x4xbf16> to vector<4x4xbf16>
    %cst_18 = arith.constant dense<0.000000e+00> : vector<128x4xf32>
    %26 = tpu.matmul %23, %25, %cst_18 {dimension_numbers = #tpu.dot_dimension_numbers<[1], [0], [0], [1], [0, 0, 1, 1], [], []>} : vector<128x4xbf16>, vector<4x4xbf16>, vector<128x4xf32> -> vector<128x4xf32>
    %27 = arith.addf %21, %26 : vector<128x4xf32>
    %28 = vector.extract_strided_slice %4 {offsets = [1, 1, 0], sizes = [8, 16, 4], strides = [1, 1, 1]} : vector<10x18x4xbf16> to vector<8x16x4xbf16>
    %29 = vector.shape_cast %28 : vector<8x16x4xbf16> to vector<128x4xbf16>
    %c4 = arith.constant 4 : index
    %c0_19 = arith.constant 0 : index
    %c0_20 = arith.constant 0 : index
    %30 = vector.load %arg4[%c4, %c0_19, %c0_20] : memref<9x4x4xbf16, #tpu.memory_space<vmem>>, vector<1x4x4xbf16>
    %31 = vector.shape_cast %30 : vector<1x4x4xbf16> to vector<4x4xbf16>
    %cst_21 = arith.constant dense<0.000000e+00> : vector<128x4xf32>
    %32 = tpu.matmul %29, %31, %cst_21 {dimension_numbers = #tpu.dot_dimension_numbers<[1], [0], [0], [1], [0, 0, 1, 1], [], []>} : vector<128x4xbf16>, vector<4x4xbf16>, vector<128x4xf32> -> vector<128x4xf32>
    %33 = arith.addf %27, %32 : vector<128x4xf32>
    %34 = vector.extract_strided_slice %4 {offsets = [1, 2, 0], sizes = [8, 16, 4], strides = [1, 1, 1]} : vector<10x18x4xbf16> to vector<8x16x4xbf16>
    %35 = vector.shape_cast %34 : vector<8x16x4xbf16> to vector<128x4xbf16>
    %c5 = arith.constant 5 : index
    %c0_22 = arith.constant 0 : index
    %c0_23 = arith.constant 0 : index
    %36 = vector.load %arg4[%c5, %c0_22, %c0_23] : memref<9x4x4xbf16, #tpu.memory_space<vmem>>, vector<1x4x4xbf16>
    %37 = vector.shape_cast %36 : vector<1x4x4xbf16> to vector<4x4xbf16>
    %cst_24 = arith.constant dense<0.000000e+00> : vector<128x4xf32>
    %38 = tpu.matmul %35, %37, %cst_24 {dimension_numbers = #tpu.dot_dimension_numbers<[1], [0], [0], [1], [0, 0, 1, 1], [], []>} : vector<128x4xbf16>, vector<4x4xbf16>, vector<128x4xf32> -> vector<128x4xf32>
    %39 = arith.addf %33, %38 : vector<128x4xf32>
    %40 = vector.extract_strided_slice %4 {offsets = [2, 0, 0], sizes = [8, 16, 4], strides = [1, 1, 1]} : vector<10x18x4xbf16> to vector<8x16x4xbf16>
    %41 = vector.shape_cast %40 : vector<8x16x4xbf16> to vector<128x4xbf16>
    %c6 = arith.constant 6 : index
    %c0_25 = arith.constant 0 : index
    %c0_26 = arith.constant 0 : index
    %42 = vector.load %arg4[%c6, %c0_25, %c0_26] : memref<9x4x4xbf16, #tpu.memory_space<vmem>>, vector<1x4x4xbf16>
    %43 = vector.shape_cast %42 : vector<1x4x4xbf16> to vector<4x4xbf16>
    %cst_27 = arith.constant dense<0.000000e+00> : vector<128x4xf32>
    %44 = tpu.matmul %41, %43, %cst_27 {dimension_numbers = #tpu.dot_dimension_numbers<[1], [0], [0], [1], [0, 0, 1, 1], [], []>} : vector<128x4xbf16>, vector<4x4xbf16>, vector<128x4xf32> -> vector<128x4xf32>
    %45 = arith.addf %39, %44 : vector<128x4xf32>
    %46 = vector.extract_strided_slice %4 {offsets = [2, 1, 0], sizes = [8, 16, 4], strides = [1, 1, 1]} : vector<10x18x4xbf16> to vector<8x16x4xbf16>
    %47 = vector.shape_cast %46 : vector<8x16x4xbf16> to vector<128x4xbf16>
    %c7 = arith.constant 7 : index
    %c0_28 = arith.constant 0 : index
    %c0_29 = arith.constant 0 : index
    %48 = vector.load %arg4[%c7, %c0_28, %c0_29] : memref<9x4x4xbf16, #tpu.memory_space<vmem>>, vector<1x4x4xbf16>
    %49 = vector.shape_cast %48 : vector<1x4x4xbf16> to vector<4x4xbf16>
    %cst_30 = arith.constant dense<0.000000e+00> : vector<128x4xf32>
    %50 = tpu.matmul %47, %49, %cst_30 {dimension_numbers = #tpu.dot_dimension_numbers<[1], [0], [0], [1], [0, 0, 1, 1], [], []>} : vector<128x4xbf16>, vector<4x4xbf16>, vector<128x4xf32> -> vector<128x4xf32>
    %51 = arith.addf %45, %50 : vector<128x4xf32>
    %52 = vector.extract_strided_slice %4 {offsets = [2, 2, 0], sizes = [8, 16, 4], strides = [1, 1, 1]} : vector<10x18x4xbf16> to vector<8x16x4xbf16>
    %53 = vector.shape_cast %52 : vector<8x16x4xbf16> to vector<128x4xbf16>
    %c8 = arith.constant 8 : index
    %c0_31 = arith.constant 0 : index
    %c0_32 = arith.constant 0 : index
    %54 = vector.load %arg4[%c8, %c0_31, %c0_32] : memref<9x4x4xbf16, #tpu.memory_space<vmem>>, vector<1x4x4xbf16>
    %55 = vector.shape_cast %54 : vector<1x4x4xbf16> to vector<4x4xbf16>
    %cst_33 = arith.constant dense<0.000000e+00> : vector<128x4xf32>
    %56 = tpu.matmul %53, %55, %cst_33 {dimension_numbers = #tpu.dot_dimension_numbers<[1], [0], [0], [1], [0, 0, 1, 1], [], []>} : vector<128x4xbf16>, vector<4x4xbf16>, vector<128x4xf32> -> vector<128x4xf32>
    %57 = arith.addf %51, %56 : vector<128x4xf32>
    %58 = vector.shape_cast %57 : vector<128x4xf32> to vector<8x16x4xf32>
    %c0_34 = arith.constant 0 : index
    %c0_35 = arith.constant 0 : index
    %59 = vector.load %arg5[%c0_34, %c0_35] : memref<1x4xf32, #tpu.memory_space<vmem>>, vector<1x4xf32>
    %60 = vector.shape_cast %59 : vector<1x4xf32> to vector<1x1x4xf32>
    %61 = vector.broadcast %60 : vector<1x1x4xf32> to vector<8x16x4xf32>
    %62 = arith.addf %58, %61 : vector<8x16x4xf32>
    %cst_36 = arith.constant 0.000000e+00 : f32
    %63 = vector.broadcast %cst_36 : f32 to vector<8x16x4xf32>
    %64 = arith.maximumf %62, %63 : vector<8x16x4xf32>
    %65 = arith.truncf %64 : vector<8x16x4xf32> to vector<8x16x4xbf16>
    %c0_37 = arith.constant 0 : index
    %c0_38 = arith.constant 0 : index
    %c0_39 = arith.constant 0 : index
    %c0_40 = arith.constant 0 : index
    %66 = vector.load %arg6[%c0_37, %c0_38, %c0_39, %c0_40] : memref<1x8x16x4xbf16, #tpu.memory_space<vmem>>, vector<1x8x16x4xbf16>
    %67 = vector.shape_cast %66 : vector<1x8x16x4xbf16> to vector<8x16x4xbf16>
    %68 = vector.shape_cast %65 : vector<8x16x4xbf16> to vector<1x8x16x4xbf16>
    tpu.vector_store %arg6[%c0_37, %c0_38, %c0_39, %c0_40], %68 {strides = array<i32>} : memref<1x8x16x4xbf16, #tpu.memory_space<vmem>>, vector<1x8x16x4xbf16>,
    %69 = vector.shape_cast %64 : vector<8x16x4xf32> to vector<4x2x16x4xf32>
    %cst_41 = arith.constant dense<0xFF800000> : vector<4x16x4xf32>
    %70 = vector.multi_reduction <maximumf>, %69, %cst_41 [1] : vector<4x2x16x4xf32> to vector<4x16x4xf32>
    %71 = vector.shape_cast %70 : vector<4x16x4xf32> to vector<4x8x2x4xf32>
    %cst_42 = arith.constant dense<0xFF800000> : vector<4x8x4xf32>
    %72 = vector.multi_reduction <maximumf>, %71, %cst_42 [2] : vector<4x8x2x4xf32> to vector<4x8x4xf32>
    %73 = arith.truncf %72 : vector<4x8x4xf32> to vector<4x8x4xbf16>
    %c0_43 = arith.constant 0 : index
    %c0_44 = arith.constant 0 : index
    %c0_45 = arith.constant 0 : index
    %c0_46 = arith.constant 0 : index
    %74 = vector.load %arg7[%c0_43, %c0_44, %c0_45, %c0_46] : memref<1x4x8x4xbf16, #tpu.memory_space<vmem>>, vector<1x4x8x4xbf16>
    %75 = vector.shape_cast %74 : vector<1x4x8x4xbf16> to vector<4x8x4xbf16>
    %76 = vector.shape_cast %73 : vector<4x8x4xbf16> to vector<1x4x8x4xbf16>
    tpu.vector_store %arg7[%c0_43, %c0_44, %c0_45, %c0_46], %76 {strides = array<i32>} : memref<1x4x8x4xbf16, #tpu.memory_space<vmem>>, vector<1x4x8x4xbf16>,
    return
  }
  func.func @transform_0(%arg0: i32, %arg1: i32) -> (i32, i32, i32, i32) {
    %c0_i32 = arith.constant 0 : i32
    %c0_i32_0 = arith.constant 0 : i32
    %c0_i32_1 = arith.constant 0 : i32
    return %arg0, %arg1, %c0_i32, %c0_i32_0 : i32, i32, i32, i32
  }
  func.func @transform_1(%arg0: i32, %arg1: i32) -> (i32, i32, i32, i32) {
    %c1_i32 = arith.constant 1 : i32
    %0 = arith.addi %arg1, %c1_i32 : i32
    %c4_i32 = arith.constant 4 : i32
    %1 = arith.muli %0, %c4_i32 : i32
    %c0_i32 = arith.constant 0 : i32
    %c0_i32_0 = arith.constant 0 : i32
    %c0_i32_1 = arith.constant 0 : i32
    return %arg0, %1, %c0_i32, %c0_i32_0 : i32, i32, i32, i32
  }
  func.func @transform_2(%arg0: i32, %arg1: i32) -> (i32, i32, i32) {
    %c0_i32 = arith.constant 0 : i32
    %c0_i32_0 = arith.constant 0 : i32
    %c0_i32_1 = arith.constant 0 : i32
    %c0_i32_2 = arith.constant 0 : i32
    return %c0_i32, %c0_i32_0, %c0_i32_1 : i32, i32, i32
  }
  func.func @transform_3(%arg0: i32, %arg1: i32) -> (i32, i32) {
    %c0_i32 = arith.constant 0 : i32
    %c0_i32_0 = arith.constant 0 : i32
    %c0_i32_1 = arith.constant 0 : i32
    return %c0_i32, %c0_i32_0 : i32, i32
  }
  func.func @transform_4(%arg0: i32, %arg1: i32) -> (i32, i32, i32, i32) {
    %c0_i32 = arith.constant 0 : i32
    %c0_i32_0 = arith.constant 0 : i32
    %c0_i32_1 = arith.constant 0 : i32
    return %arg0, %arg1, %c0_i32, %c0_i32_0 : i32, i32, i32, i32
  }
  func.func @transform_5(%arg0: i32, %arg1: i32) -> (i32, i32, i32, i32) {
    %c0_i32 = arith.constant 0 : i32
    %c0_i32_0 = arith.constant 0 : i32
    %c0_i32_1 = arith.constant 0 : i32
    return %arg0, %arg1, %c0_i32, %c0_i32_0 : i32, i32, i32, i32
  }
}

module attributes {stable_mosaic.version = 11 : i64} {
  func.func @_conv_bn_relu_kernel(%arg0: i32, %arg1: i32, %arg2: memref<1x4x10x4xbf16, #tpu.memory_space<vmem>>, %arg3: memref<1x2x10x4xbf16, #tpu.memory_space<vmem>>, %arg4: memref<9x4x8xbf16, #tpu.memory_space<vmem>>, %arg5: memref<1x8xf32, #tpu.memory_space<vmem>>, %arg6: memref<1x4x8x8xbf16, #tpu.memory_space<vmem>>) attributes {dimension_semantics = [#tpu.dimension_semantics<parallel>, #tpu.dimension_semantics<parallel>], iteration_bounds = array<i64: 2, 2>, scalar_prefetch = 0 : i64, scratch_operands = 0 : i64, tpu.core_type = #tpu.core_type<tc>, window_params = [{transform_indices = @transform_0, window_bounds = array<i64: 1, 4, 10, 4>}, {transform_indices = @transform_1, window_bounds = array<i64: 1, 2, 10, 4>}, {pipeline_mode = #tpu.pipeline_mode<synchronous>, transform_indices = @transform_2, window_bounds = array<i64: 9, 4, 8>}, {pipeline_mode = #tpu.pipeline_mode<synchronous>, transform_indices = @transform_3, window_bounds = array<i64: 1, 8>}, {transform_indices = @transform_4, window_bounds = array<i64: 1, 4, 8, 8>}]} {
    %c0 = arith.constant 0 : index
    %c0_0 = arith.constant 0 : index
    %c0_1 = arith.constant 0 : index
    %c0_2 = arith.constant 0 : index
    %0 = vector.load %arg2[%c0, %c0_0, %c0_1, %c0_2] : memref<1x4x10x4xbf16, #tpu.memory_space<vmem>>, vector<1x4x10x4xbf16>
    %1 = vector.shape_cast %0 : vector<1x4x10x4xbf16> to vector<4x10x4xbf16>
    %c0_3 = arith.constant 0 : index
    %c0_4 = arith.constant 0 : index
    %c0_5 = arith.constant 0 : index
    %c0_6 = arith.constant 0 : index
    %2 = vector.load %arg3[%c0_3, %c0_4, %c0_5, %c0_6] : memref<1x2x10x4xbf16, #tpu.memory_space<vmem>>, vector<1x2x10x4xbf16>
    %3 = vector.shape_cast %2 : vector<1x2x10x4xbf16> to vector<2x10x4xbf16>
    %4 = tpu.concatenate %1, %3 in 0 : vector<4x10x4xbf16>, vector<2x10x4xbf16> -> vector<6x10x4xbf16>
    %5 = vector.extract_strided_slice %4 {offsets = [0, 0, 0], sizes = [4, 8, 4], strides = [1, 1, 1]} : vector<6x10x4xbf16> to vector<4x8x4xbf16>
    %6 = vector.shape_cast %5 : vector<4x8x4xbf16> to vector<32x4xbf16>
    %c0_7 = arith.constant 0 : index
    %c0_8 = arith.constant 0 : index
    %c0_9 = arith.constant 0 : index
    %7 = vector.load %arg4[%c0_7, %c0_8, %c0_9] : memref<9x4x8xbf16, #tpu.memory_space<vmem>>, vector<1x4x8xbf16>
    %8 = vector.shape_cast %7 : vector<1x4x8xbf16> to vector<4x8xbf16>
    %cst = arith.constant dense<0.000000e+00> : vector<32x8xf32>
    %9 = tpu.matmul %6, %8, %cst {dimension_numbers = #tpu.dot_dimension_numbers<[1], [0], [0], [1], [0, 0, 1, 1], [], []>} : vector<32x4xbf16>, vector<4x8xbf16>, vector<32x8xf32> -> vector<32x8xf32>
    %10 = vector.extract_strided_slice %4 {offsets = [0, 1, 0], sizes = [4, 8, 4], strides = [1, 1, 1]} : vector<6x10x4xbf16> to vector<4x8x4xbf16>
    %11 = vector.shape_cast %10 : vector<4x8x4xbf16> to vector<32x4xbf16>
    %c1 = arith.constant 1 : index
    %c0_10 = arith.constant 0 : index
    %c0_11 = arith.constant 0 : index
    %12 = vector.load %arg4[%c1, %c0_10, %c0_11] : memref<9x4x8xbf16, #tpu.memory_space<vmem>>, vector<1x4x8xbf16>
    %13 = vector.shape_cast %12 : vector<1x4x8xbf16> to vector<4x8xbf16>
    %cst_12 = arith.constant dense<0.000000e+00> : vector<32x8xf32>
    %14 = tpu.matmul %11, %13, %cst_12 {dimension_numbers = #tpu.dot_dimension_numbers<[1], [0], [0], [1], [0, 0, 1, 1], [], []>} : vector<32x4xbf16>, vector<4x8xbf16>, vector<32x8xf32> -> vector<32x8xf32>
    %15 = arith.addf %9, %14 : vector<32x8xf32>
    %16 = vector.extract_strided_slice %4 {offsets = [0, 2, 0], sizes = [4, 8, 4], strides = [1, 1, 1]} : vector<6x10x4xbf16> to vector<4x8x4xbf16>
    %17 = vector.shape_cast %16 : vector<4x8x4xbf16> to vector<32x4xbf16>
    %c2 = arith.constant 2 : index
    %c0_13 = arith.constant 0 : index
    %c0_14 = arith.constant 0 : index
    %18 = vector.load %arg4[%c2, %c0_13, %c0_14] : memref<9x4x8xbf16, #tpu.memory_space<vmem>>, vector<1x4x8xbf16>
    %19 = vector.shape_cast %18 : vector<1x4x8xbf16> to vector<4x8xbf16>
    %cst_15 = arith.constant dense<0.000000e+00> : vector<32x8xf32>
    %20 = tpu.matmul %17, %19, %cst_15 {dimension_numbers = #tpu.dot_dimension_numbers<[1], [0], [0], [1], [0, 0, 1, 1], [], []>} : vector<32x4xbf16>, vector<4x8xbf16>, vector<32x8xf32> -> vector<32x8xf32>
    %21 = arith.addf %15, %20 : vector<32x8xf32>
    %22 = vector.extract_strided_slice %4 {offsets = [1, 0, 0], sizes = [4, 8, 4], strides = [1, 1, 1]} : vector<6x10x4xbf16> to vector<4x8x4xbf16>
    %23 = vector.shape_cast %22 : vector<4x8x4xbf16> to vector<32x4xbf16>
    %c3 = arith.constant 3 : index
    %c0_16 = arith.constant 0 : index
    %c0_17 = arith.constant 0 : index
    %24 = vector.load %arg4[%c3, %c0_16, %c0_17] : memref<9x4x8xbf16, #tpu.memory_space<vmem>>, vector<1x4x8xbf16>
    %25 = vector.shape_cast %24 : vector<1x4x8xbf16> to vector<4x8xbf16>
    %cst_18 = arith.constant dense<0.000000e+00> : vector<32x8xf32>
    %26 = tpu.matmul %23, %25, %cst_18 {dimension_numbers = #tpu.dot_dimension_numbers<[1], [0], [0], [1], [0, 0, 1, 1], [], []>} : vector<32x4xbf16>, vector<4x8xbf16>, vector<32x8xf32> -> vector<32x8xf32>
    %27 = arith.addf %21, %26 : vector<32x8xf32>
    %28 = vector.extract_strided_slice %4 {offsets = [1, 1, 0], sizes = [4, 8, 4], strides = [1, 1, 1]} : vector<6x10x4xbf16> to vector<4x8x4xbf16>
    %29 = vector.shape_cast %28 : vector<4x8x4xbf16> to vector<32x4xbf16>
    %c4 = arith.constant 4 : index
    %c0_19 = arith.constant 0 : index
    %c0_20 = arith.constant 0 : index
    %30 = vector.load %arg4[%c4, %c0_19, %c0_20] : memref<9x4x8xbf16, #tpu.memory_space<vmem>>, vector<1x4x8xbf16>
    %31 = vector.shape_cast %30 : vector<1x4x8xbf16> to vector<4x8xbf16>
    %cst_21 = arith.constant dense<0.000000e+00> : vector<32x8xf32>
    %32 = tpu.matmul %29, %31, %cst_21 {dimension_numbers = #tpu.dot_dimension_numbers<[1], [0], [0], [1], [0, 0, 1, 1], [], []>} : vector<32x4xbf16>, vector<4x8xbf16>, vector<32x8xf32> -> vector<32x8xf32>
    %33 = arith.addf %27, %32 : vector<32x8xf32>
    %34 = vector.extract_strided_slice %4 {offsets = [1, 2, 0], sizes = [4, 8, 4], strides = [1, 1, 1]} : vector<6x10x4xbf16> to vector<4x8x4xbf16>
    %35 = vector.shape_cast %34 : vector<4x8x4xbf16> to vector<32x4xbf16>
    %c5 = arith.constant 5 : index
    %c0_22 = arith.constant 0 : index
    %c0_23 = arith.constant 0 : index
    %36 = vector.load %arg4[%c5, %c0_22, %c0_23] : memref<9x4x8xbf16, #tpu.memory_space<vmem>>, vector<1x4x8xbf16>
    %37 = vector.shape_cast %36 : vector<1x4x8xbf16> to vector<4x8xbf16>
    %cst_24 = arith.constant dense<0.000000e+00> : vector<32x8xf32>
    %38 = tpu.matmul %35, %37, %cst_24 {dimension_numbers = #tpu.dot_dimension_numbers<[1], [0], [0], [1], [0, 0, 1, 1], [], []>} : vector<32x4xbf16>, vector<4x8xbf16>, vector<32x8xf32> -> vector<32x8xf32>
    %39 = arith.addf %33, %38 : vector<32x8xf32>
    %40 = vector.extract_strided_slice %4 {offsets = [2, 0, 0], sizes = [4, 8, 4], strides = [1, 1, 1]} : vector<6x10x4xbf16> to vector<4x8x4xbf16>
    %41 = vector.shape_cast %40 : vector<4x8x4xbf16> to vector<32x4xbf16>
    %c6 = arith.constant 6 : index
    %c0_25 = arith.constant 0 : index
    %c0_26 = arith.constant 0 : index
    %42 = vector.load %arg4[%c6, %c0_25, %c0_26] : memref<9x4x8xbf16, #tpu.memory_space<vmem>>, vector<1x4x8xbf16>
    %43 = vector.shape_cast %42 : vector<1x4x8xbf16> to vector<4x8xbf16>
    %cst_27 = arith.constant dense<0.000000e+00> : vector<32x8xf32>
    %44 = tpu.matmul %41, %43, %cst_27 {dimension_numbers = #tpu.dot_dimension_numbers<[1], [0], [0], [1], [0, 0, 1, 1], [], []>} : vector<32x4xbf16>, vector<4x8xbf16>, vector<32x8xf32> -> vector<32x8xf32>
    %45 = arith.addf %39, %44 : vector<32x8xf32>
    %46 = vector.extract_strided_slice %4 {offsets = [2, 1, 0], sizes = [4, 8, 4], strides = [1, 1, 1]} : vector<6x10x4xbf16> to vector<4x8x4xbf16>
    %47 = vector.shape_cast %46 : vector<4x8x4xbf16> to vector<32x4xbf16>
    %c7 = arith.constant 7 : index
    %c0_28 = arith.constant 0 : index
    %c0_29 = arith.constant 0 : index
    %48 = vector.load %arg4[%c7, %c0_28, %c0_29] : memref<9x4x8xbf16, #tpu.memory_space<vmem>>, vector<1x4x8xbf16>
    %49 = vector.shape_cast %48 : vector<1x4x8xbf16> to vector<4x8xbf16>
    %cst_30 = arith.constant dense<0.000000e+00> : vector<32x8xf32>
    %50 = tpu.matmul %47, %49, %cst_30 {dimension_numbers = #tpu.dot_dimension_numbers<[1], [0], [0], [1], [0, 0, 1, 1], [], []>} : vector<32x4xbf16>, vector<4x8xbf16>, vector<32x8xf32> -> vector<32x8xf32>
    %51 = arith.addf %45, %50 : vector<32x8xf32>
    %52 = vector.extract_strided_slice %4 {offsets = [2, 2, 0], sizes = [4, 8, 4], strides = [1, 1, 1]} : vector<6x10x4xbf16> to vector<4x8x4xbf16>
    %53 = vector.shape_cast %52 : vector<4x8x4xbf16> to vector<32x4xbf16>
    %c8 = arith.constant 8 : index
    %c0_31 = arith.constant 0 : index
    %c0_32 = arith.constant 0 : index
    %54 = vector.load %arg4[%c8, %c0_31, %c0_32] : memref<9x4x8xbf16, #tpu.memory_space<vmem>>, vector<1x4x8xbf16>
    %55 = vector.shape_cast %54 : vector<1x4x8xbf16> to vector<4x8xbf16>
    %cst_33 = arith.constant dense<0.000000e+00> : vector<32x8xf32>
    %56 = tpu.matmul %53, %55, %cst_33 {dimension_numbers = #tpu.dot_dimension_numbers<[1], [0], [0], [1], [0, 0, 1, 1], [], []>} : vector<32x4xbf16>, vector<4x8xbf16>, vector<32x8xf32> -> vector<32x8xf32>
    %57 = arith.addf %51, %56 : vector<32x8xf32>
    %58 = vector.shape_cast %57 : vector<32x8xf32> to vector<4x8x8xf32>
    %c0_34 = arith.constant 0 : index
    %c0_35 = arith.constant 0 : index
    %59 = vector.load %arg5[%c0_34, %c0_35] : memref<1x8xf32, #tpu.memory_space<vmem>>, vector<1x8xf32>
    %60 = vector.shape_cast %59 : vector<1x8xf32> to vector<1x1x8xf32>
    %61 = vector.broadcast %60 : vector<1x1x8xf32> to vector<4x8x8xf32>
    %62 = arith.addf %58, %61 : vector<4x8x8xf32>
    %cst_36 = arith.constant 0.000000e+00 : f32
    %63 = vector.broadcast %cst_36 : f32 to vector<4x8x8xf32>
    %64 = arith.maximumf %62, %63 : vector<4x8x8xf32>
    %65 = arith.truncf %64 : vector<4x8x8xf32> to vector<4x8x8xbf16>
    %c0_37 = arith.constant 0 : index
    %c0_38 = arith.constant 0 : index
    %c0_39 = arith.constant 0 : index
    %c0_40 = arith.constant 0 : index
    %66 = vector.load %arg6[%c0_37, %c0_38, %c0_39, %c0_40] : memref<1x4x8x8xbf16, #tpu.memory_space<vmem>>, vector<1x4x8x8xbf16>
    %67 = vector.shape_cast %66 : vector<1x4x8x8xbf16> to vector<4x8x8xbf16>
    %68 = vector.shape_cast %65 : vector<4x8x8xbf16> to vector<1x4x8x8xbf16>
    tpu.vector_store %arg6[%c0_37, %c0_38, %c0_39, %c0_40], %68 {strides = array<i32>} : memref<1x4x8x8xbf16, #tpu.memory_space<vmem>>, vector<1x4x8x8xbf16>,
    return
  }
  func.func @transform_0(%arg0: i32, %arg1: i32) -> (i32, i32, i32, i32) {
    %c0_i32 = arith.constant 0 : i32
    %c0_i32_0 = arith.constant 0 : i32
    %c0_i32_1 = arith.constant 0 : i32
    return %arg0, %arg1, %c0_i32, %c0_i32_0 : i32, i32, i32, i32
  }
  func.func @transform_1(%arg0: i32, %arg1: i32) -> (i32, i32, i32, i32) {
    %c1_i32 = arith.constant 1 : i32
    %0 = arith.addi %arg1, %c1_i32 : i32
    %c2_i32 = arith.constant 2 : i32
    %1 = arith.muli %0, %c2_i32 : i32
    %c0_i32 = arith.constant 0 : i32
    %c0_i32_0 = arith.constant 0 : i32
    %c0_i32_1 = arith.constant 0 : i32
    return %arg0, %1, %c0_i32, %c0_i32_0 : i32, i32, i32, i32
  }
  func.func @transform_2(%arg0: i32, %arg1: i32) -> (i32, i32, i32) {
    %c0_i32 = arith.constant 0 : i32
    %c0_i32_0 = arith.constant 0 : i32
    %c0_i32_1 = arith.constant 0 : i32
    %c0_i32_2 = arith.constant 0 : i32
    return %c0_i32, %c0_i32_0, %c0_i32_1 : i32, i32, i32
  }
  func.func @transform_3(%arg0: i32, %arg1: i32) -> (i32, i32) {
    %c0_i32 = arith.constant 0 : i32
    %c0_i32_0 = arith.constant 0 : i32
    %c0_i32_1 = arith.constant 0 : i32
    return %c0_i32, %c0_i32_0 : i32, i32
  }
  func.func @transform_4(%arg0: i32, %arg1: i32) -> (i32, i32, i32, i32) {
    %c0_i32 = arith.constant 0 : i32
    %c0_i32_0 = arith.constant 0 : i32
    %c0_i32_1 = arith.constant 0 : i32
    return %arg0, %arg1, %c0_i32, %c0_i32_0 : i32, i32, i32, i32
  }
}

module attributes {stable_mosaic.version = 11 : i64} {
  func.func @_conv_bn_relu_kernel(%arg0: i32, %arg1: i32, %arg2: memref<1x4x10x8xbf16, #tpu.memory_space<vmem>>, %arg3: memref<1x2x10x8xbf16, #tpu.memory_space<vmem>>, %arg4: memref<9x8x8xbf16, #tpu.memory_space<vmem>>, %arg5: memref<1x8xf32, #tpu.memory_space<vmem>>, %arg6: memref<1x4x8x8xbf16, #tpu.memory_space<vmem>>, %arg7: memref<1x2x4x8xbf16, #tpu.memory_space<vmem>>) attributes {dimension_semantics = [#tpu.dimension_semantics<parallel>, #tpu.dimension_semantics<parallel>], iteration_bounds = array<i64: 2, 2>, scalar_prefetch = 0 : i64, scratch_operands = 0 : i64, tpu.core_type = #tpu.core_type<tc>, window_params = [{transform_indices = @transform_0, window_bounds = array<i64: 1, 4, 10, 8>}, {transform_indices = @transform_1, window_bounds = array<i64: 1, 2, 10, 8>}, {pipeline_mode = #tpu.pipeline_mode<synchronous>, transform_indices = @transform_2, window_bounds = array<i64: 9, 8, 8>}, {pipeline_mode = #tpu.pipeline_mode<synchronous>, transform_indices = @transform_3, window_bounds = array<i64: 1, 8>}, {transform_indices = @transform_4, window_bounds = array<i64: 1, 4, 8, 8>}, {transform_indices = @transform_5, window_bounds = array<i64: 1, 2, 4, 8>}]} {
    %c0 = arith.constant 0 : index
    %c0_0 = arith.constant 0 : index
    %c0_1 = arith.constant 0 : index
    %c0_2 = arith.constant 0 : index
    %0 = vector.load %arg2[%c0, %c0_0, %c0_1, %c0_2] : memref<1x4x10x8xbf16, #tpu.memory_space<vmem>>, vector<1x4x10x8xbf16>
    %1 = vector.shape_cast %0 : vector<1x4x10x8xbf16> to vector<4x10x8xbf16>
    %c0_3 = arith.constant 0 : index
    %c0_4 = arith.constant 0 : index
    %c0_5 = arith.constant 0 : index
    %c0_6 = arith.constant 0 : index
    %2 = vector.load %arg3[%c0_3, %c0_4, %c0_5, %c0_6] : memref<1x2x10x8xbf16, #tpu.memory_space<vmem>>, vector<1x2x10x8xbf16>
    %3 = vector.shape_cast %2 : vector<1x2x10x8xbf16> to vector<2x10x8xbf16>
    %4 = tpu.concatenate %1, %3 in 0 : vector<4x10x8xbf16>, vector<2x10x8xbf16> -> vector<6x10x8xbf16>
    %5 = vector.extract_strided_slice %4 {offsets = [0, 0, 0], sizes = [4, 8, 8], strides = [1, 1, 1]} : vector<6x10x8xbf16> to vector<4x8x8xbf16>
    %6 = vector.shape_cast %5 : vector<4x8x8xbf16> to vector<32x8xbf16>
    %c0_7 = arith.constant 0 : index
    %c0_8 = arith.constant 0 : index
    %c0_9 = arith.constant 0 : index
    %7 = vector.load %arg4[%c0_7, %c0_8, %c0_9] : memref<9x8x8xbf16, #tpu.memory_space<vmem>>, vector<1x8x8xbf16>
    %8 = vector.shape_cast %7 : vector<1x8x8xbf16> to vector<8x8xbf16>
    %cst = arith.constant dense<0.000000e+00> : vector<32x8xf32>
    %9 = tpu.matmul %6, %8, %cst {dimension_numbers = #tpu.dot_dimension_numbers<[1], [0], [0], [1], [0, 0, 1, 1], [], []>} : vector<32x8xbf16>, vector<8x8xbf16>, vector<32x8xf32> -> vector<32x8xf32>
    %10 = vector.extract_strided_slice %4 {offsets = [0, 1, 0], sizes = [4, 8, 8], strides = [1, 1, 1]} : vector<6x10x8xbf16> to vector<4x8x8xbf16>
    %11 = vector.shape_cast %10 : vector<4x8x8xbf16> to vector<32x8xbf16>
    %c1 = arith.constant 1 : index
    %c0_10 = arith.constant 0 : index
    %c0_11 = arith.constant 0 : index
    %12 = vector.load %arg4[%c1, %c0_10, %c0_11] : memref<9x8x8xbf16, #tpu.memory_space<vmem>>, vector<1x8x8xbf16>
    %13 = vector.shape_cast %12 : vector<1x8x8xbf16> to vector<8x8xbf16>
    %cst_12 = arith.constant dense<0.000000e+00> : vector<32x8xf32>
    %14 = tpu.matmul %11, %13, %cst_12 {dimension_numbers = #tpu.dot_dimension_numbers<[1], [0], [0], [1], [0, 0, 1, 1], [], []>} : vector<32x8xbf16>, vector<8x8xbf16>, vector<32x8xf32> -> vector<32x8xf32>
    %15 = arith.addf %9, %14 : vector<32x8xf32>
    %16 = vector.extract_strided_slice %4 {offsets = [0, 2, 0], sizes = [4, 8, 8], strides = [1, 1, 1]} : vector<6x10x8xbf16> to vector<4x8x8xbf16>
    %17 = vector.shape_cast %16 : vector<4x8x8xbf16> to vector<32x8xbf16>
    %c2 = arith.constant 2 : index
    %c0_13 = arith.constant 0 : index
    %c0_14 = arith.constant 0 : index
    %18 = vector.load %arg4[%c2, %c0_13, %c0_14] : memref<9x8x8xbf16, #tpu.memory_space<vmem>>, vector<1x8x8xbf16>
    %19 = vector.shape_cast %18 : vector<1x8x8xbf16> to vector<8x8xbf16>
    %cst_15 = arith.constant dense<0.000000e+00> : vector<32x8xf32>
    %20 = tpu.matmul %17, %19, %cst_15 {dimension_numbers = #tpu.dot_dimension_numbers<[1], [0], [0], [1], [0, 0, 1, 1], [], []>} : vector<32x8xbf16>, vector<8x8xbf16>, vector<32x8xf32> -> vector<32x8xf32>
    %21 = arith.addf %15, %20 : vector<32x8xf32>
    %22 = vector.extract_strided_slice %4 {offsets = [1, 0, 0], sizes = [4, 8, 8], strides = [1, 1, 1]} : vector<6x10x8xbf16> to vector<4x8x8xbf16>
    %23 = vector.shape_cast %22 : vector<4x8x8xbf16> to vector<32x8xbf16>
    %c3 = arith.constant 3 : index
    %c0_16 = arith.constant 0 : index
    %c0_17 = arith.constant 0 : index
    %24 = vector.load %arg4[%c3, %c0_16, %c0_17] : memref<9x8x8xbf16, #tpu.memory_space<vmem>>, vector<1x8x8xbf16>
    %25 = vector.shape_cast %24 : vector<1x8x8xbf16> to vector<8x8xbf16>
    %cst_18 = arith.constant dense<0.000000e+00> : vector<32x8xf32>
    %26 = tpu.matmul %23, %25, %cst_18 {dimension_numbers = #tpu.dot_dimension_numbers<[1], [0], [0], [1], [0, 0, 1, 1], [], []>} : vector<32x8xbf16>, vector<8x8xbf16>, vector<32x8xf32> -> vector<32x8xf32>
    %27 = arith.addf %21, %26 : vector<32x8xf32>
    %28 = vector.extract_strided_slice %4 {offsets = [1, 1, 0], sizes = [4, 8, 8], strides = [1, 1, 1]} : vector<6x10x8xbf16> to vector<4x8x8xbf16>
    %29 = vector.shape_cast %28 : vector<4x8x8xbf16> to vector<32x8xbf16>
    %c4 = arith.constant 4 : index
    %c0_19 = arith.constant 0 : index
    %c0_20 = arith.constant 0 : index
    %30 = vector.load %arg4[%c4, %c0_19, %c0_20] : memref<9x8x8xbf16, #tpu.memory_space<vmem>>, vector<1x8x8xbf16>
    %31 = vector.shape_cast %30 : vector<1x8x8xbf16> to vector<8x8xbf16>
    %cst_21 = arith.constant dense<0.000000e+00> : vector<32x8xf32>
    %32 = tpu.matmul %29, %31, %cst_21 {dimension_numbers = #tpu.dot_dimension_numbers<[1], [0], [0], [1], [0, 0, 1, 1], [], []>} : vector<32x8xbf16>, vector<8x8xbf16>, vector<32x8xf32> -> vector<32x8xf32>
    %33 = arith.addf %27, %32 : vector<32x8xf32>
    %34 = vector.extract_strided_slice %4 {offsets = [1, 2, 0], sizes = [4, 8, 8], strides = [1, 1, 1]} : vector<6x10x8xbf16> to vector<4x8x8xbf16>
    %35 = vector.shape_cast %34 : vector<4x8x8xbf16> to vector<32x8xbf16>
    %c5 = arith.constant 5 : index
    %c0_22 = arith.constant 0 : index
    %c0_23 = arith.constant 0 : index
    %36 = vector.load %arg4[%c5, %c0_22, %c0_23] : memref<9x8x8xbf16, #tpu.memory_space<vmem>>, vector<1x8x8xbf16>
    %37 = vector.shape_cast %36 : vector<1x8x8xbf16> to vector<8x8xbf16>
    %cst_24 = arith.constant dense<0.000000e+00> : vector<32x8xf32>
    %38 = tpu.matmul %35, %37, %cst_24 {dimension_numbers = #tpu.dot_dimension_numbers<[1], [0], [0], [1], [0, 0, 1, 1], [], []>} : vector<32x8xbf16>, vector<8x8xbf16>, vector<32x8xf32> -> vector<32x8xf32>
    %39 = arith.addf %33, %38 : vector<32x8xf32>
    %40 = vector.extract_strided_slice %4 {offsets = [2, 0, 0], sizes = [4, 8, 8], strides = [1, 1, 1]} : vector<6x10x8xbf16> to vector<4x8x8xbf16>
    %41 = vector.shape_cast %40 : vector<4x8x8xbf16> to vector<32x8xbf16>
    %c6 = arith.constant 6 : index
    %c0_25 = arith.constant 0 : index
    %c0_26 = arith.constant 0 : index
    %42 = vector.load %arg4[%c6, %c0_25, %c0_26] : memref<9x8x8xbf16, #tpu.memory_space<vmem>>, vector<1x8x8xbf16>
    %43 = vector.shape_cast %42 : vector<1x8x8xbf16> to vector<8x8xbf16>
    %cst_27 = arith.constant dense<0.000000e+00> : vector<32x8xf32>
    %44 = tpu.matmul %41, %43, %cst_27 {dimension_numbers = #tpu.dot_dimension_numbers<[1], [0], [0], [1], [0, 0, 1, 1], [], []>} : vector<32x8xbf16>, vector<8x8xbf16>, vector<32x8xf32> -> vector<32x8xf32>
    %45 = arith.addf %39, %44 : vector<32x8xf32>
    %46 = vector.extract_strided_slice %4 {offsets = [2, 1, 0], sizes = [4, 8, 8], strides = [1, 1, 1]} : vector<6x10x8xbf16> to vector<4x8x8xbf16>
    %47 = vector.shape_cast %46 : vector<4x8x8xbf16> to vector<32x8xbf16>
    %c7 = arith.constant 7 : index
    %c0_28 = arith.constant 0 : index
    %c0_29 = arith.constant 0 : index
    %48 = vector.load %arg4[%c7, %c0_28, %c0_29] : memref<9x8x8xbf16, #tpu.memory_space<vmem>>, vector<1x8x8xbf16>
    %49 = vector.shape_cast %48 : vector<1x8x8xbf16> to vector<8x8xbf16>
    %cst_30 = arith.constant dense<0.000000e+00> : vector<32x8xf32>
    %50 = tpu.matmul %47, %49, %cst_30 {dimension_numbers = #tpu.dot_dimension_numbers<[1], [0], [0], [1], [0, 0, 1, 1], [], []>} : vector<32x8xbf16>, vector<8x8xbf16>, vector<32x8xf32> -> vector<32x8xf32>
    %51 = arith.addf %45, %50 : vector<32x8xf32>
    %52 = vector.extract_strided_slice %4 {offsets = [2, 2, 0], sizes = [4, 8, 8], strides = [1, 1, 1]} : vector<6x10x8xbf16> to vector<4x8x8xbf16>
    %53 = vector.shape_cast %52 : vector<4x8x8xbf16> to vector<32x8xbf16>
    %c8 = arith.constant 8 : index
    %c0_31 = arith.constant 0 : index
    %c0_32 = arith.constant 0 : index
    %54 = vector.load %arg4[%c8, %c0_31, %c0_32] : memref<9x8x8xbf16, #tpu.memory_space<vmem>>, vector<1x8x8xbf16>
    %55 = vector.shape_cast %54 : vector<1x8x8xbf16> to vector<8x8xbf16>
    %cst_33 = arith.constant dense<0.000000e+00> : vector<32x8xf32>
    %56 = tpu.matmul %53, %55, %cst_33 {dimension_numbers = #tpu.dot_dimension_numbers<[1], [0], [0], [1], [0, 0, 1, 1], [], []>} : vector<32x8xbf16>, vector<8x8xbf16>, vector<32x8xf32> -> vector<32x8xf32>
    %57 = arith.addf %51, %56 : vector<32x8xf32>
    %58 = vector.shape_cast %57 : vector<32x8xf32> to vector<4x8x8xf32>
    %c0_34 = arith.constant 0 : index
    %c0_35 = arith.constant 0 : index
    %59 = vector.load %arg5[%c0_34, %c0_35] : memref<1x8xf32, #tpu.memory_space<vmem>>, vector<1x8xf32>
    %60 = vector.shape_cast %59 : vector<1x8xf32> to vector<1x1x8xf32>
    %61 = vector.broadcast %60 : vector<1x1x8xf32> to vector<4x8x8xf32>
    %62 = arith.addf %58, %61 : vector<4x8x8xf32>
    %cst_36 = arith.constant 0.000000e+00 : f32
    %63 = vector.broadcast %cst_36 : f32 to vector<4x8x8xf32>
    %64 = arith.maximumf %62, %63 : vector<4x8x8xf32>
    %65 = arith.truncf %64 : vector<4x8x8xf32> to vector<4x8x8xbf16>
    %c0_37 = arith.constant 0 : index
    %c0_38 = arith.constant 0 : index
    %c0_39 = arith.constant 0 : index
    %c0_40 = arith.constant 0 : index
    %66 = vector.load %arg6[%c0_37, %c0_38, %c0_39, %c0_40] : memref<1x4x8x8xbf16, #tpu.memory_space<vmem>>, vector<1x4x8x8xbf16>
    %67 = vector.shape_cast %66 : vector<1x4x8x8xbf16> to vector<4x8x8xbf16>
    %68 = vector.shape_cast %65 : vector<4x8x8xbf16> to vector<1x4x8x8xbf16>
    tpu.vector_store %arg6[%c0_37, %c0_38, %c0_39, %c0_40], %68 {strides = array<i32>} : memref<1x4x8x8xbf16, #tpu.memory_space<vmem>>, vector<1x4x8x8xbf16>,
    %69 = vector.shape_cast %64 : vector<4x8x8xf32> to vector<2x2x8x8xf32>
    %cst_41 = arith.constant dense<0xFF800000> : vector<2x8x8xf32>
    %70 = vector.multi_reduction <maximumf>, %69, %cst_41 [1] : vector<2x2x8x8xf32> to vector<2x8x8xf32>
    %71 = vector.shape_cast %70 : vector<2x8x8xf32> to vector<2x4x2x8xf32>
    %cst_42 = arith.constant dense<0xFF800000> : vector<2x4x8xf32>
    %72 = vector.multi_reduction <maximumf>, %71, %cst_42 [2] : vector<2x4x2x8xf32> to vector<2x4x8xf32>
    %73 = arith.truncf %72 : vector<2x4x8xf32> to vector<2x4x8xbf16>
    %c0_43 = arith.constant 0 : index
    %c0_44 = arith.constant 0 : index
    %c0_45 = arith.constant 0 : index
    %c0_46 = arith.constant 0 : index
    %74 = vector.load %arg7[%c0_43, %c0_44, %c0_45, %c0_46] : memref<1x2x4x8xbf16, #tpu.memory_space<vmem>>, vector<1x2x4x8xbf16>
    %75 = vector.shape_cast %74 : vector<1x2x4x8xbf16> to vector<2x4x8xbf16>
    %76 = vector.shape_cast %73 : vector<2x4x8xbf16> to vector<1x2x4x8xbf16>
    tpu.vector_store %arg7[%c0_43, %c0_44, %c0_45, %c0_46], %76 {strides = array<i32>} : memref<1x2x4x8xbf16, #tpu.memory_space<vmem>>, vector<1x2x4x8xbf16>,
    return
  }
  func.func @transform_0(%arg0: i32, %arg1: i32) -> (i32, i32, i32, i32) {
    %c0_i32 = arith.constant 0 : i32
    %c0_i32_0 = arith.constant 0 : i32
    %c0_i32_1 = arith.constant 0 : i32
    return %arg0, %arg1, %c0_i32, %c0_i32_0 : i32, i32, i32, i32
  }
  func.func @transform_1(%arg0: i32, %arg1: i32) -> (i32, i32, i32, i32) {
    %c1_i32 = arith.constant 1 : i32
    %0 = arith.addi %arg1, %c1_i32 : i32
    %c2_i32 = arith.constant 2 : i32
    %1 = arith.muli %0, %c2_i32 : i32
    %c0_i32 = arith.constant 0 : i32
    %c0_i32_0 = arith.constant 0 : i32
    %c0_i32_1 = arith.constant 0 : i32
    return %arg0, %1, %c0_i32, %c0_i32_0 : i32, i32, i32, i32
  }
  func.func @transform_2(%arg0: i32, %arg1: i32) -> (i32, i32, i32) {
    %c0_i32 = arith.constant 0 : i32
    %c0_i32_0 = arith.constant 0 : i32
    %c0_i32_1 = arith.constant 0 : i32
    %c0_i32_2 = arith.constant 0 : i32
    return %c0_i32, %c0_i32_0, %c0_i32_1 : i32, i32, i32
  }
  func.func @transform_3(%arg0: i32, %arg1: i32) -> (i32, i32) {
    %c0_i32 = arith.constant 0 : i32
    %c0_i32_0 = arith.constant 0 : i32
    %c0_i32_1 = arith.constant 0 : i32
    return %c0_i32, %c0_i32_0 : i32, i32
  }
  func.func @transform_4(%arg0: i32, %arg1: i32) -> (i32, i32, i32, i32) {
    %c0_i32 = arith.constant 0 : i32
    %c0_i32_0 = arith.constant 0 : i32
    %c0_i32_1 = arith.constant 0 : i32
    return %arg0, %arg1, %c0_i32, %c0_i32_0 : i32, i32, i32, i32
  }
  func.func @transform_5(%arg0: i32, %arg1: i32) -> (i32, i32, i32, i32) {
    %c0_i32 = arith.constant 0 : i32
    %c0_i32_0 = arith.constant 0 : i32
    %c0_i32_1 = arith.constant 0 : i32
    return %arg0, %arg1, %c0_i32, %c0_i32_0 : i32, i32, i32, i32
  }
}

module attributes {stable_mosaic.version = 11 : i64} {
  func.func @_conv_bn_relu_kernel(%arg0: i32, %arg1: i32, %arg2: memref<1x2x6x16xbf16, #tpu.memory_space<vmem>>, %arg3: memref<1x2x6x16xbf16, #tpu.memory_space<vmem>>, %arg4: memref<9x16x16xbf16, #tpu.memory_space<vmem>>, %arg5: memref<1x16xf32, #tpu.memory_space<vmem>>, %arg6: memref<1x2x4x16xbf16, #tpu.memory_space<vmem>>, %arg7: memref<1x1x2x16xbf16, #tpu.memory_space<vmem>>) attributes {dimension_semantics = [#tpu.dimension_semantics<parallel>, #tpu.dimension_semantics<parallel>], iteration_bounds = array<i64: 2, 2>, scalar_prefetch = 0 : i64, scratch_operands = 0 : i64, tpu.core_type = #tpu.core_type<tc>, window_params = [{transform_indices = @transform_0, window_bounds = array<i64: 1, 2, 6, 16>}, {transform_indices = @transform_1, window_bounds = array<i64: 1, 2, 6, 16>}, {pipeline_mode = #tpu.pipeline_mode<synchronous>, transform_indices = @transform_2, window_bounds = array<i64: 9, 16, 16>}, {pipeline_mode = #tpu.pipeline_mode<synchronous>, transform_indices = @transform_3, window_bounds = array<i64: 1, 16>}, {transform_indices = @transform_4, window_bounds = array<i64: 1, 2, 4, 16>}, {transform_indices = @transform_5, window_bounds = array<i64: 1, 1, 2, 16>}]} {
    %c0 = arith.constant 0 : index
    %c0_0 = arith.constant 0 : index
    %c0_1 = arith.constant 0 : index
    %c0_2 = arith.constant 0 : index
    %0 = vector.load %arg2[%c0, %c0_0, %c0_1, %c0_2] : memref<1x2x6x16xbf16, #tpu.memory_space<vmem>>, vector<1x2x6x16xbf16>
    %1 = vector.shape_cast %0 : vector<1x2x6x16xbf16> to vector<2x6x16xbf16>
    %c0_3 = arith.constant 0 : index
    %c0_4 = arith.constant 0 : index
    %c0_5 = arith.constant 0 : index
    %c0_6 = arith.constant 0 : index
    %2 = vector.load %arg3[%c0_3, %c0_4, %c0_5, %c0_6] : memref<1x2x6x16xbf16, #tpu.memory_space<vmem>>, vector<1x2x6x16xbf16>
    %3 = vector.shape_cast %2 : vector<1x2x6x16xbf16> to vector<2x6x16xbf16>
    %4 = tpu.concatenate %1, %3 in 0 : vector<2x6x16xbf16>, vector<2x6x16xbf16> -> vector<4x6x16xbf16>
    %5 = vector.extract_strided_slice %4 {offsets = [0, 0, 0], sizes = [2, 4, 16], strides = [1, 1, 1]} : vector<4x6x16xbf16> to vector<2x4x16xbf16>
    %6 = vector.shape_cast %5 : vector<2x4x16xbf16> to vector<8x16xbf16>
    %c0_7 = arith.constant 0 : index
    %c0_8 = arith.constant 0 : index
    %c0_9 = arith.constant 0 : index
    %7 = vector.load %arg4[%c0_7, %c0_8, %c0_9] : memref<9x16x16xbf16, #tpu.memory_space<vmem>>, vector<1x16x16xbf16>
    %8 = vector.shape_cast %7 : vector<1x16x16xbf16> to vector<16x16xbf16>
    %cst = arith.constant dense<0.000000e+00> : vector<8x16xf32>
    %9 = tpu.matmul %6, %8, %cst {dimension_numbers = #tpu.dot_dimension_numbers<[1], [0], [0], [1], [0, 0, 1, 1], [], []>} : vector<8x16xbf16>, vector<16x16xbf16>, vector<8x16xf32> -> vector<8x16xf32>
    %10 = vector.extract_strided_slice %4 {offsets = [0, 1, 0], sizes = [2, 4, 16], strides = [1, 1, 1]} : vector<4x6x16xbf16> to vector<2x4x16xbf16>
    %11 = vector.shape_cast %10 : vector<2x4x16xbf16> to vector<8x16xbf16>
    %c1 = arith.constant 1 : index
    %c0_10 = arith.constant 0 : index
    %c0_11 = arith.constant 0 : index
    %12 = vector.load %arg4[%c1, %c0_10, %c0_11] : memref<9x16x16xbf16, #tpu.memory_space<vmem>>, vector<1x16x16xbf16>
    %13 = vector.shape_cast %12 : vector<1x16x16xbf16> to vector<16x16xbf16>
    %cst_12 = arith.constant dense<0.000000e+00> : vector<8x16xf32>
    %14 = tpu.matmul %11, %13, %cst_12 {dimension_numbers = #tpu.dot_dimension_numbers<[1], [0], [0], [1], [0, 0, 1, 1], [], []>} : vector<8x16xbf16>, vector<16x16xbf16>, vector<8x16xf32> -> vector<8x16xf32>
    %15 = arith.addf %9, %14 : vector<8x16xf32>
    %16 = vector.extract_strided_slice %4 {offsets = [0, 2, 0], sizes = [2, 4, 16], strides = [1, 1, 1]} : vector<4x6x16xbf16> to vector<2x4x16xbf16>
    %17 = vector.shape_cast %16 : vector<2x4x16xbf16> to vector<8x16xbf16>
    %c2 = arith.constant 2 : index
    %c0_13 = arith.constant 0 : index
    %c0_14 = arith.constant 0 : index
    %18 = vector.load %arg4[%c2, %c0_13, %c0_14] : memref<9x16x16xbf16, #tpu.memory_space<vmem>>, vector<1x16x16xbf16>
    %19 = vector.shape_cast %18 : vector<1x16x16xbf16> to vector<16x16xbf16>
    %cst_15 = arith.constant dense<0.000000e+00> : vector<8x16xf32>
    %20 = tpu.matmul %17, %19, %cst_15 {dimension_numbers = #tpu.dot_dimension_numbers<[1], [0], [0], [1], [0, 0, 1, 1], [], []>} : vector<8x16xbf16>, vector<16x16xbf16>, vector<8x16xf32> -> vector<8x16xf32>
    %21 = arith.addf %15, %20 : vector<8x16xf32>
    %22 = vector.extract_strided_slice %4 {offsets = [1, 0, 0], sizes = [2, 4, 16], strides = [1, 1, 1]} : vector<4x6x16xbf16> to vector<2x4x16xbf16>
    %23 = vector.shape_cast %22 : vector<2x4x16xbf16> to vector<8x16xbf16>
    %c3 = arith.constant 3 : index
    %c0_16 = arith.constant 0 : index
    %c0_17 = arith.constant 0 : index
    %24 = vector.load %arg4[%c3, %c0_16, %c0_17] : memref<9x16x16xbf16, #tpu.memory_space<vmem>>, vector<1x16x16xbf16>
    %25 = vector.shape_cast %24 : vector<1x16x16xbf16> to vector<16x16xbf16>
    %cst_18 = arith.constant dense<0.000000e+00> : vector<8x16xf32>
    %26 = tpu.matmul %23, %25, %cst_18 {dimension_numbers = #tpu.dot_dimension_numbers<[1], [0], [0], [1], [0, 0, 1, 1], [], []>} : vector<8x16xbf16>, vector<16x16xbf16>, vector<8x16xf32> -> vector<8x16xf32>
    %27 = arith.addf %21, %26 : vector<8x16xf32>
    %28 = vector.extract_strided_slice %4 {offsets = [1, 1, 0], sizes = [2, 4, 16], strides = [1, 1, 1]} : vector<4x6x16xbf16> to vector<2x4x16xbf16>
    %29 = vector.shape_cast %28 : vector<2x4x16xbf16> to vector<8x16xbf16>
    %c4 = arith.constant 4 : index
    %c0_19 = arith.constant 0 : index
    %c0_20 = arith.constant 0 : index
    %30 = vector.load %arg4[%c4, %c0_19, %c0_20] : memref<9x16x16xbf16, #tpu.memory_space<vmem>>, vector<1x16x16xbf16>
    %31 = vector.shape_cast %30 : vector<1x16x16xbf16> to vector<16x16xbf16>
    %cst_21 = arith.constant dense<0.000000e+00> : vector<8x16xf32>
    %32 = tpu.matmul %29, %31, %cst_21 {dimension_numbers = #tpu.dot_dimension_numbers<[1], [0], [0], [1], [0, 0, 1, 1], [], []>} : vector<8x16xbf16>, vector<16x16xbf16>, vector<8x16xf32> -> vector<8x16xf32>
    %33 = arith.addf %27, %32 : vector<8x16xf32>
    %34 = vector.extract_strided_slice %4 {offsets = [1, 2, 0], sizes = [2, 4, 16], strides = [1, 1, 1]} : vector<4x6x16xbf16> to vector<2x4x16xbf16>
    %35 = vector.shape_cast %34 : vector<2x4x16xbf16> to vector<8x16xbf16>
    %c5 = arith.constant 5 : index
    %c0_22 = arith.constant 0 : index
    %c0_23 = arith.constant 0 : index
    %36 = vector.load %arg4[%c5, %c0_22, %c0_23] : memref<9x16x16xbf16, #tpu.memory_space<vmem>>, vector<1x16x16xbf16>
    %37 = vector.shape_cast %36 : vector<1x16x16xbf16> to vector<16x16xbf16>
    %cst_24 = arith.constant dense<0.000000e+00> : vector<8x16xf32>
    %38 = tpu.matmul %35, %37, %cst_24 {dimension_numbers = #tpu.dot_dimension_numbers<[1], [0], [0], [1], [0, 0, 1, 1], [], []>} : vector<8x16xbf16>, vector<16x16xbf16>, vector<8x16xf32> -> vector<8x16xf32>
    %39 = arith.addf %33, %38 : vector<8x16xf32>
    %40 = vector.extract_strided_slice %4 {offsets = [2, 0, 0], sizes = [2, 4, 16], strides = [1, 1, 1]} : vector<4x6x16xbf16> to vector<2x4x16xbf16>
    %41 = vector.shape_cast %40 : vector<2x4x16xbf16> to vector<8x16xbf16>
    %c6 = arith.constant 6 : index
    %c0_25 = arith.constant 0 : index
    %c0_26 = arith.constant 0 : index
    %42 = vector.load %arg4[%c6, %c0_25, %c0_26] : memref<9x16x16xbf16, #tpu.memory_space<vmem>>, vector<1x16x16xbf16>
    %43 = vector.shape_cast %42 : vector<1x16x16xbf16> to vector<16x16xbf16>
    %cst_27 = arith.constant dense<0.000000e+00> : vector<8x16xf32>
    %44 = tpu.matmul %41, %43, %cst_27 {dimension_numbers = #tpu.dot_dimension_numbers<[1], [0], [0], [1], [0, 0, 1, 1], [], []>} : vector<8x16xbf16>, vector<16x16xbf16>, vector<8x16xf32> -> vector<8x16xf32>
    %45 = arith.addf %39, %44 : vector<8x16xf32>
    %46 = vector.extract_strided_slice %4 {offsets = [2, 1, 0], sizes = [2, 4, 16], strides = [1, 1, 1]} : vector<4x6x16xbf16> to vector<2x4x16xbf16>
    %47 = vector.shape_cast %46 : vector<2x4x16xbf16> to vector<8x16xbf16>
    %c7 = arith.constant 7 : index
    %c0_28 = arith.constant 0 : index
    %c0_29 = arith.constant 0 : index
    %48 = vector.load %arg4[%c7, %c0_28, %c0_29] : memref<9x16x16xbf16, #tpu.memory_space<vmem>>, vector<1x16x16xbf16>
    %49 = vector.shape_cast %48 : vector<1x16x16xbf16> to vector<16x16xbf16>
    %cst_30 = arith.constant dense<0.000000e+00> : vector<8x16xf32>
    %50 = tpu.matmul %47, %49, %cst_30 {dimension_numbers = #tpu.dot_dimension_numbers<[1], [0], [0], [1], [0, 0, 1, 1], [], []>} : vector<8x16xbf16>, vector<16x16xbf16>, vector<8x16xf32> -> vector<8x16xf32>
    %51 = arith.addf %45, %50 : vector<8x16xf32>
    %52 = vector.extract_strided_slice %4 {offsets = [2, 2, 0], sizes = [2, 4, 16], strides = [1, 1, 1]} : vector<4x6x16xbf16> to vector<2x4x16xbf16>
    %53 = vector.shape_cast %52 : vector<2x4x16xbf16> to vector<8x16xbf16>
    %c8 = arith.constant 8 : index
    %c0_31 = arith.constant 0 : index
    %c0_32 = arith.constant 0 : index
    %54 = vector.load %arg4[%c8, %c0_31, %c0_32] : memref<9x16x16xbf16, #tpu.memory_space<vmem>>, vector<1x16x16xbf16>
    %55 = vector.shape_cast %54 : vector<1x16x16xbf16> to vector<16x16xbf16>
    %cst_33 = arith.constant dense<0.000000e+00> : vector<8x16xf32>
    %56 = tpu.matmul %53, %55, %cst_33 {dimension_numbers = #tpu.dot_dimension_numbers<[1], [0], [0], [1], [0, 0, 1, 1], [], []>} : vector<8x16xbf16>, vector<16x16xbf16>, vector<8x16xf32> -> vector<8x16xf32>
    %57 = arith.addf %51, %56 : vector<8x16xf32>
    %58 = vector.shape_cast %57 : vector<8x16xf32> to vector<2x4x16xf32>
    %c0_34 = arith.constant 0 : index
    %c0_35 = arith.constant 0 : index
    %59 = vector.load %arg5[%c0_34, %c0_35] : memref<1x16xf32, #tpu.memory_space<vmem>>, vector<1x16xf32>
    %60 = vector.shape_cast %59 : vector<1x16xf32> to vector<1x1x16xf32>
    %61 = vector.broadcast %60 : vector<1x1x16xf32> to vector<2x4x16xf32>
    %62 = arith.addf %58, %61 : vector<2x4x16xf32>
    %cst_36 = arith.constant 0.000000e+00 : f32
    %63 = vector.broadcast %cst_36 : f32 to vector<2x4x16xf32>
    %64 = arith.maximumf %62, %63 : vector<2x4x16xf32>
    %65 = arith.truncf %64 : vector<2x4x16xf32> to vector<2x4x16xbf16>
    %c0_37 = arith.constant 0 : index
    %c0_38 = arith.constant 0 : index
    %c0_39 = arith.constant 0 : index
    %c0_40 = arith.constant 0 : index
    %66 = vector.load %arg6[%c0_37, %c0_38, %c0_39, %c0_40] : memref<1x2x4x16xbf16, #tpu.memory_space<vmem>>, vector<1x2x4x16xbf16>
    %67 = vector.shape_cast %66 : vector<1x2x4x16xbf16> to vector<2x4x16xbf16>
    %68 = vector.shape_cast %65 : vector<2x4x16xbf16> to vector<1x2x4x16xbf16>
    tpu.vector_store %arg6[%c0_37, %c0_38, %c0_39, %c0_40], %68 {strides = array<i32>} : memref<1x2x4x16xbf16, #tpu.memory_space<vmem>>, vector<1x2x4x16xbf16>,
    %69 = vector.shape_cast %64 : vector<2x4x16xf32> to vector<1x2x4x16xf32>
    %cst_41 = arith.constant dense<0xFF800000> : vector<1x4x16xf32>
    %70 = vector.multi_reduction <maximumf>, %69, %cst_41 [1] : vector<1x2x4x16xf32> to vector<1x4x16xf32>
    %71 = vector.shape_cast %70 : vector<1x4x16xf32> to vector<1x2x2x16xf32>
    %cst_42 = arith.constant dense<0xFF800000> : vector<1x2x16xf32>
    %72 = vector.multi_reduction <maximumf>, %71, %cst_42 [2] : vector<1x2x2x16xf32> to vector<1x2x16xf32>
    %73 = arith.truncf %72 : vector<1x2x16xf32> to vector<1x2x16xbf16>
    %c0_43 = arith.constant 0 : index
    %c0_44 = arith.constant 0 : index
    %c0_45 = arith.constant 0 : index
    %c0_46 = arith.constant 0 : index
    %74 = vector.load %arg7[%c0_43, %c0_44, %c0_45, %c0_46] : memref<1x1x2x16xbf16, #tpu.memory_space<vmem>>, vector<1x1x2x16xbf16>
    %75 = vector.shape_cast %74 : vector<1x1x2x16xbf16> to vector<1x2x16xbf16>
    %76 = vector.shape_cast %73 : vector<1x2x16xbf16> to vector<1x1x2x16xbf16>
    tpu.vector_store %arg7[%c0_43, %c0_44, %c0_45, %c0_46], %76 {strides = array<i32>} : memref<1x1x2x16xbf16, #tpu.memory_space<vmem>>, vector<1x1x2x16xbf16>,
    return
  }
  func.func @transform_0(%arg0: i32, %arg1: i32) -> (i32, i32, i32, i32) {
    %c0_i32 = arith.constant 0 : i32
    %c0_i32_0 = arith.constant 0 : i32
    %c0_i32_1 = arith.constant 0 : i32
    return %arg0, %arg1, %c0_i32, %c0_i32_0 : i32, i32, i32, i32
  }
  func.func @transform_1(%arg0: i32, %arg1: i32) -> (i32, i32, i32, i32) {
    %c1_i32 = arith.constant 1 : i32
    %0 = arith.addi %arg1, %c1_i32 : i32
    %c1_i32_0 = arith.constant 1 : i32
    %1 = arith.muli %0, %c1_i32_0 : i32
    %c0_i32 = arith.constant 0 : i32
    %c0_i32_1 = arith.constant 0 : i32
    %c0_i32_2 = arith.constant 0 : i32
    return %arg0, %1, %c0_i32, %c0_i32_1 : i32, i32, i32, i32
  }
  func.func @transform_2(%arg0: i32, %arg1: i32) -> (i32, i32, i32) {
    %c0_i32 = arith.constant 0 : i32
    %c0_i32_0 = arith.constant 0 : i32
    %c0_i32_1 = arith.constant 0 : i32
    %c0_i32_2 = arith.constant 0 : i32
    return %c0_i32, %c0_i32_0, %c0_i32_1 : i32, i32, i32
  }
  func.func @transform_3(%arg0: i32, %arg1: i32) -> (i32, i32) {
    %c0_i32 = arith.constant 0 : i32
    %c0_i32_0 = arith.constant 0 : i32
    %c0_i32_1 = arith.constant 0 : i32
    return %c0_i32, %c0_i32_0 : i32, i32
  }
  func.func @transform_4(%arg0: i32, %arg1: i32) -> (i32, i32, i32, i32) {
    %c0_i32 = arith.constant 0 : i32
    %c0_i32_0 = arith.constant 0 : i32
    %c0_i32_1 = arith.constant 0 : i32
    return %arg0, %arg1, %c0_i32, %c0_i32_0 : i32, i32, i32, i32
  }
  func.func @transform_5(%arg0: i32, %arg1: i32) -> (i32, i32, i32, i32) {
    %c0_i32 = arith.constant 0 : i32
    %c0_i32_0 = arith.constant 0 : i32
    %c0_i32_1 = arith.constant 0 : i32
    return %arg0, %arg1, %c0_i32, %c0_i32_0 : i32, i32, i32, i32
  }
}

module attributes {stable_mosaic.version = 11 : i64} {
  func.func @_conv_bn_relu_kernel(%arg0: i32, %arg1: i32, %arg2: memref<1x2x4x16xbf16, #tpu.memory_space<vmem>>, %arg3: memref<1x2x4x16xbf16, #tpu.memory_space<vmem>>, %arg4: memref<9x16x32xbf16, #tpu.memory_space<vmem>>, %arg5: memref<1x32xf32, #tpu.memory_space<vmem>>, %arg6: memref<1x2x2x32xbf16, #tpu.memory_space<vmem>>) attributes {dimension_semantics = [#tpu.dimension_semantics<parallel>, #tpu.dimension_semantics<parallel>], iteration_bounds = array<i64: 2, 1>, scalar_prefetch = 0 : i64, scratch_operands = 0 : i64, tpu.core_type = #tpu.core_type<tc>, window_params = [{transform_indices = @transform_0, window_bounds = array<i64: 1, 2, 4, 16>}, {transform_indices = @transform_1, window_bounds = array<i64: 1, 2, 4, 16>}, {pipeline_mode = #tpu.pipeline_mode<synchronous>, transform_indices = @transform_2, window_bounds = array<i64: 9, 16, 32>}, {pipeline_mode = #tpu.pipeline_mode<synchronous>, transform_indices = @transform_3, window_bounds = array<i64: 1, 32>}, {transform_indices = @transform_4, window_bounds = array<i64: 1, 2, 2, 32>}]} {
    %c0 = arith.constant 0 : index
    %c0_0 = arith.constant 0 : index
    %c0_1 = arith.constant 0 : index
    %c0_2 = arith.constant 0 : index
    %0 = vector.load %arg2[%c0, %c0_0, %c0_1, %c0_2] : memref<1x2x4x16xbf16, #tpu.memory_space<vmem>>, vector<1x2x4x16xbf16>
    %1 = vector.shape_cast %0 : vector<1x2x4x16xbf16> to vector<2x4x16xbf16>
    %c0_3 = arith.constant 0 : index
    %c0_4 = arith.constant 0 : index
    %c0_5 = arith.constant 0 : index
    %c0_6 = arith.constant 0 : index
    %2 = vector.load %arg3[%c0_3, %c0_4, %c0_5, %c0_6] : memref<1x2x4x16xbf16, #tpu.memory_space<vmem>>, vector<1x2x4x16xbf16>
    %3 = vector.shape_cast %2 : vector<1x2x4x16xbf16> to vector<2x4x16xbf16>
    %4 = tpu.concatenate %1, %3 in 0 : vector<2x4x16xbf16>, vector<2x4x16xbf16> -> vector<4x4x16xbf16>
    %5 = vector.extract_strided_slice %4 {offsets = [0, 0, 0], sizes = [2, 2, 16], strides = [1, 1, 1]} : vector<4x4x16xbf16> to vector<2x2x16xbf16>
    %6 = vector.shape_cast %5 : vector<2x2x16xbf16> to vector<4x16xbf16>
    %c0_7 = arith.constant 0 : index
    %c0_8 = arith.constant 0 : index
    %c0_9 = arith.constant 0 : index
    %7 = vector.load %arg4[%c0_7, %c0_8, %c0_9] : memref<9x16x32xbf16, #tpu.memory_space<vmem>>, vector<1x16x32xbf16>
    %8 = vector.shape_cast %7 : vector<1x16x32xbf16> to vector<16x32xbf16>
    %cst = arith.constant dense<0.000000e+00> : vector<4x32xf32>
    %9 = tpu.matmul %6, %8, %cst {dimension_numbers = #tpu.dot_dimension_numbers<[1], [0], [0], [1], [0, 0, 1, 1], [], []>} : vector<4x16xbf16>, vector<16x32xbf16>, vector<4x32xf32> -> vector<4x32xf32>
    %10 = vector.extract_strided_slice %4 {offsets = [0, 1, 0], sizes = [2, 2, 16], strides = [1, 1, 1]} : vector<4x4x16xbf16> to vector<2x2x16xbf16>
    %11 = vector.shape_cast %10 : vector<2x2x16xbf16> to vector<4x16xbf16>
    %c1 = arith.constant 1 : index
    %c0_10 = arith.constant 0 : index
    %c0_11 = arith.constant 0 : index
    %12 = vector.load %arg4[%c1, %c0_10, %c0_11] : memref<9x16x32xbf16, #tpu.memory_space<vmem>>, vector<1x16x32xbf16>
    %13 = vector.shape_cast %12 : vector<1x16x32xbf16> to vector<16x32xbf16>
    %cst_12 = arith.constant dense<0.000000e+00> : vector<4x32xf32>
    %14 = tpu.matmul %11, %13, %cst_12 {dimension_numbers = #tpu.dot_dimension_numbers<[1], [0], [0], [1], [0, 0, 1, 1], [], []>} : vector<4x16xbf16>, vector<16x32xbf16>, vector<4x32xf32> -> vector<4x32xf32>
    %15 = arith.addf %9, %14 : vector<4x32xf32>
    %16 = vector.extract_strided_slice %4 {offsets = [0, 2, 0], sizes = [2, 2, 16], strides = [1, 1, 1]} : vector<4x4x16xbf16> to vector<2x2x16xbf16>
    %17 = vector.shape_cast %16 : vector<2x2x16xbf16> to vector<4x16xbf16>
    %c2 = arith.constant 2 : index
    %c0_13 = arith.constant 0 : index
    %c0_14 = arith.constant 0 : index
    %18 = vector.load %arg4[%c2, %c0_13, %c0_14] : memref<9x16x32xbf16, #tpu.memory_space<vmem>>, vector<1x16x32xbf16>
    %19 = vector.shape_cast %18 : vector<1x16x32xbf16> to vector<16x32xbf16>
    %cst_15 = arith.constant dense<0.000000e+00> : vector<4x32xf32>
    %20 = tpu.matmul %17, %19, %cst_15 {dimension_numbers = #tpu.dot_dimension_numbers<[1], [0], [0], [1], [0, 0, 1, 1], [], []>} : vector<4x16xbf16>, vector<16x32xbf16>, vector<4x32xf32> -> vector<4x32xf32>
    %21 = arith.addf %15, %20 : vector<4x32xf32>
    %22 = vector.extract_strided_slice %4 {offsets = [1, 0, 0], sizes = [2, 2, 16], strides = [1, 1, 1]} : vector<4x4x16xbf16> to vector<2x2x16xbf16>
    %23 = vector.shape_cast %22 : vector<2x2x16xbf16> to vector<4x16xbf16>
    %c3 = arith.constant 3 : index
    %c0_16 = arith.constant 0 : index
    %c0_17 = arith.constant 0 : index
    %24 = vector.load %arg4[%c3, %c0_16, %c0_17] : memref<9x16x32xbf16, #tpu.memory_space<vmem>>, vector<1x16x32xbf16>
    %25 = vector.shape_cast %24 : vector<1x16x32xbf16> to vector<16x32xbf16>
    %cst_18 = arith.constant dense<0.000000e+00> : vector<4x32xf32>
    %26 = tpu.matmul %23, %25, %cst_18 {dimension_numbers = #tpu.dot_dimension_numbers<[1], [0], [0], [1], [0, 0, 1, 1], [], []>} : vector<4x16xbf16>, vector<16x32xbf16>, vector<4x32xf32> -> vector<4x32xf32>
    %27 = arith.addf %21, %26 : vector<4x32xf32>
    %28 = vector.extract_strided_slice %4 {offsets = [1, 1, 0], sizes = [2, 2, 16], strides = [1, 1, 1]} : vector<4x4x16xbf16> to vector<2x2x16xbf16>
    %29 = vector.shape_cast %28 : vector<2x2x16xbf16> to vector<4x16xbf16>
    %c4 = arith.constant 4 : index
    %c0_19 = arith.constant 0 : index
    %c0_20 = arith.constant 0 : index
    %30 = vector.load %arg4[%c4, %c0_19, %c0_20] : memref<9x16x32xbf16, #tpu.memory_space<vmem>>, vector<1x16x32xbf16>
    %31 = vector.shape_cast %30 : vector<1x16x32xbf16> to vector<16x32xbf16>
    %cst_21 = arith.constant dense<0.000000e+00> : vector<4x32xf32>
    %32 = tpu.matmul %29, %31, %cst_21 {dimension_numbers = #tpu.dot_dimension_numbers<[1], [0], [0], [1], [0, 0, 1, 1], [], []>} : vector<4x16xbf16>, vector<16x32xbf16>, vector<4x32xf32> -> vector<4x32xf32>
    %33 = arith.addf %27, %32 : vector<4x32xf32>
    %34 = vector.extract_strided_slice %4 {offsets = [1, 2, 0], sizes = [2, 2, 16], strides = [1, 1, 1]} : vector<4x4x16xbf16> to vector<2x2x16xbf16>
    %35 = vector.shape_cast %34 : vector<2x2x16xbf16> to vector<4x16xbf16>
    %c5 = arith.constant 5 : index
    %c0_22 = arith.constant 0 : index
    %c0_23 = arith.constant 0 : index
    %36 = vector.load %arg4[%c5, %c0_22, %c0_23] : memref<9x16x32xbf16, #tpu.memory_space<vmem>>, vector<1x16x32xbf16>
    %37 = vector.shape_cast %36 : vector<1x16x32xbf16> to vector<16x32xbf16>
    %cst_24 = arith.constant dense<0.000000e+00> : vector<4x32xf32>
    %38 = tpu.matmul %35, %37, %cst_24 {dimension_numbers = #tpu.dot_dimension_numbers<[1], [0], [0], [1], [0, 0, 1, 1], [], []>} : vector<4x16xbf16>, vector<16x32xbf16>, vector<4x32xf32> -> vector<4x32xf32>
    %39 = arith.addf %33, %38 : vector<4x32xf32>
    %40 = vector.extract_strided_slice %4 {offsets = [2, 0, 0], sizes = [2, 2, 16], strides = [1, 1, 1]} : vector<4x4x16xbf16> to vector<2x2x16xbf16>
    %41 = vector.shape_cast %40 : vector<2x2x16xbf16> to vector<4x16xbf16>
    %c6 = arith.constant 6 : index
    %c0_25 = arith.constant 0 : index
    %c0_26 = arith.constant 0 : index
    %42 = vector.load %arg4[%c6, %c0_25, %c0_26] : memref<9x16x32xbf16, #tpu.memory_space<vmem>>, vector<1x16x32xbf16>
    %43 = vector.shape_cast %42 : vector<1x16x32xbf16> to vector<16x32xbf16>
    %cst_27 = arith.constant dense<0.000000e+00> : vector<4x32xf32>
    %44 = tpu.matmul %41, %43, %cst_27 {dimension_numbers = #tpu.dot_dimension_numbers<[1], [0], [0], [1], [0, 0, 1, 1], [], []>} : vector<4x16xbf16>, vector<16x32xbf16>, vector<4x32xf32> -> vector<4x32xf32>
    %45 = arith.addf %39, %44 : vector<4x32xf32>
    %46 = vector.extract_strided_slice %4 {offsets = [2, 1, 0], sizes = [2, 2, 16], strides = [1, 1, 1]} : vector<4x4x16xbf16> to vector<2x2x16xbf16>
    %47 = vector.shape_cast %46 : vector<2x2x16xbf16> to vector<4x16xbf16>
    %c7 = arith.constant 7 : index
    %c0_28 = arith.constant 0 : index
    %c0_29 = arith.constant 0 : index
    %48 = vector.load %arg4[%c7, %c0_28, %c0_29] : memref<9x16x32xbf16, #tpu.memory_space<vmem>>, vector<1x16x32xbf16>
    %49 = vector.shape_cast %48 : vector<1x16x32xbf16> to vector<16x32xbf16>
    %cst_30 = arith.constant dense<0.000000e+00> : vector<4x32xf32>
    %50 = tpu.matmul %47, %49, %cst_30 {dimension_numbers = #tpu.dot_dimension_numbers<[1], [0], [0], [1], [0, 0, 1, 1], [], []>} : vector<4x16xbf16>, vector<16x32xbf16>, vector<4x32xf32> -> vector<4x32xf32>
    %51 = arith.addf %45, %50 : vector<4x32xf32>
    %52 = vector.extract_strided_slice %4 {offsets = [2, 2, 0], sizes = [2, 2, 16], strides = [1, 1, 1]} : vector<4x4x16xbf16> to vector<2x2x16xbf16>
    %53 = vector.shape_cast %52 : vector<2x2x16xbf16> to vector<4x16xbf16>
    %c8 = arith.constant 8 : index
    %c0_31 = arith.constant 0 : index
    %c0_32 = arith.constant 0 : index
    %54 = vector.load %arg4[%c8, %c0_31, %c0_32] : memref<9x16x32xbf16, #tpu.memory_space<vmem>>, vector<1x16x32xbf16>
    %55 = vector.shape_cast %54 : vector<1x16x32xbf16> to vector<16x32xbf16>
    %cst_33 = arith.constant dense<0.000000e+00> : vector<4x32xf32>
    %56 = tpu.matmul %53, %55, %cst_33 {dimension_numbers = #tpu.dot_dimension_numbers<[1], [0], [0], [1], [0, 0, 1, 1], [], []>} : vector<4x16xbf16>, vector<16x32xbf16>, vector<4x32xf32> -> vector<4x32xf32>
    %57 = arith.addf %51, %56 : vector<4x32xf32>
    %58 = vector.shape_cast %57 : vector<4x32xf32> to vector<2x2x32xf32>
    %c0_34 = arith.constant 0 : index
    %c0_35 = arith.constant 0 : index
    %59 = vector.load %arg5[%c0_34, %c0_35] : memref<1x32xf32, #tpu.memory_space<vmem>>, vector<1x32xf32>
    %60 = vector.shape_cast %59 : vector<1x32xf32> to vector<1x1x32xf32>
    %61 = vector.broadcast %60 : vector<1x1x32xf32> to vector<2x2x32xf32>
    %62 = arith.addf %58, %61 : vector<2x2x32xf32>
    %cst_36 = arith.constant 0.000000e+00 : f32
    %63 = vector.broadcast %cst_36 : f32 to vector<2x2x32xf32>
    %64 = arith.maximumf %62, %63 : vector<2x2x32xf32>
    %65 = arith.truncf %64 : vector<2x2x32xf32> to vector<2x2x32xbf16>
    %c0_37 = arith.constant 0 : index
    %c0_38 = arith.constant 0 : index
    %c0_39 = arith.constant 0 : index
    %c0_40 = arith.constant 0 : index
    %66 = vector.load %arg6[%c0_37, %c0_38, %c0_39, %c0_40] : memref<1x2x2x32xbf16, #tpu.memory_space<vmem>>, vector<1x2x2x32xbf16>
    %67 = vector.shape_cast %66 : vector<1x2x2x32xbf16> to vector<2x2x32xbf16>
    %68 = vector.shape_cast %65 : vector<2x2x32xbf16> to vector<1x2x2x32xbf16>
    tpu.vector_store %arg6[%c0_37, %c0_38, %c0_39, %c0_40], %68 {strides = array<i32>} : memref<1x2x2x32xbf16, #tpu.memory_space<vmem>>, vector<1x2x2x32xbf16>,
    return
  }
  func.func @transform_0(%arg0: i32, %arg1: i32) -> (i32, i32, i32, i32) {
    %c0_i32 = arith.constant 0 : i32
    %c0_i32_0 = arith.constant 0 : i32
    %c0_i32_1 = arith.constant 0 : i32
    return %arg0, %arg1, %c0_i32, %c0_i32_0 : i32, i32, i32, i32
  }
  func.func @transform_1(%arg0: i32, %arg1: i32) -> (i32, i32, i32, i32) {
    %c1_i32 = arith.constant 1 : i32
    %0 = arith.addi %arg1, %c1_i32 : i32
    %c1_i32_0 = arith.constant 1 : i32
    %1 = arith.muli %0, %c1_i32_0 : i32
    %c0_i32 = arith.constant 0 : i32
    %c0_i32_1 = arith.constant 0 : i32
    %c0_i32_2 = arith.constant 0 : i32
    return %arg0, %1, %c0_i32, %c0_i32_1 : i32, i32, i32, i32
  }
  func.func @transform_2(%arg0: i32, %arg1: i32) -> (i32, i32, i32) {
    %c0_i32 = arith.constant 0 : i32
    %c0_i32_0 = arith.constant 0 : i32
    %c0_i32_1 = arith.constant 0 : i32
    %c0_i32_2 = arith.constant 0 : i32
    return %c0_i32, %c0_i32_0, %c0_i32_1 : i32, i32, i32
  }
  func.func @transform_3(%arg0: i32, %arg1: i32) -> (i32, i32) {
    %c0_i32 = arith.constant 0 : i32
    %c0_i32_0 = arith.constant 0 : i32
    %c0_i32_1 = arith.constant 0 : i32
    return %c0_i32, %c0_i32_0 : i32, i32
  }
  func.func @transform_4(%arg0: i32, %arg1: i32) -> (i32, i32, i32, i32) {
    %c0_i32 = arith.constant 0 : i32
    %c0_i32_0 = arith.constant 0 : i32
    %c0_i32_1 = arith.constant 0 : i32
    return %arg0, %arg1, %c0_i32, %c0_i32_0 : i32, i32, i32, i32
  }
}

module attributes {stable_mosaic.version = 11 : i64} {
  func.func @_conv_bn_relu_kernel(%arg0: i32, %arg1: i32, %arg2: memref<1x2x6x8xbf16, #tpu.memory_space<vmem>>, %arg3: memref<1x2x6x8xbf16, #tpu.memory_space<vmem>>, %arg4: memref<9x8x16xbf16, #tpu.memory_space<vmem>>, %arg5: memref<1x16xf32, #tpu.memory_space<vmem>>, %arg6: memref<1x2x4x16xbf16, #tpu.memory_space<vmem>>) attributes {dimension_semantics = [#tpu.dimension_semantics<parallel>, #tpu.dimension_semantics<parallel>], iteration_bounds = array<i64: 2, 2>, scalar_prefetch = 0 : i64, scratch_operands = 0 : i64, tpu.core_type = #tpu.core_type<tc>, window_params = [{transform_indices = @transform_0, window_bounds = array<i64: 1, 2, 6, 8>}, {transform_indices = @transform_1, window_bounds = array<i64: 1, 2, 6, 8>}, {pipeline_mode = #tpu.pipeline_mode<synchronous>, transform_indices = @transform_2, window_bounds = array<i64: 9, 8, 16>}, {pipeline_mode = #tpu.pipeline_mode<synchronous>, transform_indices = @transform_3, window_bounds = array<i64: 1, 16>}, {transform_indices = @transform_4, window_bounds = array<i64: 1, 2, 4, 16>}]} {
    %c0 = arith.constant 0 : index
    %c0_0 = arith.constant 0 : index
    %c0_1 = arith.constant 0 : index
    %c0_2 = arith.constant 0 : index
    %0 = vector.load %arg2[%c0, %c0_0, %c0_1, %c0_2] : memref<1x2x6x8xbf16, #tpu.memory_space<vmem>>, vector<1x2x6x8xbf16>
    %1 = vector.shape_cast %0 : vector<1x2x6x8xbf16> to vector<2x6x8xbf16>
    %c0_3 = arith.constant 0 : index
    %c0_4 = arith.constant 0 : index
    %c0_5 = arith.constant 0 : index
    %c0_6 = arith.constant 0 : index
    %2 = vector.load %arg3[%c0_3, %c0_4, %c0_5, %c0_6] : memref<1x2x6x8xbf16, #tpu.memory_space<vmem>>, vector<1x2x6x8xbf16>
    %3 = vector.shape_cast %2 : vector<1x2x6x8xbf16> to vector<2x6x8xbf16>
    %4 = tpu.concatenate %1, %3 in 0 : vector<2x6x8xbf16>, vector<2x6x8xbf16> -> vector<4x6x8xbf16>
    %5 = vector.extract_strided_slice %4 {offsets = [0, 0, 0], sizes = [2, 4, 8], strides = [1, 1, 1]} : vector<4x6x8xbf16> to vector<2x4x8xbf16>
    %6 = vector.shape_cast %5 : vector<2x4x8xbf16> to vector<8x8xbf16>
    %c0_7 = arith.constant 0 : index
    %c0_8 = arith.constant 0 : index
    %c0_9 = arith.constant 0 : index
    %7 = vector.load %arg4[%c0_7, %c0_8, %c0_9] : memref<9x8x16xbf16, #tpu.memory_space<vmem>>, vector<1x8x16xbf16>
    %8 = vector.shape_cast %7 : vector<1x8x16xbf16> to vector<8x16xbf16>
    %cst = arith.constant dense<0.000000e+00> : vector<8x16xf32>
    %9 = tpu.matmul %6, %8, %cst {dimension_numbers = #tpu.dot_dimension_numbers<[1], [0], [0], [1], [0, 0, 1, 1], [], []>} : vector<8x8xbf16>, vector<8x16xbf16>, vector<8x16xf32> -> vector<8x16xf32>
    %10 = vector.extract_strided_slice %4 {offsets = [0, 1, 0], sizes = [2, 4, 8], strides = [1, 1, 1]} : vector<4x6x8xbf16> to vector<2x4x8xbf16>
    %11 = vector.shape_cast %10 : vector<2x4x8xbf16> to vector<8x8xbf16>
    %c1 = arith.constant 1 : index
    %c0_10 = arith.constant 0 : index
    %c0_11 = arith.constant 0 : index
    %12 = vector.load %arg4[%c1, %c0_10, %c0_11] : memref<9x8x16xbf16, #tpu.memory_space<vmem>>, vector<1x8x16xbf16>
    %13 = vector.shape_cast %12 : vector<1x8x16xbf16> to vector<8x16xbf16>
    %cst_12 = arith.constant dense<0.000000e+00> : vector<8x16xf32>
    %14 = tpu.matmul %11, %13, %cst_12 {dimension_numbers = #tpu.dot_dimension_numbers<[1], [0], [0], [1], [0, 0, 1, 1], [], []>} : vector<8x8xbf16>, vector<8x16xbf16>, vector<8x16xf32> -> vector<8x16xf32>
    %15 = arith.addf %9, %14 : vector<8x16xf32>
    %16 = vector.extract_strided_slice %4 {offsets = [0, 2, 0], sizes = [2, 4, 8], strides = [1, 1, 1]} : vector<4x6x8xbf16> to vector<2x4x8xbf16>
    %17 = vector.shape_cast %16 : vector<2x4x8xbf16> to vector<8x8xbf16>
    %c2 = arith.constant 2 : index
    %c0_13 = arith.constant 0 : index
    %c0_14 = arith.constant 0 : index
    %18 = vector.load %arg4[%c2, %c0_13, %c0_14] : memref<9x8x16xbf16, #tpu.memory_space<vmem>>, vector<1x8x16xbf16>
    %19 = vector.shape_cast %18 : vector<1x8x16xbf16> to vector<8x16xbf16>
    %cst_15 = arith.constant dense<0.000000e+00> : vector<8x16xf32>
    %20 = tpu.matmul %17, %19, %cst_15 {dimension_numbers = #tpu.dot_dimension_numbers<[1], [0], [0], [1], [0, 0, 1, 1], [], []>} : vector<8x8xbf16>, vector<8x16xbf16>, vector<8x16xf32> -> vector<8x16xf32>
    %21 = arith.addf %15, %20 : vector<8x16xf32>
    %22 = vector.extract_strided_slice %4 {offsets = [1, 0, 0], sizes = [2, 4, 8], strides = [1, 1, 1]} : vector<4x6x8xbf16> to vector<2x4x8xbf16>
    %23 = vector.shape_cast %22 : vector<2x4x8xbf16> to vector<8x8xbf16>
    %c3 = arith.constant 3 : index
    %c0_16 = arith.constant 0 : index
    %c0_17 = arith.constant 0 : index
    %24 = vector.load %arg4[%c3, %c0_16, %c0_17] : memref<9x8x16xbf16, #tpu.memory_space<vmem>>, vector<1x8x16xbf16>
    %25 = vector.shape_cast %24 : vector<1x8x16xbf16> to vector<8x16xbf16>
    %cst_18 = arith.constant dense<0.000000e+00> : vector<8x16xf32>
    %26 = tpu.matmul %23, %25, %cst_18 {dimension_numbers = #tpu.dot_dimension_numbers<[1], [0], [0], [1], [0, 0, 1, 1], [], []>} : vector<8x8xbf16>, vector<8x16xbf16>, vector<8x16xf32> -> vector<8x16xf32>
    %27 = arith.addf %21, %26 : vector<8x16xf32>
    %28 = vector.extract_strided_slice %4 {offsets = [1, 1, 0], sizes = [2, 4, 8], strides = [1, 1, 1]} : vector<4x6x8xbf16> to vector<2x4x8xbf16>
    %29 = vector.shape_cast %28 : vector<2x4x8xbf16> to vector<8x8xbf16>
    %c4 = arith.constant 4 : index
    %c0_19 = arith.constant 0 : index
    %c0_20 = arith.constant 0 : index
    %30 = vector.load %arg4[%c4, %c0_19, %c0_20] : memref<9x8x16xbf16, #tpu.memory_space<vmem>>, vector<1x8x16xbf16>
    %31 = vector.shape_cast %30 : vector<1x8x16xbf16> to vector<8x16xbf16>
    %cst_21 = arith.constant dense<0.000000e+00> : vector<8x16xf32>
    %32 = tpu.matmul %29, %31, %cst_21 {dimension_numbers = #tpu.dot_dimension_numbers<[1], [0], [0], [1], [0, 0, 1, 1], [], []>} : vector<8x8xbf16>, vector<8x16xbf16>, vector<8x16xf32> -> vector<8x16xf32>
    %33 = arith.addf %27, %32 : vector<8x16xf32>
    %34 = vector.extract_strided_slice %4 {offsets = [1, 2, 0], sizes = [2, 4, 8], strides = [1, 1, 1]} : vector<4x6x8xbf16> to vector<2x4x8xbf16>
    %35 = vector.shape_cast %34 : vector<2x4x8xbf16> to vector<8x8xbf16>
    %c5 = arith.constant 5 : index
    %c0_22 = arith.constant 0 : index
    %c0_23 = arith.constant 0 : index
    %36 = vector.load %arg4[%c5, %c0_22, %c0_23] : memref<9x8x16xbf16, #tpu.memory_space<vmem>>, vector<1x8x16xbf16>
    %37 = vector.shape_cast %36 : vector<1x8x16xbf16> to vector<8x16xbf16>
    %cst_24 = arith.constant dense<0.000000e+00> : vector<8x16xf32>
    %38 = tpu.matmul %35, %37, %cst_24 {dimension_numbers = #tpu.dot_dimension_numbers<[1], [0], [0], [1], [0, 0, 1, 1], [], []>} : vector<8x8xbf16>, vector<8x16xbf16>, vector<8x16xf32> -> vector<8x16xf32>
    %39 = arith.addf %33, %38 : vector<8x16xf32>
    %40 = vector.extract_strided_slice %4 {offsets = [2, 0, 0], sizes = [2, 4, 8], strides = [1, 1, 1]} : vector<4x6x8xbf16> to vector<2x4x8xbf16>
    %41 = vector.shape_cast %40 : vector<2x4x8xbf16> to vector<8x8xbf16>
    %c6 = arith.constant 6 : index
    %c0_25 = arith.constant 0 : index
    %c0_26 = arith.constant 0 : index
    %42 = vector.load %arg4[%c6, %c0_25, %c0_26] : memref<9x8x16xbf16, #tpu.memory_space<vmem>>, vector<1x8x16xbf16>
    %43 = vector.shape_cast %42 : vector<1x8x16xbf16> to vector<8x16xbf16>
    %cst_27 = arith.constant dense<0.000000e+00> : vector<8x16xf32>
    %44 = tpu.matmul %41, %43, %cst_27 {dimension_numbers = #tpu.dot_dimension_numbers<[1], [0], [0], [1], [0, 0, 1, 1], [], []>} : vector<8x8xbf16>, vector<8x16xbf16>, vector<8x16xf32> -> vector<8x16xf32>
    %45 = arith.addf %39, %44 : vector<8x16xf32>
    %46 = vector.extract_strided_slice %4 {offsets = [2, 1, 0], sizes = [2, 4, 8], strides = [1, 1, 1]} : vector<4x6x8xbf16> to vector<2x4x8xbf16>
    %47 = vector.shape_cast %46 : vector<2x4x8xbf16> to vector<8x8xbf16>
    %c7 = arith.constant 7 : index
    %c0_28 = arith.constant 0 : index
    %c0_29 = arith.constant 0 : index
    %48 = vector.load %arg4[%c7, %c0_28, %c0_29] : memref<9x8x16xbf16, #tpu.memory_space<vmem>>, vector<1x8x16xbf16>
    %49 = vector.shape_cast %48 : vector<1x8x16xbf16> to vector<8x16xbf16>
    %cst_30 = arith.constant dense<0.000000e+00> : vector<8x16xf32>
    %50 = tpu.matmul %47, %49, %cst_30 {dimension_numbers = #tpu.dot_dimension_numbers<[1], [0], [0], [1], [0, 0, 1, 1], [], []>} : vector<8x8xbf16>, vector<8x16xbf16>, vector<8x16xf32> -> vector<8x16xf32>
    %51 = arith.addf %45, %50 : vector<8x16xf32>
    %52 = vector.extract_strided_slice %4 {offsets = [2, 2, 0], sizes = [2, 4, 8], strides = [1, 1, 1]} : vector<4x6x8xbf16> to vector<2x4x8xbf16>
    %53 = vector.shape_cast %52 : vector<2x4x8xbf16> to vector<8x8xbf16>
    %c8 = arith.constant 8 : index
    %c0_31 = arith.constant 0 : index
    %c0_32 = arith.constant 0 : index
    %54 = vector.load %arg4[%c8, %c0_31, %c0_32] : memref<9x8x16xbf16, #tpu.memory_space<vmem>>, vector<1x8x16xbf16>
    %55 = vector.shape_cast %54 : vector<1x8x16xbf16> to vector<8x16xbf16>
    %cst_33 = arith.constant dense<0.000000e+00> : vector<8x16xf32>
    %56 = tpu.matmul %53, %55, %cst_33 {dimension_numbers = #tpu.dot_dimension_numbers<[1], [0], [0], [1], [0, 0, 1, 1], [], []>} : vector<8x8xbf16>, vector<8x16xbf16>, vector<8x16xf32> -> vector<8x16xf32>
    %57 = arith.addf %51, %56 : vector<8x16xf32>
    %58 = vector.shape_cast %57 : vector<8x16xf32> to vector<2x4x16xf32>
    %c0_34 = arith.constant 0 : index
    %c0_35 = arith.constant 0 : index
    %59 = vector.load %arg5[%c0_34, %c0_35] : memref<1x16xf32, #tpu.memory_space<vmem>>, vector<1x16xf32>
    %60 = vector.shape_cast %59 : vector<1x16xf32> to vector<1x1x16xf32>
    %61 = vector.broadcast %60 : vector<1x1x16xf32> to vector<2x4x16xf32>
    %62 = arith.addf %58, %61 : vector<2x4x16xf32>
    %cst_36 = arith.constant 0.000000e+00 : f32
    %63 = vector.broadcast %cst_36 : f32 to vector<2x4x16xf32>
    %64 = arith.maximumf %62, %63 : vector<2x4x16xf32>
    %65 = arith.truncf %64 : vector<2x4x16xf32> to vector<2x4x16xbf16>
    %c0_37 = arith.constant 0 : index
    %c0_38 = arith.constant 0 : index
    %c0_39 = arith.constant 0 : index
    %c0_40 = arith.constant 0 : index
    %66 = vector.load %arg6[%c0_37, %c0_38, %c0_39, %c0_40] : memref<1x2x4x16xbf16, #tpu.memory_space<vmem>>, vector<1x2x4x16xbf16>
    %67 = vector.shape_cast %66 : vector<1x2x4x16xbf16> to vector<2x4x16xbf16>
    %68 = vector.shape_cast %65 : vector<2x4x16xbf16> to vector<1x2x4x16xbf16>
    tpu.vector_store %arg6[%c0_37, %c0_38, %c0_39, %c0_40], %68 {strides = array<i32>} : memref<1x2x4x16xbf16, #tpu.memory_space<vmem>>, vector<1x2x4x16xbf16>,
    return
  }
  func.func @transform_0(%arg0: i32, %arg1: i32) -> (i32, i32, i32, i32) {
    %c0_i32 = arith.constant 0 : i32
    %c0_i32_0 = arith.constant 0 : i32
    %c0_i32_1 = arith.constant 0 : i32
    return %arg0, %arg1, %c0_i32, %c0_i32_0 : i32, i32, i32, i32
  }
  func.func @transform_1(%arg0: i32, %arg1: i32) -> (i32, i32, i32, i32) {
    %c1_i32 = arith.constant 1 : i32
    %0 = arith.addi %arg1, %c1_i32 : i32
    %c1_i32_0 = arith.constant 1 : i32
    %1 = arith.muli %0, %c1_i32_0 : i32
    %c0_i32 = arith.constant 0 : i32
    %c0_i32_1 = arith.constant 0 : i32
    %c0_i32_2 = arith.constant 0 : i32
    return %arg0, %1, %c0_i32, %c0_i32_1 : i32, i32, i32, i32
  }
  func.func @transform_2(%arg0: i32, %arg1: i32) -> (i32, i32, i32) {
    %c0_i32 = arith.constant 0 : i32
    %c0_i32_0 = arith.constant 0 : i32
    %c0_i32_1 = arith.constant 0 : i32
    %c0_i32_2 = arith.constant 0 : i32
    return %c0_i32, %c0_i32_0, %c0_i32_1 : i32, i32, i32
  }
  func.func @transform_3(%arg0: i32, %arg1: i32) -> (i32, i32) {
    %c0_i32 = arith.constant 0 : i32
    %c0_i32_0 = arith.constant 0 : i32
    %c0_i32_1 = arith.constant 0 : i32
    return %c0_i32, %c0_i32_0 : i32, i32
  }
  func.func @transform_4(%arg0: i32, %arg1: i32) -> (i32, i32, i32, i32) {
    %c0_i32 = arith.constant 0 : i32
    %c0_i32_0 = arith.constant 0 : i32
    %c0_i32_1 = arith.constant 0 : i32
    return %arg0, %arg1, %c0_i32, %c0_i32_0 : i32, i32, i32, i32
  }
}

module attributes {stable_mosaic.version = 11 : i64} {
  func.func @_conv_bn_relu_kernel(%arg0: i32, %arg1: i32, %arg2: memref<1x2x4x32xbf16, #tpu.memory_space<vmem>>, %arg3: memref<1x2x4x32xbf16, #tpu.memory_space<vmem>>, %arg4: memref<9x32x32xbf16, #tpu.memory_space<vmem>>, %arg5: memref<1x32xf32, #tpu.memory_space<vmem>>, %arg6: memref<1x2x2x32xbf16, #tpu.memory_space<vmem>>) attributes {dimension_semantics = [#tpu.dimension_semantics<parallel>, #tpu.dimension_semantics<parallel>], iteration_bounds = array<i64: 2, 1>, scalar_prefetch = 0 : i64, scratch_operands = 0 : i64, tpu.core_type = #tpu.core_type<tc>, window_params = [{transform_indices = @transform_0, window_bounds = array<i64: 1, 2, 4, 32>}, {transform_indices = @transform_1, window_bounds = array<i64: 1, 2, 4, 32>}, {pipeline_mode = #tpu.pipeline_mode<synchronous>, transform_indices = @transform_2, window_bounds = array<i64: 9, 32, 32>}, {pipeline_mode = #tpu.pipeline_mode<synchronous>, transform_indices = @transform_3, window_bounds = array<i64: 1, 32>}, {transform_indices = @transform_4, window_bounds = array<i64: 1, 2, 2, 32>}]} {
    %c0 = arith.constant 0 : index
    %c0_0 = arith.constant 0 : index
    %c0_1 = arith.constant 0 : index
    %c0_2 = arith.constant 0 : index
    %0 = vector.load %arg2[%c0, %c0_0, %c0_1, %c0_2] : memref<1x2x4x32xbf16, #tpu.memory_space<vmem>>, vector<1x2x4x32xbf16>
    %1 = vector.shape_cast %0 : vector<1x2x4x32xbf16> to vector<2x4x32xbf16>
    %c0_3 = arith.constant 0 : index
    %c0_4 = arith.constant 0 : index
    %c0_5 = arith.constant 0 : index
    %c0_6 = arith.constant 0 : index
    %2 = vector.load %arg3[%c0_3, %c0_4, %c0_5, %c0_6] : memref<1x2x4x32xbf16, #tpu.memory_space<vmem>>, vector<1x2x4x32xbf16>
    %3 = vector.shape_cast %2 : vector<1x2x4x32xbf16> to vector<2x4x32xbf16>
    %4 = tpu.concatenate %1, %3 in 0 : vector<2x4x32xbf16>, vector<2x4x32xbf16> -> vector<4x4x32xbf16>
    %5 = vector.extract_strided_slice %4 {offsets = [0, 0, 0], sizes = [2, 2, 32], strides = [1, 1, 1]} : vector<4x4x32xbf16> to vector<2x2x32xbf16>
    %6 = vector.shape_cast %5 : vector<2x2x32xbf16> to vector<4x32xbf16>
    %c0_7 = arith.constant 0 : index
    %c0_8 = arith.constant 0 : index
    %c0_9 = arith.constant 0 : index
    %7 = vector.load %arg4[%c0_7, %c0_8, %c0_9] : memref<9x32x32xbf16, #tpu.memory_space<vmem>>, vector<1x32x32xbf16>
    %8 = vector.shape_cast %7 : vector<1x32x32xbf16> to vector<32x32xbf16>
    %cst = arith.constant dense<0.000000e+00> : vector<4x32xf32>
    %9 = tpu.matmul %6, %8, %cst {dimension_numbers = #tpu.dot_dimension_numbers<[1], [0], [0], [1], [0, 0, 1, 1], [], []>} : vector<4x32xbf16>, vector<32x32xbf16>, vector<4x32xf32> -> vector<4x32xf32>
    %10 = vector.extract_strided_slice %4 {offsets = [0, 1, 0], sizes = [2, 2, 32], strides = [1, 1, 1]} : vector<4x4x32xbf16> to vector<2x2x32xbf16>
    %11 = vector.shape_cast %10 : vector<2x2x32xbf16> to vector<4x32xbf16>
    %c1 = arith.constant 1 : index
    %c0_10 = arith.constant 0 : index
    %c0_11 = arith.constant 0 : index
    %12 = vector.load %arg4[%c1, %c0_10, %c0_11] : memref<9x32x32xbf16, #tpu.memory_space<vmem>>, vector<1x32x32xbf16>
    %13 = vector.shape_cast %12 : vector<1x32x32xbf16> to vector<32x32xbf16>
    %cst_12 = arith.constant dense<0.000000e+00> : vector<4x32xf32>
    %14 = tpu.matmul %11, %13, %cst_12 {dimension_numbers = #tpu.dot_dimension_numbers<[1], [0], [0], [1], [0, 0, 1, 1], [], []>} : vector<4x32xbf16>, vector<32x32xbf16>, vector<4x32xf32> -> vector<4x32xf32>
    %15 = arith.addf %9, %14 : vector<4x32xf32>
    %16 = vector.extract_strided_slice %4 {offsets = [0, 2, 0], sizes = [2, 2, 32], strides = [1, 1, 1]} : vector<4x4x32xbf16> to vector<2x2x32xbf16>
    %17 = vector.shape_cast %16 : vector<2x2x32xbf16> to vector<4x32xbf16>
    %c2 = arith.constant 2 : index
    %c0_13 = arith.constant 0 : index
    %c0_14 = arith.constant 0 : index
    %18 = vector.load %arg4[%c2, %c0_13, %c0_14] : memref<9x32x32xbf16, #tpu.memory_space<vmem>>, vector<1x32x32xbf16>
    %19 = vector.shape_cast %18 : vector<1x32x32xbf16> to vector<32x32xbf16>
    %cst_15 = arith.constant dense<0.000000e+00> : vector<4x32xf32>
    %20 = tpu.matmul %17, %19, %cst_15 {dimension_numbers = #tpu.dot_dimension_numbers<[1], [0], [0], [1], [0, 0, 1, 1], [], []>} : vector<4x32xbf16>, vector<32x32xbf16>, vector<4x32xf32> -> vector<4x32xf32>
    %21 = arith.addf %15, %20 : vector<4x32xf32>
    %22 = vector.extract_strided_slice %4 {offsets = [1, 0, 0], sizes = [2, 2, 32], strides = [1, 1, 1]} : vector<4x4x32xbf16> to vector<2x2x32xbf16>
    %23 = vector.shape_cast %22 : vector<2x2x32xbf16> to vector<4x32xbf16>
    %c3 = arith.constant 3 : index
    %c0_16 = arith.constant 0 : index
    %c0_17 = arith.constant 0 : index
    %24 = vector.load %arg4[%c3, %c0_16, %c0_17] : memref<9x32x32xbf16, #tpu.memory_space<vmem>>, vector<1x32x32xbf16>
    %25 = vector.shape_cast %24 : vector<1x32x32xbf16> to vector<32x32xbf16>
    %cst_18 = arith.constant dense<0.000000e+00> : vector<4x32xf32>
    %26 = tpu.matmul %23, %25, %cst_18 {dimension_numbers = #tpu.dot_dimension_numbers<[1], [0], [0], [1], [0, 0, 1, 1], [], []>} : vector<4x32xbf16>, vector<32x32xbf16>, vector<4x32xf32> -> vector<4x32xf32>
    %27 = arith.addf %21, %26 : vector<4x32xf32>
    %28 = vector.extract_strided_slice %4 {offsets = [1, 1, 0], sizes = [2, 2, 32], strides = [1, 1, 1]} : vector<4x4x32xbf16> to vector<2x2x32xbf16>
    %29 = vector.shape_cast %28 : vector<2x2x32xbf16> to vector<4x32xbf16>
    %c4 = arith.constant 4 : index
    %c0_19 = arith.constant 0 : index
    %c0_20 = arith.constant 0 : index
    %30 = vector.load %arg4[%c4, %c0_19, %c0_20] : memref<9x32x32xbf16, #tpu.memory_space<vmem>>, vector<1x32x32xbf16>
    %31 = vector.shape_cast %30 : vector<1x32x32xbf16> to vector<32x32xbf16>
    %cst_21 = arith.constant dense<0.000000e+00> : vector<4x32xf32>
    %32 = tpu.matmul %29, %31, %cst_21 {dimension_numbers = #tpu.dot_dimension_numbers<[1], [0], [0], [1], [0, 0, 1, 1], [], []>} : vector<4x32xbf16>, vector<32x32xbf16>, vector<4x32xf32> -> vector<4x32xf32>
    %33 = arith.addf %27, %32 : vector<4x32xf32>
    %34 = vector.extract_strided_slice %4 {offsets = [1, 2, 0], sizes = [2, 2, 32], strides = [1, 1, 1]} : vector<4x4x32xbf16> to vector<2x2x32xbf16>
    %35 = vector.shape_cast %34 : vector<2x2x32xbf16> to vector<4x32xbf16>
    %c5 = arith.constant 5 : index
    %c0_22 = arith.constant 0 : index
    %c0_23 = arith.constant 0 : index
    %36 = vector.load %arg4[%c5, %c0_22, %c0_23] : memref<9x32x32xbf16, #tpu.memory_space<vmem>>, vector<1x32x32xbf16>
    %37 = vector.shape_cast %36 : vector<1x32x32xbf16> to vector<32x32xbf16>
    %cst_24 = arith.constant dense<0.000000e+00> : vector<4x32xf32>
    %38 = tpu.matmul %35, %37, %cst_24 {dimension_numbers = #tpu.dot_dimension_numbers<[1], [0], [0], [1], [0, 0, 1, 1], [], []>} : vector<4x32xbf16>, vector<32x32xbf16>, vector<4x32xf32> -> vector<4x32xf32>
    %39 = arith.addf %33, %38 : vector<4x32xf32>
    %40 = vector.extract_strided_slice %4 {offsets = [2, 0, 0], sizes = [2, 2, 32], strides = [1, 1, 1]} : vector<4x4x32xbf16> to vector<2x2x32xbf16>
    %41 = vector.shape_cast %40 : vector<2x2x32xbf16> to vector<4x32xbf16>
    %c6 = arith.constant 6 : index
    %c0_25 = arith.constant 0 : index
    %c0_26 = arith.constant 0 : index
    %42 = vector.load %arg4[%c6, %c0_25, %c0_26] : memref<9x32x32xbf16, #tpu.memory_space<vmem>>, vector<1x32x32xbf16>
    %43 = vector.shape_cast %42 : vector<1x32x32xbf16> to vector<32x32xbf16>
    %cst_27 = arith.constant dense<0.000000e+00> : vector<4x32xf32>
    %44 = tpu.matmul %41, %43, %cst_27 {dimension_numbers = #tpu.dot_dimension_numbers<[1], [0], [0], [1], [0, 0, 1, 1], [], []>} : vector<4x32xbf16>, vector<32x32xbf16>, vector<4x32xf32> -> vector<4x32xf32>
    %45 = arith.addf %39, %44 : vector<4x32xf32>
    %46 = vector.extract_strided_slice %4 {offsets = [2, 1, 0], sizes = [2, 2, 32], strides = [1, 1, 1]} : vector<4x4x32xbf16> to vector<2x2x32xbf16>
    %47 = vector.shape_cast %46 : vector<2x2x32xbf16> to vector<4x32xbf16>
    %c7 = arith.constant 7 : index
    %c0_28 = arith.constant 0 : index
    %c0_29 = arith.constant 0 : index
    %48 = vector.load %arg4[%c7, %c0_28, %c0_29] : memref<9x32x32xbf16, #tpu.memory_space<vmem>>, vector<1x32x32xbf16>
    %49 = vector.shape_cast %48 : vector<1x32x32xbf16> to vector<32x32xbf16>
    %cst_30 = arith.constant dense<0.000000e+00> : vector<4x32xf32>
    %50 = tpu.matmul %47, %49, %cst_30 {dimension_numbers = #tpu.dot_dimension_numbers<[1], [0], [0], [1], [0, 0, 1, 1], [], []>} : vector<4x32xbf16>, vector<32x32xbf16>, vector<4x32xf32> -> vector<4x32xf32>
    %51 = arith.addf %45, %50 : vector<4x32xf32>
    %52 = vector.extract_strided_slice %4 {offsets = [2, 2, 0], sizes = [2, 2, 32], strides = [1, 1, 1]} : vector<4x4x32xbf16> to vector<2x2x32xbf16>
    %53 = vector.shape_cast %52 : vector<2x2x32xbf16> to vector<4x32xbf16>
    %c8 = arith.constant 8 : index
    %c0_31 = arith.constant 0 : index
    %c0_32 = arith.constant 0 : index
    %54 = vector.load %arg4[%c8, %c0_31, %c0_32] : memref<9x32x32xbf16, #tpu.memory_space<vmem>>, vector<1x32x32xbf16>
    %55 = vector.shape_cast %54 : vector<1x32x32xbf16> to vector<32x32xbf16>
    %cst_33 = arith.constant dense<0.000000e+00> : vector<4x32xf32>
    %56 = tpu.matmul %53, %55, %cst_33 {dimension_numbers = #tpu.dot_dimension_numbers<[1], [0], [0], [1], [0, 0, 1, 1], [], []>} : vector<4x32xbf16>, vector<32x32xbf16>, vector<4x32xf32> -> vector<4x32xf32>
    %57 = arith.addf %51, %56 : vector<4x32xf32>
    %58 = vector.shape_cast %57 : vector<4x32xf32> to vector<2x2x32xf32>
    %c0_34 = arith.constant 0 : index
    %c0_35 = arith.constant 0 : index
    %59 = vector.load %arg5[%c0_34, %c0_35] : memref<1x32xf32, #tpu.memory_space<vmem>>, vector<1x32xf32>
    %60 = vector.shape_cast %59 : vector<1x32xf32> to vector<1x1x32xf32>
    %61 = vector.broadcast %60 : vector<1x1x32xf32> to vector<2x2x32xf32>
    %62 = arith.addf %58, %61 : vector<2x2x32xf32>
    %cst_36 = arith.constant 0.000000e+00 : f32
    %63 = vector.broadcast %cst_36 : f32 to vector<2x2x32xf32>
    %64 = arith.maximumf %62, %63 : vector<2x2x32xf32>
    %65 = arith.truncf %64 : vector<2x2x32xf32> to vector<2x2x32xbf16>
    %c0_37 = arith.constant 0 : index
    %c0_38 = arith.constant 0 : index
    %c0_39 = arith.constant 0 : index
    %c0_40 = arith.constant 0 : index
    %66 = vector.load %arg6[%c0_37, %c0_38, %c0_39, %c0_40] : memref<1x2x2x32xbf16, #tpu.memory_space<vmem>>, vector<1x2x2x32xbf16>
    %67 = vector.shape_cast %66 : vector<1x2x2x32xbf16> to vector<2x2x32xbf16>
    %68 = vector.shape_cast %65 : vector<2x2x32xbf16> to vector<1x2x2x32xbf16>
    tpu.vector_store %arg6[%c0_37, %c0_38, %c0_39, %c0_40], %68 {strides = array<i32>} : memref<1x2x2x32xbf16, #tpu.memory_space<vmem>>, vector<1x2x2x32xbf16>,
    return
  }
  func.func @transform_0(%arg0: i32, %arg1: i32) -> (i32, i32, i32, i32) {
    %c0_i32 = arith.constant 0 : i32
    %c0_i32_0 = arith.constant 0 : i32
    %c0_i32_1 = arith.constant 0 : i32
    return %arg0, %arg1, %c0_i32, %c0_i32_0 : i32, i32, i32, i32
  }
  func.func @transform_1(%arg0: i32, %arg1: i32) -> (i32, i32, i32, i32) {
    %c1_i32 = arith.constant 1 : i32
    %0 = arith.addi %arg1, %c1_i32 : i32
    %c1_i32_0 = arith.constant 1 : i32
    %1 = arith.muli %0, %c1_i32_0 : i32
    %c0_i32 = arith.constant 0 : i32
    %c0_i32_1 = arith.constant 0 : i32
    %c0_i32_2 = arith.constant 0 : i32
    return %arg0, %1, %c0_i32, %c0_i32_1 : i32, i32, i32, i32
  }
  func.func @transform_2(%arg0: i32, %arg1: i32) -> (i32, i32, i32) {
    %c0_i32 = arith.constant 0 : i32
    %c0_i32_0 = arith.constant 0 : i32
    %c0_i32_1 = arith.constant 0 : i32
    %c0_i32_2 = arith.constant 0 : i32
    return %c0_i32, %c0_i32_0, %c0_i32_1 : i32, i32, i32
  }
  func.func @transform_3(%arg0: i32, %arg1: i32) -> (i32, i32) {
    %c0_i32 = arith.constant 0 : i32
    %c0_i32_0 = arith.constant 0 : i32
    %c0_i32_1 = arith.constant 0 : i32
    return %c0_i32, %c0_i32_0 : i32, i32
  }
  func.func @transform_4(%arg0: i32, %arg1: i32) -> (i32, i32, i32, i32) {
    %c0_i32 = arith.constant 0 : i32
    %c0_i32_0 = arith.constant 0 : i32
    %c0_i32_1 = arith.constant 0 : i32
    return %arg0, %arg1, %c0_i32, %c0_i32_0 : i32, i32, i32, i32
  }
}

</mosaic_0001>

<bundles_post_ra>
// kernel: encoder_unet_forward.10
= control target key start
LH: loop header
LB: loop body
LE: loop exit
PB: predicated region body
PF: predicated region fallthrough
CT: control target
= control target key end

     0   :  { %s1083_s15 = smov 0   ;;  %s1085_s16 = smov 0   ;;  %s1324_s0 = inlined_call_operand.vmem [shape: bf16[2,10,10,4], index: 0, kind: input, shape index: {}, may-alias: {0,1}]   ;;  %s1325_s1 = inlined_call_operand.vmem [shape: bf16[2,10,10,4], index: 1, kind: input, shape index: {}, may-alias: {0,1}]   ;;  %s1326_s2 = inlined_call_operand.vmem [shape: bf16[9,4,8], index: 2, kind: input, shape index: {}]   ;;  %s1327_s3 = inlined_call_operand.vmem [shape: f32[1,8], index: 3, kind: input, shape index: {}]   ;;  %s1328_s4 = inlined_call_operand.vmem [shape: bf16[2,8,8,8], index: 4, kind: output, shape index: {}]  }
   0x1   :  { %s1087_s17 = smov 0   ;;  %s1089_s18 = smov 0  }
   0x2   :  { %s1091_s19 = smov 0  }
   0x3 LB: > { %s23_s20 = sadd.s32 1, %s1048_s17  ;;  %s26_s21 = sadd.s32 1, %s1052_s18  ;;  %s1056_s19 = sphi %s1091_s19, %s14_s19   ;;  %s1052_s18 = sphi %s1089_s18, %s1337_s18   ;;  %s1048_s17 = sphi %s1087_s17, %s1336_s17   ;;  %s1044_s16 = sphi %s1085_s16, %s1335_s16   ;;  %s1040_s15 = sphi %s1083_s15, %s1334_s15  }
   0x4   : > { %p24_p0 = scmp.ge.s32.totalorder %s23_s20, 2  ;;  %p921_p1 = scmp.ge.s32.totalorder %s1056_s19, 1 }
   0x5   : > { %p220_p2 = scmp.lt.s32.totalorder %s1056_s19, 5 }
   0x6   : > { %s1339_s20 = smov (%p24_p0, %s23_s20), 0  ;;  %s1341_s21 = smov (!%p24_p0, %s26_s21), %s1052_s18 }
   0x7   : > { %p221_p3 = pnand %p921_p1, %p220_p2  ;;  %p28_p4 = scmp.ge.s32.totalorder %s1341_s21, 2 }
   0x8   : > { %s1116_s24 = sshll.u32 (!%p221_p3), %s1040_s15, 2  ;;  %p278_p5 = scmp.lt.s32.totalorder (!%p221_p3), %s1044_s16, 1 }
   0x9   : > { %s1343_s21 = smov (%p28_p4, %s1341_s21), 0  ;;  %224 = sbr.rel (%p221_p3) target bundleno = 252 (0xfc), region = 36 }
   0xa   : > { %p280_p6 = scmp.lt.s32.totalorder (!%p221_p3), %s1116_s24, 9  ;;  %s974_s14 = sadd.s32 (!%p221_p3), 4, %s1116_s24 }
   0xb   : > { %p1156_p7 = scmp.lt.s32.totalorder (!%p221_p3), %s974_s14, 9  ;;  %p311_p8 = scmp.lt.s32.totalorder (!%p221_p3), %s1116_s24, 7 }
   0xe   : > { %v932_v0 = vld [vmem:[%s1326_s2 + $0x2] sm:$0x3]  ;;  %vm406_vm0 = vcmask 1041408   ;;  %s1345_s16 = smov (!%p278_p5, %s1044_s16), 1  ;;  %v331_v2 = vld [vmem:[%s1326_s2] sm:$0x3] }
   0xf   : > { %v408_v1 = vsel %vm406_vm0, %v932_v0, 0  ;;  %v941_v3 = vld [vmem:[%s1326_s2 + $0x4] sm:$0x3]  ;;  %s281_s29 = scalar_select %p280_p6, %s1116_s24, 9  ;;  %v446_v4 = vsel %vm406_vm0, %v331_v2, 0  ;;  %vm471_vm3 = vcmask 1042432  }
  0x10   : > { %417 = vmatpush.bf16.msra.mxu0 %v408_v1  ;;  %975 = vmatpush.bf16.msra.mxu1 %v408_v1  ;;  %v505_v5 = vsel %vm406_vm0, %v941_v3, 0  ;;  %v944_v6 = vld [vmem:[%s1326_s2 + $0x6] sm:$0x3]  ;;  %s976_s6 = smul.u32 20, %s1345_s16  ;;  %v947_v8 = vld [vmem:[%s1326_s2 + $0x8] sm:$0x3] }
  0x11   : > { %514 = vmatpush.bf16.msra.mxu2 %v505_v5  ;;  %v543_v7 = vsel %vm406_vm0, %v944_v6, 0  ;;  %v954_v9 = vld [vmem:[%s1326_s2 + $0xc] sm:$0x3]  ;;  %s923_s11 = sshll.u32 %s281_s29, 1  ;;  %v594_v10 = vsel %vm406_vm0, %v947_v8, 0  ;;  %vm472_vm4 = vcmask 1046532  }
  0x12   : > { %552 = vmatpush.bf16.msra.mxu3 %v543_v7  ;;  %v670_v11 = vsel %vm406_vm0, %v954_v9, 0  ;;  %v957_v12 = vld [vmem:[%s1326_s2 + $0xe] sm:$0x3]  ;;  %s284_s15 = sadd.s32 %s976_s6, %s923_s11  ;;  %vm332_vm1 = vsmask.f32 3328  ;;  %s1347_s14 = smov (!%p1156_p7, %s974_s14), 9  ;;  %vm1195_vm6 = vmor %vm471_vm3, %vm472_vm4 }
  0x13   : > { %v717_v13 = vsel %vm406_vm0, %v957_v12, 0  ;;  %s924_s22 = sshll.u32 %s284_s15, 2  ;;  %vm333_vm2 = vsmask.f32 7440  ;;  %s927_s28 = sshll.u32 %s1347_s14, 1  ;;  %vm399_vm7 = vcmask 31744  }
  0x14   : > { %455 = vmatpush.bf16.msrb.mxu1 %v446_v4  ;;  %603 = vmatpush.bf16.msrb.mxu0 %v594_v10  ;;  %s286_s26 = scalar_lea.vmem %s1324_s0, %s924_s22  ;;  %vm1188_vm5 = vmor %vm332_vm1, %vm333_vm2  ;;  %s302_s29 = sadd.s32 %s976_s6, %s927_s28  ;;  %v951_v10 = vld [vmem:[%s1326_s2 + $0xa] sm:$0x3]  ;;  %vm796_vm8 = vcmask 60416  }
  0x15   : > { %679 = vmatpush.bf16.msrb.mxu2 %v670_v11  ;;  %v1160_v14 = vld [vmem:[%s286_s26] sm:$0xf]  ;;  %v320_v15 = vld [vmem:[%s286_s26 + $0x4] sm:$0x1]  ;;  %v1162_v16 = vld [vmem:[%s286_s26 + $0x8] sm:$0xf] }
  0x16   : > { %726 = vmatpush.bf16.msrb.mxu3 %v717_v13  ;;  %v322_v17 = vld [vmem:[%s286_s26 + $0xc] sm:$0x1]  ;;  %v336_v18 = vshrl.u32 %v1160_v14, 16  ;;  %v339_v19 = vshll.u32 %v1160_v14, 16  ;;  %v345_v20 = vshll.u32 %v320_v15, 16  ;;  %v350_v21 = vshrl.u32 %v1162_v16, 16 }
  0x17   : > { %v353_v22 = vshll.u32 %v1162_v16, 16  ;;  %v359_v23 = vshll.u32 %v322_v17, 16  ;;  %v1168_v24 = vld [vmem:[%s286_s26 + $0x10] sm:$0xf]  ;;  %v1170_v25 = vld [vmem:[%s286_s26 + $0x14] sm:$0x1]  ;;  %v434_v26 = vunpack.c.l.b16 %v1162_v16 }
  0x18   : > { %v338_v27 = vrot.slane %v336_v18, 4  ;;  %v341_v28 = vrot.slane %v339_v19, 5  ;;  %v347_v29 = vrot.slane %v345_v20, 5  ;;  %v352_v30 = vrot.slane %v350_v21, 4  ;;  %v1173_v31 = vld [vmem:[%s286_s26 + $0x18] sm:$0xf] }
  0x19   : > { %v355_v32 = vrot.slane %v353_v22, 5  ;;  %v361_v33 = vrot.slane %v359_v23, 5  ;;  %v1175_v34 = vld [vmem:[%s286_s26 + $0x1c] sm:$0x1]  ;;  %v364_v35 = vshrl.u32 %v1168_v24, 16  ;;  %v367_v36 = vshll.u32 %v1168_v24, 16 }
  0x1a   : > { %v342_v37 = vor.u32 %v341_v28, %v338_v27  ;;  %v373_v38 = vshll.u32 %v1170_v25, 16  ;;  %v378_v39 = vshrl.u32 %v1173_v31, 16  ;;  %v381_v40 = vshll.u32 %v1173_v31, 16  ;;  %s928_s30 = sshll.u32 %s302_s29, 2  ;;  %v961_v13 = vld [vmem:[%s1326_s2 + $0x10] sm:$0x3] }
  0x1b   : > { %v356_v42 = vor.u32 %v355_v32, %v352_v30  ;;  %v366_v43 = vrot.slane %v364_v35, 4  ;;  %v369_v44 = vrot.slane %v367_v36, 5  ;;  %v387_v45 = vshll.u32 %v1175_v34, 16  ;;  %s1229_s9 = scalar_lea.vmem %s1325_s1, %s928_s30  ;;  %s1349_s24 = smov (!%p311_p8, %s1116_s24), 7 }
  0x1c   : > { %v343_v46 = vrot.slane %v342_v37, 4  ;;  %v375_v47 = vrot.slane %v373_v38, 5  ;;  %v380_v48 = vrot.slane %v378_v39, 4  ;;  %v383_v49 = vrot.slane %v381_v40, 5  ;;  %v1241_v19 = vld [vmem:[%s1229_s9] sm:$0xf] }
  0x1d   : > { %v357_v50 = vrot.slane %v356_v42, 4  ;;  %v370_v51 = vor.u32 %v369_v44, %v366_v43  ;;  %v389_v52 = vrot.slane %v387_v45, 5  ;;  %v937_v54 = vrot.slane %v1160_v14, 9  ;;  %v328_v38 = vld [vmem:[%s1229_s9 + $0x4] sm:$0x1]  ;;  %s930_s12 = sshll.u32 %s1345_s16, 3 }
  0x1e   : > { %v348_v55 = vsel %vm1188_vm5, %v343_v46, %v347_v29  ;;  %v384_v56 = vor.u32 %v383_v49, %v380_v48  ;;  %v476_v57 = vrot.slane %v320_v15, 5  ;;  %v938_v58 = vrot.slane %v1162_v16, 9  ;;  %s314_s15 = sadd.s32 %s930_s12, %s1349_s24 }
  0x1f   : > { %v362_v59 = vsel %vm1188_vm5, %v357_v50, %v361_v33  ;;  %v393_v60 = vunpack.c.l.b16 %v348_v55  ;;  %v371_v61 = vrot.slane %v370_v51, 4  ;;  %v480_v62 = vrot.slane %v322_v17, 5  ;;  %s931_s22 = sshll.u32 %s314_s15, 2 }
  0x20   : > { %v394_v63 = vunpack.c.l.b16 %v362_v59  ;;  %v385_v0 = vrot.slane %v384_v56, 4  ;;  %v477_v1 = vsel %vm1195_vm6, %v937_v54, %v476_v57  ;;  %v435_v2 = vunpack.c.l.b16 %v1168_v24  ;;  %s1299_s25 = scalar_lea.vmem %s1328_s4, %s931_s22 }
  0x21   : > { %v376_v3 = vsel %vm1188_vm5, %v371_v61, %v375_v47  ;;  %v1214_v4 = vsel %vm1195_vm6, %v938_v58, %v480_v62  ;;  %v492_v5 = vunpack.c.l.b16 %v477_v1  ;;  %v636_v18 = vsel %vm406_vm0, %v951_v10, 0 }
  0x22   : > { %v397_v6 = vpack.c.b16 %v394_v63, %v393_v60  ;;  %v390_v7 = vsel %vm1188_vm5, %v385_v0, %v389_v52  ;;  %v395_v8 = vunpack.c.l.b16 %v376_v3  ;;  %v493_v9 = vunpack.c.l.b16 %v1214_v4 }
  0x23   : > { %v396_v11 = vunpack.c.l.b16 %v390_v7  ;;  %v534_v12 = vpack.c.b16 %v435_v2, %v434_v26  ;;  %v755_v20 = vsel %vm406_vm0, %v961_v13, 0  ;;  %v939_v21 = vrot.slane %v1168_v24, 9 }
  0x24   : > { %933 = vmatmul.msk.bf16.vlgmr.msra.gmra.mxu0 %vm399_vm7, %v397_v6  ;;  %v496_v15 = vpack.c.b16 %v493_v9, %v492_v5  ;;  %v484_v22 = vrot.slane %v1170_v25, 5  ;;  %v940_v23 = vrot.slane %v1173_v31, 9  ;;  %v488_v27 = vrot.slane %v1175_v34, 5 }
  0x25   : > { %v398_v17 = vpack.c.b16 %v396_v11, %v395_v8  ;;  %945 = vmatmul.msk.bf16.vlgmr.msra.gmra.mxu3 %vm399_vm7, %v534_v12  ;;  %764 = vmatpush.bf16.msra.mxu0 %v755_v20  ;;  %v569_v28 = vshrl.u32 %v1241_v19, 16  ;;  %v572_v29 = vshll.u32 %v1241_v19, 16  ;;  %v436_v33 = vunpack.c.l.b16 %v1173_v31 }
  0x26   : > { %942 = vmatmul.msk.bf16.vlgmr.msra.gmra.mxu2 %vm399_vm7, %v496_v15  ;;  %v485_v30 = vsel %vm1195_vm6, %v939_v21, %v484_v22  ;;  %v489_v32 = vsel %vm1195_vm6, %v940_v23, %v488_v27  ;;  %v533_v25 = vunpack.c.l.b16 %v1241_v19  ;;  %v433_v39 = vunpack.c.l.b16 %v1160_v14  ;;  %v329_v14 = vld [vmem:[%s1229_s9 + $0x8] sm:$0xf] }
  0x27   : > { %934 = vmatmul.msk.bf16.vlgmr.msra.gmra.mxu1 %vm399_vm7, %v398_v17  ;;  %v571_v35 = vrot.slane %v569_v28, 4  ;;  %v574_v36 = vrot.slane %v572_v29, 5  ;;  %v494_v37 = vunpack.c.l.b16 %v485_v30  ;;  %v495_v34 = vunpack.c.l.b16 %v489_v32 }
  0x28   : > { %645 = vmatpush.bf16.msra.mxu1 %v636_v18  ;;  %v585_v40 = vpack.c.b16 %v395_v8, %v394_v63  ;;  %v535_v42 = vpack.c.b16 %v533_v25, %v436_v33  ;;  %v578_v44 = vshll.u32 %v328_v38, 16  ;;  %v437_v46 = vpack.c.b16 %v434_v26, %v433_v39  ;;  %v330_v26 = vld [vmem:[%s1229_s9 + $0xc] sm:$0x1] }
  0x29   : > { %v575_v43 = vor.u32 %v574_v36, %v571_v35  ;;  %v497_v45 = vpack.c.b16 %v495_v34, %v494_v37  ;;  %v696_v49 = vshrl.u32 %v329_v14, 16  ;;  %v699_v50 = vshll.u32 %v329_v14, 16 }
  0x2a   : > { %v580_v47 = vrot.slane %v578_v44, 5  ;;  %v705_v56 = vshll.u32 %v330_v26, 16  ;;  %v438_v57 = vpack.c.b16 %v436_v33, %v435_v2  ;;  %v664_v62 = vunpack.c.l.b16 %v329_v14 }
  0x2b   : > { %v576_v31 = vrot.slane %v575_v43, 4  ;;  %v698_v52 = vrot.slane %v696_v49, 4  ;;  %v701_v16 = vrot.slane %v699_v50, 5  ;;  %v627_v24 = vpack.c.b16 %v494_v37, %v493_v9 }
  0x2c   : > { %v707_v59 = vrot.slane %v705_v56, 5  ;;  %v665_v0 = vpack.c.b16 %v664_v62, %v533_v25  ;;  %v950_v1 = vrot.slane %v1241_v19, 9  ;;  %v622_v2 = vrot.slane %v328_v38, 5 }
  0x2d   : > { %v581_v48 = vsel %vm1188_vm5, %v576_v31, %v580_v47  ;;  %v702_v55 = vor.u32 %v701_v16, %v698_v52  ;;  %v960_v3 = vrot.slane %v329_v14, 9  ;;  %v745_v5 = vrot.slane %v330_v26, 5 }
  0x2e   : > { %v584_v51 = vunpack.c.l.b16 %v581_v48  ;;  %v623_v41 = vsel %vm1195_vm6, %v950_v1, %v622_v2  ;;  %v1017_v48 = vld [vmem:[%s1327_s3] ss:$0 sm:$0xff] }
  0x2f   : > { %v703_v58 = vrot.slane %v702_v55, 4  ;;  %v746_v4 = vsel %vm1195_vm6, %v960_v3, %v745_v5  ;;  %v626_v6 = vunpack.c.l.b16 %v623_v41 }
  0x30   : > { %v586_v54 = vpack.c.b16 %v584_v51, %v396_v11  ;;  %v749_v7 = vunpack.c.l.b16 %v746_v4 }
  0x31   : > { %v708_v60 = vsel %vm1188_vm5, %v703_v58, %v707_v59  ;;  %v628_v9 = vpack.c.b16 %v626_v6, %v495_v34 }
  0x32   : > { %v711_v61 = vunpack.c.l.b16 %v708_v60  ;;  %v750_v8 = vpack.c.b16 %v749_v7, %v626_v6 }
  0x34   : > { %948 = vmatmul.msk.bf16.vlgmr.msrb.gmra.mxu0 %vm399_vm7, %v585_v40  ;;  %v712_v63 = vpack.c.b16 %v711_v61, %v584_v51 }
  0x35   : > { %946 = vmatmul.msk.bf16.gmra.mxu3 %vm399_vm7, %v535_v42 }
  0x36   : > { %943 = vmatmul.msk.bf16.gmra.mxu2 %vm399_vm7, %v497_v45 }
  0x37   : > { %935 = vmatmul.msk.bf16.vlgmr.msrb.gmra.mxu1 %vm399_vm7, %v437_v46 }
  0x44   : > { %949 = vmatmul.msk.bf16.gmra.mxu0 %vm399_vm7, %v586_v54 }
  0x45   : > { %958 = vmatmul.msk.bf16.vlgmr.msrb.gmra.mxu3 %vm399_vm7, %v398_v17 }
  0x46   : > { %955 = vmatmul.msk.bf16.vlgmr.msrb.gmra.mxu2 %vm399_vm7, %v438_v57 }
  0x47   : > { %936 = vmatmul.msk.bf16.gmra.mxu1 %vm399_vm7, %v438_v57 }
  0x54   : > { %962 = vmatmul.msk.bf16.vlgmr.msra.gmra.mxu0 %vm399_vm7, %v497_v45 }
  0x55   : > { %959 = vmatmul.msk.bf16.gmra.mxu3 %vm399_vm7, %v712_v63 }
  0x56   : > { %956 = vmatmul.msk.bf16.gmra.mxu2 %vm399_vm7, %v665_v0 }
  0x57   : > { %952 = vmatmul.msk.bf16.vlgmr.msra.gmra.mxu1 %vm399_vm7, %v627_v24 }
  0x64   : > { %963 = vmatmul.msk.bf16.gmra.mxu0 %vm399_vm7, %v750_v8 }
  0x67   : > { %953 = vmatmul.msk.bf16.gmra.mxu1 %vm399_vm7, %v628_v9 }
  0xa1   : > { %v419_v10 = vpop.f32.mrf.mxu0 }
  0xa4   : > { %v424_v11 = vpop.f32.mrf.mxu1 }
  0xa8   : > { %v554_v15 = vpop.f32.mrf.mxu3 }
  0xa9   : > { %v421_v12 = vpop.f32.mrf.mxu0  ;;  %v516_v13 = vpop.f32.mrf.mxu2 }
  0xac   : > { %v426_v17 = vpop.f32.mrf.mxu1 }
  0xb0   : > { %v556_v21 = vpop.f32.mrf.mxu3 }
  0xb1   : > { %v605_v18 = vpop.f32.mrf.mxu0  ;;  %v518_v19 = vpop.f32.mrf.mxu2 }
  0xb4   : > { %v457_v20 = vpop.f32.mrf.mxu1 }
  0xb5   : > { %v458_v32 = vadd.f32 %v457_v20, %v419_v10 }
  0xb7   : > { %v526_v35 = vadd.f32 %v516_v13, %v458_v32 }
  0xb8   : > { %v559_v27 = vpop.f32.mrf.mxu3 }
  0xb9   : > { %v607_v53 = vpop.f32.mrf.mxu0  ;;  %v521_v23 = vpop.f32.mrf.mxu2  ;;  %v564_v37 = vadd.f32 %v554_v15, %v526_v35 }
  0xbb   : > { %v615_v40 = vadd.f32 %v605_v18, %v564_v37 }
  0xbc   : > { %v459_v22 = vpop.f32.mrf.mxu1 }
  0xbd   : > { %v460_v34 = vadd.f32 %v459_v22, %v421_v12 }
  0xbf   : > { %v527_v42 = vadd.f32 %v518_v19, %v460_v34 }
  0xc0   : > { %v561_v33 = vpop.f32.mrf.mxu3 }
  0xc1   : > { %v610_v28 = vpop.f32.mrf.mxu0  ;;  %v523_v30 = vpop.f32.mrf.mxu2  ;;  %v565_v46 = vadd.f32 %v556_v21, %v527_v42 }
  0xc3   : > { %v616_v50 = vadd.f32 %v607_v53, %v565_v46 }
  0xc4   : > { %v462_v29 = vpop.f32.mrf.mxu1 }
  0xc5   : > { %v463_v31 = vadd.f32 %v462_v29, %v424_v11 }
  0xc7   : > { %v528_v51 = vadd.f32 %v521_v23, %v463_v31 }
  0xc8   : > { %v728_v39 = vpop.f32.mrf.mxu3 }
  0xc9   : > { %v612_v25 = vpop.f32.mrf.mxu0  ;;  %v681_v38 = vpop.f32.mrf.mxu2  ;;  %v566_v57 = vadd.f32 %v559_v27, %v528_v51 }
  0xcb   : > { %v617_v63 = vadd.f32 %v610_v28, %v566_v57 }
  0xcc   : > { %v464_v36 = vpop.f32.mrf.mxu1 }
  0xcd   : > { %v465_v58 = vadd.f32 %v464_v36, %v426_v17 }
  0xcf   : > { %v529_v0 = vadd.f32 %v523_v30, %v465_v58 }
  0xd0   : > { %v730_v16 = vpop.f32.mrf.mxu3 }
  0xd1   : > { %v766_v44 = vpop.f32.mrf.mxu0  ;;  %v683_v49 = vpop.f32.mrf.mxu2  ;;  %v567_v4 = vadd.f32 %v561_v33, %v529_v0 }
  0xd3   : > { %v618_v11 = vadd.f32 %v612_v25, %v567_v4 }
  0xd4   : > { %v647_v43 = vpop.f32.mrf.mxu1 }
  0xd5   : > { %v657_v45 = vadd.f32 %v647_v43, %v615_v40 }
  0xd7   : > { %v691_v47 = vadd.f32 %v681_v38, %v657_v45 }
  0xd8   : > { %v733_v41 = vpop.f32.mrf.mxu3 }
  0xd9   : > { %v738_v14 = vadd.f32 %v728_v39, %v691_v47  ;;  %v768_v56 = vpop.f32.mrf.mxu0  ;;  %v686_v1 = vpop.f32.mrf.mxu2 }
  0xdb   : > { %v776_v52 = vadd.f32 %v766_v44, %v738_v14 }
  0xdc   : > { %v649_v26 = vpop.f32.mrf.mxu1 }
  0xdd   : > { %v784_v54 = vadd.f32 %v1017_v48, %v776_v52  ;;  %v658_v55 = vadd.f32 %v649_v26, %v616_v50 }
  0xdf   : > { %v788_v59 = vmax.f32 %v784_v54, 0.0  ;;  %v692_v60 = vadd.f32 %v683_v49, %v658_v55 }
  0xe0   : > { %v735_v21 = vpop.f32.mrf.mxu3 }
  0xe1   : > { %v792_v61 = vpack.c.bf16 %v788_v59, %v788_v59  ;;  %v739_v62 = vadd.f32 %v730_v16, %v692_v60  ;;  %v771_v8 = vpop.f32.mrf.mxu0  ;;  %v688_v18 = vpop.f32.mrf.mxu2 }
  0xe3   : > { %797 = vst.msk [vmem:[%s1299_s25] sm:$0xf] %vm796_vm8, %v792_v61  ;;  %v777_v24 = vadd.f32 %v768_v56, %v739_v62 }
  0xe4   : > { %v652_v2 = vpop.f32.mrf.mxu1 }
  0xe5   : > { %v785_v3 = vadd.f32 %v1017_v48, %v777_v24  ;;  %v659_v5 = vadd.f32 %v652_v2, %v617_v63 }
  0xe7   : > { %v789_v6 = vmax.f32 %v785_v3, 0.0  ;;  %v693_v7 = vadd.f32 %v686_v1, %v659_v5 }
  0xe9   : > { %v793_v9 = vpack.c.bf16 %v789_v6, %v789_v6  ;;  %v740_v10 = vadd.f32 %v733_v41, %v693_v7  ;;  %v773_v23 = vpop.f32.mrf.mxu0 }
  0xeb   : > { %798 = vst.msk [vmem:[%s1299_s25 + $0x4] sm:$0xf] %vm796_vm8, %v793_v9  ;;  %v778_v12 = vadd.f32 %v771_v8, %v740_v10 }
  0xec   : > { %v654_v13 = vpop.f32.mrf.mxu1 }
  0xed   : > { %v786_v15 = vadd.f32 %v1017_v48, %v778_v12  ;;  %v660_v17 = vadd.f32 %v654_v13, %v618_v11 }
  0xef   : > { %v790_v19 = vmax.f32 %v786_v15, 0.0  ;;  %v694_v20 = vadd.f32 %v688_v18, %v660_v17 }
  0xf1   : > { %v794_v53 = vpack.c.bf16 %v790_v19, %v790_v19  ;;  %v741_v22 = vadd.f32 %v735_v21, %v694_v20 }
  0xf3   : > { %799 = vst.msk [vmem:[%s1299_s25 + $0x8] sm:$0xf] %vm796_vm8, %v794_v53  ;;  %v779_v27 = vadd.f32 %v773_v23, %v741_v22 }
  0xf5   : > { %v787_v28 = vadd.f32 %v1017_v48, %v779_v27 }
  0xf7   : > { %v791_v29 = vmax.f32 %v787_v28, 0.0 }
  0xf9   : > { %v795_v30 = vpack.c.bf16 %v791_v29, %v791_v29 }
  0xfb   : > { %800 = vst.msk [vmem:[%s1299_s25 + $0xc] sm:$0xf] %vm796_vm8, %v795_v30 }
  0xfc PF: > { %s14_s19 = sadd.s32 1, %s1056_s19   ;;  %s1334_s15 = smov %s1048_s17 }
  0xfd   : > { %p11_p9 = scmp.ge.s32.totalorder %s14_s19, 6   ;;  %s1335_s16 = smov %s1052_s18 }
  0xfe   : > { %s1336_s17 = smov %s1339_s20  ;;  %s1337_s18 = smov %s1343_s21 }
  0xff   :  { %13 = sbr.rel (!%p11_p9) target bundleno = 3 (0x3), region = 77 }

// kernel: encoder_unet_forward.8
= control target key start
LH: loop header
LB: loop body
LE: loop exit
PB: predicated region body
PF: predicated region fallthrough
CT: control target
= control target key end

     0   :  { %s1803_s15 = smov 0   ;;  %s1805_s16 = smov 0   ;;  %s2890_s0 = inlined_call_operand.vmem [shape: bf16[2,18,18,1], index: 0, kind: input, shape index: {}, may-alias: {0,1}]   ;;  %s2891_s1 = inlined_call_operand.vmem [shape: bf16[2,18,18,1], index: 1, kind: input, shape index: {}, may-alias: {0,1}]   ;;  %s2892_s2 = inlined_call_operand.vmem [shape: bf16[9,1,4], index: 2, kind: input, shape index: {}]   ;;  %s2893_s3 = inlined_call_operand.vmem [shape: f32[1,4], index: 3, kind: input, shape index: {}]   ;;  %s2894_s4 = inlined_call_operand.vmem [shape: bf16[2,16,16,4], index: 4, kind: output, shape index: {}]  }
   0x1   :  { %s1807_s17 = smov 0   ;;  %s1809_s18 = smov 0  }
   0x2   :  { %s1811_s19 = smov 0  }
   0x3 LB: > { %s23_s20 = sadd.s32 1, %s1767_s17  ;;  %s26_s21 = sadd.s32 1, %s1771_s18  ;;  %s1775_s19 = sphi %s1811_s19, %s14_s19   ;;  %s1771_s18 = sphi %s1809_s18, %s3071_s18   ;;  %s1767_s17 = sphi %s1807_s17, %s3070_s17   ;;  %s1763_s16 = sphi %s1805_s16, %s3069_s16   ;;  %s1759_s15 = sphi %s1803_s15, %s3068_s15  }
   0x4   : > { %p24_p0 = scmp.ge.s32.totalorder %s23_s20, 2  ;;  %p1562_p1 = scmp.ge.s32.totalorder %s1775_s19, 1 }
   0x5   : > { %p220_p2 = scmp.lt.s32.totalorder %s1775_s19, 5 }
   0x6   : > { %s3073_s20 = smov (%p24_p0, %s23_s20), 0  ;;  %s3075_s21 = smov (!%p24_p0, %s26_s21), %s1771_s18 }
   0x7   : > { %p221_p3 = pnand %p1562_p1, %p220_p2  ;;  %p28_p4 = scmp.ge.s32.totalorder %s3075_s21, 2 }
   0x9   : > { %s3077_s21 = smov (%p28_p4, %s3075_s21), 0  ;;  %224 = sbr.rel (%p221_p3) target bundleno = 304 (0x130), region = 36 }
   0xe   : > { %s1833_s22 = sshll.u32 %s1759_s15, 3  ;;  %p279_p5 = scmp.lt.s32.totalorder %s1763_s16, 1  ;;  %v1777_v0 = vmov 0   ;;  %vm565_vm0 = vcmask 1046528   ;;  %vm690_vm1 = vcmask 1045504   ;;  %vm1419_vm2 = vcmask 27648  }
   0xf   : > { %1680 = vset.pattern.permute.xlu2 %v1777_v0  ;;  %1669 = vset.pattern.permute.xlu1 %v1777_v0  ;;  %p281_p6 = scmp.lt.s32.totalorder %s1833_s22, 17  ;;  %s1610_s5 = sadd.s32 8, %s1833_s22 }
  0x10   : > { %1658 = vset.pattern.permute.xlu0 %v1777_v0  ;;  %s3079_s16 = smov (!%p279_p5, %s1763_s16), 1  ;;  %p299_p7 = scmp.lt.s32.totalorder %s1610_s5, 17 }
  0x11   : > { %s282_s23 = scalar_select %p281_p6, %s1833_s22, 17 }
  0x12   : > { %s1615_s24 = smul.u32 54, %s3079_s16  ;;  %s3081_s5 = smov (!%p299_p7, %s1610_s5), 17 }
  0x13   : > { %s1614_s25 = smul.u32 3, %s282_s23  ;;  %p312_p8 = scmp.lt.s32.totalorder %s1833_s22, 15 }
  0x14   : > { %s1616_s6 = smul.u32 3, %s3081_s5  ;;  %s1570_s12 = sshll.u32 %s3079_s16, 5 }
  0x15   : > { %s285_s26 = sadd.s32 %s1615_s24, %s1614_s25  ;;  %s3083_s22 = smov (!%p312_p8, %s1833_s22), 15 }
  0x16   : > { %s1564_s27 = sshll.u32 %s285_s26, 2  ;;  %s303_s7 = sadd.s32 %s1616_s6, %s1615_s24 }
  0x17   : > { %s1845_s30 = scalar_lea.vmem %s2890_s0, %s1564_s27  ;;  %s1567_s8 = sshll.u32 %s303_s7, 2 }
  0x18   : > { %v1612_v1 = vld [vmem:[%s1845_s30 + $0x30] sm:$0xff]   ;;  %v1611_v2 = vld [vmem:[%s1845_s30 + $0x18] sm:$0xff]   ;;  %v1590_v3 = vld [vmem:[%s1845_s30] sm:$0xff]   ;;  %s305_s11 = scalar_lea.vmem %s2891_s1, %s1567_s8  ;;  %s1569_s13 = sshll.u32 %s3083_s22, 1 }
  0x19   : > { %v1599_v4 = vunpack.c.l.bf16 %v1612_v1  ;;  %v1600_v5 = vunpack.c.h.bf16 %v1612_v1  ;;  %v1595_v6 = vunpack.c.l.bf16 %v1611_v2  ;;  %v1596_v7 = vunpack.c.h.bf16 %v1611_v2  ;;  %v335_v10 = vld [vmem:[%s1845_s30 + $0x3c] sm:$0xff]   ;;  %v329_v11 = vld [vmem:[%s1845_s30 + $0x24] sm:$0xff]   ;;  %v323_v14 = vld [vmem:[%s1845_s30 + $0xc] sm:$0xff]   ;;  %s1872_s14 = sadd.s32 %s1570_s12, %s1569_s13 }
  0x1a   : > { %v1591_v8 = vunpack.c.l.bf16 %v1590_v3  ;;  %v1592_v9 = vunpack.c.h.bf16 %v1590_v3  ;;  %v360_v16 = vunpack.c.l.bf16 %v335_v10  ;;  %v361_v17 = vunpack.c.h.bf16 %v335_v10  ;;  %v341_v25 = vld [vmem:[%s1845_s30 + $0x54] sm:$0xff]   ;;  %v322_v26 = vld [vmem:[%s1845_s30 + $0x8] sm:$0x1]  ;;  %v337_v39 = vld [vmem:[%s1845_s30 + $0x44] sm:$0x1]  ;;  %s1571_s15 = sshll.u32 %s1872_s14, 2 }
  0x1b   : > { %v1681_v12 = vpack.i.bf16 %v1600_v5, %v1599_v4  ;;  %v1670_v13 = vpack.i.bf16 %v1596_v7, %v1595_v6  ;;  %v356_v18 = vunpack.c.l.bf16 %v329_v11  ;;  %v357_v19 = vunpack.c.h.bf16 %v329_v11  ;;  %v325_v27 = vld [vmem:[%s1845_s30 + $0x14] sm:$0x1]  ;;  %v1613_v28 = vld [vmem:[%s1845_s30 + $0x48] sm:$0xff]   ;;  %v334_v37 = vld [vmem:[%s1845_s30 + $0x38] sm:$0x1]  ;;  %s2455_s23 = scalar_lea.vmem %s2894_s4, %s1571_s15 }
  0x1c   : > { %v1659_v15 = vpack.i.bf16 %v1592_v9, %v1591_v8  ;;  %v352_v20 = vunpack.c.l.bf16 %v323_v14  ;;  %v353_v21 = vunpack.c.h.bf16 %v323_v14  ;;  %v1686_v22 = vpack.i.bf16 %v361_v17, %v360_v16  ;;  %v340_v40 = vld [vmem:[%s1845_s30 + $0x50] sm:$0x1]  ;;  %v343_v41 = vld [vmem:[%s1845_s30 + $0x5c] sm:$0x1]  ;;  %v328_v42 = vld [vmem:[%s1845_s30 + $0x20] sm:$0x1] }
  0x1d   : > { %1682 = vperm.xlu2 %1680, %v1681_v12   ;;  %1671 = vperm.xlu1 %1669, %v1670_v13   ;;  %v1675_v23 = vpack.i.bf16 %v357_v19, %v356_v18  ;;  %v364_v29 = vunpack.c.l.bf16 %v341_v25  ;;  %v365_v30 = vunpack.c.h.bf16 %v341_v25  ;;  %v465_v31 = vunpack.c.l.bf16 %v322_v26  ;;  %v331_v43 = vld [vmem:[%s1845_s30 + $0x2c] sm:$0x1]  ;;  %v346_v53 = vld [vmem:[%s305_s11 + $0x8] sm:$0x1]  ;;  %v349_v55 = vld [vmem:[%s305_s11 + $0x14] sm:$0x1] }
  0x1e   : > { %1660 = vperm.xlu0 %1658, %v1659_v15   ;;  %v1664_v24 = vpack.i.bf16 %v353_v21, %v352_v20  ;;  %v466_v32 = vunpack.c.l.bf16 %v325_v27  ;;  %v1603_v33 = vunpack.c.l.bf16 %v1613_v28  ;;  %v1604_v34 = vunpack.c.h.bf16 %v1613_v28  ;;  %v347_v54 = vld [vmem:[%s305_s11 + $0xc] sm:$0xff]   ;;  %v1606_v56 = vld [vmem:[%s305_s11] sm:$0xff]  }
  0x1f   : > { %v1696_v35 = vpack.i.bf16 %v365_v30, %v364_v29  ;;  %v469_v44 = vunpack.c.l.bf16 %v334_v37  ;;  %v470_v45 = vunpack.c.l.bf16 %v337_v39  ;;  %v471_v46 = vunpack.c.l.bf16 %v340_v40  ;;  %v1572_v2 = vld [vmem:[%s2892_s2 + $0x1] sm:$0x1]  ;;  %v1573_v3 = vld [vmem:[%s2892_s2 + $0x2] sm:$0x1]  ;;  %v366_v6 = vld [vmem:[%s2892_s2] sm:$0x1] }
  0x20   : > { %v1701_v36 = vpack.i.bf16 %v466_v32, %v465_v31  ;;  %v1691_v38 = vpack.i.bf16 %v1604_v34, %v1603_v33  ;;  %v472_v47 = vunpack.c.l.bf16 %v343_v41  ;;  %v467_v48 = vunpack.c.l.bf16 %v328_v42  ;;  %v1575_v13 = vld [vmem:[%s2892_s2 + $0x4] sm:$0x1]  ;;  %v1577_v16 = vld [vmem:[%s2892_s2 + $0x6] sm:$0x1]  ;;  %v1574_v19 = vld [vmem:[%s2892_s2 + $0x3] sm:$0x1] }
  0x21   : > { %v468_v49 = vunpack.c.l.bf16 %v331_v43  ;;  %v1711_v50 = vpack.i.bf16 %v470_v45, %v469_v44  ;;  %v811_v57 = vunpack.c.l.bf16 %v346_v53  ;;  %v1065_v58 = vunpack.c.l.bf16 %v347_v54  ;;  %v1576_v28 = vld [vmem:[%s2892_s2 + $0x5] sm:$0x1]  ;;  %v1578_v33 = vld [vmem:[%s2892_s2 + $0x7] sm:$0x1]  ;;  %v1579_v39 = vld [vmem:[%s2892_s2 + $0x8] sm:$0x1] }
  0x22   : > { %v1716_v51 = vpack.i.bf16 %v472_v47, %v471_v46  ;;  %v1066_v59 = vunpack.c.h.bf16 %v347_v54  ;;  %v1113_v60 = vunpack.c.l.bf16 %v349_v55  ;;  %v1607_v61 = vunpack.c.l.bf16 %v1606_v56 }
  0x23   : > { %v1706_v52 = vpack.i.bf16 %v468_v49, %v467_v48  ;;  %v1608_v62 = vunpack.c.h.bf16 %v1606_v56  ;;  %v1726_v63 = vpack.i.bf16 %v1065_v58, %v811_v57  ;;  %v475_v4 = vunpack.c.l.bf16 %v1572_v2 }
  0x24   : > { %v1731_v0 = vpack.i.bf16 %v1113_v60, %v1066_v59  ;;  %v640_v5 = vunpack.c.l.bf16 %v1573_v3  ;;  %v367_v11 = vunpack.c.l.bf16 %v366_v6  ;;  %v814_v17 = vunpack.c.l.bf16 %v1575_v13 }
  0x25   : > { %1687 = vperm.xlu2 %1680, %v1686_v22   ;;  %1676 = vperm.xlu1 %1669, %v1675_v23   ;;  %v1721_v1 = vpack.i.bf16 %v1608_v62, %v1607_v61  ;;  %v1887_v10 = vperm.slane %v475_v4, 0  ;;  %v1069_v25 = vunpack.c.l.bf16 %v1577_v16  ;;  %v767_v30 = vunpack.c.l.bf16 %v1574_v19 }
  0x26   : > { %1665 = vperm.xlu0 %1658, %v1664_v24   ;;  %v1889_v12 = vperm.slane %v640_v5, 0  ;;  %v1903_v18 = vperm.slane %v367_v11, 0  ;;  %v1922_v29 = vperm.slane %v814_v17, 0  ;;  %v1116_v44 = vunpack.c.l.bf16 %v1578_v33 }
  0x27   : > { %v1942_v40 = vperm.slane %v1069_v25, 0  ;;  %v1950_v45 = vperm.slane %v767_v30, 0  ;;  %v1245_v48 = vunpack.c.l.bf16 %v1579_v39 }
  0x28   : > { %2946 = vst [vmem:[#allocation2_spill] sm:$0xff] %v1903_v18  ;;  %v1976_v62 = vperm.slane %v1116_v44, 0 }
  0x29   : > { %2947 = vst [vmem:[#allocation3_spill] sm:$0xff] %v1950_v45  ;;  %v1984_v2 = vperm.slane %v1245_v48, 0 }
  0x2d   : > { %1697 = vperm.xlu1 %1669, %v1696_v35   ;;  %1702 = vperm.xlu2 %1680, %v1701_v36  }
  0x2e   : > { %1692 = vperm.xlu0 %1658, %v1691_v38   ;;  %v943_v38 = vunpack.c.l.bf16 %v1576_v28 }
  0x35   : > { %1712 = vperm.xlu1 %1669, %v1711_v50   ;;  %1717 = vperm.xlu2 %1680, %v1716_v51  }
  0x36   : > { %1707 = vperm.xlu0 %1658, %v1706_v52   ;;  %v1962_v52 = vperm.slane %v943_v38, 0 }
  0x3d   : > { %1727 = vperm.xlu1 %1669, %v1726_v63   ;;  %1732 = vperm.xlu2 %1680, %v1731_v0  }
  0x3e   : > { %1722 = vperm.xlu0 %1658, %v1721_v1  }
  0x77   : > { %v1683_v7 = vpop.permute.xlu2 %1682 }
  0x78   : > { %v1883_v8 = vunpack.i.h.bf16 %v1683_v7  ;;  %v1885_v9 = vunpack.i.l.bf16 %v1683_v7 }
  0x7a   : > { %v529_v14 = vmul.f32 %v1885_v9, %v1887_v10  ;;  %v1898_v15 = vmul.f32 %v1883_v8, %v1887_v10  ;;  %v654_v22 = vmul.f32 %v1885_v9, %v1889_v12  ;;  %v1913_v23 = vmul.f32 %v1883_v8, %v1889_v12 }
  0x7b   : > { %v457_v31 = vmul.f32 %v1885_v9, %v1903_v18  ;;  %v830_v55 = vmul.f32 %v1885_v9, %v1922_v29  ;;  %v1970_v56 = vmul.f32 %v1883_v8, %v1922_v29  ;;  %v1989_v5 = vmul.f32 %v1883_v8, %v1903_v18 }
  0x7c   : > { %v586_v20 = vrot.slane %v529_v14, 1  ;;  %v2898_v21 = vrot.slane %v1898_v15, 1  ;;  %v711_v36 = vrot.slane %v654_v22, 2  ;;  %v2896_v37 = vrot.slane %v1913_v23, 2 }
  0x7d   : > { %2948 = vst [vmem:[#allocation4_spill] sm:$0xff] %v1970_v56  ;;  %v884_v7 = vrot.slane %v830_v55, 1  ;;  %v2895_v11 = vrot.slane %v1970_v56, 1  ;;  %v954_v28 = vmul.f32 %v1885_v9, %v1962_v52  ;;  %v2020_v30 = vmul.f32 %v1883_v8, %v1962_v52 }
  0x7e   : > { %v588_v32 = vsel %vm565_vm0, %v586_v20, %v2898_v21  ;;  %v713_v49 = vsel %vm690_vm1, %v711_v36, %v2896_v37 }
  0x7f   : > { %v1688_v24 = vpop.permute.xlu2 %1687  ;;  %v630_v47 = vadd.f32 %v588_v32, %v457_v31  ;;  %2950 = vst [vmem:[#allocation6_spill] sm:$0xff] %v2020_v30  ;;  %v2039_v39 = vsel %vm565_vm0, %v884_v7, %v2895_v11 }
  0x80   : > { %v1915_v26 = vunpack.i.h.bf16 %v1688_v24  ;;  %v1917_v27 = vunpack.i.l.bf16 %v1688_v24  ;;  %2952 = vst [vmem:[#allocation8_spill] sm:$0xff] %v2039_v39 }
  0x81   : > { %v755_v63 = vadd.f32 %v713_v49, %v630_v47 }
  0x82   : > { %v532_v34 = vmul.f32 %v1917_v27, %v1887_v10  ;;  %v1936_v35 = vmul.f32 %v1915_v26, %v1887_v10  ;;  %v657_v42 = vmul.f32 %v1917_v27, %v1889_v12  ;;  %v1948_v43 = vmul.f32 %v1915_v26, %v1889_v12 }
  0x83   : > { %v833_v50 = vmul.f32 %v1917_v27, %v1922_v29  ;;  %v1960_v51 = vmul.f32 %v1915_v26, %v1922_v29  ;;  %v459_v54 = vmul.f32 %v1917_v27, %v1903_v18  ;;  %v787_v0 = vmul.f32 %v1917_v27, %v1950_v45 }
  0x84   : > { %v591_v41 = vrot.slane %v532_v34, 1  ;;  %v2900_v46 = vrot.slane %v1936_v35, 1  ;;  %v716_v59 = vrot.slane %v657_v42, 2  ;;  %v2899_v60 = vrot.slane %v1948_v43, 2 }
  0x85   : > { %v1982_v1 = vmul.f32 %v1917_v27, %v1942_v40  ;;  %v889_v3 = vrot.slane %v833_v50, 1  ;;  %v2897_v4 = vrot.slane %v1960_v51, 1  ;;  %v803_v24 = vadd.f32 %v787_v0, %v755_v63 }
  0x86   : > { %v593_v58 = vsel %vm565_vm0, %v591_v41, %v2900_v46  ;;  %v718_v17 = vsel %vm690_vm1, %v716_v59, %v2899_v60  ;;  %v2024_v31 = vmul.f32 %v1917_v27, %v1962_v52  ;;  %v2028_v34 = vmul.f32 %v1915_v26, %v1903_v18 }
  0x87   : > { %v1703_v53 = vpop.permute.xlu2 %1702  ;;  %2949 = vst [vmem:[#allocation5_spill] sm:$0xff] %v1982_v1  ;;  %v632_v6 = vadd.f32 %v593_v58, %v459_v54  ;;  %v891_v25 = vsel %vm565_vm0, %v889_v3, %v2897_v4  ;;  %v2034_v38 = vmul.f32 %v1915_v26, %v1950_v45  ;;  %v2051_v55 = vmul.f32 %v1915_v26, %v1962_v52 }
  0x88   : > { %v1705_v57 = vunpack.i.h.bf16 %v1703_v53  ;;  %v1704_v61 = vunpack.i.l.bf16 %v1703_v53  ;;  %v2047_v54 = vadd.f32 %v891_v25, %v803_v24  ;;  %v2901_v58 = vrot.slane %v2020_v30, 2 }
  0x89   : > { %v2030_v36 = vadd.f32 %v718_v17, %v632_v6  ;;  %2951 = vst [vmem:[#allocation7_spill] sm:$0xff] %v2034_v38  ;;  %v2060_v3 = vmul.f32 %v1885_v9, %v1976_v62 }
  0x8a   : > { %v1993_v13 = vmul.f32 %v1705_v57, %v1887_v10  ;;  %v1996_v14 = vmul.f32 %v1705_v57, %v1889_v12  ;;  %v1999_v16 = vmul.f32 %v1705_v57, %v1922_v29  ;;  %v2005_v19 = vmul.f32 %v1705_v57, %v1962_v52 }
  0x8b   : > { %v2008_v20 = vmul.f32 %v1704_v61, %v1887_v10  ;;  %v2011_v22 = vmul.f32 %v1704_v61, %v1889_v12  ;;  %v1008_v57 = vrot.slane %v954_v28, 2  ;;  %v2082_v28 = vmul.f32 %v1917_v27, %v1976_v62 }
  0x8d   : > { %v569_v50 = vrot.slane %v2008_v20, 1  ;;  %v694_v53 = vrot.slane %v2011_v22, 2  ;;  %v2073_v20 = vmul.f32 %v1883_v8, %v1976_v62  ;;  %v2092_v37 = vsel %vm690_vm1, %v1008_v57, %v2901_v58 }
  0x8e   : > { %2960 = vst [vmem:[#allocation16_spill] sm:$0xff] %v2092_v37 }
  0x8f   : > { %v1672_v32 = vpop.permute.xlu1 %1671  ;;  %v1718_v33 = vpop.permute.xlu2 %1717  ;;  %2957 = vst [vmem:[#allocation13_spill] sm:$0xff] %v2073_v20 }
  0x90   : > { %v1720_v47 = vunpack.i.h.bf16 %v1718_v33  ;;  %v1661_v48 = vpop.permute.xlu0 %1660  ;;  %v1719_v63 = vunpack.i.l.bf16 %v1718_v33  ;;  %v2075_v22 = vunpack.i.h.bf16 %v1672_v32  ;;  %v2084_v33 = vunpack.i.l.bf16 %v1672_v32 }
  0x91   : > { %v1663_v0 = vunpack.i.h.bf16 %v1661_v48  ;;  %v1662_v25 = vunpack.i.l.bf16 %v1661_v48 }
  0x92   : > { %v2056_v61 = vmul.f32 %v1720_v47, %v1887_v10  ;;  %v2063_v6 = vmul.f32 %v1720_v47, %v1889_v12  ;;  %v2066_v7 = vmul.f32 %v1720_v47, %v1922_v29  ;;  %v2069_v17 = vmul.f32 %v1720_v47, %v1962_v52 }
  0x93   : > { %v2078_v24 = vmul.f32 %v1720_v47, %v1976_v62  ;;  %v2087_v11 = vmul.f32 %v1720_v47, %v1984_v2  ;;  %v2097_v48 = vmul.f32 %v1719_v63, %v1887_v10  ;;  %v2100_v60 = vmul.f32 %v1719_v63, %v1889_v12 }
  0x94   : > { %2953 = vst [vmem:[#allocation9_spill] sm:$0xff] %v2056_v61  ;;  %v518_v32 = vmul.f32 %v1663_v0, %v1887_v10  ;;  %v643_v58 = vmul.f32 %v1663_v0, %v1889_v12  ;;  %v517_v42 = vmul.f32 %v1662_v25, %v1887_v10  ;;  %v642_v44 = vmul.f32 %v1662_v25, %v1889_v12 }
  0x95   : > { %2954 = vst [vmem:[#allocation10_spill] sm:$0xff] %v2063_v6  ;;  %v2111_v41 = vmul.f32 %v1719_v63, %v1922_v29  ;;  %v2114_v61 = vmul.f32 %v1719_v63, %v1962_v52  ;;  %v2119_v57 = vmul.f32 %v1719_v63, %v1976_v62  ;;  %v450_v1 = vmul.f32 %v1663_v0, %v1903_v18 }
  0x96   : > { %2955 = vst [vmem:[#allocation11_spill] sm:$0xff] %v2066_v7  ;;  %v567_v49 = vrot.slane %v518_v32, 1  ;;  %v566_v21 = vrot.slane %v517_v42, 1  ;;  %v692_v37 = vrot.slane %v643_v58, 2 }
  0x97   : > { %2956 = vst [vmem:[#allocation12_spill] sm:$0xff] %v2069_v17  ;;  %v1733_v46 = vpop.permute.xlu2 %1732  ;;  %v1677_v4 = vpop.permute.xlu1 %1676  ;;  %v2122_v17 = vmul.f32 %v1719_v63, %v1984_v2 }
  0x98   : > { %2958 = vst [vmem:[#allocation14_spill] sm:$0xff] %v2078_v24  ;;  %v1735_v47 = vunpack.i.h.bf16 %v1733_v46  ;;  %v2116_v59 = vunpack.i.l.bf16 %v1733_v46  ;;  %v570_v32 = vsel %vm565_vm0, %v567_v49, %v569_v50  ;;  %v449_v46 = vmul.f32 %v1662_v25, %v1903_v18  ;;  %v1666_v6 = vpop.permute.xlu0 %1665 }
  0x99   : > { %2959 = vst [vmem:[#allocation15_spill] sm:$0xff] %v2087_v11  ;;  %v568_v30 = vsel %vm565_vm0, %v566_v21, %v567_v49  ;;  %v691_v24 = vrot.slane %v642_v44, 2  ;;  %v623_v56 = vadd.f32 %v570_v32, %v450_v1  ;;  %v695_v21 = vsel %vm690_vm1, %v692_v37, %v694_v53 }
  0x9a   : > { %2961 = vst [vmem:[#allocation17_spill] sm:$0xff] %v2097_v48  ;;  %v2133_v50 = vmul.f32 %v1735_v47, %v1976_v62  ;;  %v2137_v42 = vmul.f32 %v2116_v59, %v1976_v62  ;;  %v622_v39 = vadd.f32 %v568_v30, %v449_v46  ;;  %v2143_v44 = vunpack.i.h.bf16 %v1677_v4 }
  0x9b   : > { %2962 = vst [vmem:[#allocation18_spill] sm:$0xff] %v2100_v60  ;;  %v2145_v1 = vunpack.i.l.bf16 %v1677_v4  ;;  %v824_v49 = vmul.f32 %v2084_v33, %v1922_v29  ;;  %v693_v32 = vsel %vm690_vm1, %v691_v24, %v692_v37  ;;  %v2151_v7 = vmul.f32 %v1735_v47, %v1984_v2 }
  0x9c   : > { %2963 = vst [vmem:[#allocation19_spill] sm:$0xff] %v2114_v61  ;;  %v1668_v58 = vunpack.i.h.bf16 %v1666_v6  ;;  %v1667_v63 = vunpack.i.l.bf16 %v1666_v6  ;;  %v748_v0 = vadd.f32 %v695_v21, %v623_v56  ;;  %v2157_v53 = vmul.f32 %v2116_v59, %v1984_v2 }
  0x9d   : > { %2964 = vst [vmem:[#allocation20_spill] sm:$0xff] %v2116_v59  ;;  %v747_v46 = vadd.f32 %v693_v32, %v622_v39  ;;  %v781_v60 = vmul.f32 %v2084_v33, %v1950_v45  ;;  %v2165_v56 = vmul.f32 %v2075_v22, %v1922_v29  ;;  %v874_v6 = vrot.slane %v824_v49, 1 }
  0x9e   : > { %2965 = vst [vmem:[#allocation21_spill] sm:$0xff] %v2119_v57  ;;  %v521_v37 = vmul.f32 %v1668_v58, %v1887_v10  ;;  %v646_v24 = vmul.f32 %v1668_v58, %v1889_v12  ;;  %v780_v47 = vmul.f32 %v1668_v58, %v1950_v45  ;;  %v822_v21 = vmul.f32 %v1668_v58, %v1922_v29 }
  0x9f   : > { %2966 = vst [vmem:[#allocation22_spill] sm:$0xff] %v2122_v17  ;;  %v1698_v4 = vpop.permute.xlu1 %1697  ;;  %v520_v25 = vmul.f32 %v1667_v63, %v1887_v10  ;;  %v645_v39 = vmul.f32 %v1667_v63, %v1889_v12  ;;  %v452_v48 = vmul.f32 %v1668_v58, %v1903_v18  ;;  %v779_v59 = vmul.f32 %v1667_v63, %v1950_v45 }
  0xa0   : > { %2967 = vst [vmem:[#allocation23_spill] sm:$0xff] %v2133_v50  ;;  %v572_v30 = vrot.slane %v521_v37, 1  ;;  %v2171_v32 = vunpack.i.h.bf16 %v1698_v4  ;;  %v946_v50 = vmul.f32 %v1668_v58, %v1962_v52  ;;  %v2974_v49 = vrot.slane %v1993_v13, 1 }
  0xa1   : > { %2968 = vst [vmem:[#allocation24_spill] sm:$0xff] %v2137_v42  ;;  %v870_v42 = vrot.slane %v822_v21, 1  ;;  %v696_v37 = vrot.slane %v645_v39, 2  ;;  %v451_v11 = vmul.f32 %v1667_v63, %v1903_v18  ;;  %v796_v57 = vadd.f32 %v780_v47, %v748_v0 }
  0xa2   : > { %2969 = vst [vmem:[#allocation25_spill] sm:$0xff] %v2143_v44  ;;  %v571_v44 = vrot.slane %v520_v25, 1  ;;  %v2975_v61 = vrot.slane %v1999_v16, 1  ;;  %v821_v38 = vmul.f32 %v1667_v63, %v1922_v29  ;;  %v2186_v13 = vunpack.i.l.bf16 %v1698_v4 }
  0xa3   : > { %2970 = vst [vmem:[#allocation26_spill] sm:$0xff] %v2145_v1  ;;  %v2922_v1 = vrot.slane %v2165_v56, 1  ;;  %v795_v25 = vadd.f32 %v779_v59, %v747_v46  ;;  %v945_v39 = vmul.f32 %v1667_v63, %v1962_v52 }
  0xa4   : > { %2971 = vst [vmem:[#allocation27_spill] sm:$0xff] %v2151_v7  ;;  %v697_v7 = vrot.slane %v646_v24, 2  ;;  %v873_v21 = vsel %vm565_vm0, %v870_v42, %v2975_v61  ;;  %v573_v58 = vsel %vm565_vm0, %v571_v44, %v572_v30  ;;  %v869_v16 = vrot.slane %v821_v38, 1  ;;  %v1693_v44 = vpop.permute.xlu0 %1692 }
  0xa5   : > { %2972 = vst [vmem:[#allocation28_spill] sm:$0xff] %v2157_v53  ;;  %v575_v53 = vsel %vm565_vm0, %v572_v30, %v2974_v49  ;;  %v994_v49 = vrot.slane %v946_v50, 2  ;;  %v624_v24 = vadd.f32 %v573_v58, %v451_v11  ;;  %v2195_v61 = vmul.f32 %v2171_v32, %v1984_v2 }
  0xa6   : > { %2973 = vst [vmem:[#allocation29_spill] sm:$0xff] %v2165_v56  ;;  %v625_v17 = vadd.f32 %v575_v53, %v452_v48  ;;  %v2977_v48 = vrot.slane %v1996_v14, 2  ;;  %v698_v0 = vsel %vm690_vm1, %v696_v37, %v697_v7  ;;  %v926_v47 = vadd.f32 %v873_v21, %v796_v57 }
  0xa7   : > { %2976 = vst [vmem:[#allocation30_spill] sm:$0xff] %v2186_v13  ;;  %v749_v4 = vadd.f32 %v698_v0, %v624_v24  ;;  %v993_v50 = vrot.slane %v945_v39, 2  ;;  %v782_v11 = vmul.f32 %v2075_v22, %v1950_v45  ;;  %v871_v59 = vsel %vm565_vm0, %v869_v16, %v870_v42 }
  0xa8   : > { %v700_v53 = vsel %vm690_vm1, %v697_v7, %v2977_v48  ;;  %v2202_v14 = vmul.f32 %v2186_v13, %v1976_v62  ;;  %v1262_v38 = vmul.f32 %v2186_v13, %v1984_v2  ;;  %v1081_v7 = vmul.f32 %v2084_v33, %v1942_v40 }
  0xa9   : > { %v750_v30 = vadd.f32 %v700_v53, %v625_v17  ;;  %v797_v63 = vadd.f32 %v781_v60, %v749_v4  ;;  %v925_v17 = vadd.f32 %v871_v59, %v795_v25  ;;  %v2208_v46 = vunpack.i.l.bf16 %v1693_v44 }
  0xaa   : > { %v876_v57 = vsel %vm565_vm0, %v874_v6, %v2922_v1  ;;  %v2979_v42 = vrot.slane %v2005_v19, 2  ;;  %v2923_v21 = vrot.slane %v2195_v61, 2  ;;  %v1320_v58 = vrot.slane %v1262_v38, 2 }
  0xab   : > { %2978 = vst [vmem:[#allocation31_spill] sm:$0xff] %v2208_v46  ;;  %v2217_v24 = vadd.f32 %v782_v11, %v750_v30  ;;  %v995_v39 = vsel %vm690_vm1, %v993_v50, %v994_v49  ;;  %v2224_v60 = vmul.f32 %v2186_v13, %v1942_v40  ;;  %v2229_v19 = vmul.f32 %v2208_v46, %v1922_v29  ;;  %v1713_v50 = vpop.permute.xlu1 %1712 }
  0xac   : > { %v997_v37 = vsel %vm690_vm1, %v994_v49, %v2979_v42  ;;  %v1049_v25 = vadd.f32 %v995_v39, %v925_v17  ;;  %v2981_v53 = vrot.slane %v2051_v55, 2  ;;  %v2982_v0 = vrot.slane %v2024_v31, 2 }
  0xad   : > { %2980 = vst [vmem:[#allocation32_spill] sm:$0xff] %v2217_v24  ;;  %v2220_v48 = vadd.f32 %v997_v37, %v926_v47  ;;  %v2236_v49 = vadd.f32 %v876_v57, %v797_v63  ;;  %v2238_v30 = vunpack.i.h.bf16 %v1693_v44  ;;  %v2242_v4 = vmul.f32 %v1915_v26, %v1976_v62 }
  0xae   : > { %v1015_v16 = vsel %vm690_vm1, %v2982_v0, %v2981_v53  ;;  %v1181_v47 = vrot.slane %v2060_v3, 1  ;;  %v2248_v11 = vsel %vm690_vm1, %v1320_v58, %v2923_v21  ;;  %v2252_v31 = vmul.f32 %v2208_v46, %v1962_v52 }
  0xaf   : > { %2983 = vst [vmem:[#allocation33_spill] sm:$0xff] %v2238_v30  ;;  %v2256_v44 = vmul.f32 %v2208_v46, %v1976_v62  ;;  %v2260_v59 = vmul.f32 %v2208_v46, %v1984_v2  ;;  %v2263_v3 = vadd.f32 %v1015_v16, %v2047_v54  ;;  %v1253_v38 = vmul.f32 %v1885_v9, %v1984_v2 }
  0xb0   : > { %v2269_v63 = vmul.f32 %v1883_v8, %v1984_v2  ;;  %v1256_v17 = vmul.f32 %v1917_v27, %v1984_v2  ;;  %v2273_v57 = vadd.f32 %v1081_v7, %v1049_v25  ;;  %v894_v42 = vrot.slane %v2229_v19, 1 }
  0xb1   : > { %v2278_v37 = vmul.f32 %v1915_v26, %v1984_v2  ;;  %v1715_v54 = vunpack.i.h.bf16 %v1713_v50  ;;  %v1186_v39 = vrot.slane %v2082_v28, 1  ;;  %v2283_v0 = vunpack.i.l.bf16 %v1713_v50 }
  0xb2   : > { %2984 = vst [vmem:[#allocation34_spill] sm:$0xff] %v2269_v63  ;;  %v1305_v16 = vrot.slane %v1253_v38, 2  ;;  %v1018_v19 = vrot.slane %v2252_v31, 2  ;;  %v1310_v1 = vrot.slane %v1256_v17, 2  ;;  %v2986_v38 = vrot.slane %v2073_v20, 1 }
  0xb3   : > { %2985 = vst [vmem:[#allocation35_spill] sm:$0xff] %v2273_v57  ;;  %v534_v7 = vmul.f32 %v1715_v54, %v1887_v10  ;;  %v659_v25 = vmul.f32 %v1715_v54, %v1889_v12  ;;  %v835_v6 = vmul.f32 %v1715_v54, %v1922_v29  ;;  %v2987_v13 = vrot.slane %v2242_v4, 1 }
  0xb4   : > { %v2296_v27 = vsel %vm565_vm0, %v1181_v47, %v2986_v38  ;;  %v959_v17 = vmul.f32 %v1715_v54, %v1962_v52  ;;  %v531_v21 = vmul.f32 %v2283_v0, %v1887_v10  ;;  %v2988_v28 = vrot.slane %v2269_v63, 2 }
  0xb5   : > { %v594_v50 = vrot.slane %v534_v7, 1  ;;  %v719_v58 = vrot.slane %v659_v25, 2  ;;  %v2301_v31 = vsel %vm565_vm0, %v1186_v39, %v2987_v13  ;;  %v2989_v25 = vrot.slane %v1936_v35, 1 }
  0xb6   : > { %v2309_v7 = vsel %vm690_vm1, %v1305_v16, %v2988_v28  ;;  %v1134_v38 = vmul.f32 %v1715_v54, %v1976_v62  ;;  %v656_v13 = vmul.f32 %v2283_v0, %v1889_v12  ;;  %v2990_v39 = vrot.slane %v2278_v37, 2 }
  0xb7   : > { %v595_v47 = vsel %vm565_vm0, %v2989_v25, %v594_v50  ;;  %v892_v63 = vrot.slane %v835_v6, 1  ;;  %v1258_v16 = vmul.f32 %v1715_v54, %v1984_v2  ;;  %v2991_v28 = vrot.slane %v1948_v43, 2 }
  0xb8   : > { %v2320_v53 = vsel %vm690_vm1, %v1310_v1, %v2990_v39  ;;  %v633_v20 = vadd.f32 %v595_v47, %v2028_v34  ;;  %v589_v50 = vrot.slane %v531_v21, 1  ;;  %v714_v25 = vrot.slane %v656_v13, 2 }
  0xb9   : > { %v720_v35 = vsel %vm690_vm1, %v2991_v28, %v719_v58  ;;  %v789_v24 = vmul.f32 %v2208_v46, %v1950_v45  ;;  %v1016_v57 = vrot.slane %v959_v17, 2  ;;  %v790_v1 = vmul.f32 %v2238_v30, %v1950_v45 }
  0xba   : > { %v758_v56 = vadd.f32 %v720_v35, %v633_v20  ;;  %v837_v34 = vmul.f32 %v2238_v30, %v1922_v29  ;;  %v1189_v6 = vrot.slane %v1134_v38, 1  ;;  %v2992_v54 = vrot.slane %v1898_v15, 1 }
  0xbb   : > { %v805_v58 = vadd.f32 %v789_v24, %v2030_v36  ;;  %v961_v21 = vmul.f32 %v2238_v30, %v1962_v52  ;;  %v832_v17 = vmul.f32 %v2283_v0, %v1922_v29  ;;  %v2993_v39 = vrot.slane %v1960_v51, 1 }
  0xbc   : > { %v590_v43 = vsel %vm565_vm0, %v2992_v54, %v589_v50  ;;  %v806_v20 = vadd.f32 %v790_v1, %v758_v56  ;;  %v895_v13 = vrot.slane %v837_v34, 1  ;;  %v1313_v28 = vrot.slane %v1258_v16, 2 }
  0xbd   : > { %v631_v47 = vadd.f32 %v590_v43, %v1989_v5  ;;  %v893_v38 = vsel %vm565_vm0, %v2993_v39, %v892_v63  ;;  %v2994_v15 = vrot.slane %v1913_v23, 2  ;;  %v1019_v36 = vrot.slane %v961_v21, 2  ;;  %v2998_v43 = vld [vmem:[#allocation19_spill] sm:$0xff] }
  0xbe   : > { %v896_v50 = vsel %vm565_vm0, %v894_v42, %v895_v13  ;;  %v2995_v5 = vrot.slane %v2111_v41, 1  ;;  %v1089_v1 = vmul.f32 %v2208_v46, %v1942_v40  ;;  %v2996_v51 = vrot.slane %v2051_v55, 2 }
  0xbf   : > { %v715_v35 = vsel %vm690_vm1, %v2994_v15, %v714_v25  ;;  %v935_v16 = vadd.f32 %v896_v50, %v805_v58  ;;  %v2359_v23 = vmul.f32 %v2283_v0, %v1962_v52  ;;  %v2997_v25 = vld [vmem:[#allocation7_spill] sm:$0xff]  ;;  %v887_v42 = vrot.slane %v832_v17, 1 }
  0xc0   : > { %v756_v24 = vadd.f32 %v715_v35, %v631_v47  ;;  %v898_v56 = vsel %vm565_vm0, %v895_v13, %v2995_v5  ;;  %v1017_v63 = vsel %vm690_vm1, %v2996_v51, %v1016_v57  ;;  %v1020_v41 = vsel %vm690_vm1, %v1018_v19, %v1019_v36 }
  0xc1   : > { %v936_v34 = vadd.f32 %v898_v56, %v806_v20  ;;  %v2999_v21 = vrot.slane %v2998_v43, 2  ;;  %v1059_v13 = vadd.f32 %v1020_v41, %v935_v16  ;;  %v1092_v55 = vmul.f32 %v2171_v32, %v1942_v40  ;;  %v3002_v16 = vld [vmem:[#allocation4_spill] sm:$0xff] }
  0xc2   : > { %v804_v54 = vadd.f32 %v2997_v25, %v756_v24  ;;  %v1136_v57 = vmul.f32 %v2238_v30, %v1976_v62  ;;  %v1105_v20 = vadd.f32 %v1089_v1, %v2263_v3  ;;  %v1139_v17 = vmul.f32 %v2171_v32, %v1976_v62 }
  0xc3   : > { %v1022_v47 = vsel %vm690_vm1, %v1019_v36, %v2999_v21  ;;  %v1260_v19 = vmul.f32 %v2238_v30, %v1984_v2  ;;  %v3000_v15 = vrot.slane %v2242_v4, 1  ;;  %v1107_v36 = vadd.f32 %v2224_v60, %v1059_v13 }
  0xc4   : > { %v1060_v39 = vadd.f32 %v1022_v47, %v936_v34  ;;  %v934_v58 = vadd.f32 %v893_v38, %v804_v54  ;;  %v1192_v50 = vrot.slane %v1136_v57, 1  ;;  %v1090_v38 = vmul.f32 %v2238_v30, %v1942_v40  ;;  %v3008_v47 = vld [vmem:[#allocation21_spill] sm:$0xff] }
  0xc5   : > { %v2378_v35 = vsel %vm565_vm0, %v3000_v15, %v1189_v6  ;;  %v1197_v3 = vrot.slane %v1139_v17, 1  ;;  %v1316_v56 = vrot.slane %v1260_v19, 2  ;;  %v3001_v1 = vrot.slane %v2278_v37, 2  ;;  %v3006_v37 = vld [vmem:[#allocation14_spill] sm:$0xff] }
  0xc6   : > { %v1108_v24 = vadd.f32 %v1092_v55, %v1060_v39  ;;  %v1058_v5 = vadd.f32 %v1017_v63, %v934_v58  ;;  %v3003_v4 = vrot.slane %v3002_v16, 1  ;;  %v1011_v60 = vrot.slane %v2359_v23, 2 }
  0xc7   : > { %v2386_v51 = vsel %vm690_vm1, %v3001_v1, %v1313_v28  ;;  %v3004_v34 = vrot.slane %v2256_v44, 1  ;;  %v3005_v54 = vrot.slane %v2202_v14, 1  ;;  %v3007_v43 = vrot.slane %v3006_v37, 1  ;;  %v2412_v14 = vld [vmem:[%s2893_s3] ss:$0 sm:$0xff]  ;;  %v3017_v37 = vld [vmem:[#allocation25_spill] sm:$0xff] }
  0xc8   : > { %v2391_v6 = vsel %vm565_vm0, %v3003_v4, %v887_v42  ;;  %v1106_v25 = vadd.f32 %v1090_v38, %v1058_v5  ;;  %v3009_v42 = vrot.slane %v3008_v47, 1  ;;  %v3010_v44 = vrot.slane %v2260_v59, 2  ;;  %v3016_v4 = vld [vmem:[#allocation26_spill] sm:$0xff] }
  0xc9   : > { %v1193_v63 = vsel %vm565_vm0, %v3004_v34, %v1192_v50  ;;  %v1198_v41 = vsel %vm565_vm0, %v3005_v54, %v1197_v3  ;;  %v1200_v28 = vsel %vm565_vm0, %v1197_v3, %v3007_v43  ;;  %v2416_v57 = vmul.f32 %v2283_v0, %v1976_v62 }
  0xca   : > { %v1235_v21 = vadd.f32 %v1193_v63, %v1105_v20  ;;  %v1195_v13 = vsel %vm565_vm0, %v1192_v50, %v3009_v42  ;;  %v1237_v23 = vadd.f32 %v1198_v41, %v1107_v36  ;;  %v1238_v39 = vadd.f32 %v1200_v28, %v1108_v24  ;;  %v3011_v20 = vld [vmem:[#allocation15_spill] sm:$0xff]  ;;  %v3014_v36 = vld [vmem:[#allocation22_spill] sm:$0xff] }
  0xcb   : > { %v1317_v55 = vsel %vm690_vm1, %v3010_v44, %v1316_v56  ;;  %v1236_v58 = vadd.f32 %v1195_v13, %v1106_v25  ;;  %v3012_v17 = vrot.slane %v3011_v20, 2  ;;  %v3013_v19 = vrot.slane %v2195_v61, 2 }
  0xcc   : > { %v1359_v59 = vadd.f32 %v1317_v55, %v1235_v21  ;;  %v3015_v24 = vrot.slane %v3014_v36, 2  ;;  %v1361_v5 = vadd.f32 %v2248_v11, %v1237_v23  ;;  %v453_v3 = vmul.f32 %v2084_v33, %v1903_v18 }
  0xcd   : > { %v1324_v15 = vsel %vm690_vm1, %v3013_v19, %v3012_v17  ;;  %v455_v34 = vmul.f32 %v3016_v4, %v1903_v18  ;;  %v523_v61 = vmul.f32 %v2084_v33, %v1887_v10  ;;  %v2438_v11 = vmul.f32 %v2075_v22, %v1887_v10 }
  0xce   : > { %v1319_v50 = vsel %vm690_vm1, %v1316_v56, %v3015_v24  ;;  %v1362_v38 = vadd.f32 %v1324_v15, %v1238_v39  ;;  %v1379_v16 = vadd.f32 %v2412_v14, %v1359_v59  ;;  %v1381_v63 = vadd.f32 %v2412_v14, %v1361_v5 }
  0xcf   : > { %v1360_v1 = vadd.f32 %v1319_v50, %v1236_v58  ;;  %v526_v56 = vmul.f32 %v3016_v4, %v1887_v10  ;;  %v2446_v43 = vmul.f32 %v3017_v37, %v1887_v10  ;;  %v576_v28 = vrot.slane %v523_v61, 1  ;;  %v3018_v50 = vld [vmem:[#allocation6_spill] sm:$0xff] }
  0xd0   : > { %v1382_v25 = vadd.f32 %v2412_v14, %v1362_v38  ;;  %v1395_v41 = vmax.f32 %v1379_v16, 0.0  ;;  %v1397_v21 = vmax.f32 %v1381_v63, 0.0  ;;  %v2932_v42 = vrot.slane %v2438_v11, 1 }
  0xd1   : > { %v1380_v54 = vadd.f32 %v2412_v14, %v1360_v1  ;;  %v581_v13 = vrot.slane %v526_v56, 1  ;;  %v2934_v44 = vrot.slane %v2446_v43, 1  ;;  %v648_v55 = vmul.f32 %v2084_v33, %v1889_v12 }
  0xd2   : > { %v1398_v47 = vmax.f32 %v1382_v25, 0.0  ;;  %v1411_v39 = vpack.c.bf16 %v1395_v41, %v1395_v41  ;;  %v1413_v58 = vpack.c.bf16 %v1397_v21, %v1397_v21  ;;  %v578_v17 = vsel %vm565_vm0, %v576_v28, %v2932_v42  ;;  %v3022_v42 = vld [vmem:[#allocation5_spill] sm:$0xff] }
  0xd3   : > { %v1396_v23 = vmax.f32 %v1380_v54, 0.0  ;;  %v2462_v19 = vmul.f32 %v2075_v22, %v1889_v12  ;;  %v583_v59 = vsel %vm565_vm0, %v581_v13, %v2934_v44  ;;  %v626_v36 = vadd.f32 %v578_v17, %v453_v3 }
  0xd4   : > { %v1414_v20 = vpack.c.bf16 %v1398_v47, %v1398_v47  ;;  %1428 = vst.msk [vmem:[%s2455_s23 + $0x20] sm:$0xf] %vm1419_vm2, %v1411_v39  ;;  %v651_v24 = vmul.f32 %v3016_v4, %v1889_v12  ;;  %v3019_v5 = vrot.slane %v3018_v50, 2  ;;  %v2480_v1 = vmul.f32 %v3017_v37, %v1889_v12 }
  0xd5   : > { %v1412_v15 = vpack.c.bf16 %v1396_v23, %v1396_v23  ;;  %1430 = vst.msk [vmem:[%s2455_s23 + $0x28] sm:$0xf] %vm1419_vm2, %v1413_v58  ;;  %v701_v16 = vrot.slane %v648_v55, 2  ;;  %v2931_v61 = vrot.slane %v2462_v19, 2  ;;  %v2485_v3 = vmul.f32 %v2283_v0, %v1984_v2 }
  0xd6   : > { %v2474_v38 = vsel %vm690_vm1, %v3019_v5, %v1011_v60  ;;  %v628_v63 = vadd.f32 %v583_v59, %v455_v34  ;;  %v706_v25 = vrot.slane %v651_v24, 2  ;;  %v783_v60 = vmul.f32 %v3016_v4, %v1950_v45  ;;  %1431 = vst.msk [vmem:[%s2455_s23 + $0x2c] sm:$0xf] %vm1419_vm2, %v1414_v20 }
  0xd7   : > { %1429 = vst.msk [vmem:[%s2455_s23 + $0x24] sm:$0xf] %vm1419_vm2, %v1412_v15  ;;  %v703_v54 = vsel %vm690_vm1, %v701_v16, %v2931_v61  ;;  %v2933_v41 = vrot.slane %v2480_v1, 2  ;;  %v827_v0 = vmul.f32 %v3016_v4, %v1922_v29  ;;  %v2502_v34 = vmul.f32 %v3017_v37, %v1922_v29 }
  0xd8   : > { %v751_v28 = vadd.f32 %v703_v54, %v626_v36  ;;  %v948_v21 = vmul.f32 %v2084_v33, %v1962_v52  ;;  %v2508_v47 = vmul.f32 %v2075_v22, %v1962_v52  ;;  %v951_v39 = vmul.f32 %v3016_v4, %v1962_v52 }
  0xd9   : > { %v708_v13 = vsel %vm690_vm1, %v706_v25, %v2933_v41  ;;  %v879_v23 = vrot.slane %v827_v0, 1  ;;  %v2517_v55 = vmul.f32 %v3017_v37, %v1962_v52  ;;  %v785_v20 = vmul.f32 %v1885_v9, %v1950_v45 }
  0xda   : > { %v753_v58 = vadd.f32 %v708_v13, %v628_v63  ;;  %v799_v17 = vadd.f32 %v783_v60, %v751_v28  ;;  %v2930_v15 = vrot.slane %v2502_v34, 1  ;;  %v2524_v59 = vmul.f32 %v2075_v22, %v1903_v18  ;;  %v3020_v13 = vld [vmem:[#allocation8_spill] sm:$0xff] }
  0xdb   : > { %v2528_v36 = vmul.f32 %v3017_v37, %v1903_v18  ;;  %v1003_v24 = vrot.slane %v951_v39, 2  ;;  %v2929_v50 = vrot.slane %v2517_v55, 2  ;;  %v2533_v5 = vmul.f32 %v3017_v37, %v1950_v45 }
  0xdc   : > { %v2537_v16 = vmul.f32 %v1883_v8, %v1950_v45  ;;  %v801_v63 = vadd.f32 %v785_v20, %v753_v58  ;;  %v881_v25 = vsel %vm565_vm0, %v879_v23, %v2930_v15  ;;  %v998_v54 = vrot.slane %v948_v21, 2 }
  0xdd   : > { %v929_v60 = vadd.f32 %v881_v25, %v799_v17  ;;  %v2935_v0 = vrot.slane %v2508_v47, 2  ;;  %v2545_v28 = vmul.f32 %v2075_v22, %v1942_v40  ;;  %v1005_v56 = vsel %vm690_vm1, %v1003_v24, %v2929_v50  ;;  %v3021_v25 = vld [vmem:[#allocation16_spill] sm:$0xff] }
  0xde   : > { %v931_v39 = vadd.f32 %v3020_v13, %v801_v63  ;;  %v2553_v58 = vmul.f32 %v3016_v4, %v1942_v40  ;;  %v1123_v23 = vmul.f32 %v2084_v33, %v1976_v62  ;;  %v1085_v20 = vmul.f32 %v1885_v9, %v1942_v40 }
  0xdf   : > { %v1053_v21 = vadd.f32 %v1005_v56, %v929_v60  ;;  %v2561_v17 = vmul.f32 %v2075_v22, %v1976_v62  ;;  %v1126_v63 = vmul.f32 %v3016_v4, %v1976_v62  ;;  %v2568_v13 = vmul.f32 %v3017_v37, %v1942_v40 }
  0xe0   : > { %v1055_v24 = vadd.f32 %v3021_v25, %v931_v39  ;;  %v2572_v50 = vmul.f32 %v3017_v37, %v1976_v62  ;;  %v1247_v9 = vmul.f32 %v2084_v33, %v1984_v2  ;;  %v1171_v60 = vrot.slane %v1123_v23, 1  ;;  %v1708_v39 = vpop.permute.xlu0 %1707 }
  0xe1   : > { %v1101_v56 = vadd.f32 %v1085_v20, %v1053_v21  ;;  %v2938_v15 = vrot.slane %v2561_v17, 1  ;;  %v2579_v61 = vmul.f32 %v2075_v22, %v1984_v2  ;;  %v1000_v25 = vsel %vm690_vm1, %v998_v54, %v2935_v0 }
  0xe2   : > { %v1103_v41 = vadd.f32 %v3022_v42, %v1055_v24  ;;  %v1250_v44 = vmul.f32 %v3016_v4, %v1984_v2  ;;  %v2589_v33 = vmul.f32 %v3017_v37, %v1984_v2  ;;  %v2593_v23 = vmul.f32 %v1883_v8, %v1942_v40 }
  0xe3   : > { %v2597_v22 = vmul.f32 %v1915_v26, %v1942_v40  ;;  %v1176_v21 = vrot.slane %v1126_v63, 1  ;;  %v1231_v54 = vadd.f32 %v2296_v27, %v1101_v56  ;;  %v2941_v42 = vrot.slane %v2572_v50, 1 }
  0xe4   : > { %v1233_v20 = vadd.f32 %v2301_v31, %v1103_v41  ;;  %v1295_v4 = vrot.slane %v1247_v9, 2  ;;  %v1710_v24 = vunpack.i.h.bf16 %v1708_v39  ;;  %v1173_v37 = vsel %vm565_vm0, %v1171_v60, %v2938_v15 }
  0xe5   : > { %v1296_v8 = vrot.slane %v2579_v61, 2  ;;  %v1300_v0 = vrot.slane %v1250_v44, 2  ;;  %v1355_v30 = vadd.f32 %v2309_v7, %v1231_v54  ;;  %v1709_v60 = vunpack.i.l.bf16 %v1708_v39 }
  0xe6   : > { %v1357_v63 = vadd.f32 %v2320_v53, %v1233_v20  ;;  %v528_v27 = vmul.f32 %v1710_v24, %v1887_v10  ;;  %v653_v56 = vmul.f32 %v1710_v24, %v1889_v12  ;;  %v829_v41 = vmul.f32 %v1710_v24, %v1922_v29 }
  0xe7   : > { %v1375_v31 = vadd.f32 %v2412_v14, %v1355_v30  ;;  %v2614_v9 = vmul.f32 %v1710_v24, %v1962_v52  ;;  %v1128_v54 = vmul.f32 %v1710_v24, %v1976_v62  ;;  %v1178_v53 = vsel %vm565_vm0, %v1176_v21, %v2941_v42 }
  0xe8   : > { %v1377_v44 = vadd.f32 %v2412_v14, %v1357_v63  ;;  %v584_v15 = vrot.slane %v528_v27, 1  ;;  %v709_v7 = vrot.slane %v653_v56, 2  ;;  %v1297_v30 = vsel %vm690_vm1, %v1295_v4, %v1296_v8 }
  0xe9   : > { %v1391_v20 = vmax.f32 %v1375_v31, 0.0  ;;  %v1051_v26 = vadd.f32 %v1000_v25, %v2236_v49  ;;  %v3023_v39 = vrot.slane %v2589_v33, 2  ;;  %v3024_v56 = vrot.slane %v2446_v43, 1 }
  0xea   : > { %v1393_v27 = vmax.f32 %v1377_v44, 0.0  ;;  %v1252_v21 = vmul.f32 %v1710_v24, %v1984_v2  ;;  %v882_v18 = vrot.slane %v829_v41, 1  ;;  %v1006_v4 = vrot.slane %v2614_v9, 2 }
  0xeb   : > { %v1302_v63 = vsel %vm690_vm1, %v1300_v0, %v3023_v39  ;;  %v585_v46 = vsel %vm565_vm0, %v3024_v56, %v584_v15  ;;  %v1407_v42 = vpack.c.bf16 %v1391_v20, %v1391_v20  ;;  %v3025_v49 = vrot.slane %v2480_v1, 2  ;;  %v3027_v56 = vld [vmem:[#allocation35_spill] sm:$0xff] }
  0xec   : > { %v629_v45 = vadd.f32 %v585_v46, %v2528_v36  ;;  %v1409_v31 = vpack.c.bf16 %v1393_v27, %v1393_v27  ;;  %v1179_v0 = vrot.slane %v1128_v54, 1  ;;  %v525_v44 = vmul.f32 %v1709_v60, %v1887_v10 }
  0xed   : > { %v710_v25 = vsel %vm690_vm1, %v3025_v49, %v709_v7  ;;  %1424 = vst.msk [vmem:[%s2455_s23 + $0x10] sm:$0xf] %vm1419_vm2, %v1407_v42  ;;  %v650_v15 = vmul.f32 %v1709_v60, %v1889_v12  ;;  %v826_v24 = vmul.f32 %v1709_v60, %v1922_v29  ;;  %v950_v46 = vmul.f32 %v1709_v60, %v1962_v52 }
  0xee   : > { %v754_v43 = vadd.f32 %v710_v25, %v629_v45  ;;  %1426 = vst.msk [vmem:[%s2455_s23 + $0x18] sm:$0xf] %vm1419_vm2, %v1409_v31  ;;  %v579_v36 = vrot.slane %v525_v44, 1  ;;  %v1098_v1 = vadd.f32 %v2545_v28, %v2220_v48  ;;  %v1099_v41 = vadd.f32 %v2553_v58, %v1051_v26 }
  0xef   : > { %v1125_v9 = vmul.f32 %v1709_v60, %v1976_v62  ;;  %v704_v42 = vrot.slane %v650_v15, 2  ;;  %v877_v45 = vrot.slane %v826_v24, 1  ;;  %v1001_v54 = vrot.slane %v950_v46, 2 }
  0xf0   : > { %v802_v7 = vadd.f32 %v2537_v16, %v754_v43  ;;  %v3026_v20 = vrot.slane %v2438_v11, 1  ;;  %v1227_v31 = vadd.f32 %v1173_v37, %v3027_v56  ;;  %v1229_v49 = vadd.f32 %v1178_v53, %v1099_v41  ;;  %v3029_v16 = vld [vmem:[#allocation29_spill] sm:$0xff]  ;;  %v3031_v43 = vld [vmem:[#allocation32_spill] sm:$0xff] }
  0xf1   : > { %v1174_v27 = vrot.slane %v1125_v9, 1  ;;  %v3028_v28 = vrot.slane %v2462_v19, 2  ;;  %v3030_v26 = vrot.slane %v3029_v16, 1  ;;  %v3032_v15 = vrot.slane %v2508_v47, 2  ;;  %v3038_v16 = vld [vmem:[#allocation27_spill] sm:$0xff] }
  0xf2   : > { %v580_v39 = vsel %vm565_vm0, %v3026_v20, %v579_v36  ;;  %v932_v25 = vadd.f32 %v2391_v6, %v802_v7  ;;  %v3033_v37 = vrot.slane %v2561_v17, 1  ;;  %v1351_v36 = vadd.f32 %v1297_v30, %v1227_v31 }
  0xf3   : > { %v627_v48 = vadd.f32 %v580_v39, %v2524_v59  ;;  %v705_v58 = vsel %vm690_vm1, %v3028_v28, %v704_v42  ;;  %v878_v44 = vsel %vm565_vm0, %v3030_v26, %v877_v45  ;;  %v1002_v24 = vsel %vm690_vm1, %v3032_v15, %v1001_v54  ;;  %v3039_v26 = vld [vmem:[#allocation28_spill] sm:$0xff] }
  0xf4   : > { %v928_v11 = vadd.f32 %v878_v44, %v3031_v43  ;;  %v1175_v6 = vsel %vm565_vm0, %v3033_v37, %v1174_v27  ;;  %v1249_v59 = vmul.f32 %v1709_v60, %v1984_v2  ;;  %v1056_v19 = vadd.f32 %v2474_v38, %v932_v25 }
  0xf5   : > { %v752_v53 = vadd.f32 %v705_v58, %v627_v48  ;;  %v1228_v46 = vadd.f32 %v1175_v6, %v1098_v1  ;;  %v1303_v41 = vrot.slane %v1252_v21, 2  ;;  %v1353_v42 = vadd.f32 %v1302_v63, %v1229_v49 }
  0xf6   : > { %v1052_v9 = vadd.f32 %v1002_v24, %v928_v11  ;;  %v1298_v7 = vrot.slane %v1249_v59, 2  ;;  %v3034_v45 = vrot.slane %v2502_v34, 1  ;;  %v1104_v54 = vadd.f32 %v2597_v22, %v1056_v19  ;;  %v3041_v11 = vld [vmem:[#allocation13_spill] sm:$0xff] }
  0xf7   : > { %v800_v17 = vadd.f32 %v2533_v5, %v752_v53  ;;  %v1371_v20 = vadd.f32 %v2412_v14, %v1351_v36  ;;  %v3035_v60 = vrot.slane %v2572_v50, 1  ;;  %v1373_v34 = vadd.f32 %v2412_v14, %v1353_v42  ;;  %v1728_v5 = vpop.permute.xlu1 %1727  ;;  %v3044_v53 = vld [vmem:[#allocation34_spill] sm:$0xff] }
  0xf8   : > { %v883_v47 = vsel %vm565_vm0, %v3034_v45, %v882_v18  ;;  %v1100_v30 = vadd.f32 %v2568_v13, %v1052_v9  ;;  %v1299_v63 = vsel %vm690_vm1, %v1296_v8, %v1298_v7  ;;  %v1234_v18 = vadd.f32 %v2378_v35, %v1104_v54  ;;  %v3046_v7 = vld [vmem:[#allocation23_spill] sm:$0xff]  ;;  %v3048_v45 = vld [vmem:[#allocation24_spill] sm:$0xff] }
  0xf9   : > { %v1180_v38 = vsel %vm565_vm0, %v3035_v60, %v1179_v0  ;;  %v930_v21 = vadd.f32 %v883_v47, %v800_v17  ;;  %v1352_v22 = vadd.f32 %v1299_v63, %v1228_v46  ;;  %v1387_v1 = vmax.f32 %v1371_v20, 0.0 }
  0xfa   : > { %v3036_v39 = vrot.slane %v2517_v55, 2  ;;  %v3037_v0 = vrot.slane %v2589_v33, 2  ;;  %v1230_v61 = vadd.f32 %v1180_v38, %v1100_v30  ;;  %v1389_v27 = vmax.f32 %v1373_v34, 0.0  ;;  %v3050_v34 = vld [vmem:[#allocation30_spill] sm:$0xff] }
  0xfb   : > { %v1358_v8 = vadd.f32 %v2386_v51, %v1234_v18  ;;  %v1372_v35 = vadd.f32 %v2412_v14, %v1352_v22  ;;  %v1403_v31 = vpack.c.bf16 %v1387_v1, %v1387_v1  ;;  %v1308_v49 = vrot.slane %v2485_v3, 2 }
  0xfc   : > { %v1007_v50 = vsel %vm690_vm1, %v3036_v39, %v1006_v4  ;;  %v1304_v13 = vsel %vm690_vm1, %v3037_v0, %v1303_v41  ;;  %v1405_v55 = vpack.c.bf16 %v1389_v27, %v1389_v27  ;;  %v1730_v48 = vunpack.i.h.bf16 %v1728_v5 }
  0xfd   : > { %v1054_v56 = vadd.f32 %v1007_v50, %v930_v21  ;;  %v1354_v25 = vadd.f32 %v1304_v13, %v1230_v61  ;;  %v1378_v4 = vadd.f32 %v2412_v14, %v1358_v8  ;;  %v1388_v28 = vmax.f32 %v1372_v35, 0.0  ;;  %1420 = vst.msk [vmem:[%s2455_s23] sm:$0xf] %vm1419_vm2, %v1403_v31  ;;  %v3051_v35 = vld [vmem:[#allocation2_spill] sm:$0xff] }
  0xfe   : > { %v1729_v58 = vunpack.i.l.bf16 %v1728_v5  ;;  %v1333_v51 = vrot.slane %v3038_v16, 2  ;;  %v1331_v44 = vrot.slane %v3039_v26, 2  ;;  %v3040_v43 = vrot.slane %v2416_v57, 1  ;;  %1422 = vst.msk [vmem:[%s2455_s23 + $0x8] sm:$0xf] %vm1419_vm2, %v1405_v55  ;;  %v3052_v16 = vld [vmem:[#allocation9_spill] sm:$0xff] }
  0xff   : > { %v1102_v33 = vadd.f32 %v2593_v23, %v1054_v56  ;;  %v3042_v3 = vrot.slane %v3041_v11, 1  ;;  %v1374_v24 = vadd.f32 %v2412_v14, %v1354_v25  ;;  %v3043_v23 = vld [vmem:[#allocation20_spill] sm:$0xff]  ;;  %v1394_v6 = vmax.f32 %v1378_v4, 0.0 }
 0x100   : > { %v2711_v37 = vmul.f32 %v3043_v23, %v1942_v40  ;;  %v1404_v19 = vpack.c.bf16 %v1388_v28, %v1388_v28  ;;  %v3045_v46 = vrot.slane %v3044_v53, 2  ;;  %v2717_v41 = vmul.f32 %v1730_v48, %v1976_v62 }
 0x101   : > { %v1185_v15 = vsel %vm565_vm0, %v3042_v3, %v3040_v43  ;;  %v1390_v36 = vmax.f32 %v1374_v24, 0.0  ;;  %v2720_v9 = vmul.f32 %v1730_v48, %v1984_v2  ;;  %v3047_v42 = vrot.slane %v3046_v7, 1 }
 0x102   : > { %v1232_v59 = vadd.f32 %v1185_v15, %v1102_v33  ;;  %v1309_v57 = vsel %vm690_vm1, %v3045_v46, %v1308_v49  ;;  %v3049_v47 = vrot.slane %v3048_v45, 1  ;;  %v1410_v17 = vpack.c.bf16 %v1394_v6, %v1394_v6  ;;  %1421 = vst.msk [vmem:[%s2455_s23 + $0x4] sm:$0xf] %vm1419_vm2, %v1404_v19  ;;  %v3054_v46 = vld [vmem:[#allocation10_spill] sm:$0xff] }
 0x103   : > { %v844_v60 = vmul.f32 %v1729_v58, %v1922_v29  ;;  %v2735_v38 = vsel %vm690_vm1, %v1331_v44, %v1333_v51  ;;  %v1406_v30 = vpack.c.bf16 %v1390_v36, %v1390_v36  ;;  %v2738_v63 = vmul.f32 %v1730_v48, %v1942_v40  ;;  %v1723_v48 = vpop.permute.xlu0 %1722 }
 0x104   : > { %v2727_v54 = vsel %vm565_vm0, %v3049_v47, %v3047_v42  ;;  %v1356_v20 = vadd.f32 %v1309_v57, %v1232_v59  ;;  %v538_v18 = vmul.f32 %v3050_v34, %v1887_v10  ;;  %1427 = vst.msk [vmem:[%s2455_s23 + $0x1c] sm:$0xf] %vm1419_vm2, %v1410_v17  ;;  %v968_v22 = vmul.f32 %v1729_v58, %v1962_v52  ;;  %v3056_v17 = vld [vmem:[#allocation3_spill] sm:$0xff] }
 0x105   : > { %v539_v1 = vmul.f32 %v2171_v32, %v1887_v10  ;;  %v664_v5 = vmul.f32 %v2171_v32, %v1889_v12  ;;  %1423 = vst.msk [vmem:[%s2455_s23 + $0xc] sm:$0xf] %vm1419_vm2, %v1406_v30  ;;  %v1206_v39 = vrot.slane %v2717_v41, 1  ;;  %v1330_v50 = vrot.slane %v2720_v9, 2 }
 0x106   : > { %v1376_v21 = vadd.f32 %v2412_v14, %v1356_v20  ;;  %v601_v0 = vrot.slane %v538_v18, 1  ;;  %v663_v13 = vmul.f32 %v3050_v34, %v1889_v12  ;;  %v907_v27 = vrot.slane %v844_v60, 1 }
 0x107   : > { %v2757_v8 = vmul.f32 %v1729_v58, %v1976_v62  ;;  %v602_v56 = vrot.slane %v539_v1, 1  ;;  %v464_v31 = vmul.f32 %v2171_v32, %v3051_v35  ;;  %v727_v49 = vrot.slane %v664_v5, 2 }
 0x108   : > { %v1392_v61 = vmax.f32 %v1376_v21, 0.0  ;;  %v839_v25 = vmul.f32 %v3050_v34, %v1922_v29  ;;  %v2765_v55 = vmul.f32 %v2171_v32, %v1922_v29  ;;  %v1031_v33 = vrot.slane %v968_v22, 2 }
 0x109   : > { %v603_v28 = vsel %vm565_vm0, %v601_v0, %v602_v56  ;;  %v3053_v51 = vrot.slane %v3052_v16, 1  ;;  %v463_v11 = vmul.f32 %v3050_v34, %v3051_v35  ;;  %v726_v15 = vrot.slane %v663_v13, 2 }
 0x10a   : > { %v1408_v4 = vpack.c.bf16 %v1392_v61, %v1392_v61  ;;  %v2775_v24 = vmul.f32 %v3050_v34, %v1962_v52  ;;  %v1204_v23 = vrot.slane %v2757_v8, 1  ;;  %v2781_v6 = vmul.f32 %v1729_v58, %v1984_v2 }
 0x10b   : > { %v605_v43 = vsel %vm565_vm0, %v602_v56, %v3053_v51  ;;  %v2785_v59 = vmul.f32 %v2171_v32, %v1962_v52  ;;  %v1725_v19 = vunpack.i.h.bf16 %v1723_v48  ;;  %v636_v53 = vadd.f32 %v603_v28, %v463_v11 }
 0x10c   : > { %v637_v3 = vadd.f32 %v605_v43, %v464_v31  ;;  %1425 = vst.msk [vmem:[%s2455_s23 + $0x14] sm:$0xf] %vm1419_vm2, %v1408_v4  ;;  %v3055_v57 = vrot.slane %v3054_v46, 2  ;;  %v899_v7 = vrot.slane %v839_v25, 1  ;;  %v900_v42 = vrot.slane %v2765_v55, 1  ;;  %v3057_v31 = vld [vmem:[#allocation31_spill] sm:$0xff] }
 0x10d   : > { %v791_v20 = vmul.f32 %v3050_v34, %v3056_v17  ;;  %v794_v58 = vmul.f32 %v1725_v19, %v3056_v17  ;;  %v843_v60 = vmul.f32 %v1725_v19, %v1922_v29  ;;  %v728_v30 = vsel %vm690_vm1, %v726_v15, %v727_v49  ;;  %v3059_v46 = vld [vmem:[#allocation17_spill] sm:$0xff] }
 0x10e   : > { %v730_v36 = vsel %vm690_vm1, %v727_v49, %v3055_v57  ;;  %v792_v18 = vmul.f32 %v2171_v32, %v3056_v17  ;;  %v1023_v21 = vrot.slane %v2775_v24, 2  ;;  %v967_v22 = vmul.f32 %v1725_v19, %v1962_v52  ;;  %v3058_v32 = vld [vmem:[#allocation33_spill] sm:$0xff] }
 0x10f   : > { %v762_v47 = vadd.f32 %v730_v36, %v637_v3  ;;  %v1024_v1 = vrot.slane %v2785_v59, 2  ;;  %v905_v0 = vrot.slane %v843_v60, 1  ;;  %v1724_v13 = vunpack.i.l.bf16 %v1723_v48 }
 0x110   : > { %v761_v61 = vadd.f32 %v728_v30, %v636_v53  ;;  %v901_v34 = vsel %vm565_vm0, %v899_v7, %v900_v42  ;;  %v1029_v56 = vrot.slane %v967_v22, 2  ;;  %v535_v25 = vmul.f32 %v3057_v31, %v1887_v10 }
 0x111   : > { %v810_v5 = vadd.f32 %v794_v58, %v762_v47  ;;  %v908_v49 = vsel %vm565_vm0, %v905_v0, %v907_v27  ;;  %v536_v55 = vmul.f32 %v3058_v32, %v1887_v10  ;;  %v660_v4 = vmul.f32 %v3057_v31, %v1889_v12 }
 0x112   : > { %v661_v28 = vmul.f32 %v3058_v32, %v1889_v12  ;;  %v1032_v48 = vsel %vm690_vm1, %v1029_v56, %v1031_v33  ;;  %v461_v51 = vmul.f32 %v3057_v31, %v3051_v35  ;;  %v462_v43 = vmul.f32 %v3058_v32, %v3051_v35  ;;  %v3063_v31 = vld [vmem:[#allocation11_spill] sm:$0xff] }
 0x113   : > { %v940_v16 = vadd.f32 %v908_v49, %v810_v5  ;;  %v596_v11 = vrot.slane %v535_v25, 1  ;;  %v597_v27 = vrot.slane %v536_v55, 1  ;;  %v721_v3 = vrot.slane %v660_v4, 2 }
 0x114   : > { %v722_v15 = vrot.slane %v661_v28, 2  ;;  %v793_v24 = vmul.f32 %v1724_v13, %v3056_v17  ;;  %v842_v59 = vmul.f32 %v1724_v13, %v1922_v29  ;;  %v966_v12 = vmul.f32 %v1724_v13, %v1962_v52  ;;  %v3061_v17 = vld [vmem:[#allocation18_spill] sm:$0xff] }
 0x115   : > { %v1064_v10 = vadd.f32 %v1032_v48, %v940_v16  ;;  %v1142_v53 = vmul.f32 %v1725_v19, %v1976_v62  ;;  %v598_v33 = vsel %vm565_vm0, %v596_v11, %v597_v27  ;;  %v3060_v57 = vrot.slane %v3059_v46, 1 }
 0x116   : > { %v723_v35 = vsel %vm690_vm1, %v721_v3, %v722_v15  ;;  %v634_v47 = vadd.f32 %v598_v33, %v461_v51  ;;  %v809_v60 = vadd.f32 %v793_v24, %v761_v61  ;;  %v3062_v30 = vrot.slane %v3061_v17, 2 }
 0x117   : > { %v600_v36 = vsel %vm565_vm0, %v597_v27, %v3060_v57  ;;  %v1112_v7 = vadd.f32 %v2711_v37, %v1064_v10  ;;  %v904_v52 = vrot.slane %v842_v59, 1  ;;  %v1028_v22 = vrot.slane %v966_v12, 2 }
 0x118   : > { %v635_v58 = vadd.f32 %v600_v36, %v462_v43  ;;  %v725_v29 = vsel %vm690_vm1, %v722_v15, %v3062_v30  ;;  %v1141_v5 = vmul.f32 %v1724_v13, %v1976_v62  ;;  %v3064_v25 = vrot.slane %v3063_v31, 1 }
 0x119   : > { %v1242_v32 = vadd.f32 %v2727_v54, %v1112_v7  ;;  %v759_v55 = vadd.f32 %v723_v35, %v634_v47  ;;  %v1094_v37 = vmul.f32 %v1725_v19, %v1942_v40  ;;  %v1202_v28 = vrot.slane %v1142_v53, 1 }
 0x11a   : > { %v903_v49 = vsel %vm565_vm0, %v900_v42, %v3064_v25  ;;  %v760_v4 = vadd.f32 %v725_v29, %v635_v58  ;;  %v1266_v61 = vmul.f32 %v1725_v19, %v1984_v2  ;;  %v906_v16 = vsel %vm565_vm0, %v904_v52, %v905_v0 }
 0x11b   : > { %v1366_v48 = vadd.f32 %v2735_v38, %v1242_v32  ;;  %v807_v51 = vadd.f32 %v791_v20, %v759_v55  ;;  %v939_v62 = vadd.f32 %v906_v16, %v809_v60  ;;  %v1030_v11 = vsel %vm690_vm1, %v1028_v22, %v1029_v56 }
 0x11c   : > { %v808_v43 = vadd.f32 %v792_v18, %v760_v4  ;;  %v1093_v42 = vmul.f32 %v1724_v13, %v1942_v40  ;;  %v1201_v27 = vrot.slane %v1141_v5, 1  ;;  %v1265_v54 = vmul.f32 %v1724_v13, %v1984_v2  ;;  %v3066_v40 = vld [vmem:[#allocation12_spill] sm:$0xff] }
 0x11d   : > { %v1386_v3 = vadd.f32 %v2412_v14, %v1366_v48  ;;  %v937_v15 = vadd.f32 %v901_v34, %v807_v51  ;;  %v1063_v24 = vadd.f32 %v1030_v11, %v939_v62  ;;  %v3065_v19 = vrot.slane %v3048_v45, 1 }
 0x11e   : > { %v938_v10 = vadd.f32 %v903_v49, %v808_v43  ;;  %v1328_v20 = vrot.slane %v2781_v6, 2  ;;  %v1025_v18 = vsel %vm690_vm1, %v1023_v21, %v1024_v1  ;;  %v3067_v0 = vrot.slane %v3066_v40, 2 }
 0x11f   : > { %v1208_v38 = vsel %vm565_vm0, %v1206_v39, %v3065_v19  ;;  %v1402_v13 = vmax.f32 %v1386_v3, 0.0  ;;  %v1061_v56 = vadd.f32 %v1025_v18, %v937_v15  ;;  %v1111_v59 = vadd.f32 %v2738_v63, %v1063_v24 }
 0x120   : > { %v1027_v2 = vsel %vm690_vm1, %v1024_v1, %v3067_v0  ;;  %v1205_v41 = vsel %vm565_vm0, %v1202_v28, %v1204_v23  ;;  %v1326_v45 = vrot.slane %v1266_v61, 2  ;;  %v1203_v39 = vsel %vm565_vm0, %v1201_v27, %v1202_v28 }
 0x121   : > { %v1062_v34 = vadd.f32 %v1027_v2, %v938_v10  ;;  %v1325_v6 = vrot.slane %v1265_v54, 2  ;;  %v1418_v12 = vpack.c.bf16 %v1402_v13, %v1402_v13  ;;  %v1109_v53 = vadd.f32 %v1093_v42, %v1061_v56 }
 0x122   : > { %v1241_v33 = vadd.f32 %v1208_v38, %v1111_v59  ;;  %v1332_v1 = vsel %vm690_vm1, %v1330_v50, %v1331_v44  ;;  %v1329_v46 = vsel %vm690_vm1, %v1326_v45, %v1328_v20 }
 0x123   : > { %v1110_v21 = vadd.f32 %v1094_v37, %v1062_v34  ;;  %1435 = vst.msk [vmem:[%s2455_s23 + $0x3c] sm:$0xf] %vm1419_vm2, %v1418_v12  ;;  %v1239_v63 = vadd.f32 %v1203_v39, %v1109_v53  ;;  %v1327_v57 = vsel %vm690_vm1, %v1325_v6, %v1326_v45 }
 0x124   : > { %v1365_v23 = vadd.f32 %v1332_v1, %v1241_v33 }
 0x125   : > { %v1240_v8 = vadd.f32 %v1205_v41, %v1110_v21  ;;  %v1363_v36 = vadd.f32 %v1327_v57, %v1239_v63 }
 0x126   : > { %v1385_v26 = vadd.f32 %v2412_v14, %v1365_v23 }
 0x127   : > { %v1364_v35 = vadd.f32 %v1329_v46, %v1240_v8  ;;  %v1383_v9 = vadd.f32 %v2412_v14, %v1363_v36 }
 0x128   : > { %v1401_v50 = vmax.f32 %v1385_v26, 0.0 }
 0x129   : > { %v1384_v44 = vadd.f32 %v2412_v14, %v1364_v35  ;;  %v1399_v7 = vmax.f32 %v1383_v9, 0.0 }
 0x12a   : > { %v1417_v58 = vpack.c.bf16 %v1401_v50, %v1401_v50 }
 0x12b   : > { %v1400_v47 = vmax.f32 %v1384_v44, 0.0  ;;  %v1415_v60 = vpack.c.bf16 %v1399_v7, %v1399_v7 }
 0x12c   : > { %1434 = vst.msk [vmem:[%s2455_s23 + $0x38] sm:$0xf] %vm1419_vm2, %v1417_v58 }
 0x12d   : > { %v1416_v17 = vpack.c.bf16 %v1400_v47, %v1400_v47  ;;  %1432 = vst.msk [vmem:[%s2455_s23 + $0x30] sm:$0xf] %vm1419_vm2, %v1415_v60 }
 0x12f   : > { %1433 = vst.msk [vmem:[%s2455_s23 + $0x34] sm:$0xf] %vm1419_vm2, %v1416_v17 }
 0x130 PF: > { %s14_s19 = sadd.s32 1, %s1775_s19   ;;  %s3068_s15 = smov %s1767_s17 }
 0x131   : > { %p11_p9 = scmp.ge.s32.totalorder %s14_s19, 6   ;;  %s3069_s16 = smov %s1771_s18 }
 0x132   : > { %s3070_s17 = smov %s3073_s20  ;;  %s3071_s18 = smov %s3077_s21 }
 0x133   :  { %13 = sbr.rel (!%p11_p9) target bundleno = 3 (0x3), region = 77 }

// kernel: encoder_unet_forward.9
= control target key start
LH: loop header
LB: loop body
LE: loop exit
PB: predicated region body
PF: predicated region fallthrough
CT: control target
= control target key end

     0   :  { %s2501_s18 = smov 0   ;;  %s2503_s19 = smov 0   ;;  %s3320_s0 = inlined_call_operand.vmem [shape: bf16[2,18,18,4], index: 0, kind: input, shape index: {}, may-alias: {0,1}]   ;;  %s3321_s1 = inlined_call_operand.vmem [shape: bf16[2,18,18,4], index: 1, kind: input, shape index: {}, may-alias: {0,1}]   ;;  %s3322_s2 = inlined_call_operand.vmem [shape: bf16[9,4,4], index: 2, kind: input, shape index: {}]   ;;  %s3323_s3 = inlined_call_operand.vmem [shape: f32[1,4], index: 3, kind: input, shape index: {}]   ;;  %s3324_s4 = inlined_call_operand.vmem [shape: bf16[2,16,16,4], index: 4, kind: output, shape index: {0}]   ;;  %s3325_s5 = inlined_call_operand.vmem [shape: bf16[2,8,8,4], index: 5, kind: output, shape index: {1}]  }
   0x1   :  { %s2505_s20 = smov 0   ;;  %s2507_s21 = smov 0  }
   0x2   :  { %s2509_s22 = smov 0  }
   0x3 LB: > { %s25_s23 = sadd.s32 1, %s2461_s20  ;;  %s28_s24 = sadd.s32 1, %s2465_s21  ;;  %s2469_s22 = sphi %s2509_s22, %s16_s22   ;;  %s2465_s21 = sphi %s2507_s21, %s3334_s21   ;;  %s2461_s20 = sphi %s2505_s20, %s3333_s20   ;;  %s2457_s19 = sphi %s2503_s19, %s3332_s19   ;;  %s2453_s18 = sphi %s2501_s18, %s3331_s18  }
   0x4   : > { %p26_p0 = scmp.ge.s32.totalorder %s25_s23, 2  ;;  %p2220_p1 = scmp.ge.s32.totalorder %s2469_s22, 1 }
   0x5   : > { %p250_p2 = scmp.lt.s32.totalorder %s2469_s22, 5 }
   0x6   : > { %s3336_s23 = smov (%p26_p0, %s25_s23), 0  ;;  %s3338_s24 = smov (!%p26_p0, %s28_s24), %s2465_s21 }
   0x7   : > { %p251_p3 = pnand %p2220_p1, %p250_p2  ;;  %p30_p4 = scmp.ge.s32.totalorder %s3338_s24, 2 }
   0x8   : > { %s2537_s27 = sshll.u32 (!%p251_p3), %s2453_s18, 3  ;;  %p320_p5 = scmp.lt.s32.totalorder (!%p251_p3), %s2457_s19, 1 }
   0x9   : > { %s3340_s24 = smov (%p30_p4, %s3338_s24), 0  ;;  %254 = sbr.rel (%p251_p3) target bundleno = 500 (0x1f4), region = 36 }
   0xa   : > { %p322_p6 = scmp.lt.s32.totalorder (!%p251_p3), %s2537_s27, 17  ;;  %s2383_s11 = sadd.s32 (!%p251_p3), 8, %s2537_s27 }
   0xb   : > { %p340_p7 = scmp.lt.s32.totalorder (!%p251_p3), %s2383_s11, 17  ;;  %p353_p8 = scmp.lt.s32.totalorder (!%p251_p3), %s2537_s27, 15 }
   0xc   : > { %s2230_s9 = sshll.u32 (!%p251_p3), %s2453_s18, 2 }
   0xd   : > { %p3156_p9 = scmp.lt.s32.totalorder (!%p251_p3), %s2230_s9, 7 }
   0xe   : > { %v2233_v0 = vld [vmem:[%s3322_s2 + $0x2] sm:$0x3]  ;;  %vm649_vm0 = vcmask 1041408   ;;  %s3342_s19 = smov (!%p320_p5, %s2457_s19), 1  ;;  %v2290_v2 = vld [vmem:[%s3322_s2 + $0x4] sm:$0x3] }
   0xf   : > { %v651_v1 = vsel %vm649_vm0, %v2233_v0, 0  ;;  %s323_s30 = scalar_select %p322_p6, %s2537_s27, 17  ;;  %v936_v3 = vsel %vm649_vm0, %v2290_v2, 0  ;;  %v2299_v4 = vld [vmem:[%s3322_s2 + $0x6] sm:$0x3]  ;;  %vm624_vm3 = vcmask 31744  }
  0x10   : > { %2384 = vmatpush.bf16.msra.mxu1 %v651_v1  ;;  %2385 = vmatpush.bf16.msra.mxu2 %v651_v1  ;;  %s2388_s6 = smul.u32 54, %s3342_s19  ;;  %v402_v5 = vld [vmem:[%s3322_s2] sm:$0x3]  ;;  %v2312_v6 = vld [vmem:[%s3322_s2 + $0x8] sm:$0x3]  ;;  %v1014_v7 = vsel %vm649_vm0, %v2299_v4, 0 }
  0x11   : > { %2386 = vmatpush.bf16.msra.mxu3 %v651_v1  ;;  %660 = vmatpush.bf16.msra.mxu0 %v651_v1  ;;  %s2387_s7 = smul.u32 3, %s323_s30  ;;  %v767_v8 = vsel %vm649_vm0, %v402_v5, 0  ;;  %v1114_v9 = vsel %vm649_vm0, %v2312_v6, 0  ;;  %vm403_vm1 = vsmask.f32 3328  ;;  %vm826_vm5 = vcmask 1042432  }
  0x12   : > { %vm404_vm2 = vsmask.f32 7440  ;;  %vm827_vm6 = vcmask 1046532   ;;  %s3344_s11 = smov (!%p340_p7, %s2383_s11), 17  ;;  %s3346_s27 = smov (!%p353_p8, %s2537_s27), 15  ;;  %vm1579_vm8 = vcmask 27648  }
  0x13   : > { %s326_s14 = sadd.s32 %s2388_s6, %s2387_s7  ;;  %vm2604_vm4 = vmor %vm403_vm1, %vm404_vm2  ;;  %s2389_s12 = smul.u32 3, %s3344_s11  ;;  %vm1676_vm9 = vcmask 25600   ;;  %vm1997_vm10 = vcmask 1041409   ;;  %vm1999_vm11 = vcmask 1042434   ;;  %vm2001_vm12 = vcmask 1043459  }
  0x14   : > { %945 = vmatpush.bf16.msrb.mxu2 %v936_v3  ;;  %s2222_s15 = sshll.u32 %s326_s14, 2  ;;  %776 = vmatpush.bf16.msrb.mxu1 %v767_v8  ;;  %vm2758_vm7 = vmor %vm826_vm5, %vm827_vm6  ;;  %s2227_s17 = sshll.u32 %s3346_s27, 1  ;;  %vm2003_vm13 = vcmask 1044484   ;;  %vm2005_vm14 = vcmask 1045509   ;;  %vm2007_vm15 = vcmask 1046534  }
  0x15   : > { %1023 = vmatpush.bf16.msrb.mxu3 %v1014_v7  ;;  %s2566_s25 = scalar_lea.vmem %s3320_s0, %s2222_s15  ;;  %1123 = vmatpush.bf16.msrb.mxu0 %v1114_v9  ;;  %s344_s13 = sadd.s32 %s2389_s12, %s2388_s6 }
  0x16   : > { %v2569_v10 = vld [vmem:[%s2566_s25 + $0x18] sm:$0xf]  ;;  %v2572_v11 = vld [vmem:[%s2566_s25 + $0x1c] sm:$0xf]  ;;  %v2575_v12 = vld [vmem:[%s2566_s25 + $0x20] sm:$0x1] }
  0x17   : > { %v455_v13 = vshrl.u32 %v2569_v10, 16  ;;  %v458_v14 = vshll.u32 %v2569_v10, 16  ;;  %v464_v15 = vshll.u32 %v2572_v11, 16  ;;  %v468_v16 = vshrl.u32 %v2572_v11, 16  ;;  %v2582_v17 = vld [vmem:[%s2566_s25 + $0x30] sm:$0xf] }
  0x18   : > { %v474_v18 = vshll.u32 %v2575_v12, 16  ;;  %v2586_v19 = vld [vmem:[%s2566_s25 + $0x34] sm:$0xf]  ;;  %v2589_v20 = vld [vmem:[%s2566_s25 + $0x38] sm:$0x1]  ;;  %v503_v21 = vshrl.u32 %v2582_v17, 16 }
  0x19   : > { %v457_v22 = vrot.slane %v455_v13, 4  ;;  %v460_v23 = vrot.slane %v458_v14, 5  ;;  %v466_v24 = vrot.slane %v464_v15, 5  ;;  %v470_v25 = vrot.slane %v468_v16, 4  ;;  %v2593_v26 = vld [vmem:[%s2566_s25 + $0x48] sm:$0xf] }
  0x1a   : > { %v476_v27 = vrot.slane %v474_v18, 5  ;;  %v505_v28 = vrot.slane %v503_v21, 4  ;;  %v506_v29 = vshll.u32 %v2582_v17, 16  ;;  %v512_v30 = vshll.u32 %v2586_v19, 16  ;;  %v2600_v35 = vld [vmem:[%s2566_s25 + $0x4c] sm:$0xf] }
  0x1b   : > { %v461_v31 = vor.u32 %v460_v23, %v457_v22  ;;  %v471_v32 = vor.u32 %v470_v25, %v466_v24  ;;  %v516_v33 = vshrl.u32 %v2586_v19, 16  ;;  %v522_v34 = vshll.u32 %v2589_v20, 16  ;;  %v2611_v46 = vld [vmem:[%s2566_s25 + $0x50] sm:$0x1]  ;;  %v2620_v54 = vld [vmem:[%s2566_s25] sm:$0xf] }
  0x1c   : > { %v508_v37 = vrot.slane %v506_v29, 5  ;;  %v514_v38 = vrot.slane %v512_v30, 5  ;;  %v551_v39 = vshrl.u32 %v2593_v26, 16  ;;  %v554_v40 = vshll.u32 %v2593_v26, 16  ;;  %v2628_v2 = vld [vmem:[%s2566_s25 + $0x4] sm:$0xf] }
  0x1d   : > { %v462_v41 = vrot.slane %v461_v31, 4  ;;  %v472_v42 = vrot.slane %v471_v32, 4  ;;  %v518_v43 = vrot.slane %v516_v33, 4  ;;  %v524_v44 = vrot.slane %v522_v34, 5  ;;  %v2634_v8 = vld [vmem:[%s2566_s25 + $0x8] sm:$0x1] }
  0x1e   : > { %v509_v45 = vor.u32 %v508_v37, %v505_v28  ;;  %v553_v47 = vrot.slane %v551_v39, 4  ;;  %v556_v48 = vrot.slane %v554_v40, 5  ;;  %v560_v49 = vshll.u32 %v2600_v35, 16  ;;  %v2642_v16 = vld [vmem:[%s2566_s25 + $0x24] sm:$0xf]  ;;  %s2225_s14 = sshll.u32 %s344_s13, 2 }
  0x1f   : > { %v467_v50 = vsel %vm2604_vm4, %v462_v41, %v466_v24  ;;  %v477_v51 = vsel %vm2604_vm4, %v472_v42, %v476_v27  ;;  %v519_v52 = vor.u32 %v518_v43, %v514_v38  ;;  %v564_v53 = vshrl.u32 %v2600_v35, 16  ;;  %v2651_v29 = vld [vmem:[%s2566_s25 + $0x28] sm:$0xf]  ;;  %v2656_v33 = vld [vmem:[%s2566_s25 + $0x2c] sm:$0x1]  ;;  %s2892_s6 = scalar_lea.vmem %s3321_s1, %s2225_s14  ;;  %s3348_s9 = smov (!%p3156_p9, %s2230_s9), 7 }
  0x20   : > { %v604_v55 = vunpack.c.l.b16 %v467_v50  ;;  %v605_v56 = vunpack.c.l.b16 %v477_v51  ;;  %v510_v57 = vrot.slane %v509_v45, 4  ;;  %v557_v58 = vor.u32 %v556_v48, %v553_v47  ;;  %v2663_v41 = vld [vmem:[%s2566_s25 + $0x3c] sm:$0xf]  ;;  %s2231_s11 = sshll.u32 %s3342_s19, 3 }
  0x21   : > { %v520_v59 = vrot.slane %v519_v52, 4  ;;  %v562_v60 = vrot.slane %v560_v49, 5  ;;  %v566_v61 = vrot.slane %v564_v53, 4  ;;  %v570_v62 = vshll.u32 %v2611_v46, 16  ;;  %s3171_s18 = sadd.s32 %s2231_s11, %s3348_s9 }
  0x22   : > { %v2623_v63 = vpack.c.b16 %v605_v56, %v604_v55  ;;  %v515_v0 = vsel %vm2604_vm4, %v510_v57, %v514_v38  ;;  %v558_v1 = vrot.slane %v557_v58, 4  ;;  %v407_v3 = vshrl.u32 %v2620_v54, 16  ;;  %v2671_v55 = vld [vmem:[%s2566_s25 + $0x40] sm:$0xf] }
  0x23   : > { %v525_v4 = vsel %vm2604_vm4, %v520_v59, %v524_v44  ;;  %v608_v5 = vunpack.c.l.b16 %v515_v0  ;;  %v567_v6 = vor.u32 %v566_v61, %v562_v60  ;;  %v572_v7 = vrot.slane %v570_v62, 5  ;;  %v2683_v62 = vld [vmem:[%s2566_s25 + $0x54] sm:$0xf] }
  0x24   : > { %2236 = vmatmul.msk.bf16.vlgmr.msra.gmra.mxu1 %vm624_vm3, %v2623_v63  ;;  %v609_v9 = vunpack.c.l.b16 %v525_v4  ;;  %v563_v13 = vsel %vm2604_vm4, %v558_v1, %v562_v60  ;;  %v409_v14 = vrot.slane %v407_v3, 4  ;;  %v410_v15 = vshll.u32 %v2620_v54, 16  ;;  %v2679_v60 = vld [vmem:[%s2566_s25 + $0x44] sm:$0x1] }
  0x25   : > { %v568_v18 = vrot.slane %v567_v6, 4  ;;  %v612_v21 = vunpack.c.l.b16 %v563_v13  ;;  %v416_v22 = vshll.u32 %v2628_v2, 16  ;;  %v420_v23 = vshrl.u32 %v2628_v2, 16 }
  0x26   : > { %v2646_v24 = vpack.c.b16 %v609_v9, %v608_v5  ;;  %v412_v25 = vrot.slane %v410_v15, 5  ;;  %v426_v27 = vshll.u32 %v2634_v8, 16  ;;  %v834_v28 = vrot.slane %v2634_v8, 5 }
  0x27   : > { %v573_v30 = vsel %vm2604_vm4, %v568_v18, %v572_v7  ;;  %v418_v31 = vrot.slane %v416_v22, 5  ;;  %v422_v32 = vrot.slane %v420_v23, 4  ;;  %v479_v34 = vshrl.u32 %v2642_v16, 16 }
  0x28   : > { %2238 = vmatmul.msk.bf16.vlgmr.msra.gmra.mxu2 %vm624_vm3, %v2646_v24  ;;  %v613_v37 = vunpack.c.l.b16 %v573_v30  ;;  %v413_v38 = vor.u32 %v412_v25, %v409_v14  ;;  %v428_v39 = vrot.slane %v426_v27, 5  ;;  %v482_v40 = vshll.u32 %v2642_v16, 16  ;;  %v2694_v27 = vld [vmem:[%s2566_s25 + $0x58] sm:$0xf]  ;;  %v2697_v30 = vld [vmem:[%s2566_s25 + $0x5c] sm:$0x1] }
  0x29   : > { %v423_v42 = vor.u32 %v422_v32, %v418_v31  ;;  %v481_v43 = vrot.slane %v479_v34, 4  ;;  %v488_v44 = vshll.u32 %v2651_v29, 16  ;;  %v492_v45 = vshrl.u32 %v2651_v29, 16 }
  0x2a   : > { %v2667_v47 = vpack.c.b16 %v613_v37, %v612_v21  ;;  %v414_v48 = vrot.slane %v413_v38, 4  ;;  %v484_v49 = vrot.slane %v482_v40, 5  ;;  %v498_v50 = vshll.u32 %v2656_v33, 16  ;;  %v2702_v38 = vld [vmem:[%s2566_s25 + $0xc] sm:$0xf] }
  0x2b   : > { %v424_v51 = vrot.slane %v423_v42, 4  ;;  %v490_v52 = vrot.slane %v488_v44, 5  ;;  %v494_v53 = vrot.slane %v492_v45, 4  ;;  %v527_v56 = vshrl.u32 %v2663_v41, 16 }
  0x2c   : > { %2240 = vmatmul.msk.bf16.vlgmr.msra.gmra.mxu3 %vm624_vm3, %v2667_v47  ;;  %v419_v57 = vsel %vm2604_vm4, %v414_v48, %v418_v31  ;;  %v485_v58 = vor.u32 %v484_v49, %v481_v43  ;;  %v500_v59 = vrot.slane %v498_v50, 5  ;;  %v530_v61 = vshll.u32 %v2663_v41, 16 }
  0x2d   : > { %v429_v0 = vsel %vm2604_vm4, %v424_v51, %v428_v39  ;;  %v600_v1 = vunpack.c.l.b16 %v419_v57  ;;  %v495_v3 = vor.u32 %v494_v53, %v490_v52  ;;  %v529_v4 = vrot.slane %v527_v56, 4  ;;  %v2714_v53 = vld [vmem:[%s2566_s25 + $0x10] sm:$0xf] }
  0x2e   : > { %v601_v5 = vunpack.c.l.b16 %v429_v0  ;;  %v486_v6 = vrot.slane %v485_v58, 4  ;;  %v532_v7 = vrot.slane %v530_v61, 5  ;;  %v536_v9 = vshll.u32 %v2671_v55, 16  ;;  %v2718_v0 = vld [vmem:[%s2566_s25 + $0x14] sm:$0x1] }
  0x2f   : > { %v496_v13 = vrot.slane %v495_v3, 4  ;;  %v540_v14 = vshrl.u32 %v2671_v55, 16  ;;  %v546_v15 = vshll.u32 %v2679_v60, 16  ;;  %v575_v18 = vshrl.u32 %v2683_v62, 16 }
  0x30   : > { %v616_v21 = vpack.c.b16 %v601_v5, %v600_v1  ;;  %v491_v22 = vsel %vm2604_vm4, %v486_v6, %v490_v52  ;;  %v533_v23 = vor.u32 %v532_v7, %v529_v4  ;;  %v538_v25 = vrot.slane %v536_v9, 5 }
  0x31   : > { %v501_v31 = vsel %vm2604_vm4, %v496_v13, %v500_v59  ;;  %v606_v32 = vunpack.c.l.b16 %v491_v22  ;;  %v542_v34 = vrot.slane %v540_v14, 4  ;;  %v548_v37 = vrot.slane %v546_v15, 5 }
  0x32   : > { %2234 = vmatmul.msk.bf16.vlgmr.msra.gmra.mxu0 %vm624_vm3, %v616_v21  ;;  %v607_v39 = vunpack.c.l.b16 %v501_v31  ;;  %v534_v40 = vrot.slane %v533_v23, 4  ;;  %v577_v42 = vrot.slane %v575_v18, 4  ;;  %v578_v43 = vshll.u32 %v2683_v62, 16  ;;  %v2331_v31 = vld [vmem:[%s3322_s2 + $0xc] sm:$0x3] }
  0x33   : > { %v543_v44 = vor.u32 %v542_v34, %v538_v25  ;;  %v584_v45 = vshll.u32 %v2694_v27, 16  ;;  %v588_v48 = vshrl.u32 %v2694_v27, 16  ;;  %v594_v49 = vshll.u32 %v2697_v30, 16 }
  0x34   : > { %v2709_v50 = vpack.c.b16 %v607_v39, %v606_v32  ;;  %v539_v51 = vsel %vm2604_vm4, %v534_v40, %v538_v25  ;;  %v580_v52 = vrot.slane %v578_v43, 5  ;;  %v431_v56 = vshrl.u32 %v2702_v38, 16  ;;  %v2344_v40 = vld [vmem:[%s3322_s2 + $0xe] sm:$0x3] }
  0x35   : > { %v544_v57 = vrot.slane %v543_v44, 4  ;;  %v610_v58 = vunpack.c.l.b16 %v539_v51  ;;  %v586_v59 = vrot.slane %v584_v45, 5  ;;  %v590_v61 = vrot.slane %v588_v48, 4 }
  0x36   : > { %2237 = vmatmul.msk.bf16.gmra.mxu1 %vm624_vm3, %v2709_v50  ;;  %v581_v1 = vor.u32 %v580_v52, %v577_v42  ;;  %v596_v3 = vrot.slane %v594_v49, 5  ;;  %v433_v4 = vrot.slane %v431_v56, 4  ;;  %v434_v5 = vshll.u32 %v2702_v38, 16  ;;  %v2322_v42 = vld [vmem:[%s3322_s2 + $0xa] sm:$0x3] }
  0x37   : > { %v549_v6 = vsel %vm2604_vm4, %v544_v57, %v548_v37  ;;  %v591_v7 = vor.u32 %v590_v61, %v586_v59  ;;  %v440_v9 = vshll.u32 %v2714_v53, 16  ;;  %v444_v13 = vshrl.u32 %v2714_v53, 16  ;;  %v2354_v56 = vld [vmem:[%s3322_s2 + $0x10] sm:$0x3] }
  0x38   : > { %v611_v14 = vunpack.c.l.b16 %v549_v6  ;;  %v582_v15 = vrot.slane %v581_v1, 4  ;;  %v436_v18 = vrot.slane %v434_v5, 5  ;;  %v450_v21 = vshll.u32 %v2718_v0, 16 }
  0x39   : > { %v592_v22 = vrot.slane %v591_v7, 4  ;;  %v442_v23 = vrot.slane %v440_v9, 5  ;;  %v446_v25 = vrot.slane %v444_v13, 4  ;;  %v2282_v51 = vrot.slane %v2620_v54, 9 }
  0x3a   : > { %v2731_v32 = vpack.c.b16 %v611_v14, %v610_v58  ;;  %v587_v34 = vsel %vm2604_vm4, %v582_v15, %v586_v59  ;;  %v437_v37 = vor.u32 %v436_v18, %v433_v4  ;;  %v452_v39 = vrot.slane %v450_v21, 5  ;;  %v2372_v15 = vld [vmem:[%s2566_s25] sm:$0xff] }
  0x3b   : > { %v597_v43 = vsel %vm2604_vm4, %v592_v22, %v596_v3  ;;  %v614_v44 = vunpack.c.l.b16 %v587_v34  ;;  %v447_v45 = vor.u32 %v446_v25, %v442_v23  ;;  %v831_v52 = vrot.slane %v2628_v2, 5 }
  0x3c   : > { %2239 = vmatmul.msk.bf16.gmra.mxu2 %vm624_vm3, %v2731_v32  ;;  %v615_v48 = vunpack.c.l.b16 %v597_v43  ;;  %v438_v49 = vrot.slane %v437_v37, 4  ;;  %v1276_v58 = vsel %vm649_vm0, %v2331_v31, 0  ;;  %v1376_v59 = vsel %vm649_vm0, %v2344_v40, 0 }
  0x3d   : > { %v448_v57 = vrot.slane %v447_v45, 4  ;;  %v1198_v61 = vsel %vm649_vm0, %v2322_v42, 0  ;;  %v833_v2 = vrot.slane %v831_v52, 4  ;;  %1285 = vmatpush.bf16.msra.mxu2 %v1276_v58  ;;  %1385 = vmatpush.bf16.msra.mxu3 %v1376_v59  ;;  %v1460_v6 = vsel %vm649_vm0, %v2354_v56, 0  ;;  %v2373_v42 = vld [vmem:[%s2566_s25 + $0xc] sm:$0xff] }
  0x3e   : > { %v2753_v1 = vpack.c.b16 %v615_v48, %v614_v44  ;;  %v443_v3 = vsel %vm2604_vm4, %v438_v49, %v442_v23  ;;  %1207 = vmatpush.bf16.msra.mxu1 %v1198_v61  ;;  %1469 = vmatpush.bf16.msra.mxu0 %v1460_v6  ;;  %v832_v9 = vsel %vm2758_vm7, %v2282_v51, %v831_v52  ;;  %v2284_v22 = vrot.slane %v2569_v10, 9 }
  0x3f   : > { %v453_v4 = vsel %vm2604_vm4, %v448_v57, %v452_v39  ;;  %v602_v5 = vunpack.c.l.b16 %v443_v3  ;;  %v835_v13 = vsel %vm2758_vm7, %v833_v2, %v834_v28  ;;  %v887_v18 = vunpack.c.l.b16 %v832_v9  ;;  %v2834_v3 = vld [vmem:[%s2566_s25 + $0x30] sm:$0xff] }
  0x40   : > { %2241 = vmatmul.msk.bf16.gmra.mxu3 %vm624_vm3, %v2753_v1  ;;  %v603_v7 = vunpack.c.l.b16 %v453_v4  ;;  %v888_v21 = vunpack.c.l.b16 %v835_v13  ;;  %v845_v23 = vrot.slane %v2572_v11, 5  ;;  %v848_v25 = vrot.slane %v2575_v12, 5  ;;  %v2854_v13 = vld [vmem:[%s2566_s25 + $0x3c] sm:$0xff] }
  0x41   : > { %v838_v34 = vrot.slane %v2714_v53, 5  ;;  %v2283_v10 = vrot.slane %v2702_v38, 9  ;;  %v841_v12 = vrot.slane %v2718_v0, 5  ;;  %v2285_v38 = vrot.slane %v2642_v16, 9  ;;  %v2809_v16 = vld [vmem:[%s2566_s25 + $0x18] sm:$0xff] }
  0x42   : > { %v617_v14 = vpack.c.b16 %v603_v7, %v602_v5  ;;  %v903_v31 = vpack.c.b16 %v888_v21, %v887_v18  ;;  %v846_v8 = vsel %vm2758_vm7, %v2284_v22, %v845_v23  ;;  %v847_v28 = vrot.slane %v845_v23, 4 }
  0x43   : > { %v891_v37 = vunpack.c.l.b16 %v846_v8  ;;  %v840_v11 = vrot.slane %v838_v34, 4  ;;  %v839_v53 = vsel %vm2758_vm7, %v2283_v10, %v838_v34  ;;  %v852_v0 = vrot.slane %v2651_v29, 5 }
  0x44   : > { %2235 = vmatmul.msk.bf16.gmra.mxu0 %vm624_vm3, %v617_v14  ;;  %v849_v39 = vsel %vm2758_vm7, %v847_v28, %v848_v25  ;;  %v889_v45 = vunpack.c.l.b16 %v839_v53  ;;  %v855_v49 = vrot.slane %v2656_v33, 5  ;;  %v2822_v33 = vld [vmem:[%s2566_s25 + $0x24] sm:$0xff]  ;;  %v859_v61 = vrot.slane %v2586_v19, 5 }
  0x45   : > { %v892_v40 = vunpack.c.l.b16 %v849_v39  ;;  %v842_v44 = vsel %vm2758_vm7, %v840_v11, %v841_v12  ;;  %v853_v52 = vsel %vm2758_vm7, %v2285_v38, %v852_v0  ;;  %v854_v56 = vrot.slane %v852_v0, 4  ;;  %v2875_v25 = vld [vmem:[%s2566_s25 + $0x48] sm:$0xff]  ;;  %v2897_v39 = vld [vmem:[%s2892_s6] sm:$0xf]  ;;  %v2918_v38 = vld [vmem:[%s2566_s25 + $0x54] sm:$0xff]  ;;  %s2228_s25 = sshll.u32 %s3342_s19, 5 }
  0x46   : > { %2274 = vmatmul.msk.bf16.vlgmr.msrb.gmra.mxu1 %vm624_vm3, %v2372_v15  ;;  %v890_v48 = vunpack.c.l.b16 %v842_v44  ;;  %v893_v57 = vunpack.c.l.b16 %v853_v52  ;;  %v2286_v2 = vrot.slane %v2582_v17, 9  ;;  %v861_v4 = vrot.slane %v859_v61, 4  ;;  %s357_s29 = sadd.s32 %s2228_s25, %s2227_s17  ;;  %s2232_s19 = sshll.u32 %s3171_s18, 2 }
  0x47   : > { %v2788_v43 = vpack.c.b16 %v892_v40, %v891_v37  ;;  %v856_v58 = vsel %vm2758_vm7, %v854_v56, %v855_v49  ;;  %v862_v5 = vrot.slane %v2589_v20, 5  ;;  %v866_v20 = vrot.slane %v2671_v55, 5  ;;  %v2900_v40 = vld [vmem:[%s2892_s6 + $0x4] sm:$0xf]  ;;  %s2229_s30 = sshll.u32 %s357_s29, 2  ;;  %s3186_s14 = scalar_lea.vmem %s3325_s5, %s2232_s19 }
  0x48   : > { %v2800_v51 = vpack.c.b16 %v890_v48, %v889_v45  ;;  %v894_v59 = vunpack.c.l.b16 %v856_v58  ;;  %v860_v6 = vsel %vm2758_vm7, %v2286_v2, %v859_v61  ;;  %v869_v18 = vrot.slane %v2679_v60, 5  ;;  %v2923_v61 = vld [vmem:[%s2892_s6 + $0x8] sm:$0x1]  ;;  %s3117_s8 = scalar_lea.vmem %s3324_s4, %s2229_s30 }
  0x49   : > { %v863_v19 = vsel %vm2758_vm7, %v861_v4, %v862_v5  ;;  %v895_v7 = vunpack.c.l.b16 %v860_v6  ;;  %v868_v15 = vrot.slane %v866_v20, 4  ;;  %v873_v23 = vrot.slane %v2600_v35, 5 }
  0x4a   : > { %v2811_v29 = vpack.c.b16 %v894_v59, %v893_v57  ;;  %v896_v9 = vunpack.c.l.b16 %v863_v19  ;;  %v876_v28 = vrot.slane %v2611_v46, 5  ;;  %v1082_v10 = vshrl.u32 %v2897_v39, 16 }
  0x4b   : > { %v870_v21 = vsel %vm2758_vm7, %v868_v15, %v869_v18  ;;  %v875_v8 = vrot.slane %v873_v23, 4  ;;  %v1085_v11 = vshll.u32 %v2897_v39, 16  ;;  %v1091_v12 = vshll.u32 %v2900_v40, 16 }
  0x4c   : > { %2291 = vmatmul.msk.bf16.vlgmr.msrb.gmra.mxu2 %vm624_vm3, %v903_v31  ;;  %v2848_v17 = vpack.c.b16 %v896_v9, %v895_v7  ;;  %v898_v22 = vunpack.c.l.b16 %v870_v21  ;;  %v2288_v31 = vrot.slane %v2593_v26, 9  ;;  %v880_v44 = vrot.slane %v2694_v27, 5 }
  0x4d   : > { %v877_v37 = vsel %vm2758_vm7, %v875_v8, %v876_v28  ;;  %v1095_v45 = vshrl.u32 %v2900_v40, 16  ;;  %v1084_v0 = vrot.slane %v1082_v10, 4  ;;  %v1087_v49 = vrot.slane %v1085_v11, 5  ;;  %v2955_v8 = vld [vmem:[%s2892_s6] sm:$0xff] }
  0x4e   : > { %v874_v35 = vsel %vm2758_vm7, %v2288_v31, %v873_v23  ;;  %v900_v46 = vunpack.c.l.b16 %v877_v37  ;;  %v1093_v52 = vrot.slane %v1091_v12, 5  ;;  %v2289_v56 = vrot.slane %v2683_v62, 9 }
  0x4f   : > { %v899_v26 = vunpack.c.l.b16 %v874_v35  ;;  %v882_v57 = vrot.slane %v880_v44, 4  ;;  %v883_v58 = vrot.slane %v2697_v30, 5  ;;  %v1097_v59 = vrot.slane %v1095_v45, 4 }
  0x50   : > { %2304 = vmatmul.msk.bf16.vlgmr.msrb.gmra.mxu3 %vm624_vm3, %v2373_v42  ;;  %v1088_v4 = vor.u32 %v1087_v49, %v1084_v0  ;;  %v881_v5 = vsel %vm2758_vm7, %v2289_v56, %v880_v44  ;;  %v1101_v19 = vshll.u32 %v2923_v61, 16  ;;  %vm2009_vm0 = vcmask 1047559  }
  0x51   : > { %v884_v6 = vsel %vm2758_vm7, %v882_v57, %v883_v58  ;;  %v1098_v62 = vor.u32 %v1097_v59, %v1093_v52  ;;  %v901_v7 = vunpack.c.l.b16 %v881_v5 }
  0x52   : > { %v902_v9 = vunpack.c.l.b16 %v884_v6  ;;  %v1103_v18 = vrot.slane %v1101_v19, 5 }
  0x53   : > { %v1099_v15 = vrot.slane %v1098_v62, 4 }
  0x54   : > { %2313 = vmatmul.msk.bf16.vlgmr.msrb.gmra.mxu0 %vm624_vm3, %v617_v14  ;;  %v2287_v14 = vrot.slane %v2663_v41, 9  ;;  %v2942_v21 = vpack.c.b16 %v902_v9, %v901_v7 }
  0x55   : > { %v1104_v23 = vsel %vm2604_vm4, %v1099_v15, %v1103_v18 }
  0x56   : > { %2275 = vmatmul.msk.bf16.gmra.mxu1 %vm624_vm3, %v2373_v42  ;;  %v867_v55 = vsel %vm2758_vm7, %v2287_v14, %v866_v20  ;;  %v2904_v42 = vpack.c.b16 %v900_v46, %v899_v26  ;;  %v1089_v14 = vrot.slane %v1088_v4, 4  ;;  %v1108_v35 = vunpack.c.l.b16 %v1104_v23 }
  0x57   : > { %v897_v41 = vunpack.c.l.b16 %v867_v55 }
  0x59   : > { %v2869_v60 = vpack.c.b16 %v898_v22, %v897_v41  ;;  %v1094_v22 = vsel %vm2604_vm4, %v1089_v14, %v1093_v52 }
  0x5a   : > { %v1107_v28 = vunpack.c.l.b16 %v1094_v22 }
  0x5c   : > { %2292 = vmatmul.msk.bf16.gmra.mxu2 %vm624_vm3, %v2800_v51  ;;  %v2961_v26 = vpack.c.b16 %v1108_v35, %v1107_v28 }
  0x60   : > { %2305 = vmatmul.msk.bf16.gmra.mxu3 %vm624_vm3, %v2809_v16 }
  0x64   : > { %2314 = vmatmul.msk.bf16.gmra.mxu0 %vm624_vm3, %v2623_v63 }
  0x66   : > { %2276 = vmatmul.msk.bf16.gmra.mxu1 %vm624_vm3, %v2809_v16 }
  0x6c   : > { %2293 = vmatmul.msk.bf16.gmra.mxu2 %vm624_vm3, %v2788_v43 }
  0x70   : > { %2306 = vmatmul.msk.bf16.gmra.mxu3 %vm624_vm3, %v2822_v33 }
  0x74   : > { %2315 = vmatmul.msk.bf16.gmra.mxu0 %vm624_vm3, %v2709_v50 }
  0x76   : > { %2277 = vmatmul.msk.bf16.gmra.mxu1 %vm624_vm3, %v2822_v33 }
  0x7c   : > { %2294 = vmatmul.msk.bf16.gmra.mxu2 %vm624_vm3, %v2811_v29 }
  0x80   : > { %2307 = vmatmul.msk.bf16.gmra.mxu3 %vm624_vm3, %v2834_v3 }
  0x84   : > { %2316 = vmatmul.msk.bf16.gmra.mxu0 %vm624_vm3, %v2646_v24 }
  0x86   : > { %2278 = vmatmul.msk.bf16.gmra.mxu1 %vm624_vm3, %v2834_v3 }
  0x8c   : > { %2295 = vmatmul.msk.bf16.gmra.mxu2 %vm624_vm3, %v2848_v17 }
  0x90   : > { %2308 = vmatmul.msk.bf16.gmra.mxu3 %vm624_vm3, %v2854_v13 }
  0x94   : > { %2317 = vmatmul.msk.bf16.gmra.mxu0 %vm624_vm3, %v2731_v32 }
  0x96   : > { %2279 = vmatmul.msk.bf16.gmra.mxu1 %vm624_vm3, %v2854_v13 }
  0x9c   : > { %2296 = vmatmul.msk.bf16.gmra.mxu2 %vm624_vm3, %v2869_v60 }
  0xa0   : > { %2309 = vmatmul.msk.bf16.gmra.mxu3 %vm624_vm3, %v2875_v25 }
  0xa1   : > { %v2883_v34 = vpop.f32.mrf.mxu1 }
  0xa4   : > { %2318 = vmatmul.msk.bf16.gmra.mxu0 %vm624_vm3, %v2667_v47 }
  0xa6   : > { %2280 = vmatmul.msk.bf16.gmra.mxu1 %vm624_vm3, %v2875_v25 }
  0xa9   : > { %v2909_v53 = vpop.f32.mrf.mxu1 }
  0xab   : > { %v2913_v48 = vpop.f32.mrf.mxu2 }
  0xac   : > { %2297 = vmatmul.msk.bf16.gmra.mxu2 %vm624_vm3, %v2904_v42 }
  0xaf   : > { %v662_v27 = vpop.f32.mrf.mxu0  ;;  %v2925_v2 = vpop.f32.mrf.mxu3 }
  0xb0   : > { %2310 = vmatmul.msk.bf16.gmra.mxu3 %vm624_vm3, %v2918_v38 }
  0xb3   : > { %v2934_v30 = vpop.f32.mrf.mxu1  ;;  %v2938_v20 = vpop.f32.mrf.mxu2 }
  0xb4   : > { %2319 = vmatmul.msk.bf16.gmra.mxu0 %vm624_vm3, %v2753_v1 }
  0xb6   : > { %2281 = vmatmul.msk.bf16.gmra.mxu1 %vm624_vm3, %v2918_v38 }
  0xb7   : > { %v664_v55 = vpop.f32.mrf.mxu0  ;;  %v2944_v41 = vpop.f32.mrf.mxu3 }
  0xbb   : > { %v2950_v31 = vpop.f32.mrf.mxu1 }
  0xbc   : > { %2298 = vmatmul.msk.bf16.gmra.mxu2 %vm624_vm3, %v2942_v21 }
  0xbf   : > { %v2957_v37 = vpop.f32.mrf.mxu2 }
  0xc0   : > { %2311 = vmatmul.msk.bf16.gmra.mxu3 %vm624_vm3, %v2955_v8 }
  0xc1   : > { %v667_v46 = vpop.f32.mrf.mxu0 }
  0xc3   : > { %v2963_v10 = vpop.f32.mrf.mxu3  ;;  %v778_v11 = vpop.f32.mrf.mxu1 }
  0xc4   : > { %2320 = vmatmul.msk.bf16.gmra.mxu0 %vm624_vm3, %v2961_v26  ;;  %v779_v12 = vadd.f32 %v778_v11, %v662_v27 }
  0xc6   : > { %2323 = vmatmul.msk.bf16.vlgmr.msra.gmra.mxu1 %vm624_vm3, %v2800_v51 }
  0xc7   : > { %v2969_v44 = vpop.f32.mrf.mxu2 }
  0xc9   : > { %v669_v45 = vpop.f32.mrf.mxu0 }
  0xcb   : > { %v2971_v0 = vpop.f32.mrf.mxu3  ;;  %v780_v49 = vpop.f32.mrf.mxu1 }
  0xcc   : > { %2336 = vmatmul.msk.bf16.vlgmr.msra.gmra.mxu2 %vm624_vm3, %v2809_v16  ;;  %v781_v52 = vadd.f32 %v780_v49, %v664_v55 }
  0xcf   : > { %v947_v56 = vpop.f32.mrf.mxu2 }
  0xd0   : > { %2345 = vmatmul.msk.bf16.vlgmr.msra.gmra.mxu3 %vm624_vm3, %v2623_v63  ;;  %v987_v57 = vadd.f32 %v947_v56, %v779_v12 }
  0xd1   : > { %v1125_v58 = vpop.f32.mrf.mxu0 }
  0xd3   : > { %v1025_v59 = vpop.f32.mrf.mxu3  ;;  %v783_v27 = vpop.f32.mrf.mxu1 }
  0xd4   : > { %2355 = vmatmul.msk.bf16.vlgmr.msra.gmra.mxu0 %vm624_vm3, %v2788_v43  ;;  %v1065_v51 = vadd.f32 %v1025_v59, %v987_v57  ;;  %v784_v4 = vadd.f32 %v783_v27, %v667_v46 }
  0xd6   : > { %2324 = vmatmul.msk.bf16.gmra.mxu1 %vm624_vm3, %v2788_v43  ;;  %v2981_v5 = vadd.f32 %v1125_v58, %v1065_v51 }
  0xd7   : > { %v949_v16 = vpop.f32.mrf.mxu2 }
  0xd8   : > { %v988_v6 = vadd.f32 %v949_v16, %v781_v52 }
  0xd9   : > { %v1127_v62 = vpop.f32.mrf.mxu0 }
  0xdb   : > { %v1027_v19 = vpop.f32.mrf.mxu3  ;;  %v785_v7 = vpop.f32.mrf.mxu1 }
  0xdc   : > { %v1066_v63 = vadd.f32 %v1027_v19, %v988_v6  ;;  %2337 = vmatmul.msk.bf16.gmra.mxu2 %vm624_vm3, %v2822_v33  ;;  %v786_v9 = vadd.f32 %v785_v7, %v669_v45 }
  0xde   : > { %v2985_v14 = vadd.f32 %v1127_v62, %v1066_v63 }
  0xdf   : > { %v952_v15 = vpop.f32.mrf.mxu2 }
  0xe0   : > { %2346 = vmatmul.msk.bf16.gmra.mxu3 %vm624_vm3, %v2709_v50  ;;  %v989_v18 = vadd.f32 %v952_v15, %v784_v4 }
  0xe1   : > { %v1130_v43 = vpop.f32.mrf.mxu0 }
  0xe3   : > { %v1030_v55 = vpop.f32.mrf.mxu3  ;;  %v788_v22 = vpop.f32.mrf.mxu1 }
  0xe4   : > { %2356 = vmatmul.msk.bf16.gmra.mxu0 %vm624_vm3, %v2811_v29  ;;  %v1067_v23 = vadd.f32 %v1030_v55, %v989_v18  ;;  %v789_v28 = vadd.f32 %v788_v22, %v2883_v34 }
  0xe6   : > { %2325 = vmatmul.msk.bf16.gmra.mxu1 %vm624_vm3, %v2811_v29  ;;  %v2994_v33 = vadd.f32 %v1130_v43, %v1067_v23 }
  0xe7   : > { %v954_v35 = vpop.f32.mrf.mxu2 }
  0xe8   : > { %v990_v46 = vadd.f32 %v954_v35, %v786_v9 }
  0xe9   : > { %v1132_v11 = vpop.f32.mrf.mxu0 }
  0xeb   : > { %v1032_v12 = vpop.f32.mrf.mxu3  ;;  %v790_v50 = vpop.f32.mrf.mxu1 }
  0xec   : > { %v1068_v45 = vadd.f32 %v1032_v12, %v990_v46  ;;  %2338 = vmatmul.msk.bf16.gmra.mxu2 %vm624_vm3, %v2834_v3  ;;  %v791_v49 = vadd.f32 %v790_v50, %v2909_v53 }
  0xee   : > { %v2999_v52 = vadd.f32 %v1132_v11, %v1068_v45 }
  0xef   : > { %v957_v56 = vpop.f32.mrf.mxu2 }
  0xf0   : > { %2347 = vmatmul.msk.bf16.gmra.mxu3 %vm624_vm3, %v2646_v24  ;;  %v991_v29 = vadd.f32 %v957_v56, %v789_v28 }
  0xf1   : > { %v1135_v34 = vpop.f32.mrf.mxu0 }
  0xf3   : > { %v1035_v57 = vpop.f32.mrf.mxu3  ;;  %v793_v58 = vpop.f32.mrf.mxu1 }
  0xf4   : > { %2357 = vmatmul.msk.bf16.gmra.mxu0 %vm624_vm3, %v2848_v17  ;;  %v1069_v59 = vadd.f32 %v1035_v57, %v991_v29  ;;  %v794_v27 = vadd.f32 %v793_v58, %v2934_v30 }
  0xf6   : > { %2326 = vmatmul.msk.bf16.gmra.mxu1 %vm624_vm3, %v2848_v17  ;;  %v3008_v3 = vadd.f32 %v1135_v34, %v1069_v59 }
  0xf7   : > { %v959_v53 = vpop.f32.mrf.mxu2 }
  0xf8   : > { %v992_v51 = vadd.f32 %v959_v53, %v791_v49  ;;  %v3046_v53 = vld [vmem:[%s2892_s6 + $0xc] sm:$0xf] }
  0xf9   : > { %v1137_v4 = vpop.f32.mrf.mxu0 }
  0xfb   : > { %v1037_v16 = vpop.f32.mrf.mxu3  ;;  %v795_v24 = vpop.f32.mrf.mxu1 }
  0xfc   : > { %v1070_v6 = vadd.f32 %v1037_v16, %v992_v51  ;;  %2339 = vmatmul.msk.bf16.gmra.mxu2 %vm624_vm3, %v2854_v13  ;;  %v796_v62 = vadd.f32 %v795_v24, %v2950_v31  ;;  %v3049_v51 = vld [vmem:[%s2892_s6 + $0x10] sm:$0xf]  ;;  %v1344_v24 = vshrl.u32 %v3046_v53, 16 }
  0xfe   : > { %v3013_v19 = vadd.f32 %v1137_v4, %v1070_v6  ;;  %v2321_v6 = vrot.slane %v2897_v39, 9 }
  0xff   : > { %v962_v7 = vpop.f32.mrf.mxu2 }
 0x100   : > { %2348 = vmatmul.msk.bf16.gmra.mxu3 %vm624_vm3, %v2731_v32  ;;  %v993_v17 = vadd.f32 %v962_v7, %v794_v27  ;;  %v1184_v27 = vrot.slane %v2900_v40, 5  ;;  %v1357_v7 = vshrl.u32 %v3049_v51, 16 }
 0x101   : > { %v1140_v30 = vpop.f32.mrf.mxu0 }
 0x102   : > { %v1186_v40 = vrot.slane %v1184_v27, 4  ;;  %v1185_v39 = vsel %vm2758_vm7, %v2321_v6, %v1184_v27 }
 0x103   : > { %v1040_v63 = vpop.f32.mrf.mxu3  ;;  %v798_v9 = vpop.f32.mrf.mxu1 }
 0x104   : > { %2358 = vmatmul.msk.bf16.gmra.mxu0 %vm624_vm3, %v2869_v60  ;;  %v1071_v15 = vadd.f32 %v1040_v63, %v993_v17  ;;  %v799_v32 = vadd.f32 %v798_v9, %v2913_v48  ;;  %v1346_v9 = vrot.slane %v1344_v24, 4  ;;  %v2381_v24 = vld [vmem:[%s2892_s6 + $0xc] sm:$0xff] }
 0x106   : > { %2327 = vmatmul.msk.bf16.gmra.mxu1 %vm624_vm3, %v2869_v60  ;;  %v3021_v13 = vadd.f32 %v1140_v30, %v1071_v15 }
 0x107   : > { %v964_v31 = vpop.f32.mrf.mxu2 }
 0x108   : > { %v994_v18 = vadd.f32 %v964_v31, %v796_v62  ;;  %v1353_v62 = vshll.u32 %v3049_v51, 16 }
 0x109   : > { %v1142_v43 = vpop.f32.mrf.mxu0 }
 0x10b   : > { %v1042_v55 = vpop.f32.mrf.mxu3  ;;  %v800_v22 = vpop.f32.mrf.mxu1 }
 0x10c   : > { %v1072_v23 = vadd.f32 %v1042_v55, %v994_v18  ;;  %2340 = vmatmul.msk.bf16.gmra.mxu2 %vm624_vm3, %v2875_v25  ;;  %v801_v45 = vadd.f32 %v800_v22, %v2938_v20  ;;  %v1359_v55 = vrot.slane %v1357_v7, 4  ;;  %v401_v22 = vld [vmem:[%s2892_s6 + $0x14] sm:$0x1] }
 0x10e   : > { %v3026_v28 = vadd.f32 %v1142_v43, %v1072_v23  ;;  %v1355_v43 = vrot.slane %v1353_v62, 5 }
 0x10f   : > { %v967_v35 = vpop.f32.mrf.mxu2 }
 0x110   : > { %2349 = vmatmul.msk.bf16.gmra.mxu3 %vm624_vm3, %v2667_v47  ;;  %v995_v60 = vadd.f32 %v967_v35, %v799_v32 }
 0x111   : > { %v1145_v46 = vpop.f32.mrf.mxu0 }
 0x113   : > { %v1045_v11 = vpop.f32.mrf.mxu3  ;;  %v803_v12 = vpop.f32.mrf.mxu1 }
 0x114   : > { %2359 = vmatmul.msk.bf16.gmra.mxu0 %vm624_vm3, %v2904_v42  ;;  %v1073_v50 = vadd.f32 %v1045_v11, %v995_v60  ;;  %v804_v57 = vadd.f32 %v803_v12, %v2957_v37  ;;  %v1363_v11 = vshll.u32 %v401_v22, 16 }
 0x116   : > { %2328 = vmatmul.msk.bf16.gmra.mxu1 %vm624_vm3, %v2904_v42  ;;  %v3035_v25 = vadd.f32 %v1145_v46, %v1073_v50  ;;  %v1360_v46 = vor.u32 %v1359_v55, %v1355_v43 }
 0x117   : > { %v969_v48 = vpop.f32.mrf.mxu2 }
 0x118   : > { %v996_v49 = vadd.f32 %v969_v48, %v801_v45 }
 0x119   : > { %v1147_v47 = vpop.f32.mrf.mxu0 }
 0x11b   : > { %v1047_v56 = vpop.f32.mrf.mxu3  ;;  %v805_v29 = vpop.f32.mrf.mxu1 }
 0x11c   : > { %v1074_v34 = vadd.f32 %v1047_v56, %v996_v49  ;;  %2341 = vmatmul.msk.bf16.gmra.mxu2 %vm624_vm3, %v2918_v38  ;;  %v1187_v38 = vrot.slane %v2923_v61, 5  ;;  %v806_v17 = vadd.f32 %v805_v29, %v2969_v44  ;;  %v1361_v29 = vrot.slane %v1360_v46, 4 }
 0x11e   : > { %v3040_v58 = vadd.f32 %v1147_v47, %v1074_v34  ;;  %v1188_v18 = vsel %vm2758_vm7, %v1186_v40, %v1187_v38  ;;  %v1365_v34 = vrot.slane %v1363_v11, 5 }
 0x11f   : > { %v972_v20 = vpop.f32.mrf.mxu2  ;;  %v1192_v35 = vunpack.c.l.b16 %v1188_v18 }
 0x120   : > { %2350 = vmatmul.msk.bf16.gmra.mxu3 %vm624_vm3, %v2753_v1  ;;  %v997_v42 = vadd.f32 %v972_v20, %v804_v57  ;;  %v1347_v1 = vshll.u32 %v3046_v53, 16 }
 0x121   : > { %v1150_v59 = vpop.f32.mrf.mxu0 }
 0x122   : > { %v1349_v15 = vrot.slane %v1347_v1, 5 }
 0x123   : > { %v1050_v4 = vpop.f32.mrf.mxu3  ;;  %v808_v16 = vpop.f32.mrf.mxu1 }
 0x124   : > { %2360 = vmatmul.msk.bf16.gmra.mxu0 %vm624_vm3, %v2942_v21  ;;  %v1075_v37 = vadd.f32 %v1050_v4, %v997_v42  ;;  %v1350_v60 = vor.u32 %v1349_v15, %v1346_v9  ;;  %v809_v12 = vadd.f32 %v808_v16, %v2925_v2  ;;  %v1449_v4 = vrot.slane %v401_v22, 5 }
 0x126   : > { %2329 = vmatmul.msk.bf16.gmra.mxu1 %vm624_vm3, %v2942_v21  ;;  %v3062_v61 = vadd.f32 %v1150_v59, %v1075_v37  ;;  %v1191_v21 = vunpack.c.l.b16 %v1185_v39  ;;  %v1351_v47 = vrot.slane %v1350_v60, 4  ;;  %v2353_v59 = vrot.slane %v3046_v53, 9 }
 0x127   : > { %v974_v30 = vpop.f32.mrf.mxu2 }
 0x128   : > { %v998_v63 = vadd.f32 %v974_v30, %v806_v17  ;;  %v1193_v48 = vpack.c.b16 %v1192_v35, %v1191_v21  ;;  %v1356_v42 = vsel %vm2604_vm4, %v1351_v47, %v1355_v43 }
 0x129   : > { %v1152_v31 = vpop.f32.mrf.mxu0  ;;  %v1369_v1 = vunpack.c.l.b16 %v1356_v42 }
 0x12b   : > { %v1052_v44 = vpop.f32.mrf.mxu3  ;;  %v810_v23 = vpop.f32.mrf.mxu1 }
 0x12c   : > { %v1076_v32 = vadd.f32 %v1052_v44, %v998_v63  ;;  %2342 = vmatmul.msk.bf16.gmra.mxu2 %vm624_vm3, %v2955_v8  ;;  %v1446_v8 = vrot.slane %v3049_v51, 5  ;;  %v811_v16 = vadd.f32 %v810_v23, %v2944_v41 }
 0x12e   : > { %v3072_v50 = vadd.f32 %v1152_v31, %v1076_v32  ;;  %v1448_v27 = vrot.slane %v1446_v8, 4  ;;  %v1447_v36 = vsel %vm2758_vm7, %v2353_v59, %v1446_v8 }
 0x12f   : > { %v977_v45 = vpop.f32.mrf.mxu2  ;;  %v1453_v30 = vunpack.c.l.b16 %v1447_v36 }
 0x130   : > { %2351 = vmatmul.msk.bf16.gmra.mxu3 %vm624_vm3, %v2961_v26  ;;  %v999_v49 = vadd.f32 %v977_v45, %v809_v12  ;;  %v1366_v26 = vsel %vm2604_vm4, %v1361_v29, %v1365_v34  ;;  %v1450_v53 = vsel %vm2758_vm7, %v1448_v27, %v1449_v4  ;;  %v3110_v29 = vld [vmem:[%s3323_s3] ss:$0 sm:$0xff] }
 0x131   : > { %v1155_v56 = vpop.f32.mrf.mxu0  ;;  %v1370_v6 = vunpack.c.l.b16 %v1366_v26  ;;  %v1454_v63 = vunpack.c.l.b16 %v1450_v53 }
 0x133   : > { %v1055_v57 = vpop.f32.mrf.mxu3  ;;  %v813_v20 = vpop.f32.mrf.mxu1  ;;  %v1371_v41 = vpack.c.b16 %v1370_v6, %v1369_v1  ;;  %v1455_v39 = vpack.c.b16 %v1454_v63, %v1453_v30 }
 0x134   : > { %2361 = vmatmul.msk.bf16.gmra.mxu0 %vm624_vm3, %v1193_v48  ;;  %v1077_v2 = vadd.f32 %v1055_v57, %v999_v49  ;;  %v814_v9 = vadd.f32 %v813_v20, %v2963_v10 }
 0x136   : > { %2330 = vmatmul.msk.bf16.gmra.mxu1 %vm624_vm3, %v1193_v48  ;;  %v3085_v51 = vadd.f32 %v1155_v56, %v1077_v2 }
 0x137   : > { %v979_v38 = vpop.f32.mrf.mxu2 }
 0x138   : > { %v1000_v37 = vadd.f32 %v979_v38, %v811_v16 }
 0x139   : > { %v1157_v40 = vpop.f32.mrf.mxu0 }
 0x13b   : > { %v1057_v62 = vpop.f32.mrf.mxu3  ;;  %v815_v7 = vpop.f32.mrf.mxu1 }
 0x13c   : > { %v1078_v17 = vadd.f32 %v1057_v62, %v1000_v37  ;;  %2343 = vmatmul.msk.bf16.gmra.mxu2 %vm624_vm3, %v2381_v24  ;;  %v816_v44 = vadd.f32 %v815_v7, %v2971_v0 }
 0x13e   : > { %v3094_v15 = vadd.f32 %v1157_v40, %v1078_v17 }
 0x13f   : > { %v982_v31 = vpop.f32.mrf.mxu2 }
 0x140   : > { %2352 = vmatmul.msk.bf16.gmra.mxu3 %vm624_vm3, %v1371_v41  ;;  %v1001_v18 = vadd.f32 %v982_v31, %v814_v9 }
 0x141   : > { %v1160_v54 = vpop.f32.mrf.mxu0 }
 0x143   : > { %v1060_v43 = vpop.f32.mrf.mxu3  ;;  %v1209_v55 = vpop.f32.mrf.mxu1 }
 0x144   : > { %2362 = vmatmul.msk.bf16.gmra.mxu0 %vm624_vm3, %v1455_v39  ;;  %v1079_v22 = vadd.f32 %v1060_v43, %v1001_v18  ;;  %v1249_v11 = vadd.f32 %v1209_v55, %v2981_v5 }
 0x146   : > { %v3099_v23 = vadd.f32 %v1160_v54, %v1079_v22 }
 0x147   : > { %v984_v10 = vpop.f32.mrf.mxu2 }
 0x148   : > { %v1002_v32 = vadd.f32 %v984_v10, %v816_v44 }
 0x149   : > { %v1162_v21 = vpop.f32.mrf.mxu0 }
 0x14b   : > { %v1062_v35 = vpop.f32.mrf.mxu3  ;;  %v1211_v60 = vpop.f32.mrf.mxu1 }
 0x14c   : > { %v1080_v46 = vadd.f32 %v1062_v35, %v1002_v32  ;;  %v1250_v5 = vadd.f32 %v1211_v60, %v2985_v14 }
 0x14e   : > { %v3104_v12 = vadd.f32 %v1162_v21, %v1080_v46 }
 0x14f   : > { %v1287_v45 = vpop.f32.mrf.mxu2 }
 0x150   : > { %v1327_v48 = vadd.f32 %v1287_v45, %v1249_v11 }
 0x151   : > { %v1471_v49 = vpop.f32.mrf.mxu0 }
 0x153   : > { %v1387_v0 = vpop.f32.mrf.mxu3  ;;  %v1214_v47 = vpop.f32.mrf.mxu1 }
 0x154   : > { %v1427_v56 = vadd.f32 %v1387_v0, %v1327_v48  ;;  %v1251_v16 = vadd.f32 %v1214_v47, %v2994_v33 }
 0x156   : > { %v1511_v34 = vadd.f32 %v1471_v49, %v1427_v56 }
 0x157   : > { %v1289_v8 = vpop.f32.mrf.mxu2 }
 0x158   : > { %v1531_v57 = vadd.f32 %v3110_v29, %v1511_v34  ;;  %v1328_v20 = vadd.f32 %v1289_v8, %v1250_v5 }
 0x159   : > { %v1473_v2 = vpop.f32.mrf.mxu0 }
 0x15a   : > { %v1547_v42 = vmax.f32 %v1531_v57, 0.0 }
 0x15b   : > { %v1389_v26 = vpop.f32.mrf.mxu3  ;;  %v1216_v59 = vpop.f32.mrf.mxu1 }
 0x15c   : > { %v1563_v27 = vpack.c.bf16 %v1547_v42, %v1547_v42  ;;  %v1428_v4 = vadd.f32 %v1389_v26, %v1328_v20  ;;  %v1252_v17 = vadd.f32 %v1216_v59, %v2999_v52  ;;  %v1596_v18 = vsel %vm624_vm3, %v1547_v42, -inf }
 0x15e   : > { %1580 = vst.msk [vmem:[%s3117_s8] sm:$0xf] %vm1579_vm8, %v1563_v27  ;;  %v1512_v14 = vadd.f32 %v1473_v2, %v1428_v4 }
 0x15f   : > { %v1292_v38 = vpop.f32.mrf.mxu2 }
 0x160   : > { %v1532_v37 = vadd.f32 %v3110_v29, %v1512_v14  ;;  %v1329_v24 = vadd.f32 %v1292_v38, %v1251_v16 }
 0x161   : > { %v1476_v1 = vpop.f32.mrf.mxu0 }
 0x162   : > { %v1548_v6 = vmax.f32 %v1532_v37, 0.0 }
 0x163   : > { %v1392_v40 = vpop.f32.mrf.mxu3  ;;  %v1219_v36 = vpop.f32.mrf.mxu1 }
 0x164   : > { %v1564_v53 = vpack.c.bf16 %v1548_v6, %v1548_v6  ;;  %v1429_v62 = vadd.f32 %v1392_v40, %v1329_v24  ;;  %v1253_v44 = vadd.f32 %v1219_v36, %v3008_v3  ;;  %v1599_v27 = vsel %vm624_vm3, %v1548_v6, -inf }
 0x166   : > { %1581 = vst.msk [vmem:[%s3117_s8 + $0x4] sm:$0xf] %vm1579_vm8, %v1564_v53  ;;  %v1513_v7 = vadd.f32 %v1476_v1, %v1429_v62 }
 0x167   : > { %v1294_v41 = vpop.f32.mrf.mxu2 }
 0x168   : > { %v1533_v30 = vadd.f32 %v3110_v29, %v1513_v7  ;;  %v1330_v33 = vadd.f32 %v1294_v41, %v1252_v17 }
 0x169   : > { %v1478_v63 = vpop.f32.mrf.mxu0 }
 0x16a   : > { %v1549_v9 = vmax.f32 %v1533_v30, 0.0 }
 0x16b   : > { %v1394_v31 = vpop.f32.mrf.mxu3  ;;  %v3127_v39 = vpop.f32.mrf.mxu1 }
 0x16c   : > { %v1565_v54 = vpack.c.bf16 %v1549_v9, %v1549_v9  ;;  %v1597_v43 = vsel %vm624_vm3, %v1549_v9, -inf  ;;  %v1430_v55 = vadd.f32 %v1394_v31, %v1330_v33 }
 0x16d   : > { %v1598_v22 = vmax.f32 %v1596_v18, %v1597_v43 }
 0x16e   : > { %1582 = vst.msk [vmem:[%s3117_s8 + $0x8] sm:$0xf] %vm1579_vm8, %v1565_v54  ;;  %v1514_v52 = vadd.f32 %v1478_v63, %v1430_v55 }
 0x16f   : > { %v1628_v10 = vrot.slane %v1598_v22, 2  ;;  %v1629_v32 = vrot.slane %v1598_v22, 4  ;;  %v1630_v21 = vrot.slane %v1598_v22, 6  ;;  %v1677_v35 = vsel %vm1676_vm9, %v1598_v22, -inf  ;;  %v1297_v60 = vpop.f32.mrf.mxu2 }
 0x170   : > { %v1678_v46 = vrot.slane %v1677_v35, 4  ;;  %v1534_v11 = vadd.f32 %v3110_v29, %v1514_v52  ;;  %v1331_v47 = vadd.f32 %v1297_v60, %v1253_v44 }
 0x171   : > { %v1684_v45 = vsel %vm1676_vm9, %v1628_v10, -inf  ;;  %v1691_v48 = vsel %vm1676_vm9, %v1629_v32, -inf  ;;  %v1698_v49 = vsel %vm1676_vm9, %v1630_v21, -inf  ;;  %v1481_v0 = vpop.f32.mrf.mxu0 }
 0x172   : > { %v1679_v56 = vmax.f32 %v1677_v35, %v1678_v46  ;;  %v1685_v34 = vrot.slane %v1684_v45, 4  ;;  %v1692_v3 = vrot.slane %v1691_v48, 4  ;;  %v1699_v5 = vrot.slane %v1698_v49, 4 }
 0x173   : > { %v1550_v8 = vmax.f32 %v1534_v11, 0.0  ;;  %v1397_v57 = vpop.f32.mrf.mxu3  ;;  %v1224_v20 = vpop.f32.mrf.mxu1 }
 0x174   : > { %v1680_v2 = vrot.slane %v1679_v56, 2  ;;  %v1686_v42 = vmax.f32 %v1684_v45, %v1685_v34  ;;  %v1693_v26 = vmax.f32 %v1691_v48, %v1692_v3  ;;  %v1700_v59 = vmax.f32 %v1698_v49, %v1699_v5 }
 0x175   : > { %v1566_v4 = vpack.c.bf16 %v1550_v8, %v1550_v8  ;;  %v1600_v14 = vsel %vm624_vm3, %v1550_v8, -inf  ;;  %v1431_v16 = vadd.f32 %v1397_v57, %v1331_v47  ;;  %v1254_v47 = vadd.f32 %v3127_v39, %v3013_v19 }
 0x176   : > { %v1681_v38 = vmax.f32 %v1679_v56, %v1680_v2  ;;  %v1687_v37 = vrot.slane %v1686_v42, 2  ;;  %v1694_v24 = vrot.slane %v1693_v26, 2  ;;  %v1701_v1 = vrot.slane %v1700_v59, 2 }
 0x177   : > { %1583 = vst.msk [vmem:[%s3117_s8 + $0xc] sm:$0xf] %vm1579_vm8, %v1566_v4  ;;  %v1601_v40 = vmax.f32 %v1599_v27, %v1600_v14  ;;  %v1299_v36 = vpop.f32.mrf.mxu2  ;;  %v1515_v54 = vadd.f32 %v1481_v0, %v1431_v16  ;;  %v1255_v56 = vadd.f32 %v1224_v20, %v3021_v13 }
 0x178   : > { %v1682_v53 = vrot.slane %v1681_v38, 1  ;;  %v1688_v62 = vmax.f32 %v1686_v42, %v1687_v37  ;;  %v1695_v7 = vmax.f32 %v1693_v26, %v1694_v24  ;;  %v1702_v17 = vmax.f32 %v1700_v59, %v1701_v1 }
 0x179   : > { %v1631_v41 = vrot.slane %v1601_v40, 2  ;;  %v1632_v30 = vrot.slane %v1601_v40, 4  ;;  %v1633_v6 = vrot.slane %v1601_v40, 6  ;;  %v1705_v33 = vsel %vm1676_vm9, %v1601_v40, -inf  ;;  %v3144_v63 = vpop.f32.mrf.mxu0 }
 0x17a   : > { %v1683_v9 = vmax.f32 %v1681_v38, %v1682_v53  ;;  %v1689_v31 = vrot.slane %v1688_v62, 1  ;;  %v1696_v18 = vrot.slane %v1695_v7, 1  ;;  %v1706_v43 = vrot.slane %v1705_v33, 4 }
 0x17b   : > { %v1712_v55 = vsel %vm1676_vm9, %v1631_v41, -inf  ;;  %v1719_v22 = vsel %vm1676_vm9, %v1632_v30, -inf  ;;  %v1726_v52 = vsel %vm1676_vm9, %v1633_v6, -inf  ;;  %v1399_v44 = vpop.f32.mrf.mxu3  ;;  %v1226_v10 = vpop.f32.mrf.mxu1  ;;  %v1703_v35 = vrot.slane %v1702_v17, 1 }
 0x17c   : > { %v1690_v32 = vmax.f32 %v1688_v62, %v1689_v31  ;;  %v1697_v21 = vmax.f32 %v1695_v7, %v1696_v18  ;;  %v1901_v60 = vpack.c.bf16 %v1683_v9, %v1683_v9  ;;  %v1707_v46 = vmax.f32 %v1705_v33, %v1706_v43 }
 0x17d   : > { %v1713_v11 = vrot.slane %v1712_v55, 4  ;;  %v1720_v45 = vrot.slane %v1719_v22, 4  ;;  %v1727_v48 = vrot.slane %v1726_v52, 4  ;;  %v1704_v2 = vmax.f32 %v1702_v17, %v1703_v35 }
 0x17e   : > { %v1902_v49 = vpack.c.bf16 %v1690_v32, %v1690_v32  ;;  %v1903_v0 = vpack.c.bf16 %v1697_v21, %v1697_v21  ;;  %v1708_v34 = vrot.slane %v1707_v46, 2  ;;  %v1965_v42 = vunpack.c.l.b16 %v1901_v60 }
 0x17f   : > { %v1714_v3 = vmax.f32 %v1712_v55, %v1713_v11  ;;  %v1721_v5 = vmax.f32 %v1719_v22, %v1720_v45  ;;  %v1728_v8 = vmax.f32 %v1726_v52, %v1727_v48  ;;  %v1302_v57 = vpop.f32.mrf.mxu2  ;;  %v1535_v59 = vadd.f32 %v3110_v29, %v1515_v54 }
 0x180   : > { %v1966_v26 = vunpack.c.l.b16 %v1902_v49  ;;  %v1709_v19 = vmax.f32 %v1707_v46, %v1708_v34  ;;  %v1967_v4 = vunpack.c.l.b16 %v1903_v0  ;;  %v1332_v16 = vadd.f32 %v1299_v36, %v1254_v47 }
 0x181   : > { %v1715_v39 = vrot.slane %v1714_v3, 2  ;;  %v1722_v13 = vrot.slane %v1721_v5, 2  ;;  %v1729_v20 = vrot.slane %v1728_v8, 2  ;;  %v1486_v27 = vpop.f32.mrf.mxu0  ;;  %v1551_v14 = vmax.f32 %v1535_v59, 0.0 }
 0x182   : > { %v1333_v38 = vadd.f32 %v1302_v57, %v1255_v56  ;;  %v1998_v37 = vsel %vm1997_vm10, %v1966_v26, %v1965_v42  ;;  %v1710_v24 = vrot.slane %v1709_v19, 1  ;;  %v1904_v7 = vpack.c.bf16 %v1704_v2, %v1704_v2 }
 0x183   : > { %v1716_v1 = vmax.f32 %v1714_v3, %v1715_v39  ;;  %v1723_v40 = vmax.f32 %v1721_v5, %v1722_v13  ;;  %v1402_v53 = vpop.f32.mrf.mxu3  ;;  %v1229_v62 = vpop.f32.mrf.mxu1  ;;  %v1730_v17 = vmax.f32 %v1728_v8, %v1729_v20  ;;  %v1567_v41 = vpack.c.bf16 %v1551_v14, %v1551_v14 }
 0x184   : > { %v1711_v30 = vmax.f32 %v1709_v19, %v1710_v24  ;;  %v1432_v33 = vadd.f32 %v1399_v44, %v1332_v16  ;;  %v2000_v9 = vsel %vm1999_vm11, %v1967_v4, %v1998_v37  ;;  %v1433_v18 = vadd.f32 %v1402_v53, %v1333_v38 }
 0x185   : > { %v1717_v6 = vrot.slane %v1716_v1, 1  ;;  %v1724_v36 = vrot.slane %v1723_v40, 1  ;;  %v1731_v31 = vrot.slane %v1730_v17, 1  ;;  %1584 = vst.msk [vmem:[%s3117_s8 + $0x10] sm:$0xf] %vm1579_vm8, %v1567_v41  ;;  %v1256_v54 = vadd.f32 %v1226_v10, %v3026_v28 }
 0x186   : > { %v1905_v22 = vpack.c.bf16 %v1711_v30, %v1711_v30  ;;  %v1516_v52 = vadd.f32 %v3144_v63, %v1432_v33  ;;  %v1968_v21 = vunpack.c.l.b16 %v1904_v7  ;;  %v1517_v60 = vadd.f32 %v1486_v27, %v1433_v18 }
 0x187   : > { %v1718_v43 = vmax.f32 %v1716_v1, %v1717_v6  ;;  %v1725_v55 = vmax.f32 %v1723_v40, %v1724_v36  ;;  %v1304_v32 = vpop.f32.mrf.mxu2  ;;  %v1732_v35 = vmax.f32 %v1730_v17, %v1731_v31  ;;  %v1602_v8 = vsel %vm624_vm3, %v1551_v14, -inf }
 0x188   : > { %v1334_v46 = vadd.f32 %v1304_v32, %v1256_v54  ;;  %v1969_v45 = vunpack.c.l.b16 %v1905_v22  ;;  %v1536_v48 = vadd.f32 %v3110_v29, %v1516_v52  ;;  %v2002_v28 = vsel %vm2001_vm12, %v1968_v21, %v2000_v9 }
 0x189   : > { %v1906_v44 = vpack.c.bf16 %v1718_v43, %v1718_v43  ;;  %v1907_v11 = vpack.c.bf16 %v1725_v55, %v1725_v55  ;;  %v1488_v49 = vpop.f32.mrf.mxu0  ;;  %v1908_v10 = vpack.c.bf16 %v1732_v35, %v1732_v35  ;;  %v1537_v63 = vadd.f32 %v3110_v29, %v1517_v60 }
 0x18a   : > { %v2004_v56 = vsel %vm2003_vm13, %v1969_v45, %v2002_v28  ;;  %v1552_v34 = vmax.f32 %v1536_v48, 0.0  ;;  %v1257_v19 = vadd.f32 %v1229_v62, %v3035_v25 }
 0x18b   : > { %v1970_v0 = vunpack.c.l.b16 %v1906_v44  ;;  %v1971_v47 = vunpack.c.l.b16 %v1907_v11  ;;  %v1404_v3 = vpop.f32.mrf.mxu3  ;;  %v1231_v5 = vpop.f32.mrf.mxu1  ;;  %v1553_v57 = vmax.f32 %v1537_v63, 0.0  ;;  %v1972_v42 = vunpack.c.l.b16 %v1908_v10 }
 0x18c   : > { %v1434_v2 = vadd.f32 %v1404_v3, %v1334_v46  ;;  %v1568_v59 = vpack.c.bf16 %v1552_v34, %v1552_v34  ;;  %v1605_v43 = vsel %vm624_vm3, %v1552_v34, -inf  ;;  %v1258_v11 = vadd.f32 %v1231_v5, %v3040_v58 }
 0x18d   : > { %v2006_v26 = vsel %vm2005_vm14, %v1970_v0, %v2004_v56  ;;  %v1569_v13 = vpack.c.bf16 %v1553_v57, %v1553_v57  ;;  %v1603_v20 = vsel %vm624_vm3, %v1553_v57, -inf }
 0x18e   : > { %v2008_v39 = vsel %vm2007_vm15, %v1971_v47, %v2006_v26  ;;  %v1518_v27 = vadd.f32 %v1488_v49, %v1434_v2  ;;  %1585 = vst.msk [vmem:[%s3117_s8 + $0x14] sm:$0xf] %vm1579_vm8, %v1568_v59  ;;  %v1604_v14 = vmax.f32 %v1602_v8, %v1603_v20 }
 0x18f   : > { %v2010_v4 = vsel %vm2009_vm0, %v1972_v42, %v2008_v39  ;;  %v1307_v16 = vpop.f32.mrf.mxu2  ;;  %1586 = vst.msk [vmem:[%s3117_s8 + $0x18] sm:$0xf] %vm1579_vm8, %v1569_v13 }
 0x190   : > { %v2032_v38 = vpack.c.b16 %v2010_v4, %v2010_v4  ;;  %v1538_v25 = vadd.f32 %v3110_v29, %v1518_v27  ;;  %v1335_v37 = vadd.f32 %v1307_v16, %v1257_v19  ;;  %v1634_v24 = vrot.slane %v1604_v14, 2 }
 0x191   : > { %v1635_v1 = vrot.slane %v1604_v14, 4  ;;  %v1636_v40 = vrot.slane %v1604_v14, 6  ;;  %v1733_v53 = vsel %vm1676_vm9, %v1604_v14, -inf  ;;  %v1491_v62 = vpop.f32.mrf.mxu0 }
 0x192   : > { %2040 = vst.msk [vmem:[%s3186_s14] sm:$0xf] %vm1579_vm8, %v2032_v38  ;;  %v1734_v7 = vrot.slane %v1733_v53, 4  ;;  %v1554_v17 = vmax.f32 %v1538_v25, 0.0  ;;  %v1740_v41 = vsel %vm1676_vm9, %v1634_v24, -inf }
 0x193   : > { %v1747_v30 = vsel %vm1676_vm9, %v1635_v1, -inf  ;;  %v1754_v6 = vsel %vm1676_vm9, %v1636_v40, -inf  ;;  %v1407_v36 = vpop.f32.mrf.mxu3  ;;  %v1234_v33 = vpop.f32.mrf.mxu1  ;;  %v1741_v31 = vrot.slane %v1740_v41, 4 }
 0x194   : > { %v1735_v9 = vmax.f32 %v1733_v53, %v1734_v7  ;;  %v1748_v18 = vrot.slane %v1747_v30, 4  ;;  %v1755_v54 = vrot.slane %v1754_v6, 4  ;;  %v1570_v55 = vpack.c.bf16 %v1554_v17, %v1554_v17 }
 0x195   : > { %v1606_v22 = vsel %vm624_vm3, %v1554_v17, -inf  ;;  %v1435_v52 = vadd.f32 %v1407_v36, %v1335_v37  ;;  %v1742_v21 = vmax.f32 %v1740_v41, %v1741_v31  ;;  %v1259_v36 = vadd.f32 %v1234_v33, %v3062_v61 }
 0x196   : > { %v1736_v32 = vrot.slane %v1735_v9, 2  ;;  %v1749_v35 = vmax.f32 %v1747_v30, %v1748_v18  ;;  %v1756_v60 = vmax.f32 %v1754_v6, %v1755_v54  ;;  %1587 = vst.msk [vmem:[%s3117_s8 + $0x1c] sm:$0xf] %vm1579_vm8, %v1570_v55  ;;  %v1607_v46 = vmax.f32 %v1605_v43, %v1606_v22 }
 0x197   : > { %v1519_v44 = vadd.f32 %v1491_v62, %v1435_v52  ;;  %v1309_v45 = vpop.f32.mrf.mxu2  ;;  %v1743_v49 = vrot.slane %v1742_v21, 2 }
 0x198   : > { %v1737_v48 = vmax.f32 %v1735_v9, %v1736_v32  ;;  %v1750_v28 = vrot.slane %v1749_v35, 2  ;;  %v1757_v10 = vrot.slane %v1756_v60, 2  ;;  %v1637_v63 = vrot.slane %v1607_v46, 2 }
 0x199   : > { %v1638_v0 = vrot.slane %v1607_v46, 4  ;;  %v1639_v47 = vrot.slane %v1607_v46, 6  ;;  %v1761_v56 = vsel %vm1676_vm9, %v1607_v46, -inf  ;;  %v3206_v34 = vpop.f32.mrf.mxu0  ;;  %v1744_v8 = vmax.f32 %v1742_v21, %v1743_v49 }
 0x19a   : > { %v1738_v3 = vrot.slane %v1737_v48, 1  ;;  %v1751_v57 = vmax.f32 %v1749_v35, %v1750_v28  ;;  %v1758_v2 = vmax.f32 %v1756_v60, %v1757_v10  ;;  %v1762_v42 = vrot.slane %v1761_v56, 4 }
 0x19b   : > { %v1768_v26 = vsel %vm1676_vm9, %v1637_v63, -inf  ;;  %v1775_v58 = vsel %vm1676_vm9, %v1638_v0, -inf  ;;  %v1782_v5 = vsel %vm1676_vm9, %v1639_v47, -inf  ;;  %v1409_v59 = vpop.f32.mrf.mxu3  ;;  %v1236_v19 = vpop.f32.mrf.mxu1  ;;  %v1745_v13 = vrot.slane %v1744_v8, 1 }
 0x19c   : > { %v1739_v39 = vmax.f32 %v1737_v48, %v1738_v3  ;;  %v1752_v20 = vrot.slane %v1751_v57, 1  ;;  %v1759_v27 = vrot.slane %v1758_v2, 1  ;;  %v1763_v4 = vmax.f32 %v1761_v56, %v1762_v42 }
 0x19d   : > { %v1769_v14 = vrot.slane %v1768_v26, 4  ;;  %v1776_v16 = vrot.slane %v1775_v58, 4  ;;  %v1783_v38 = vrot.slane %v1782_v5, 4  ;;  %v1746_v25 = vmax.f32 %v1744_v8, %v1745_v13 }
 0x19e   : > { %v1753_v37 = vmax.f32 %v1751_v57, %v1752_v20  ;;  %v1760_v24 = vmax.f32 %v1758_v2, %v1759_v27  ;;  %v1909_v1 = vpack.c.bf16 %v1739_v39, %v1739_v39  ;;  %v1764_v40 = vrot.slane %v1763_v4, 2 }
 0x19f   : > { %v1770_v53 = vmax.f32 %v1768_v26, %v1769_v14  ;;  %v1777_v62 = vmax.f32 %v1775_v58, %v1776_v16  ;;  %v1784_v7 = vmax.f32 %v1782_v5, %v1783_v38  ;;  %v1312_v17 = vpop.f32.mrf.mxu2  ;;  %v1910_v41 = vpack.c.bf16 %v1746_v25, %v1746_v25 }
 0x1a0   : > { %v1911_v30 = vpack.c.bf16 %v1753_v37, %v1753_v37  ;;  %v1912_v6 = vpack.c.bf16 %v1760_v24, %v1760_v24  ;;  %v1765_v9 = vmax.f32 %v1763_v4, %v1764_v40  ;;  %v1973_v55 = vunpack.c.l.b16 %v1909_v1 }
 0x1a1   : > { %v1771_v31 = vrot.slane %v1770_v53, 2  ;;  %v1778_v18 = vrot.slane %v1777_v62, 2  ;;  %v1785_v54 = vrot.slane %v1784_v7, 2  ;;  %v1496_v43 = vpop.f32.mrf.mxu0  ;;  %v1974_v22 = vunpack.c.l.b16 %v1910_v41 }
 0x1a2   : > { %v1975_v52 = vunpack.c.l.b16 %v1911_v30  ;;  %v1539_v32 = vadd.f32 %v3110_v29, %v1519_v44  ;;  %v1766_v21 = vrot.slane %v1765_v9, 1  ;;  %v1336_v10 = vadd.f32 %v1309_v45, %v1258_v11 }
 0x1a3   : > { %v1772_v35 = vmax.f32 %v1770_v53, %v1771_v31  ;;  %v1779_v60 = vmax.f32 %v1777_v62, %v1778_v18  ;;  %v1786_v46 = vmax.f32 %v1784_v7, %v1785_v54  ;;  %v1412_v48 = vpop.f32.mrf.mxu3  ;;  %v2011_v49 = vsel %vm1997_vm10, %v1974_v22, %v1973_v55  ;;  %v1239_v47 = vpop.f32.mrf.mxu1 }
 0x1a4   : > { %v1555_v28 = vmax.f32 %v1539_v32, 0.0  ;;  %v1337_v61 = vadd.f32 %v1312_v17, %v1259_v36  ;;  %v1767_v33 = vmax.f32 %v1765_v9, %v1766_v21  ;;  %v2012_v56 = vsel %vm1999_vm11, %v1975_v52, %v2011_v49 }
 0x1a5   : > { %v1773_v63 = vrot.slane %v1772_v35, 1  ;;  %v1780_v0 = vrot.slane %v1779_v60, 1  ;;  %v1787_v3 = vrot.slane %v1786_v46, 1  ;;  %v1436_v42 = vadd.f32 %v1409_v59, %v1336_v10 }
 0x1a6   : > { %v1571_v8 = vpack.c.bf16 %v1555_v28, %v1555_v28  ;;  %v1913_v2 = vpack.c.bf16 %v1767_v33, %v1767_v33  ;;  %v1976_v58 = vunpack.c.l.b16 %v1912_v6  ;;  %v1437_v11 = vadd.f32 %v1412_v48, %v1337_v61 }
 0x1a7   : > { %v1774_v44 = vmax.f32 %v1772_v35, %v1773_v63  ;;  %v1781_v57 = vmax.f32 %v1779_v60, %v1780_v0  ;;  %v1314_v26 = vpop.f32.mrf.mxu2  ;;  %v1788_v5 = vmax.f32 %v1786_v46, %v1787_v3  ;;  %v1260_v45 = vadd.f32 %v1236_v19, %v3072_v50 }
 0x1a8   : > { %1588 = vst.msk [vmem:[%s3117_s8 + $0x20] sm:$0xf] %vm1579_vm8, %v1571_v8  ;;  %v1977_v20 = vunpack.c.l.b16 %v1913_v2  ;;  %v1520_v27 = vadd.f32 %v3206_v34, %v1436_v42  ;;  %v2013_v14 = vsel %vm2001_vm12, %v1976_v58, %v2012_v56  ;;  %v1521_v38 = vadd.f32 %v1496_v43, %v1437_v11 }
 0x1a9   : > { %v1914_v39 = vpack.c.bf16 %v1774_v44, %v1774_v44  ;;  %v1915_v13 = vpack.c.bf16 %v1781_v57, %v1781_v57  ;;  %v1498_v4 = vpop.f32.mrf.mxu0  ;;  %v1916_v16 = vpack.c.bf16 %v1788_v5, %v1788_v5  ;;  %v1338_v25 = vadd.f32 %v1314_v26, %v1260_v45 }
 0x1aa   : > { %v2014_v24 = vsel %vm2003_vm13, %v1977_v20, %v2013_v14  ;;  %v1540_v1 = vadd.f32 %v3110_v29, %v1520_v27  ;;  %v1541_v50 = vadd.f32 %v3110_v29, %v1521_v38  ;;  %v1608_v6 = vsel %vm624_vm3, %v1555_v28, -inf }
 0x1ab   : > { %v1978_v59 = vunpack.c.l.b16 %v1914_v39  ;;  %v1979_v37 = vunpack.c.l.b16 %v1915_v13  ;;  %v1414_v40 = vpop.f32.mrf.mxu3  ;;  %v1980_v53 = vunpack.c.l.b16 %v1916_v16  ;;  %v1261_v9 = vadd.f32 %v1239_v47, %v3085_v51  ;;  %v1241_v18 = vpop.f32.mrf.mxu1 }
 0x1ac   : > { %v1438_v19 = vadd.f32 %v1414_v40, %v1338_v25  ;;  %v1556_v62 = vmax.f32 %v1540_v1, 0.0  ;;  %v1557_v17 = vmax.f32 %v1541_v50, 0.0  ;;  %v3238_v51 = vadd.f32 %v1241_v18, %v3094_v15 }
 0x1ad   : > { %v2015_v34 = vsel %vm2005_vm14, %v1978_v59, %v2014_v24 }
 0x1ae   : > { %v2016_v7 = vsel %vm2007_vm15, %v1979_v37, %v2015_v34  ;;  %v1522_v41 = vadd.f32 %v1498_v4, %v1438_v19  ;;  %v1572_v36 = vpack.c.bf16 %v1556_v62, %v1556_v62  ;;  %v1573_v43 = vpack.c.bf16 %v1557_v17, %v1557_v17 }
 0x1af   : > { %v2017_v30 = vsel %vm2009_vm0, %v1980_v53, %v2016_v7  ;;  %v1317_v31 = vpop.f32.mrf.mxu2  ;;  %v1609_v55 = vsel %vm624_vm3, %v1557_v17, -inf  ;;  %v1611_v21 = vsel %vm624_vm3, %v1556_v62, -inf }
 0x1b0   : > { %v2033_v54 = vpack.c.b16 %v2017_v30, %v2017_v30  ;;  %v1542_v22 = vadd.f32 %v3110_v29, %v1522_v41  ;;  %1589 = vst.msk [vmem:[%s3117_s8 + $0x24] sm:$0xf] %vm1579_vm8, %v1572_v36  ;;  %v1610_v52 = vmax.f32 %v1608_v6, %v1609_v55  ;;  %v1339_v32 = vadd.f32 %v1317_v31, %v1261_v9 }
 0x1b1   : > { %v3235_v60 = vpop.f32.mrf.mxu0  ;;  %1590 = vst.msk [vmem:[%s3117_s8 + $0x28] sm:$0xf] %vm1579_vm8, %v1573_v43 }
 0x1b2   : > { %2041 = vst.msk [vmem:[%s3186_s14 + $0x4] sm:$0xf] %vm1579_vm8, %v2033_v54  ;;  %v1558_v35 = vmax.f32 %v1542_v22, 0.0  ;;  %v1640_v46 = vrot.slane %v1610_v52, 2  ;;  %v1641_v48 = vrot.slane %v1610_v52, 4  ;;  %v1642_v49 = vrot.slane %v1610_v52, 6 }
 0x1b3   : > { %v1789_v28 = vsel %vm1676_vm9, %v1610_v52, -inf  ;;  %v1417_v10 = vpop.f32.mrf.mxu3  ;;  %v1244_v43 = vpop.f32.mrf.mxu1 }
 0x1b4   : > { %v1790_v61 = vrot.slane %v1789_v28, 4  ;;  %v1574_v33 = vpack.c.bf16 %v1558_v35, %v1558_v35  ;;  %v1612_v63 = vsel %vm624_vm3, %v1558_v35, -inf  ;;  %v3244_v0 = vadd.f32 %v1417_v10, %v1339_v32 }
 0x1b5   : > { %v1796_v47 = vsel %vm1676_vm9, %v1640_v46, -inf  ;;  %v1803_v15 = vsel %vm1676_vm9, %v1641_v48, -inf  ;;  %v1810_v56 = vsel %vm1676_vm9, %v1642_v49, -inf  ;;  %v1613_v3 = vmax.f32 %v1611_v21, %v1612_v63 }
 0x1b6   : > { %v1791_v8 = vmax.f32 %v1789_v28, %v1790_v61  ;;  %v1797_v44 = vrot.slane %v1796_v47, 4  ;;  %v1804_v57 = vrot.slane %v1803_v15, 4  ;;  %v1811_v2 = vrot.slane %v1810_v56, 4  ;;  %1591 = vst.msk [vmem:[%s3117_s8 + $0x2c] sm:$0xf] %vm1579_vm8, %v1574_v33 }
 0x1b7   : > { %v1643_v42 = vrot.slane %v1613_v3, 2  ;;  %v1644_v26 = vrot.slane %v1613_v3, 4  ;;  %v1645_v58 = vrot.slane %v1613_v3, 6  ;;  %v1817_v5 = vsel %vm1676_vm9, %v1613_v3, -inf  ;;  %v3252_v11 = vpop.f32.mrf.mxu2 }
 0x1b8   : > { %v1792_v45 = vrot.slane %v1791_v8, 2  ;;  %v1798_v39 = vmax.f32 %v1796_v47, %v1797_v44  ;;  %v1805_v13 = vmax.f32 %v1803_v15, %v1804_v57  ;;  %v1812_v20 = vmax.f32 %v1810_v56, %v1811_v2 }
 0x1b9   : > { %v1818_v27 = vrot.slane %v1817_v5, 4  ;;  %v1824_v4 = vsel %vm1676_vm9, %v1643_v42, -inf  ;;  %v1831_v14 = vsel %vm1676_vm9, %v1644_v26, -inf  ;;  %v1838_v16 = vsel %vm1676_vm9, %v1645_v58, -inf  ;;  %v1503_v17 = vpop.f32.mrf.mxu0 }
 0x1ba   : > { %v1793_v38 = vmax.f32 %v1791_v8, %v1792_v45  ;;  %v1799_v25 = vrot.slane %v1798_v39, 2  ;;  %v1806_v59 = vrot.slane %v1805_v13, 2  ;;  %v1813_v37 = vrot.slane %v1812_v20, 2 }
 0x1bb   : > { %v1819_v24 = vmax.f32 %v1817_v5, %v1818_v27  ;;  %v1825_v1 = vrot.slane %v1824_v4, 4  ;;  %v1832_v40 = vrot.slane %v1831_v14, 4  ;;  %v1839_v50 = vrot.slane %v1838_v16, 4  ;;  %v1419_v19 = vpop.f32.mrf.mxu3 }
 0x1bc   : > { %v1794_v53 = vrot.slane %v1793_v38, 1  ;;  %v1800_v34 = vmax.f32 %v1798_v39, %v1799_v25  ;;  %v1807_v62 = vmax.f32 %v1805_v13, %v1806_v59  ;;  %v1814_v7 = vmax.f32 %v1812_v20, %v1813_v37 }
 0x1bd   : > { %v1820_v41 = vrot.slane %v1819_v24, 2  ;;  %v1826_v30 = vmax.f32 %v1824_v4, %v1825_v1  ;;  %v1833_v6 = vmax.f32 %v1831_v14, %v1832_v40  ;;  %v1840_v36 = vmax.f32 %v1838_v16, %v1839_v50  ;;  %v1246_v40 = vpop.f32.mrf.mxu1 }
 0x1be   : > { %v1795_v9 = vmax.f32 %v1793_v38, %v1794_v53  ;;  %v1801_v31 = vrot.slane %v1800_v34, 1  ;;  %v1808_v18 = vrot.slane %v1807_v62, 1  ;;  %v1815_v54 = vrot.slane %v1814_v7, 1 }
 0x1bf   : > { %v1821_v55 = vmax.f32 %v1819_v24, %v1820_v41  ;;  %v1827_v22 = vrot.slane %v1826_v30, 2  ;;  %v1834_v52 = vrot.slane %v1833_v6, 2  ;;  %v1841_v32 = vrot.slane %v1840_v36, 2  ;;  %v1322_v49 = vpop.f32.mrf.mxu2 }
 0x1c0   : > { %v1802_v21 = vmax.f32 %v1800_v34, %v1801_v31  ;;  %v1809_v35 = vmax.f32 %v1807_v62, %v1808_v18  ;;  %v1816_v46 = vmax.f32 %v1814_v7, %v1815_v54  ;;  %v1917_v48 = vpack.c.bf16 %v1795_v9, %v1795_v9 }
 0x1c1   : > { %v1822_v28 = vrot.slane %v1821_v55, 1  ;;  %v1828_v10 = vmax.f32 %v1826_v30, %v1827_v22  ;;  %v1835_v61 = vmax.f32 %v1833_v6, %v1834_v52  ;;  %v1842_v33 = vmax.f32 %v1840_v36, %v1841_v32  ;;  %v1506_v38 = vpop.f32.mrf.mxu0 }
 0x1c2   : > { %v1918_v63 = vpack.c.bf16 %v1802_v21, %v1802_v21  ;;  %v1919_v47 = vpack.c.bf16 %v1809_v35, %v1809_v35  ;;  %v1920_v15 = vpack.c.bf16 %v1816_v46, %v1816_v46  ;;  %v1981_v56 = vunpack.c.l.b16 %v1917_v48 }
 0x1c3   : > { %v1823_v3 = vmax.f32 %v1821_v55, %v1822_v28  ;;  %v1829_v8 = vrot.slane %v1828_v10, 1  ;;  %v1836_v44 = vrot.slane %v1835_v61, 1  ;;  %v1843_v57 = vrot.slane %v1842_v33, 1  ;;  %v1422_v5 = vpop.f32.mrf.mxu3 }
 0x1c4   : > { %v1982_v2 = vunpack.c.l.b16 %v1918_v63  ;;  %v1983_v42 = vunpack.c.l.b16 %v1919_v47  ;;  %v1984_v26 = vunpack.c.l.b16 %v1920_v15  ;;  %v1523_v58 = vadd.f32 %v3235_v60, %v3244_v0 }
 0x1c5   : > { %v1830_v45 = vmax.f32 %v1828_v10, %v1829_v8  ;;  %v1837_v39 = vmax.f32 %v1835_v61, %v1836_v44  ;;  %v1844_v13 = vmax.f32 %v1842_v33, %v1843_v57  ;;  %v1921_v20 = vpack.c.bf16 %v1823_v3, %v1823_v3 }
 0x1c6   : > { %v2018_v27 = vsel %vm1997_vm10, %v1982_v2, %v1981_v56  ;;  %v1543_v4 = vadd.f32 %v3110_v29, %v1523_v58  ;;  %v1340_v14 = vadd.f32 %v3252_v11, %v3238_v51  ;;  %v1263_v16 = vadd.f32 %v1244_v43, %v3099_v23 }
 0x1c7   : > { %v2019_v25 = vsel %vm1999_vm11, %v1983_v42, %v2018_v27  ;;  %v1922_v59 = vpack.c.bf16 %v1830_v45, %v1830_v45  ;;  %v1923_v37 = vpack.c.bf16 %v1837_v39, %v1837_v39  ;;  %v1924_v60 = vpack.c.bf16 %v1844_v13, %v1844_v13  ;;  %v1324_v7 = vpop.f32.mrf.mxu2 }
 0x1c8   : > { %v1985_v0 = vunpack.c.l.b16 %v1921_v20  ;;  %v1559_v24 = vmax.f32 %v1543_v4, 0.0  ;;  %v1440_v1 = vadd.f32 %v1419_v19, %v1340_v14  ;;  %v2020_v50 = vsel %vm2001_vm12, %v1984_v26, %v2019_v25 }
 0x1c9   : > { %v1986_v53 = vunpack.c.l.b16 %v1922_v59  ;;  %v1987_v34 = vunpack.c.l.b16 %v1923_v37  ;;  %v1341_v62 = vadd.f32 %v1322_v49, %v1263_v16  ;;  %v1988_v41 = vunpack.c.l.b16 %v1924_v60  ;;  %v1508_v32 = vpop.f32.mrf.mxu0 }
 0x1ca   : > { %v2021_v51 = vsel %vm2003_vm13, %v1985_v0, %v2020_v50  ;;  %v1575_v11 = vpack.c.bf16 %v1559_v24, %v1559_v24  ;;  %v1524_v23 = vadd.f32 %v1503_v17, %v1440_v1  ;;  %v1264_v36 = vadd.f32 %v1246_v40, %v3104_v12 }
 0x1cb   : > { %v2022_v30 = vsel %vm2005_vm14, %v1986_v53, %v2021_v51  ;;  %v1441_v6 = vadd.f32 %v1422_v5, %v1341_v62  ;;  %v1424_v55 = vpop.f32.mrf.mxu3  ;;  %v1614_v46 = vsel %vm624_vm3, %v1559_v24, -inf }
 0x1cc   : > { %v2023_v19 = vsel %vm2007_vm15, %v1987_v34, %v2022_v30  ;;  %1592 = vst.msk [vmem:[%s3117_s8 + $0x30] sm:$0xf] %vm1579_vm8, %v1575_v11  ;;  %v1544_v9 = vadd.f32 %v3110_v29, %v1524_v23  ;;  %v1342_v54 = vadd.f32 %v1324_v7, %v1264_v36 }
 0x1cd   : > { %v2024_v31 = vsel %vm2009_vm0, %v1988_v41, %v2023_v19  ;;  %v1525_v18 = vadd.f32 %v1506_v38, %v1441_v6 }
 0x1ce   : > { %v2034_v17 = vpack.c.b16 %v2024_v31, %v2024_v31  ;;  %v1560_v43 = vmax.f32 %v1544_v9, 0.0  ;;  %v1442_v52 = vadd.f32 %v1424_v55, %v1342_v54 }
 0x1cf   : > { %v1545_v22 = vadd.f32 %v3110_v29, %v1525_v18 }
 0x1d0   : > { %2042 = vst.msk [vmem:[%s3186_s14 + $0x8] sm:$0xf] %vm1579_vm8, %v2034_v17  ;;  %v1576_v12 = vpack.c.bf16 %v1560_v43, %v1560_v43  ;;  %v1526_v35 = vadd.f32 %v1508_v32, %v1442_v52  ;;  %v1617_v56 = vsel %vm624_vm3, %v1560_v43, -inf }
 0x1d1   : > { %v1561_v21 = vmax.f32 %v1545_v22, 0.0 }
 0x1d2   : > { %1593 = vst.msk [vmem:[%s3117_s8 + $0x34] sm:$0xf] %vm1579_vm8, %v1576_v12  ;;  %v1546_v28 = vadd.f32 %v3110_v29, %v1526_v35 }
 0x1d3   : > { %v1577_v48 = vpack.c.bf16 %v1561_v21, %v1561_v21  ;;  %v1615_v49 = vsel %vm624_vm3, %v1561_v21, -inf }
 0x1d4   : > { %v1616_v10 = vmax.f32 %v1614_v46, %v1615_v49  ;;  %v1562_v61 = vmax.f32 %v1546_v28, 0.0 }
 0x1d5   : > { %1594 = vst.msk [vmem:[%s3117_s8 + $0x38] sm:$0xf] %vm1579_vm8, %v1577_v48 }
 0x1d6   : > { %v1646_v33 = vrot.slane %v1616_v10, 2  ;;  %v1647_v63 = vrot.slane %v1616_v10, 4  ;;  %v1648_v47 = vrot.slane %v1616_v10, 6  ;;  %v1845_v15 = vsel %vm1676_vm9, %v1616_v10, -inf }
 0x1d7   : > { %v1846_v3 = vrot.slane %v1845_v15, 4  ;;  %v1578_v8 = vpack.c.bf16 %v1562_v61, %v1562_v61  ;;  %v1618_v44 = vsel %vm624_vm3, %v1562_v61, -inf }
 0x1d8   : > { %v1852_v57 = vsel %vm1676_vm9, %v1646_v33, -inf  ;;  %v1859_v29 = vsel %vm1676_vm9, %v1647_v63, -inf  ;;  %v1866_v2 = vsel %vm1676_vm9, %v1648_v47, -inf  ;;  %v1619_v42 = vmax.f32 %v1617_v56, %v1618_v44 }
 0x1d9   : > { %v1847_v26 = vmax.f32 %v1845_v15, %v1846_v3  ;;  %v1853_v58 = vrot.slane %v1852_v57, 4  ;;  %v1860_v5 = vrot.slane %v1859_v29, 4  ;;  %v1867_v45 = vrot.slane %v1866_v2, 4  ;;  %1595 = vst.msk [vmem:[%s3117_s8 + $0x3c] sm:$0xf] %vm1579_vm8, %v1578_v8 }
 0x1da   : > { %v1649_v39 = vrot.slane %v1619_v42, 2  ;;  %v1650_v13 = vrot.slane %v1619_v42, 4  ;;  %v1651_v20 = vrot.slane %v1619_v42, 6  ;;  %v1873_v27 = vsel %vm1676_vm9, %v1619_v42, -inf }
 0x1db   : > { %v1848_v4 = vrot.slane %v1847_v26, 2  ;;  %v1854_v14 = vmax.f32 %v1852_v57, %v1853_v58  ;;  %v1861_v16 = vmax.f32 %v1859_v29, %v1860_v5  ;;  %v1868_v38 = vmax.f32 %v1866_v2, %v1867_v45 }
 0x1dc   : > { %v1874_v25 = vrot.slane %v1873_v27, 4  ;;  %v1880_v59 = vsel %vm1676_vm9, %v1649_v39, -inf  ;;  %v1887_v37 = vsel %vm1676_vm9, %v1650_v13, -inf  ;;  %v1894_v60 = vsel %vm1676_vm9, %v1651_v20, -inf }
 0x1dd   : > { %v1849_v0 = vmax.f32 %v1847_v26, %v1848_v4  ;;  %v1855_v24 = vrot.slane %v1854_v14, 2  ;;  %v1862_v1 = vrot.slane %v1861_v16, 2  ;;  %v1869_v40 = vrot.slane %v1868_v38, 2 }
 0x1de   : > { %v1875_v50 = vmax.f32 %v1873_v27, %v1874_v25  ;;  %v1881_v53 = vrot.slane %v1880_v59, 4  ;;  %v1888_v34 = vrot.slane %v1887_v37, 4  ;;  %v1895_v62 = vrot.slane %v1894_v60, 4 }
 0x1df   : > { %v1850_v51 = vrot.slane %v1849_v0, 1  ;;  %v1856_v11 = vmax.f32 %v1854_v14, %v1855_v24  ;;  %v1863_v23 = vmax.f32 %v1861_v16, %v1862_v1  ;;  %v1870_v7 = vmax.f32 %v1868_v38, %v1869_v40 }
 0x1e0   : > { %v1876_v41 = vrot.slane %v1875_v50, 2  ;;  %v1882_v30 = vmax.f32 %v1880_v59, %v1881_v53  ;;  %v1889_v6 = vmax.f32 %v1887_v37, %v1888_v34  ;;  %v1896_v36 = vmax.f32 %v1894_v60, %v1895_v62 }
 0x1e1   : > { %v1851_v19 = vmax.f32 %v1849_v0, %v1850_v51  ;;  %v1857_v9 = vrot.slane %v1856_v11, 1  ;;  %v1864_v31 = vrot.slane %v1863_v23, 1  ;;  %v1871_v18 = vrot.slane %v1870_v7, 1 }
 0x1e2   : > { %v1877_v54 = vmax.f32 %v1875_v50, %v1876_v41  ;;  %v1883_v17 = vrot.slane %v1882_v30, 2  ;;  %v1890_v43 = vrot.slane %v1889_v6, 2  ;;  %v1897_v55 = vrot.slane %v1896_v36, 2 }
 0x1e3   : > { %v1858_v22 = vmax.f32 %v1856_v11, %v1857_v9  ;;  %v1865_v52 = vmax.f32 %v1863_v23, %v1864_v31  ;;  %v1872_v12 = vmax.f32 %v1870_v7, %v1871_v18  ;;  %v1925_v32 = vpack.c.bf16 %v1851_v19, %v1851_v19 }
 0x1e4   : > { %v1878_v21 = vrot.slane %v1877_v54, 1  ;;  %v1884_v35 = vmax.f32 %v1882_v30, %v1883_v17  ;;  %v1891_v46 = vmax.f32 %v1889_v6, %v1890_v43  ;;  %v1898_v48 = vmax.f32 %v1896_v36, %v1897_v55 }
 0x1e5   : > { %v1926_v49 = vpack.c.bf16 %v1858_v22, %v1858_v22  ;;  %v1927_v28 = vpack.c.bf16 %v1865_v52, %v1865_v52  ;;  %v1928_v10 = vpack.c.bf16 %v1872_v12, %v1872_v12  ;;  %v1989_v15 = vunpack.c.l.b16 %v1925_v32 }
 0x1e6   : > { %v1879_v61 = vmax.f32 %v1877_v54, %v1878_v21  ;;  %v1885_v33 = vrot.slane %v1884_v35, 1  ;;  %v1892_v63 = vrot.slane %v1891_v46, 1  ;;  %v1899_v47 = vrot.slane %v1898_v48, 1 }
 0x1e7   : > { %v1990_v56 = vunpack.c.l.b16 %v1926_v49  ;;  %v1991_v3 = vunpack.c.l.b16 %v1927_v28  ;;  %v1992_v2 = vunpack.c.l.b16 %v1928_v10 }
 0x1e8   : > { %v1886_v8 = vmax.f32 %v1884_v35, %v1885_v33  ;;  %v1893_v44 = vmax.f32 %v1891_v46, %v1892_v63  ;;  %v1900_v57 = vmax.f32 %v1898_v48, %v1899_v47  ;;  %v1929_v29 = vpack.c.bf16 %v1879_v61, %v1879_v61 }
 0x1e9   : > { %v2025_v42 = vsel %vm1997_vm10, %v1990_v56, %v1989_v15 }
 0x1ea   : > { %v2026_v26 = vsel %vm1999_vm11, %v1991_v3, %v2025_v42  ;;  %v1930_v58 = vpack.c.bf16 %v1886_v8, %v1886_v8  ;;  %v1931_v5 = vpack.c.bf16 %v1893_v44, %v1893_v44  ;;  %v1932_v45 = vpack.c.bf16 %v1900_v57, %v1900_v57 }
 0x1eb   : > { %v1993_v39 = vunpack.c.l.b16 %v1929_v29  ;;  %v2027_v13 = vsel %vm2001_vm12, %v1992_v2, %v2026_v26 }
 0x1ec   : > { %v1994_v20 = vunpack.c.l.b16 %v1930_v58  ;;  %v1995_v27 = vunpack.c.l.b16 %v1931_v5  ;;  %v1996_v14 = vunpack.c.l.b16 %v1932_v45 }
 0x1ed   : > { %v2028_v4 = vsel %vm2003_vm13, %v1993_v39, %v2027_v13 }
 0x1ee   : > { %v2029_v16 = vsel %vm2005_vm14, %v1994_v20, %v2028_v4 }
 0x1ef   : > { %v2030_v38 = vsel %vm2007_vm15, %v1995_v27, %v2029_v16 }
 0x1f0   : > { %v2031_v25 = vsel %vm2009_vm0, %v1996_v14, %v2030_v38 }
 0x1f1   : > { %v2035_v59 = vpack.c.b16 %v2031_v25, %v2031_v25 }
 0x1f3   : > { %2043 = vst.msk [vmem:[%s3186_s14 + $0xc] sm:$0xf] %vm1579_vm8, %v2035_v59 }
 0x1f4 PF: > { %s16_s22 = sadd.s32 1, %s2469_s22   ;;  %s3331_s18 = smov %s2461_s20 }
 0x1f5   : > { %p13_p10 = scmp.ge.s32.totalorder %s16_s22, 6   ;;  %s3332_s19 = smov %s2465_s21 }
 0x1f6   : > { %s3333_s20 = smov %s3336_s23  ;;  %s3334_s21 = smov %s3340_s24 }
 0x1f7   :  { %15 = sbr.rel (!%p13_p10) target bundleno = 3 (0x3), region = 89 }

// kernel: encoder_unet_forward.11
= control target key start
LH: loop header
LB: loop body
LE: loop exit
PB: predicated region body
PF: predicated region fallthrough
CT: control target
= control target key end

     0   :  { %s1382_s18 = smov 0   ;;  %s1384_s19 = smov 0   ;;  %s1667_s0 = inlined_call_operand.vmem [shape: bf16[2,10,10,8], index: 0, kind: input, shape index: {}, may-alias: {0,1}]   ;;  %s1668_s1 = inlined_call_operand.vmem [shape: bf16[2,10,10,8], index: 1, kind: input, shape index: {}, may-alias: {0,1}]   ;;  %s1669_s2 = inlined_call_operand.vmem [shape: bf16[9,8,8], index: 2, kind: input, shape index: {}]   ;;  %s1670_s3 = inlined_call_operand.vmem [shape: f32[1,8], index: 3, kind: input, shape index: {}]   ;;  %s1671_s4 = inlined_call_operand.vmem [shape: bf16[2,8,8,8], index: 4, kind: output, shape index: {0}]   ;;  %s1672_s5 = inlined_call_operand.vmem [shape: bf16[2,4,4,8], index: 5, kind: output, shape index: {1}]  }
   0x1   :  { %s1386_s20 = smov 0   ;;  %s1388_s21 = smov 0  }
   0x2   :  { %s1390_s22 = smov 0  }
   0x3 LB: > { %s25_s23 = sadd.s32 1, %s1342_s20  ;;  %s28_s24 = sadd.s32 1, %s1346_s21  ;;  %s1350_s22 = sphi %s1390_s22, %s16_s22   ;;  %s1346_s21 = sphi %s1388_s21, %s1681_s21   ;;  %s1342_s20 = sphi %s1386_s20, %s1680_s20   ;;  %s1338_s19 = sphi %s1384_s19, %s1679_s19   ;;  %s1334_s18 = sphi %s1382_s18, %s1678_s18  }
   0x4   : > { %p26_p0 = scmp.ge.s32.totalorder %s25_s23, 2  ;;  %p1212_p1 = scmp.ge.s32.totalorder %s1350_s22, 1 }
   0x5   : > { %p250_p2 = scmp.lt.s32.totalorder %s1350_s22, 5 }
   0x6   : > { %s1683_s23 = smov (%p26_p0, %s25_s23), 0  ;;  %s1685_s24 = smov (!%p26_p0, %s28_s24), %s1346_s21 }
   0x7   : > { %p251_p3 = pnand %p1212_p1, %p250_p2  ;;  %p30_p4 = scmp.ge.s32.totalorder %s1685_s24, 2 }
   0x8   : > { %s1418_s27 = sshll.u32 (!%p251_p3), %s1334_s18, 2  ;;  %p319_p5 = scmp.lt.s32.totalorder (!%p251_p3), %s1338_s19, 1 }
   0x9   : > { %s1687_s24 = smov (%p30_p4, %s1685_s24), 0  ;;  %254 = sbr.rel (%p251_p3) target bundleno = 296 (0x128), region = 36 }
   0xa   : > { %p321_p6 = scmp.lt.s32.totalorder (!%p251_p3), %s1418_s27, 9  ;;  %s1268_s26 = sadd.s32 (!%p251_p3), 4, %s1418_s27 }
   0xb   : > { %p1460_p7 = scmp.lt.s32.totalorder (!%p251_p3), %s1268_s26, 9  ;;  %p352_p8 = scmp.lt.s32.totalorder (!%p251_p3), %s1418_s27, 7 }
   0xe   : > { %v1226_v0 = vld [vmem:[%s1669_s2 + $0x4] sm:$0xf]  ;;  %vm457_vm0 = vcmask 1043456   ;;  %s1689_s19 = smov (!%p319_p5, %s1338_s19), 1  ;;  %v382_v2 = vld [vmem:[%s1669_s2] sm:$0xf] }
   0xf   : > { %v459_v1 = vsel %vm457_vm0, %v1226_v0, 0  ;;  %s322_s30 = scalar_select %p321_p6, %s1418_s27, 9  ;;  %v497_v3 = vsel %vm457_vm0, %v382_v2, 0  ;;  %v1235_v4 = vld [vmem:[%s1669_s2 + $0x8] sm:$0xf]  ;;  %vm522_vm3 = vcmask 1042432  }
  0x10   : > { %468 = vmatpush.bf16.msra.mxu0 %v459_v1  ;;  %1269 = vmatpush.bf16.msra.mxu1 %v459_v1  ;;  %v1238_v5 = vld [vmem:[%s1669_s2 + $0xc] sm:$0xf]  ;;  %s1270_s10 = smul.u32 20, %s1689_s19  ;;  %v556_v6 = vsel %vm457_vm0, %v1235_v4, 0  ;;  %v1241_v8 = vld [vmem:[%s1669_s2 + $0x10] sm:$0xf] }
  0x11   : > { %v594_v7 = vsel %vm457_vm0, %v1238_v5, 0  ;;  %s1214_s13 = sshll.u32 %s322_s30, 1  ;;  %565 = vmatpush.bf16.msra.mxu2 %v556_v6  ;;  %v645_v9 = vsel %vm457_vm0, %v1241_v8, 0  ;;  %v1248_v10 = vld [vmem:[%s1669_s2 + $0x18] sm:$0xf]  ;;  %vm523_vm4 = vcmask 1046532  }
  0x12   : > { %603 = vmatpush.bf16.msra.mxu3 %v594_v7  ;;  %s325_s16 = sadd.s32 %s1270_s10, %s1214_s13  ;;  %v721_v11 = vsel %vm457_vm0, %v1248_v10, 0  ;;  %v1251_v12 = vld [vmem:[%s1669_s2 + $0x1c] sm:$0xf]  ;;  %vm383_vm1 = vsmask.f32 3328  ;;  %s1691_s26 = smov (!%p1460_p7, %s1268_s26), 9  ;;  %vm1498_vm6 = vmor %vm522_vm3, %vm523_vm4 }
  0x13   : > { %s1215_s28 = sshll.u32 %s325_s16, 2  ;;  %v768_v13 = vsel %vm457_vm0, %v1251_v12, 0  ;;  %vm384_vm2 = vsmask.f32 7440  ;;  %s1218_s8 = sshll.u32 %s1691_s26, 1  ;;  %vm450_vm7 = vcmask 64512  }
  0x14   : > { %506 = vmatpush.bf16.msrb.mxu1 %v497_v3  ;;  %654 = vmatpush.bf16.msrb.mxu0 %v645_v9  ;;  %s327_s6 = scalar_lea.vmem %s1667_s0, %s1215_s28  ;;  %vm1488_vm5 = vmor %vm383_vm1, %vm384_vm2  ;;  %s343_s9 = sadd.s32 %s1270_s10, %s1218_s8  ;;  %v1255_v12 = vld [vmem:[%s1669_s2 + $0x20] sm:$0xf]  ;;  %vm847_vm8 = vcmask 60416   ;;  %vm872_vm9 = vcmask 58368   ;;  %vm953_vm10 = vcmask 1041408   ;;  %vm1014_vm11 = vcmask 1041409  }
  0x15   : > { %730 = vmatpush.bf16.msrb.mxu2 %v721_v11  ;;  %v1456_v14 = vld [vmem:[%s327_s6] sm:$0xf]  ;;  %v371_v15 = vld [vmem:[%s327_s6 + $0x4] sm:$0x1]  ;;  %v1464_v16 = vld [vmem:[%s327_s6 + $0x8] sm:$0xf] }
  0x16   : > { %777 = vmatpush.bf16.msrb.mxu3 %v768_v13  ;;  %v373_v17 = vld [vmem:[%s327_s6 + $0xc] sm:$0x1]  ;;  %v387_v18 = vshrl.u32 %v1456_v14, 16  ;;  %v390_v19 = vshll.u32 %v1456_v14, 16  ;;  %v396_v20 = vshll.u32 %v371_v15, 16  ;;  %v401_v21 = vshrl.u32 %v1464_v16, 16 }
  0x17   : > { %v404_v22 = vshll.u32 %v1464_v16, 16  ;;  %v410_v23 = vshll.u32 %v373_v17, 16  ;;  %v1470_v24 = vld [vmem:[%s327_s6 + $0x10] sm:$0xf]  ;;  %v1472_v27 = vld [vmem:[%s327_s6 + $0x14] sm:$0x1]  ;;  %v485_v29 = vunpack.c.l.b16 %v1464_v16 }
  0x18   : > { %v389_v25 = vrot.slane %v387_v18, 4  ;;  %v392_v26 = vrot.slane %v390_v19, 5  ;;  %v415_v28 = vshrl.u32 %v1470_v24, 16  ;;  %v398_v30 = vrot.slane %v396_v20, 5  ;;  %v1476_v34 = vld [vmem:[%s327_s6 + $0x18] sm:$0xf] }
  0x19   : > { %v403_v31 = vrot.slane %v401_v21, 4  ;;  %v406_v32 = vrot.slane %v404_v22, 5  ;;  %v412_v33 = vrot.slane %v410_v23, 5  ;;  %v1478_v36 = vld [vmem:[%s327_s6 + $0x1c] sm:$0x1]  ;;  %v418_v38 = vshll.u32 %v1470_v24, 16 }
  0x1a   : > { %v393_v35 = vor.u32 %v392_v26, %v389_v25  ;;  %v417_v37 = vrot.slane %v415_v28, 4  ;;  %v424_v39 = vshll.u32 %v1472_v27, 16  ;;  %v429_v42 = vshrl.u32 %v1476_v34, 16  ;;  %s1219_s10 = sshll.u32 %s343_s9, 2  ;;  %v1245_v11 = vld [vmem:[%s1669_s2 + $0x14] sm:$0xf] }
  0x1b   : > { %v407_v41 = vor.u32 %v406_v32, %v403_v31  ;;  %v432_v43 = vshll.u32 %v1476_v34, 16  ;;  %v438_v44 = vshll.u32 %v1478_v36, 16  ;;  %v420_v46 = vrot.slane %v418_v38, 5  ;;  %s1531_s15 = scalar_lea.vmem %s1668_s1, %s1219_s10  ;;  %s1693_s27 = smov (!%p352_p8, %s1418_s27), 7 }
  0x1c   : > { %v394_v45 = vrot.slane %v393_v35, 4  ;;  %v426_v47 = vrot.slane %v424_v39, 5  ;;  %v1231_v48 = vrot.slane %v1456_v14, 9  ;;  %v431_v50 = vrot.slane %v429_v42, 4  ;;  %v1543_v19 = vld [vmem:[%s1531_s15] sm:$0xf] }
  0x1d   : > { %v408_v49 = vrot.slane %v407_v41, 4  ;;  %v434_v51 = vrot.slane %v432_v43, 5  ;;  %v440_v52 = vrot.slane %v438_v44, 5  ;;  %v421_v55 = vor.u32 %v420_v46, %v417_v37  ;;  %v379_v38 = vld [vmem:[%s1531_s15 + $0x4] sm:$0x1]  ;;  %s1221_s25 = sshll.u32 %s1689_s19, 3 }
  0x1e   : > { %v399_v54 = vsel %vm1488_vm5, %v394_v45, %v398_v30  ;;  %v527_v56 = vrot.slane %v371_v15, 5  ;;  %v1232_v57 = vrot.slane %v1464_v16, 9  ;;  %v531_v61 = vrot.slane %v373_v17, 5  ;;  %s355_s29 = sadd.s32 %s1221_s25, %s1693_s27  ;;  %s1223_s27 = sshll.u32 %s1334_s18, 1 }
  0x1f   : > { %v413_v58 = vsel %vm1488_vm5, %v408_v49, %v412_v33  ;;  %v444_v59 = vunpack.c.l.b16 %v399_v54  ;;  %v435_v60 = vor.u32 %v434_v51, %v431_v50  ;;  %v422_v63 = vrot.slane %v421_v55, 4  ;;  %s1222_s30 = sshll.u32 %s355_s29, 2  ;;  %p362_p9 = scmp.lt.s32.totalorder %s1223_s27, 3 }
  0x20   : > { %v445_v62 = vunpack.c.l.b16 %v413_v58  ;;  %v528_v0 = vsel %vm1498_vm6, %v1231_v48, %v527_v56  ;;  %v486_v1 = vunpack.c.l.b16 %v1470_v24  ;;  %v1514_v3 = vsel %vm1498_vm6, %v1232_v57, %v531_v61  ;;  %v380_v48 = vld [vmem:[%s1531_s15 + $0x8] sm:$0xf]  ;;  %s1604_s8 = scalar_lea.vmem %s1671_s4, %s1222_s30  ;;  %s1224_s18 = sshll.u32 %s1689_s19, 2 }
  0x21   : > { %v436_v2 = vrot.slane %v435_v60, 4  ;;  %v543_v4 = vunpack.c.l.b16 %v528_v0  ;;  %v427_v6 = vsel %vm1488_vm5, %v422_v63, %v426_v47  ;;  %v544_v7 = vunpack.c.l.b16 %v1514_v3  ;;  %s1695_s27 = smov (!%p362_p9, %s1223_s27), 3 }
  0x22   : > { %v448_v5 = vpack.c.b16 %v445_v62, %v444_v59  ;;  %v585_v8 = vpack.c.b16 %v486_v1, %v485_v29  ;;  %v446_v10 = vunpack.c.l.b16 %v427_v6  ;;  %v687_v18 = vsel %vm457_vm0, %v1245_v11, 0  ;;  %s365_s9 = sadd.s32 %s1224_s18, %s1695_s27 }
  0x23   : > { %v441_v9 = vsel %vm1488_vm5, %v436_v2, %v440_v52  ;;  %v547_v15 = vpack.c.b16 %v544_v7, %v543_v4  ;;  %v806_v20 = vsel %vm457_vm0, %v1255_v12, 0  ;;  %v1233_v21 = vrot.slane %v1470_v24, 9  ;;  %s1225_s19 = sshll.u32 %s365_s9, 1 }
  0x24   : > { %1227 = vmatmul.msk.bf16.vlgmr.msra.gmra.mxu0 %vm450_vm7, %v448_v5  ;;  %v447_v13 = vunpack.c.l.b16 %v441_v9  ;;  %1239 = vmatmul.msk.bf16.vlgmr.msra.gmra.mxu3 %vm450_vm7, %v585_v8  ;;  %v535_v22 = vrot.slane %v1472_v27, 5  ;;  %v1234_v23 = vrot.slane %v1476_v34, 9  ;;  %v539_v25 = vrot.slane %v1478_v36, 5  ;;  %s367_s12 = scalar_lea.vmem %s1672_s5, %s1225_s19 }
  0x25   : > { %1236 = vmatmul.msk.bf16.vlgmr.msra.gmra.mxu2 %vm450_vm7, %v547_v15  ;;  %815 = vmatpush.bf16.msra.mxu0 %v806_v20  ;;  %v620_v26 = vshrl.u32 %v1543_v19, 16  ;;  %v623_v28 = vshll.u32 %v1543_v19, 16  ;;  %v487_v27 = vunpack.c.l.b16 %v1476_v34  ;;  %v584_v32 = vunpack.c.l.b16 %v1543_v19 }
  0x26   : > { %v449_v17 = vpack.c.b16 %v447_v13, %v446_v10  ;;  %v536_v30 = vsel %vm1498_vm6, %v1233_v21, %v535_v22  ;;  %v540_v31 = vsel %vm1498_vm6, %v1234_v23, %v539_v25  ;;  %v484_v39 = vunpack.c.l.b16 %v1456_v14 }
  0x27   : > { %v622_v33 = vrot.slane %v620_v26, 4  ;;  %v625_v35 = vrot.slane %v623_v28, 5  ;;  %v545_v36 = vunpack.c.l.b16 %v536_v30  ;;  %v546_v37 = vunpack.c.l.b16 %v540_v31 }
  0x28   : > { %1228 = vmatmul.msk.bf16.vlgmr.msra.gmra.mxu1 %vm450_vm7, %v449_v17  ;;  %v636_v41 = vpack.c.b16 %v446_v10, %v445_v62  ;;  %v586_v42 = vpack.c.b16 %v584_v32, %v487_v27  ;;  %v629_v44 = vshll.u32 %v379_v38, 16  ;;  %v488_v46 = vpack.c.b16 %v485_v29, %v484_v39  ;;  %v381_v29 = vld [vmem:[%s1531_s15 + $0xc] sm:$0x1] }
  0x29   : > { %696 = vmatpush.bf16.msra.mxu1 %v687_v18  ;;  %v626_v43 = vor.u32 %v625_v35, %v622_v33  ;;  %v548_v45 = vpack.c.b16 %v546_v37, %v545_v36  ;;  %v747_v49 = vshrl.u32 %v380_v48, 16  ;;  %v750_v50 = vshll.u32 %v380_v48, 16 }
  0x2a   : > { %v631_v47 = vrot.slane %v629_v44, 5  ;;  %v756_v56 = vshll.u32 %v381_v29, 16  ;;  %v489_v57 = vpack.c.b16 %v487_v27, %v486_v1  ;;  %v715_v62 = vunpack.c.l.b16 %v380_v48 }
  0x2b   : > { %v627_v34 = vrot.slane %v626_v43, 4  ;;  %v749_v52 = vrot.slane %v747_v49, 4  ;;  %v752_v16 = vrot.slane %v750_v50, 5  ;;  %v678_v24 = vpack.c.b16 %v545_v36, %v544_v7 }
  0x2c   : > { %v758_v59 = vrot.slane %v756_v56, 5  ;;  %v716_v0 = vpack.c.b16 %v715_v62, %v584_v32  ;;  %v1244_v1 = vrot.slane %v1543_v19, 9  ;;  %v673_v2 = vrot.slane %v379_v38, 5 }
  0x2d   : > { %v632_v14 = vsel %vm1488_vm5, %v627_v34, %v631_v47  ;;  %v753_v55 = vor.u32 %v752_v16, %v749_v52  ;;  %v1254_v4 = vrot.slane %v380_v48, 9  ;;  %v796_v5 = vrot.slane %v381_v29, 5 }
  0x2e   : > { %v635_v51 = vunpack.c.l.b16 %v632_v14  ;;  %v674_v40 = vsel %vm1498_vm6, %v1244_v1, %v673_v2  ;;  %v1598_v14 = vld [vmem:[%s1670_s3] ss:$0 sm:$0xff]  ;;  %vm1017_vm12 = vcmask 1042434   ;;  %vm1020_vm13 = vcmask 1043459  }
  0x2f   : > { %v754_v58 = vrot.slane %v753_v55, 4  ;;  %v797_v3 = vsel %vm1498_vm6, %v1254_v4, %v796_v5  ;;  %v677_v6 = vunpack.c.l.b16 %v674_v40 }
  0x30   : > { %v637_v54 = vpack.c.b16 %v635_v51, %v447_v13  ;;  %v800_v7 = vunpack.c.l.b16 %v797_v3 }
  0x31   : > { %v759_v60 = vsel %vm1488_vm5, %v754_v58, %v758_v59  ;;  %v679_v9 = vpack.c.b16 %v677_v6, %v546_v37 }
  0x32   : > { %v762_v61 = vunpack.c.l.b16 %v759_v60  ;;  %v801_v8 = vpack.c.b16 %v800_v7, %v677_v6 }
  0x34   : > { %1242 = vmatmul.msk.bf16.vlgmr.msrb.gmra.mxu0 %vm450_vm7, %v636_v41  ;;  %1240 = vmatmul.msk.bf16.gmra.mxu3 %vm450_vm7, %v586_v42  ;;  %v763_v63 = vpack.c.b16 %v762_v61, %v635_v51 }
  0x35   : > { %1237 = vmatmul.msk.bf16.gmra.mxu2 %vm450_vm7, %v548_v45 }
  0x38   : > { %1229 = vmatmul.msk.bf16.vlgmr.msrb.gmra.mxu1 %vm450_vm7, %v488_v46 }
  0x44   : > { %1243 = vmatmul.msk.bf16.gmra.mxu0 %vm450_vm7, %v637_v54  ;;  %1252 = vmatmul.msk.bf16.vlgmr.msrb.gmra.mxu3 %vm450_vm7, %v449_v17 }
  0x45   : > { %1249 = vmatmul.msk.bf16.vlgmr.msrb.gmra.mxu2 %vm450_vm7, %v489_v57 }
  0x48   : > { %1230 = vmatmul.msk.bf16.gmra.mxu1 %vm450_vm7, %v489_v57 }
  0x54   : > { %1256 = vmatmul.msk.bf16.vlgmr.msra.gmra.mxu0 %vm450_vm7, %v548_v45  ;;  %1253 = vmatmul.msk.bf16.gmra.mxu3 %vm450_vm7, %v763_v63 }
  0x55   : > { %1250 = vmatmul.msk.bf16.gmra.mxu2 %vm450_vm7, %v716_v0 }
  0x58   : > { %1246 = vmatmul.msk.bf16.vlgmr.msra.gmra.mxu1 %vm450_vm7, %v678_v24 }
  0x64   : > { %1257 = vmatmul.msk.bf16.gmra.mxu0 %vm450_vm7, %v801_v8 }
  0x68   : > { %1247 = vmatmul.msk.bf16.gmra.mxu1 %vm450_vm7, %v679_v9 }
  0xa1   : > { %v470_v10 = vpop.f32.mrf.mxu0 }
  0xa5   : > { %v475_v11 = vpop.f32.mrf.mxu1 }
  0xa7   : > { %v605_v15 = vpop.f32.mrf.mxu3 }
  0xa8   : > { %v567_v13 = vpop.f32.mrf.mxu2 }
  0xa9   : > { %v472_v12 = vpop.f32.mrf.mxu0 }
  0xad   : > { %v477_v17 = vpop.f32.mrf.mxu1 }
  0xaf   : > { %v607_v21 = vpop.f32.mrf.mxu3 }
  0xb0   : > { %v569_v19 = vpop.f32.mrf.mxu2 }
  0xb1   : > { %v656_v18 = vpop.f32.mrf.mxu0 }
  0xb5   : > { %v508_v20 = vpop.f32.mrf.mxu1 }
  0xb6   : > { %v509_v30 = vadd.f32 %v508_v20, %v470_v10 }
  0xb7   : > { %v610_v25 = vpop.f32.mrf.mxu3 }
  0xb8   : > { %v572_v23 = vpop.f32.mrf.mxu2  ;;  %v577_v32 = vadd.f32 %v567_v13, %v509_v30 }
  0xb9   : > { %v658_v53 = vpop.f32.mrf.mxu0 }
  0xba   : > { %v615_v36 = vadd.f32 %v605_v15, %v577_v32 }
  0xbc   : > { %v666_v39 = vadd.f32 %v656_v18, %v615_v36 }
  0xbd   : > { %v510_v22 = vpop.f32.mrf.mxu1 }
  0xbe   : > { %v511_v37 = vadd.f32 %v510_v22, %v472_v12 }
  0xbf   : > { %v612_v27 = vpop.f32.mrf.mxu3 }
  0xc0   : > { %v574_v31 = vpop.f32.mrf.mxu2  ;;  %v578_v41 = vadd.f32 %v569_v19, %v511_v37 }
  0xc1   : > { %v661_v26 = vpop.f32.mrf.mxu0 }
  0xc2   : > { %v616_v46 = vadd.f32 %v607_v21, %v578_v41 }
  0xc4   : > { %v667_v49 = vadd.f32 %v658_v53, %v616_v46 }
  0xc5   : > { %v513_v28 = vpop.f32.mrf.mxu1 }
  0xc6   : > { %v514_v34 = vadd.f32 %v513_v28, %v475_v11 }
  0xc7   : > { %v779_v42 = vpop.f32.mrf.mxu3 }
  0xc8   : > { %v732_v38 = vpop.f32.mrf.mxu2  ;;  %v579_v50 = vadd.f32 %v572_v23, %v514_v34 }
  0xc9   : > { %v663_v33 = vpop.f32.mrf.mxu0 }
  0xca   : > { %v617_v56 = vadd.f32 %v610_v25, %v579_v50 }
  0xcc   : > { %v668_v63 = vadd.f32 %v661_v26, %v617_v56 }
  0xcd   : > { %v515_v35 = vpop.f32.mrf.mxu1 }
  0xce   : > { %v516_v57 = vadd.f32 %v515_v35, %v477_v17 }
  0xcf   : > { %v781_v54 = vpop.f32.mrf.mxu3 }
  0xd0   : > { %v734_v52 = vpop.f32.mrf.mxu2  ;;  %v580_v0 = vadd.f32 %v574_v31, %v516_v57 }
  0xd1   : > { %v817_v45 = vpop.f32.mrf.mxu0 }
  0xd2   : > { %v618_v40 = vadd.f32 %v612_v27, %v580_v0 }
  0xd4   : > { %v669_v15 = vadd.f32 %v663_v33, %v618_v40 }
  0xd5   : > { %v698_v43 = vpop.f32.mrf.mxu1 }
  0xd6   : > { %v708_v44 = vadd.f32 %v698_v43, %v666_v39 }
  0xd7   : > { %v784_v6 = vpop.f32.mrf.mxu3 }
  0xd8   : > { %v742_v47 = vadd.f32 %v732_v38, %v708_v44  ;;  %v737_v4 = vpop.f32.mrf.mxu2 }
  0xd9   : > { %v819_v60 = vpop.f32.mrf.mxu0 }
  0xda   : > { %v789_v48 = vadd.f32 %v779_v42, %v742_v47 }
  0xdc   : > { %v827_v51 = vadd.f32 %v817_v45, %v789_v48 }
  0xdd   : > { %v700_v16 = vpop.f32.mrf.mxu1 }
  0xde   : > { %v835_v29 = vadd.f32 %v1598_v14, %v827_v51  ;;  %v709_v55 = vadd.f32 %v700_v16, %v667_v49 }
  0xdf   : > { %v786_v43 = vpop.f32.mrf.mxu3 }
  0xe0   : > { %v839_v58 = vmax.f32 %v835_v29, 0.0  ;;  %v743_v59 = vadd.f32 %v734_v52, %v709_v55  ;;  %v739_v35 = vpop.f32.mrf.mxu2 }
  0xe1   : > { %v822_v12 = vpop.f32.mrf.mxu0 }
  0xe2   : > { %v843_v61 = vpack.c.bf16 %v839_v58, %v839_v58  ;;  %v790_v62 = vadd.f32 %v781_v54, %v743_v59  ;;  %v852_v8 = vsel %vm450_vm7, %v839_v58, -inf }
  0xe4   : > { %848 = vst.msk [vmem:[%s1604_s8] sm:$0xf] %vm847_vm8, %v843_v61  ;;  %v828_v24 = vadd.f32 %v819_v60, %v790_v62 }
  0xe5   : > { %v703_v1 = vpop.f32.mrf.mxu1 }
  0xe6   : > { %v836_v2 = vadd.f32 %v1598_v14, %v828_v24  ;;  %v710_v5 = vadd.f32 %v703_v1, %v668_v63 }
  0xe8   : > { %v840_v3 = vmax.f32 %v836_v2, 0.0  ;;  %v744_v7 = vadd.f32 %v737_v4, %v710_v5 }
  0xe9   : > { %v824_v49 = vpop.f32.mrf.mxu0 }
  0xea   : > { %v844_v9 = vpack.c.bf16 %v840_v3, %v840_v3  ;;  %v853_v10 = vsel %vm450_vm7, %v840_v3, -inf  ;;  %v791_v11 = vadd.f32 %v784_v6, %v744_v7 }
  0xeb   : > { %v854_v13 = vmax.f32 %v852_v8, %v853_v10 }
  0xec   : > { %849 = vst.msk [vmem:[%s1604_s8 + $0x4] sm:$0xf] %vm847_vm8, %v844_v9  ;;  %v829_v17 = vadd.f32 %v822_v12, %v791_v11 }
  0xed   : > { %v860_v18 = vrot.slane %v854_v13, 2  ;;  %v861_v19 = vrot.slane %v854_v13, 4  ;;  %v862_v20 = vrot.slane %v854_v13, 6  ;;  %v873_v21 = vsel %vm872_vm9, %v854_v13, -inf  ;;  %v705_v53 = vpop.f32.mrf.mxu1 }
  0xee   : > { %v874_v22 = vrot.slane %v873_v21, 4  ;;  %v837_v23 = vadd.f32 %v1598_v14, %v829_v17  ;;  %v711_v25 = vadd.f32 %v705_v53, %v669_v15 }
  0xef   : > { %v880_v26 = vsel %vm872_vm9, %v860_v18, -inf  ;;  %v887_v28 = vsel %vm872_vm9, %v861_v19, -inf  ;;  %v894_v30 = vsel %vm872_vm9, %v862_v20, -inf }
  0xf0   : > { %v875_v31 = vmax.f32 %v873_v21, %v874_v22  ;;  %v881_v27 = vrot.slane %v880_v26, 4  ;;  %v888_v32 = vrot.slane %v887_v28, 4  ;;  %v895_v33 = vrot.slane %v894_v30, 4 }
  0xf1   : > { %v841_v36 = vmax.f32 %v837_v23, 0.0  ;;  %v745_v37 = vadd.f32 %v739_v35, %v711_v25 }
  0xf2   : > { %v876_v38 = vrot.slane %v875_v31, 2  ;;  %v882_v39 = vmax.f32 %v880_v26, %v881_v27  ;;  %v889_v41 = vmax.f32 %v887_v28, %v888_v32  ;;  %v896_v42 = vmax.f32 %v894_v30, %v895_v33 }
  0xf3   : > { %v845_v44 = vpack.c.bf16 %v841_v36, %v841_v36  ;;  %v792_v45 = vadd.f32 %v786_v43, %v745_v37  ;;  %v855_v0 = vsel %vm450_vm7, %v841_v36, -inf }
  0xf4   : > { %v877_v46 = vmax.f32 %v875_v31, %v876_v38  ;;  %v883_v34 = vrot.slane %v882_v39, 2  ;;  %v890_v47 = vrot.slane %v889_v41, 2  ;;  %v897_v48 = vrot.slane %v896_v42, 2 }
  0xf5   : > { %850 = vst.msk [vmem:[%s1604_s8 + $0x8] sm:$0xf] %vm847_vm8, %v845_v44  ;;  %v830_v50 = vadd.f32 %v824_v49, %v792_v45 }
  0xf6   : > { %v878_v51 = vrot.slane %v877_v46, 1  ;;  %v884_v52 = vmax.f32 %v882_v39, %v883_v34  ;;  %v891_v16 = vmax.f32 %v889_v41, %v890_v47  ;;  %v898_v29 = vmax.f32 %v896_v42, %v897_v48 }
  0xf7   : > { %v838_v54 = vadd.f32 %v1598_v14, %v830_v50 }
  0xf8   : > { %v879_v55 = vmax.f32 %v877_v46, %v878_v51  ;;  %v885_v56 = vrot.slane %v884_v52, 1  ;;  %v892_v57 = vrot.slane %v891_v16, 1  ;;  %v899_v58 = vrot.slane %v898_v29, 1 }
  0xf9   : > { %v842_v59 = vmax.f32 %v838_v54, 0.0 }
  0xfa   : > { %v886_v60 = vmax.f32 %v884_v52, %v885_v56  ;;  %v893_v61 = vmax.f32 %v891_v16, %v892_v57  ;;  %v900_v62 = vmax.f32 %v898_v29, %v899_v58  ;;  %v929_v63 = vpack.c.bf16 %v879_v55, %v879_v55 }
  0xfb   : > { %v846_v24 = vpack.c.bf16 %v842_v59, %v842_v59  ;;  %v856_v1 = vsel %vm450_vm7, %v842_v59, -inf }
  0xfc   : > { %v930_v2 = vpack.c.bf16 %v886_v60, %v886_v60  ;;  %v931_v4 = vpack.c.bf16 %v893_v61, %v893_v61  ;;  %v932_v5 = vpack.c.bf16 %v900_v62, %v900_v62  ;;  %v945_v14 = vrot.slane %v929_v63, 2 }
  0xfd   : > { %851 = vst.msk [vmem:[%s1604_s8 + $0xc] sm:$0xf] %vm847_vm8, %v846_v24  ;;  %v857_v40 = vmax.f32 %v855_v0, %v856_v1 }
  0xfe   : > { %v946_v3 = vrot.slane %v930_v2, 2  ;;  %v947_v6 = vrot.slane %v931_v4, 2  ;;  %v948_v7 = vrot.slane %v932_v5, 2  ;;  %v956_v8 = vsel %vm953_vm10, %v929_v63, %v945_v14 }
  0xff   : > { %978 = vst [vmem:[#allocation1] ss:$2 sm:$0xff] %v956_v8  ;;  %v863_v9 = vrot.slane %v857_v40, 2  ;;  %v864_v10 = vrot.slane %v857_v40, 4  ;;  %v865_v11 = vrot.slane %v857_v40, 6  ;;  %v901_v12 = vsel %vm872_vm9, %v857_v40, -inf }
 0x100   : > { %v959_v13 = vsel %vm953_vm10, %v930_v2, %v946_v3  ;;  %v962_v15 = vsel %vm953_vm10, %v931_v4, %v947_v6  ;;  %v965_v17 = vsel %vm953_vm10, %v932_v5, %v948_v7  ;;  %v902_v18 = vrot.slane %v901_v12, 4 }
 0x101   : > { %982 = vst [vmem:[#allocation1 + $0x10] ss:$2 sm:$0xff] %v959_v13  ;;  %v908_v19 = vsel %vm872_vm9, %v863_v9, -inf  ;;  %v915_v20 = vsel %vm872_vm9, %v864_v10, -inf  ;;  %v922_v21 = vsel %vm872_vm9, %v865_v11, -inf }
 0x102   : > { %986 = vst [vmem:[#allocation1 + $0x20] ss:$2 sm:$0xff] %v962_v15  ;;  %v903_v53 = vmax.f32 %v901_v12, %v902_v18  ;;  %v909_v22 = vrot.slane %v908_v19, 4  ;;  %v916_v23 = vrot.slane %v915_v20, 4  ;;  %v923_v25 = vrot.slane %v922_v21, 4 }
 0x103   : > { %990 = vst [vmem:[#allocation1 + $0x30] ss:$2 sm:$0xff] %v965_v17 }
 0x104   : > { %v904_v26 = vrot.slane %v903_v53, 2  ;;  %v910_v28 = vmax.f32 %v908_v19, %v909_v22  ;;  %v917_v30 = vmax.f32 %v915_v20, %v916_v23  ;;  %v924_v31 = vmax.f32 %v922_v21, %v923_v25 }
 0x106   : > { %v905_v27 = vmax.f32 %v903_v53, %v904_v26  ;;  %v911_v32 = vrot.slane %v910_v28, 2  ;;  %v918_v33 = vrot.slane %v917_v30, 2  ;;  %v925_v35 = vrot.slane %v924_v31, 2  ;;  %v979_v36 = vld.sshfl [vmem:[#allocation1] sm:$0xff pattern:$0x75643120] }
 0x107   : > { %v1005_v49 = vunpack.c.l.b16 %v979_v36 }
 0x108   : > { %v906_v37 = vrot.slane %v905_v27, 1  ;;  %v912_v38 = vmax.f32 %v910_v28, %v911_v32  ;;  %v919_v39 = vmax.f32 %v917_v30, %v918_v33  ;;  %v926_v41 = vmax.f32 %v924_v31, %v925_v35  ;;  %v983_v42 = vld.sshfl [vmem:[#allocation1 + $0x10] sm:$0xff pattern:$0x75643120] }
 0x109   : > { %v987_v43 = vld.sshfl [vmem:[#allocation1 + $0x20] sm:$0xff pattern:$0x75643120]  ;;  %v1006_v44 = vunpack.c.l.b16 %v983_v42 }
 0x10a   : > { %v907_v45 = vmax.f32 %v905_v27, %v906_v37  ;;  %v913_v46 = vrot.slane %v912_v38, 1  ;;  %v920_v34 = vrot.slane %v919_v39, 1  ;;  %v927_v47 = vrot.slane %v926_v41, 1  ;;  %v991_v48 = vld.sshfl [vmem:[#allocation1 + $0x30] sm:$0xff pattern:$0x75643120] }
 0x10b   : > { %v1007_v50 = vunpack.c.l.b16 %v987_v43  ;;  %v1008_v51 = vunpack.c.l.b16 %v991_v48  ;;  %v1013_v52 = vrot.slane %v1006_v44, 7 }
 0x10c   : > { %v914_v16 = vmax.f32 %v912_v38, %v913_v46  ;;  %v921_v29 = vmax.f32 %v919_v39, %v920_v34  ;;  %v928_v54 = vmax.f32 %v926_v41, %v927_v47  ;;  %v933_v55 = vpack.c.bf16 %v907_v45, %v907_v45 }
 0x10d   : > { %v1015_v56 = vsel %vm1014_vm11, %v1013_v52, %v1005_v49  ;;  %v1016_v57 = vrot.slane %v1007_v50, 6  ;;  %v1019_v63 = vrot.slane %v1008_v51, 5 }
 0x10e   : > { %v934_v58 = vpack.c.bf16 %v914_v16, %v914_v16  ;;  %v935_v59 = vpack.c.bf16 %v921_v29, %v921_v29  ;;  %v936_v60 = vpack.c.bf16 %v928_v54, %v928_v54  ;;  %v949_v61 = vrot.slane %v933_v55, 2 }
 0x10f   : > { %v1018_v62 = vsel %vm1017_vm12, %v1016_v57, %v1015_v56 }
 0x110   : > { %v950_v0 = vrot.slane %v934_v58, 2  ;;  %v951_v24 = vrot.slane %v935_v59, 2  ;;  %v952_v1 = vrot.slane %v936_v60, 2  ;;  %v968_v2 = vsel %vm953_vm10, %v933_v55, %v949_v61 }
 0x111   : > { %993 = vst [vmem:[#allocation1] ss:$2 sm:$0xff] %v968_v2  ;;  %v1021_v4 = vsel %vm1020_vm13, %v1019_v63, %v1018_v62 }
 0x112   : > { %v971_v5 = vsel %vm953_vm10, %v934_v58, %v950_v0  ;;  %v974_v14 = vsel %vm953_vm10, %v935_v59, %v951_v24  ;;  %v977_v40 = vsel %vm953_vm10, %v936_v60, %v952_v1  ;;  %v1028_v3 = vpack.c.b16 %v1021_v4, %v1021_v4 }
 0x113   : > { %996 = vst [vmem:[#allocation1 + $0x10] ss:$2 sm:$0xff] %v971_v5 }
 0x114   : > { %999 = vst [vmem:[#allocation1 + $0x20] ss:$2 sm:$0xff] %v974_v14  ;;  %v1030_v6 = vrot.slane %v1028_v3, 2 }
 0x115   : > { %1002 = vst [vmem:[#allocation1 + $0x30] ss:$2 sm:$0xff] %v977_v40 }
 0x116   : > { %v1034_v7 = vsel %vm953_vm10, %v1028_v3, %v1030_v6 }
 0x117   : > { %1040 = vst.msk [vmem:[%s367_s12] sm:$0x3] %vm872_vm9, %v1034_v7 }
 0x118   : > { %v994_v8 = vld.sshfl [vmem:[#allocation1] sm:$0xff pattern:$0x75643120] }
 0x119   : > { %v1009_v15 = vunpack.c.l.b16 %v994_v8 }
 0x11a   : > { %v997_v9 = vld.sshfl [vmem:[#allocation1 + $0x10] sm:$0xff pattern:$0x75643120] }
 0x11b   : > { %v1000_v10 = vld.sshfl [vmem:[#allocation1 + $0x20] sm:$0xff pattern:$0x75643120]  ;;  %v1010_v11 = vunpack.c.l.b16 %v997_v9 }
 0x11c   : > { %v1003_v12 = vld.sshfl [vmem:[#allocation1 + $0x30] sm:$0xff pattern:$0x75643120]  ;;  %v1011_v13 = vunpack.c.l.b16 %v1000_v10 }
 0x11d   : > { %v1012_v17 = vunpack.c.l.b16 %v1003_v12  ;;  %v1022_v18 = vrot.slane %v1010_v11, 7 }
 0x11e   : > { %v1024_v19 = vrot.slane %v1011_v13, 6 }
 0x11f   : > { %v1023_v20 = vsel %vm1014_vm11, %v1022_v18, %v1009_v15  ;;  %v1026_v21 = vrot.slane %v1012_v17, 5 }
 0x120   : > { %v1025_v53 = vsel %vm1017_vm12, %v1024_v19, %v1023_v20 }
 0x121   : > { %v1027_v22 = vsel %vm1020_vm13, %v1026_v21, %v1025_v53 }
 0x122   : > { %v1029_v23 = vpack.c.b16 %v1027_v22, %v1027_v22 }
 0x124   : > { %v1031_v25 = vrot.slane %v1029_v23, 2 }
 0x126   : > { %v1037_v26 = vsel %vm953_vm10, %v1029_v23, %v1031_v25 }
 0x127   : > { %1041 = vst.msk [vmem:[%s367_s12 + $0x2] sm:$0x3] %vm872_vm9, %v1037_v26 }
 0x128 PF: > { %s16_s22 = sadd.s32 1, %s1350_s22   ;;  %s1678_s18 = smov %s1342_s20 }
 0x129   : > { %p13_p10 = scmp.ge.s32.totalorder %s16_s22, 6   ;;  %s1679_s19 = smov %s1346_s21 }
 0x12a   : > { %s1680_s20 = smov %s1683_s23  ;;  %s1681_s21 = smov %s1687_s24 }
 0x12b   :  { %15 = sbr.rel (!%p13_p10) target bundleno = 3 (0x3), region = 92 }

// kernel: encoder_unet_forward.14
= control target key start
LH: loop header
LB: loop body
LE: loop exit
PB: predicated region body
PF: predicated region fallthrough
CT: control target
= control target key end

     0   :  { %s960_s15 = smov 0   ;;  %s962_s16 = smov 0   ;;  %s1110_s0 = inlined_call_operand.vmem [shape: bf16[2,4,4,16], index: 0, kind: input, shape index: {}, may-alias: {0,1}]   ;;  %s1111_s1 = inlined_call_operand.vmem [shape: bf16[2,4,4,16], index: 1, kind: input, shape index: {}, may-alias: {0,1}]   ;;  %s1112_s2 = inlined_call_operand.vmem [shape: bf16[9,16,32], index: 2, kind: input, shape index: {}]   ;;  %s1113_s3 = inlined_call_operand.vmem [shape: f32[1,32], index: 3, kind: input, shape index: {}]   ;;  %s1114_s4 = inlined_call_operand.vmem [shape: bf16[2,2,2,32], index: 4, kind: output, shape index: {}]  }
   0x1   :  { %s964_s17 = smov 0  }
   0x2 LB: > { %s26_s18 = sadd.s32 1, %s929_s16  ;;  %p800_p0 = scmp.ge.s32.totalorder %s933_s17, 1  ;;  %s933_s17 = sphi %s964_s17, %s14_s17   ;;  %s929_s16 = sphi %s962_s16, %s1118_s16   ;;  %s925_s15 = sphi %s960_s15, %s1117_s15  }
   0x3   : > { %p28_p1 = scmp.ge.s32.totalorder %s26_s18, 2  ;;  %p204_p2 = scmp.lt.s32.totalorder %s933_s17, 3 }
   0x5   : > { %s1120_s18 = smov (%p28_p1, %s26_s18), 0  ;;  %p205_p3 = pnand %p800_p0, %p204_p2 }
   0x6   : > { %p248_p4 = scmp.lt.s32.totalorder (!%p205_p3), %s925_s15, 1 }
   0x7   : > { %208 = sbr.rel (%p205_p3) target bundleno = 269 (0x10d), region = 36 }
   0xc   : > { %v877_v0 = vld [vmem:[%s1112_s2 + $0x8] sm:$0xff]  ;;  %v876_v1 = vld [vmem:[%s1112_s2] sm:$0xff]  ;;  %v878_v2 = vld [vmem:[%s1112_s2 + $0x10] sm:$0xff]  ;;  %s1122_s15 = smov (!%p248_p4, %s925_s15), 1  ;;  %vm323_vm0 = vsmask.f32 256 }
   0xd   : > { %379 = vmatpush.bf16.msra.mxu0 %v877_v0  ;;  %404 = vmatpush.bf16.msra.mxu1 %v876_v1  ;;  %vm324_vm1 = vsmask.f32 1284  ;;  %vm326_vm3 = vsmask.f32 2312  ;;  %vm328_vm4 = vsmask.f32 3340 }
   0xe   : > { %438 = vmatpush.bf16.msra.mxu2 %v878_v2  ;;  %vm325_vm2 = vmor %vm323_vm0, %vm324_vm1  ;;  %vm330_vm5 = vsmask.f32 4368  ;;  %s873_s25 = sshll.u32 %s1122_s15, 3  ;;  %vm332_vm7 = vsmask.f32 5396  ;;  %vm293_vm8 = vcmask 1040384  }
   0xf   : > { %vm327_vm6 = vmor %vm325_vm2, %vm326_vm3  ;;  %s255_s28 = scalar_lea.vmem %s1110_s0, %s873_s25  ;;  %vm297_vm9 = vcmask 1042434   ;;  %vm301_vm10 = vcmask 1041408   ;;  %vm303_vm12 = vcmask 1041409   ;;  %vm305_vm13 = vcmask 1043459   ;;  %s875_s29 = sadd.s32 4, %s873_s25  ;;  %v879_v45 = vld [vmem:[%s1112_s2 + $0x18] sm:$0xff] }
  0x10   : > { %vm329_vm11 = vmor %vm327_vm6, %vm328_vm4  ;;  %v993_v3 = vld [vmem:[%s255_s28] sm:$0x3]  ;;  %v995_v4 = vld [vmem:[%s255_s28 + $0x2] sm:$0x3]  ;;  %vm307_vm15 = vcmask 1042433   ;;  %s1011_s6 = scalar_lea.vmem %s1111_s1, %s875_s29  ;;  %468 = vmatpush.bf16.msra.mxu3 %v879_v45  ;;  %s805_s25 = sshll.u32 %s1122_s15, 1 }
  0x11   : > { %vm331_vm14 = vmor %vm329_vm11, %vm330_vm5  ;;  %v287_v5 = vrot.slane %v993_v3, 1  ;;  %v288_v6 = vrot.slane %v993_v3, 2  ;;  %vm334_vm1 = vsmask.f32 6424  ;;  %v289_v7 = vrot.slane %v993_v3, 3  ;;  %v880_v50 = vld [vmem:[%s1112_s2 + $0x20] sm:$0xff]  ;;  %s276_s28 = scalar_lea.vmem %s1114_s4, %s805_s25 }
  0x12   : > { %vm333_vm0 = vmor %vm331_vm14, %vm332_vm7  ;;  %v290_v8 = vrot.slane %v995_v4, 1  ;;  %v291_v9 = vrot.slane %v995_v4, 2  ;;  %v292_v10 = vrot.slane %v995_v4, 3  ;;  %vm336_vm2 = vsmask.f32 7452  ;;  %v881_v51 = vld [vmem:[%s1112_s2 + $0x28] sm:$0xff]  ;;  %521 = vmatpush.bf16.msrb.mxu0 %v880_v50 }
  0x13   : > { %v296_v11 = vsel %vm293_vm8, %v993_v3, %v287_v5  ;;  %v304_v12 = vsel %vm303_vm12, %v993_v3, %v287_v5  ;;  %v300_v13 = vsel %vm297_vm9, %v288_v6, %v289_v7  ;;  %v306_v14 = vsel %vm305_vm13, %v288_v6, %v289_v7  ;;  %vm335_vm3 = vmor %vm333_vm0, %vm334_vm1  ;;  %v1019_v17 = vld [vmem:[%s1011_s6 + $0x2] sm:$0x3]  ;;  %v281_v49 = vld [vmem:[%s1011_s6] sm:$0x3]  ;;  %556 = vmatpush.bf16.msrb.mxu1 %v881_v51 }
  0x14   : > { %v313_v15 = vsel %vm293_vm8, %v995_v4, %v290_v8  ;;  %v316_v16 = vsel %vm297_vm9, %v291_v9, %v292_v10  ;;  %v302_v18 = vsel %vm301_vm10, %v296_v11, %v300_v13  ;;  %v308_v19 = vsel %vm307_vm15, %v304_v12, %v306_v14  ;;  %vm1029_vm4 = vmor %vm335_vm3, %vm336_vm2  ;;  %v882_v52 = vld [vmem:[%s1112_s2 + $0x30] sm:$0xff]  ;;  %v883_v7 = vld [vmem:[%s1112_s2 + $0x38] sm:$0xff] }
  0x15   : > { %v317_v20 = vsel %vm301_vm10, %v313_v15, %v316_v16  ;;  %v318_v21 = vsel %vm303_vm12, %v995_v4, %v290_v8  ;;  %v310_v22 = vrot.slane %v308_v19, 1  ;;  %v319_v23 = vsel %vm305_vm13, %v291_v9, %v292_v10  ;;  %586 = vmatpush.bf16.msrb.mxu2 %v882_v52  ;;  %639 = vmatpush.bf16.msrb.mxu3 %v883_v7  ;;  %v884_v11 = vld [vmem:[%s1112_s2 + $0x40] sm:$0xff] }
  0x16   : > { %v338_v24 = vshrl.u32 %v302_v18, 16  ;;  %v320_v25 = vsel %vm307_vm15, %v318_v21, %v319_v23  ;;  %v346_v27 = vshrl.u32 %v317_v20, 16  ;;  %v594_v30 = vrot.slane %v1019_v17, 1 }
  0x17   : > { %v322_v28 = vrot.slane %v320_v25, 1  ;;  %v343_v29 = vshll.u32 %v310_v22, 16  ;;  %v595_v31 = vrot.slane %v1019_v17, 2  ;;  %v596_v32 = vrot.slane %v1019_v17, 3 }
  0x18   : > { %v598_v35 = vsel %vm293_vm8, %v1019_v17, %v594_v30  ;;  %v603_v39 = vsel %vm303_vm12, %v1019_v17, %v594_v30  ;;  %vm369_vm5 = vcmask 130048   ;;  %v476_v54 = vrot.slane %v281_v49, 1 }
  0x19   : > { %v345_v33 = vsel %vm1029_vm4, %v338_v24, %v343_v29  ;;  %v351_v34 = vshll.u32 %v322_v28, 16  ;;  %v601_v36 = vsel %vm297_vm9, %v595_v31, %v596_v32  ;;  %v604_v40 = vsel %vm305_vm13, %v595_v31, %v596_v32 }
  0x1a   : > { %358 = vst [vmem:[#allocation1] ss:$9 sm:$0xff] %v345_v33  ;;  %v602_v38 = vsel %vm301_vm10, %v598_v35, %v601_v36  ;;  %v605_v41 = vsel %vm307_vm15, %v603_v39, %v604_v40  ;;  %v477_v55 = vrot.slane %v281_v49, 2  ;;  %v478_v56 = vrot.slane %v281_v49, 3  ;;  %v910_v40 = vld [vmem:[%s1113_s3] ss:$0 sm:$0xff] }
  0x1b   : > { %v353_v37 = vsel %vm1029_vm4, %v346_v27, %v351_v34  ;;  %v607_v42 = vrot.slane %v605_v41, 1  ;;  %v608_v43 = vshrl.u32 %v602_v38, 16  ;;  %v485_v58 = vsel %vm303_vm12, %v281_v49, %v476_v54 }
  0x1c   : > { %361 = vst [vmem:[#allocation1 + $0x1] ss:$9 sm:$0xff] %v353_v37  ;;  %v486_v59 = vsel %vm305_vm13, %v477_v55, %v478_v56  ;;  %v480_v61 = vsel %vm293_vm8, %v281_v49, %v476_v54  ;;  %v483_v62 = vsel %vm297_vm9, %v477_v55, %v478_v56  ;;  %vm694_vm6 = vcmask 253952  }
  0x1d   : > { %v613_v44 = vshll.u32 %v607_v42, 16  ;;  %v487_v60 = vsel %vm307_vm15, %v485_v58, %v486_v59  ;;  %v484_v1 = vsel %vm301_vm10, %v480_v61, %v483_v62 }
  0x1e   : > { %v489_v63 = vrot.slane %v487_v60, 1  ;;  %v490_v2 = vshrl.u32 %v484_v1, 16 }
  0x1f   : > { %v615_v46 = vsel %vm1029_vm4, %v608_v43, %v613_v44 }
  0x23   : > { %v362_v47 = vld [vmem:[#allocation1] sm:$0xff] }
  0x24   : > { %814 = vmatmul.msk.bf16.vlgmr.msra.gmra.mxu0 %vm369_vm5, %v362_v47  ;;  %385 = vst [vmem:[#allocation1] ss:$9 sm:$0xff] %v993_v3 }
  0x25   : > { %387 = vst [vmem:[#allocation1 + $0x1] ss:$9 sm:$0xff] %v995_v4  ;;  %674 = vmatpush.bf16.msra.mxu0 %v884_v11 }
  0x26   : > { %413 = vst [vmem:[#allocation1 + $0x10] sm:$0xff] %v995_v4 }
  0x2c   : > { %v388_v48 = vld [vmem:[#allocation1] sm:$0xff] }
  0x2d   : > { %819 = vmatmul.msk.bf16.vlgmr.msra.gmra.mxu1 %vm369_vm5, %v388_v48  ;;  %410 = vst [vmem:[#allocation1] sm:$0xff] %v993_v3  ;;  %v415_v53 = vld [vmem:[#allocation1 + $0x11] ss:$2 sm:$0xff]  ;;  %v495_v3 = vshll.u32 %v489_v63, 16 }
  0x2f   : > { %v497_v5 = vsel %vm1029_vm4, %v490_v2, %v495_v3 }
  0x34   : > { %v412_v57 = vld [vmem:[#allocation1 + $0x1] ss:$2 sm:$0xff] }
  0x35   : > { %419 = vst [vmem:[#allocation1] ss:$9 sm:$0xff] %v412_v57 }
  0x36   : > { %421 = vst [vmem:[#allocation1 + $0x1] ss:$9 sm:$0xff] %v415_v53 }
  0x3d   : > { %v422_v0 = vld [vmem:[#allocation1] sm:$0xff] }
  0x3e   : > { %826 = vmatmul.msk.bf16.vlgmr.msra.gmra.mxu2 %vm369_vm5, %v422_v0  ;;  %448 = vst [vmem:[#allocation1] ss:$9 sm:$0xff] %v995_v4 }
  0x3f   : > { %451 = vst [vmem:[#allocation1 + $0x1] ss:$9 sm:$0xff] %v281_v49 }
  0x46   : > { %v452_v6 = vld [vmem:[#allocation1] sm:$0xff] }
  0x47   : > { %833 = vmatmul.msk.bf16.vlgmr.msra.gmra.mxu3 %vm369_vm5, %v452_v6  ;;  %501 = vst [vmem:[#allocation1] ss:$9 sm:$0xff] %v353_v37 }
  0x48   : > { %504 = vst [vmem:[#allocation1 + $0x1] ss:$9 sm:$0xff] %v497_v5 }
  0x49   : > { %531 = vst [vmem:[#allocation1 + $0x10] sm:$0xff] %v281_v49 }
  0x4f   : > { %v505_v8 = vld [vmem:[#allocation1] sm:$0xff] }
  0x50   : > { %841 = vmatmul.msk.bf16.vlgmr.msrb.gmra.mxu0 %vm369_vm5, %v505_v8  ;;  %528 = vst [vmem:[#allocation1] sm:$0xff] %v995_v4  ;;  %v533_v9 = vld [vmem:[#allocation1 + $0x11] ss:$2 sm:$0xff] }
  0x57   : > { %v530_v10 = vld [vmem:[#allocation1 + $0x1] ss:$2 sm:$0xff] }
  0x58   : > { %537 = vst [vmem:[#allocation1] ss:$9 sm:$0xff] %v530_v10 }
  0x59   : > { %539 = vst [vmem:[#allocation1 + $0x1] ss:$9 sm:$0xff] %v533_v9 }
  0x60   : > { %v540_v12 = vld [vmem:[#allocation1] sm:$0xff] }
  0x61   : > { %848 = vmatmul.msk.bf16.vlgmr.msrb.gmra.mxu1 %vm369_vm5, %v540_v12  ;;  %566 = vst [vmem:[#allocation1] ss:$9 sm:$0xff] %v281_v49 }
  0x62   : > { %569 = vst [vmem:[#allocation1 + $0x1] ss:$9 sm:$0xff] %v1019_v17 }
  0x69   : > { %v570_v13 = vld [vmem:[#allocation1] sm:$0xff] }
  0x6a   : > { %855 = vmatmul.msk.bf16.vlgmr.msrb.gmra.mxu2 %vm369_vm5, %v570_v13  ;;  %619 = vst [vmem:[#allocation1] ss:$9 sm:$0xff] %v497_v5 }
  0x6b   : > { %622 = vst [vmem:[#allocation1 + $0x1] ss:$9 sm:$0xff] %v615_v46 }
  0x6c   : > { %649 = vst [vmem:[#allocation1 + $0x10] sm:$0xff] %v1019_v17 }
  0x72   : > { %v623_v4 = vld [vmem:[#allocation1] sm:$0xff] }
  0x73   : > { %863 = vmatmul.msk.bf16.vlgmr.msrb.gmra.mxu3 %vm369_vm5, %v623_v4  ;;  %646 = vst [vmem:[#allocation1] sm:$0xff] %v281_v49  ;;  %v651_v14 = vld [vmem:[#allocation1 + $0x11] ss:$2 sm:$0xff] }
  0x7a   : > { %v648_v15 = vld [vmem:[#allocation1 + $0x1] ss:$2 sm:$0xff] }
  0x7b   : > { %655 = vst [vmem:[#allocation1] ss:$9 sm:$0xff] %v648_v15 }
  0x7c   : > { %657 = vst [vmem:[#allocation1 + $0x1] ss:$9 sm:$0xff] %v651_v14 }
  0x83   : > { %v658_v16 = vld [vmem:[#allocation1] sm:$0xff] }
  0x84   : > { %870 = vmatmul.msk.bf16.vlgmr.msra.gmra.mxu0 %vm369_vm5, %v658_v16 }
  0xa1   : > { %v381_v18 = vpop.f32.mrf.mxu0 }
  0xa9   : > { %v383_v19 = vpop.f32.mrf.mxu0 }
  0xaa   : > { %v406_v20 = vpop.f32.mrf.mxu1 }
  0xab   : > { %v407_v21 = vadd.f32 %v406_v20, %v381_v18 }
  0xb2   : > { %v408_v22 = vpop.f32.mrf.mxu1 }
  0xc1   : > { %v440_v23 = vpop.f32.mrf.mxu2 }
  0xc2   : > { %v444_v31 = vadd.f32 %v440_v23, %v407_v21 }
  0xc9   : > { %v442_v24 = vpop.f32.mrf.mxu2 }
  0xca   : > { %v470_v25 = vpop.f32.mrf.mxu3 }
  0xcb   : > { %v474_v32 = vadd.f32 %v470_v25, %v444_v31 }
  0xcd   : > { %v523_v17 = vpop.f32.mrf.mxu0 }
  0xce   : > { %v527_v35 = vadd.f32 %v523_v17, %v474_v32 }
  0xd2   : > { %v472_v26 = vpop.f32.mrf.mxu3 }
  0xd5   : > { %v525_v27 = vpop.f32.mrf.mxu0 }
  0xde   : > { %v558_v28 = vpop.f32.mrf.mxu1 }
  0xdf   : > { %v562_v36 = vadd.f32 %v558_v28, %v527_v35 }
  0xe6   : > { %v560_v29 = vpop.f32.mrf.mxu1 }
  0xed   : > { %v588_v30 = vpop.f32.mrf.mxu2 }
  0xee   : > { %v592_v37 = vadd.f32 %v588_v30, %v562_v36 }
  0xf5   : > { %v590_v33 = vpop.f32.mrf.mxu2 }
  0xf6   : > { %v641_v34 = vpop.f32.mrf.mxu3 }
  0xf7   : > { %v645_v39 = vadd.f32 %v641_v34, %v592_v37 }
  0xfe   : > { %v643_v38 = vpop.f32.mrf.mxu3 }
 0x101   : > { %v676_v41 = vpop.f32.mrf.mxu0 }
 0x102   : > { %v680_v42 = vadd.f32 %v676_v41, %v645_v39 }
 0x104   : > { %v682_v43 = vrot.slane %v680_v42, 2  ;;  %v688_v44 = vadd.f32 %v910_v40, %v680_v42 }
 0x106   : > { %v689_v45 = vadd.f32 %v910_v40, %v682_v43  ;;  %v690_v46 = vmax.f32 %v688_v44, 0.0 }
 0x108   : > { %v691_v47 = vmax.f32 %v689_v45, 0.0  ;;  %v692_v48 = vpack.c.bf16 %v690_v46, %v690_v46 }
 0x109   : > { %v678_v49 = vpop.f32.mrf.mxu0 }
 0x10a   : > { %v693_v50 = vpack.c.bf16 %v691_v47, %v691_v47  ;;  %695 = vst.msk [vmem:[%s276_s28] sm:$0x1] %vm694_vm6, %v692_v48 }
 0x10c   : > { %696 = vst.msk [vmem:[%s276_s28 + $0x1] sm:$0x1] %vm694_vm6, %v693_v50 }
 0x10d PF: > { %s14_s17 = sadd.s32 1, %s933_s17   ;;  %s1117_s15 = smov %s929_s16 }
 0x10e   : > { %p11_p5 = scmp.ge.s32.totalorder %s14_s17, 4   ;;  %s1118_s16 = smov %s1120_s18 }
 0x110   :  { %13 = sbr.rel (!%p11_p5) target bundleno = 2 (0x2), region = 92 }

// kernel: encoder_unet_forward.13
= control target key start
LH: loop header
LB: loop body
LE: loop exit
PB: predicated region body
PF: predicated region fallthrough
CT: control target
= control target key end

     0   :  { %s1144_s18 = smov 0   ;;  %s1146_s19 = smov 0   ;;  %s1322_s0 = inlined_call_operand.vmem [shape: bf16[2,6,6,16], index: 0, kind: input, shape index: {}, may-alias: {0,1}]   ;;  %s1323_s1 = inlined_call_operand.vmem [shape: bf16[2,6,6,16], index: 1, kind: input, shape index: {}, may-alias: {0,1}]   ;;  %s1324_s2 = inlined_call_operand.vmem [shape: bf16[9,16,16], index: 2, kind: input, shape index: {}]   ;;  %s1325_s3 = inlined_call_operand.vmem [shape: f32[1,16], index: 3, kind: input, shape index: {}]   ;;  %s1326_s4 = inlined_call_operand.vmem [shape: bf16[2,4,4,16], index: 4, kind: output, shape index: {0}]   ;;  %s1327_s5 = inlined_call_operand.vmem [shape: bf16[2,2,2,16], index: 5, kind: output, shape index: {1}]  }
   0x1   :  { %s1148_s20 = smov 0   ;;  %s1150_s21 = smov 0  }
   0x2   :  { %s1152_s22 = smov 0  }
   0x3 LB: > { %s25_s23 = sadd.s32 1, %s1104_s20  ;;  %s28_s24 = sadd.s32 1, %s1108_s21  ;;  %s1112_s22 = sphi %s1152_s22, %s16_s22   ;;  %s1108_s21 = sphi %s1150_s21, %s1335_s21   ;;  %s1104_s20 = sphi %s1148_s20, %s1334_s20   ;;  %s1100_s19 = sphi %s1146_s19, %s1333_s19   ;;  %s1096_s18 = sphi %s1144_s18, %s1332_s18  }
   0x4   : > { %p26_p0 = scmp.ge.s32.totalorder %s25_s23, 2  ;;  %p945_p1 = scmp.ge.s32.totalorder %s1112_s22, 1 }
   0x5   : > { %p234_p2 = scmp.lt.s32.totalorder %s1112_s22, 5 }
   0x6   : > { %s1337_s23 = smov (%p26_p0, %s25_s23), 0  ;;  %s1339_s24 = smov (!%p26_p0, %s28_s24), %s1108_s21 }
   0x7   : > { %p235_p3 = pnand %p945_p1, %p234_p2  ;;  %p30_p4 = scmp.ge.s32.totalorder %s1339_s24, 2 }
   0x8   : > { %s1183_s29 = sshll.u32 (!%p235_p3), %s1096_s18, 1  ;;  %p288_p5 = scmp.lt.s32.totalorder (!%p235_p3), %s1100_s19, 1 }
   0x9   : > { %s1341_s24 = smov (%p30_p4, %s1339_s24), 0  ;;  %238 = sbr.rel (%p235_p3) target bundleno = 294 (0x126), region = 36 }
   0xa   : > { %p290_p6 = scmp.lt.s32.totalorder (!%p235_p3), %s1183_s29, 5  ;;  %s1022_s16 = sadd.s32 (!%p235_p3), 2, %s1183_s29 }
   0xb   : > { %p301_p7 = scmp.lt.s32.totalorder (!%p235_p3), %s1022_s16, 5  ;;  %p312_p8 = scmp.lt.s32.totalorder (!%p235_p3), %s1183_s29, 3 }
   0xc   : > { %p321_p9 = scmp.lt.s32.totalorder (!%p235_p3), %s1096_s18, 1 }
   0xe   : > { %v1024_v0 = vld [vmem:[%s1324_s2 + $0x8] sm:$0xff]  ;;  %v1023_v1 = vld [vmem:[%s1324_s2] sm:$0xff]  ;;  %s1343_s19 = smov (!%p288_p5, %s1100_s19), 1  ;;  %vm337_vm0 = vcmask 1041408   ;;  %vm341_vm1 = vcmask 1043458   ;;  %v1025_v2 = vld [vmem:[%s1324_s2 + $0x10] sm:$0xff] }
   0xf   : > { %409 = vmatpush.bf16.msra.mxu0 %v1024_v0  ;;  %434 = vmatpush.bf16.msra.mxu1 %v1023_v1  ;;  %s291_s30 = scalar_select %p290_p6, %s1183_s29, 5  ;;  %vm351_vm2 = vsmask.f32 1280  ;;  %v1026_v3 = vld [vmem:[%s1324_s2 + $0x18] sm:$0xff]  ;;  %vm352_vm3 = vsmask.f32 3336 }
  0x10   : > { %s1032_s6 = smul.u32 6, %s1343_s19  ;;  %481 = vmatpush.bf16.msra.mxu2 %v1025_v2  ;;  %511 = vmatpush.bf16.msra.mxu3 %v1026_v3  ;;  %vm354_vm4 = vsmask.f32 5392  ;;  %vm353_vm5 = vmor %vm351_vm2, %vm352_vm3  ;;  %vm356_vm6 = vsmask.f32 7448  ;;  %s1345_s16 = smov (!%p301_p7, %s1022_s16), 5 }
  0x11   : > { %vm355_vm7 = vmor %vm353_vm5, %vm354_vm4  ;;  %vm442_vm9 = vcmask 1040384   ;;  %vm443_vm10 = vcmask 1042434   ;;  %v1027_v33 = vld [vmem:[%s1324_s2 + $0x20] sm:$0xff]  ;;  %v1028_v34 = vld [vmem:[%s1324_s2 + $0x28] sm:$0xff]  ;;  %vm399_vm11 = vcmask 130048   ;;  %vm445_vm13 = vcmask 1044484  }
  0x12   : > { %s293_s7 = sadd.s32 %s1032_s6, %s291_s30  ;;  %vm1212_vm8 = vmor %vm355_vm7, %vm356_vm6  ;;  %s304_s17 = sadd.s32 %s1032_s6, %s1345_s16  ;;  %vm447_vm15 = vcmask 1046534   ;;  %v1029_v43 = vld [vmem:[%s1324_s2 + $0x30] sm:$0xff]  ;;  %v1030_v54 = vld [vmem:[%s1324_s2 + $0x38] sm:$0xff]  ;;  %vm731_vm3 = vcmask 123904   ;;  %vm734_vm4 = vcmask 125952  }
  0x13   : > { %s947_s8 = sshll.u32 %s293_s7, 2  ;;  %s949_s25 = sshll.u32 %s304_s17, 2  ;;  %vm444_vm12 = vmor %vm442_vm9, %vm443_vm10  ;;  %561 = vmatpush.bf16.msrb.mxu0 %v1027_v33  ;;  %596 = vmatpush.bf16.msrb.mxu1 %v1028_v34  ;;  %v1031_v60 = vld [vmem:[%s1324_s2 + $0x40] sm:$0xff] }
  0x14   : > { %s295_s11 = scalar_lea.vmem %s1322_s0, %s947_s8  ;;  %s1231_s6 = scalar_lea.vmem %s1323_s1, %s949_s25  ;;  %vm446_vm14 = vmor %vm444_vm12, %vm445_vm13  ;;  %626 = vmatpush.bf16.msrb.mxu2 %v1029_v43  ;;  %676 = vmatpush.bf16.msrb.mxu3 %v1030_v54 }
  0x15   : > { %v327_v4 = vld [vmem:[%s295_s11] sm:$0x7]  ;;  %v1201_v5 = vld [vmem:[%s295_s11 + $0x4] sm:$0x7]  ;;  %vm1240_vm2 = vmor %vm446_vm14, %vm447_vm15  ;;  %s1347_s29 = smov (!%p312_p8, %s1183_s29), 3  ;;  %s951_s15 = sshll.u32 %s1343_s19, 2 }
  0x16   : > { %v335_v6 = vrot.slane %v327_v4, 2  ;;  %v336_v7 = vrot.slane %v1201_v5, 2  ;;  %v1235_v36 = vld [vmem:[%s1231_s6] sm:$0x7]  ;;  %v330_v63 = vld [vmem:[%s1231_s6 + $0x4] sm:$0x7]  ;;  %s315_s25 = sadd.s32 %s951_s15, %s1347_s29 }
  0x17   : > { %v519_v39 = vrot.slane %v1235_v36, 2  ;;  %v634_v0 = vrot.slane %v330_v63, 2  ;;  %s952_s26 = sshll.u32 %s315_s25, 1  ;;  %s1349_s18 = smov (!%p321_p9, %s1096_s18), 1 }
  0x18   : > { %v340_v8 = vsel %vm337_vm0, %v327_v4, %v335_v6  ;;  %v342_v9 = vsel %vm341_vm1, %v327_v4, %v335_v6  ;;  %v347_v10 = vsel %vm337_vm0, %v1201_v5, %v336_v7  ;;  %v348_v11 = vsel %vm341_vm1, %v1201_v5, %v336_v7  ;;  %s317_s30 = scalar_lea.vmem %s1326_s4, %s952_s26  ;;  %s953_s29 = sshll.u32 %s1343_s19, 1 }
  0x19   : > { %v344_v12 = vrot.slane %v342_v9, 2  ;;  %v350_v13 = vrot.slane %v348_v11, 2  ;;  %v358_v14 = vshrl.u32 %v340_v8, 16  ;;  %v361_v15 = vshll.u32 %v340_v8, 16  ;;  %s324_s7 = sadd.s32 %s953_s29, %s1349_s18 }
  0x1a   : > { %v371_v16 = vshrl.u32 %v347_v10, 16  ;;  %v374_v17 = vshll.u32 %v347_v10, 16  ;;  %v966_v37 = vrot.slane %v340_v8, 9  ;;  %v967_v41 = vrot.slane %v347_v10, 9  ;;  %s325_s9 = scalar_lea.vmem %s1327_s5, %s324_s7 }
  0x1b   : > { %v360_v18 = vrot.slane %v358_v14, 6  ;;  %v363_v19 = vrot.slane %v361_v15, 7  ;;  %v367_v20 = vshll.u32 %v344_v12, 16  ;;  %v380_v21 = vshll.u32 %v350_v13, 16 }
  0x1c   : > { %v373_v22 = vrot.slane %v371_v16, 6  ;;  %v376_v23 = vrot.slane %v374_v17, 7  ;;  %v451_v38 = vrot.slane %v344_v12, 7  ;;  %v455_v42 = vrot.slane %v350_v13, 7 }
  0x1d   : > { %v364_v24 = vor.u32 %v363_v19, %v360_v18  ;;  %v369_v25 = vrot.slane %v367_v20, 7  ;;  %v382_v28 = vrot.slane %v380_v21, 7  ;;  %v521_v45 = vsel %vm337_vm0, %v1235_v36, %v519_v39 }
  0x1e   : > { %v377_v27 = vor.u32 %v376_v23, %v373_v22  ;;  %v452_v44 = vsel %vm1240_vm2, %v966_v37, %v451_v38  ;;  %v456_v46 = vsel %vm1240_vm2, %v967_v41, %v455_v42  ;;  %v525_v48 = vshrl.u32 %v521_v45, 16 }
  0x1f   : > { %v365_v29 = vrot.slane %v364_v24, 2  ;;  %v528_v49 = vshll.u32 %v521_v45, 16  ;;  %v522_v50 = vsel %vm341_vm1, %v1235_v36, %v519_v39  ;;  %v989_v1 = vrot.slane %v521_v45, 9 }
  0x20   : > { %v378_v30 = vrot.slane %v377_v27, 2  ;;  %v524_v51 = vrot.slane %v522_v50, 2  ;;  %v527_v52 = vrot.slane %v525_v48, 6  ;;  %v636_v3 = vsel %vm337_vm0, %v330_v63, %v634_v0 }
  0x21   : > { %v370_v31 = vsel %vm1212_vm8, %v365_v29, %v369_v25  ;;  %v530_v53 = vrot.slane %v528_v49, 7  ;;  %v640_v6 = vshrl.u32 %v636_v3, 16  ;;  %v643_v7 = vshll.u32 %v636_v3, 16 }
  0x22   : > { %v383_v32 = vsel %vm1212_vm8, %v378_v30, %v382_v28  ;;  %388 = vst [vmem:[#allocation1] ss:$4 sm:$0xff] %v370_v31  ;;  %v534_v57 = vshll.u32 %v524_v51, 16  ;;  %v571_v2 = vrot.slane %v524_v51, 7  ;;  %v637_v8 = vsel %vm341_vm1, %v330_v63, %v634_v0 }
  0x23   : > { %391 = vst [vmem:[#allocation1 + $0x1] ss:$4 sm:$0xff] %v383_v32  ;;  %v531_v56 = vor.u32 %v530_v53, %v527_v52  ;;  %v639_v9 = vrot.slane %v637_v8, 2  ;;  %v642_v10 = vrot.slane %v640_v6, 6  ;;  %v645_v11 = vrot.slane %v643_v7, 7 }
  0x24   : > { %v536_v59 = vrot.slane %v534_v57, 7  ;;  %v1011_v19 = vrot.slane %v636_v3, 9 }
  0x25   : > { %v532_v58 = vrot.slane %v531_v56, 2  ;;  %v649_v13 = vshll.u32 %v639_v9, 16  ;;  %v646_v14 = vor.u32 %v645_v11, %v642_v10  ;;  %v686_v20 = vrot.slane %v639_v9, 7 }
  0x27   : > { %v537_v61 = vsel %vm1212_vm8, %v532_v58, %v536_v59  ;;  %v647_v15 = vrot.slane %v646_v14, 2  ;;  %v651_v16 = vrot.slane %v649_v13, 7  ;;  %v687_v21 = vsel %vm1240_vm2, %v1011_v19, %v686_v20 }
  0x29   : > { %v652_v17 = vsel %vm1212_vm8, %v647_v15, %v651_v16 }
  0x2a   : > { %v392_v35 = vld.sshfl [vmem:[#allocation1] sm:$0xff pattern:$0x73625140] }
  0x2b   : > { %960 = vmatmul.msk.bf16.vlgmr.msra.gmra.mxu0 %vm399_vm11, %v392_v35  ;;  %415 = vst [vmem:[#allocation1] ss:$4 sm:$0xff] %v327_v4  ;;  %v572_v4 = vsel %vm1240_vm2, %v989_v1, %v571_v2 }
  0x2c   : > { %417 = vst [vmem:[#allocation1 + $0x1] ss:$4 sm:$0xff] %v1201_v5  ;;  %711 = vmatpush.bf16.msra.mxu0 %v1031_v60 }
  0x33   : > { %v418_v47 = vld.sshfl [vmem:[#allocation1] sm:$0xff pattern:$0x73625140] }
  0x34   : > { %965 = vmatmul.msk.bf16.vlgmr.msra.gmra.mxu1 %vm399_vm11, %v418_v47  ;;  %461 = vst [vmem:[#allocation1] ss:$4 sm:$0xff] %v452_v44 }
  0x35   : > { %464 = vst [vmem:[#allocation1 + $0x1] ss:$4 sm:$0xff] %v456_v46 }
  0x3c   : > { %v465_v55 = vld.sshfl [vmem:[#allocation1] sm:$0xff pattern:$0x73625140] }
  0x3d   : > { %974 = vmatmul.msk.bf16.vlgmr.msra.gmra.mxu2 %vm399_vm11, %v465_v55  ;;  %491 = vst [vmem:[#allocation1] ss:$4 sm:$0xff] %v1201_v5 }
  0x3e   : > { %494 = vst [vmem:[#allocation1 + $0x1] ss:$4 sm:$0xff] %v1235_v36 }
  0x45   : > { %v495_v62 = vld.sshfl [vmem:[#allocation1] sm:$0xff pattern:$0x73625140] }
  0x46   : > { %981 = vmatmul.msk.bf16.vlgmr.msra.gmra.mxu3 %vm399_vm11, %v495_v62  ;;  %541 = vst [vmem:[#allocation1] ss:$4 sm:$0xff] %v383_v32 }
  0x47   : > { %544 = vst [vmem:[#allocation1 + $0x1] ss:$4 sm:$0xff] %v537_v61 }
  0x4e   : > { %v545_v5 = vld.sshfl [vmem:[#allocation1] sm:$0xff pattern:$0x73625140] }
  0x4f   : > { %988 = vmatmul.msk.bf16.vlgmr.msrb.gmra.mxu0 %vm399_vm11, %v545_v5  ;;  %576 = vst [vmem:[#allocation1] ss:$4 sm:$0xff] %v456_v46  ;;  %v1073_v46 = vld [vmem:[%s1325_s3] ss:$0 sm:$0xff] }
  0x50   : > { %579 = vst [vmem:[#allocation1 + $0x1] ss:$4 sm:$0xff] %v572_v4 }
  0x57   : > { %v580_v12 = vld.sshfl [vmem:[#allocation1] sm:$0xff pattern:$0x73625140] }
  0x58   : > { %996 = vmatmul.msk.bf16.vlgmr.msrb.gmra.mxu1 %vm399_vm11, %v580_v12  ;;  %606 = vst [vmem:[#allocation1] ss:$4 sm:$0xff] %v1235_v36 }
  0x59   : > { %609 = vst [vmem:[#allocation1 + $0x1] ss:$4 sm:$0xff] %v330_v63 }
  0x60   : > { %v610_v18 = vld.sshfl [vmem:[#allocation1] sm:$0xff pattern:$0x73625140] }
  0x61   : > { %1003 = vmatmul.msk.bf16.vlgmr.msrb.gmra.mxu2 %vm399_vm11, %v610_v18  ;;  %656 = vst [vmem:[#allocation1] ss:$4 sm:$0xff] %v537_v61 }
  0x62   : > { %659 = vst [vmem:[#allocation1 + $0x1] ss:$4 sm:$0xff] %v652_v17 }
  0x69   : > { %v660_v22 = vld.sshfl [vmem:[#allocation1] sm:$0xff pattern:$0x73625140] }
  0x6a   : > { %1010 = vmatmul.msk.bf16.vlgmr.msrb.gmra.mxu3 %vm399_vm11, %v660_v22  ;;  %691 = vst [vmem:[#allocation1] ss:$4 sm:$0xff] %v572_v4 }
  0x6b   : > { %694 = vst [vmem:[#allocation1 + $0x1] ss:$4 sm:$0xff] %v687_v21 }
  0x72   : > { %v695_v23 = vld.sshfl [vmem:[#allocation1] sm:$0xff pattern:$0x73625140] }
  0x73   : > { %1018 = vmatmul.msk.bf16.vlgmr.msra.gmra.mxu0 %vm399_vm11, %v695_v23 }
  0xa8   : > { %v411_v24 = vpop.f32.mrf.mxu0 }
  0xb0   : > { %v413_v25 = vpop.f32.mrf.mxu0 }
  0xb1   : > { %v436_v26 = vpop.f32.mrf.mxu1 }
  0xb2   : > { %v437_v35 = vadd.f32 %v436_v26, %v411_v24 }
  0xb9   : > { %v438_v27 = vpop.f32.mrf.mxu1 }
  0xc0   : > { %v483_v28 = vpop.f32.mrf.mxu2 }
  0xc1   : > { %v487_v37 = vadd.f32 %v483_v28, %v437_v35 }
  0xc8   : > { %v485_v29 = vpop.f32.mrf.mxu2 }
  0xc9   : > { %v513_v30 = vpop.f32.mrf.mxu3 }
  0xca   : > { %v517_v38 = vadd.f32 %v513_v30, %v487_v37 }
  0xcc   : > { %v563_v31 = vpop.f32.mrf.mxu0 }
  0xcd   : > { %v567_v40 = vadd.f32 %v563_v31, %v517_v38 }
  0xd1   : > { %v515_v32 = vpop.f32.mrf.mxu3 }
  0xd4   : > { %v565_v33 = vpop.f32.mrf.mxu0 }
  0xd5   : > { %v598_v34 = vpop.f32.mrf.mxu1 }
  0xd6   : > { %v602_v41 = vadd.f32 %v598_v34, %v567_v40 }
  0xdd   : > { %v600_v36 = vpop.f32.mrf.mxu1 }
  0xe4   : > { %v628_v39 = vpop.f32.mrf.mxu2 }
  0xe5   : > { %v632_v42 = vadd.f32 %v628_v39, %v602_v41 }
  0xec   : > { %v630_v43 = vpop.f32.mrf.mxu2 }
  0xed   : > { %v678_v44 = vpop.f32.mrf.mxu3 }
  0xee   : > { %v682_v45 = vadd.f32 %v678_v44, %v632_v42 }
  0xf0   : > { %v713_v47 = vpop.f32.mrf.mxu0 }
  0xf1   : > { %v717_v48 = vadd.f32 %v713_v47, %v682_v45 }
  0xf3   : > { %v719_v49 = vrot.slane %v717_v48, 4  ;;  %v725_v50 = vadd.f32 %v1073_v46, %v717_v48 }
  0xf5   : > { %v726_v51 = vadd.f32 %v1073_v46, %v719_v49  ;;  %v727_v52 = vmax.f32 %v725_v50, 0.0  ;;  %v680_v53 = vpop.f32.mrf.mxu3 }
  0xf7   : > { %v728_v54 = vmax.f32 %v726_v51, 0.0  ;;  %v729_v55 = vpack.c.bf16 %v727_v52, %v727_v52  ;;  %v735_v58 = vsel %vm734_vm4, %v727_v52, -inf }
  0xf8   : > { %v715_v56 = vpop.f32.mrf.mxu0 }
  0xf9   : > { %v730_v57 = vpack.c.bf16 %v728_v54, %v728_v54  ;;  %732 = vst.msk [vmem:[%s317_s30] sm:$0x3] %vm731_vm3, %v729_v55  ;;  %v736_v59 = vsel %vm734_vm4, %v728_v54, -inf }
  0xfa   : > { %v737_v60 = vmax.f32 %v735_v58, %v736_v59 }
  0xfb   : > { %733 = vst.msk [vmem:[%s317_s30 + $0x2] sm:$0x3] %vm731_vm3, %v730_v57 }
  0xfc   : > { %v739_v61 = vrot.slane %v737_v60, 2 }
  0xfe   : > { %v740_v62 = vsel %vm337_vm0, %v737_v60, %v739_v61  ;;  %v741_v63 = vsel %vm341_vm1, %v737_v60, %v739_v61  ;;  %vm782_vm0 = vcmask 1041409   ;;  %vm790_vm1 = vcmask 122880  }
  0xff   : > { %v742_v0 = vrot.slane %v741_v63, 2  ;;  %v745_v1 = vsel %vm731_vm3, %v740_v62, -inf }
 0x100   : > { %v746_v2 = vrot.slane %v745_v1, 4 }
 0x101   : > { %v752_v3 = vsel %vm731_vm3, %v742_v0, -inf }
 0x102   : > { %v747_v4 = vmax.f32 %v745_v1, %v746_v2  ;;  %v753_v5 = vrot.slane %v752_v3, 4 }
 0x104   : > { %v748_v6 = vrot.slane %v747_v4, 2  ;;  %v754_v7 = vmax.f32 %v752_v3, %v753_v5 }
 0x106   : > { %v749_v8 = vmax.f32 %v747_v4, %v748_v6  ;;  %v755_v9 = vrot.slane %v754_v7, 2 }
 0x108   : > { %v750_v10 = vrot.slane %v749_v8, 1  ;;  %v756_v11 = vmax.f32 %v754_v7, %v755_v9 }
 0x10a   : > { %v751_v12 = vmax.f32 %v749_v8, %v750_v10  ;;  %v757_v13 = vrot.slane %v756_v11, 1 }
 0x10c   : > { %v758_v14 = vmax.f32 %v756_v11, %v757_v13  ;;  %v759_v15 = vpack.c.bf16 %v751_v12, %v751_v12 }
 0x10e   : > { %v760_v16 = vpack.c.bf16 %v758_v14, %v758_v14  ;;  %v763_v17 = vrot.slane %v759_v15, 3 }
 0x110   : > { %v764_v18 = vrot.slane %v760_v16, 3  ;;  %v768_v19 = vsel %vm442_vm9, %v759_v15, %v763_v17 }
 0x111   : > { %772 = vst [vmem:[#allocation1] ss:$4 sm:$0xff] %v768_v19 }
 0x112   : > { %v771_v20 = vsel %vm442_vm9, %v760_v16, %v764_v18 }
 0x113   : > { %776 = vst [vmem:[#allocation1 + $0x20] ss:$4 sm:$0xff] %v771_v20 }
 0x118   : > { %v773_v21 = vld [vmem:[#allocation1] sm:$0xf] }
 0x119   : > { %v779_v24 = vunpack.c.l.b16 %v773_v21 }
 0x11a   : > { %v777_v22 = vld [vmem:[#allocation1 + $0x20] sm:$0xf] }
 0x11b   : > { %v780_v23 = vunpack.c.l.b16 %v777_v22 }
 0x11d   : > { %v781_v25 = vrot.slane %v780_v23, 7 }
 0x11f   : > { %v783_v26 = vsel %vm782_vm0, %v781_v25, %v779_v24 }
 0x120   : > { %v784_v27 = vpack.c.b16 %v783_v26, %v783_v26 }
 0x122   : > { %v785_v28 = vrot.slane %v784_v27, 3 }
 0x124   : > { %v788_v29 = vsel %vm442_vm9, %v784_v27, %v785_v28 }
 0x125   : > { %791 = vst.msk [vmem:[%s325_s9] sm:$0x1] %vm790_vm1, %v788_v29 }
 0x126 PF: > { %s16_s22 = sadd.s32 1, %s1112_s22   ;;  %s1332_s18 = smov %s1104_s20 }
 0x127   : > { %p13_p10 = scmp.ge.s32.totalorder %s16_s22, 6   ;;  %s1333_s19 = smov %s1108_s21 }
 0x128   : > { %s1334_s20 = smov %s1337_s23  ;;  %s1335_s21 = smov %s1341_s24 }
 0x129   :  { %15 = sbr.rel (!%p13_p10) target bundleno = 3 (0x3), region = 99 }

// kernel: encoder_unet_forward.12
= control target key start
LH: loop header
LB: loop body
LE: loop exit
PB: predicated region body
PF: predicated region fallthrough
CT: control target
= control target key end

     0   :  { %s905_s15 = smov 0   ;;  %s907_s16 = smov 0   ;;  %s1079_s0 = inlined_call_operand.vmem [shape: bf16[2,6,6,8], index: 0, kind: input, shape index: {}, may-alias: {0,1}]   ;;  %s1080_s1 = inlined_call_operand.vmem [shape: bf16[2,6,6,8], index: 1, kind: input, shape index: {}, may-alias: {0,1}]   ;;  %s1081_s2 = inlined_call_operand.vmem [shape: bf16[9,8,16], index: 2, kind: input, shape index: {}]   ;;  %s1082_s3 = inlined_call_operand.vmem [shape: f32[1,16], index: 3, kind: input, shape index: {}]   ;;  %s1083_s4 = inlined_call_operand.vmem [shape: bf16[2,4,4,16], index: 4, kind: output, shape index: {}]  }
   0x1   :  { %s909_s17 = smov 0   ;;  %s911_s18 = smov 0  }
   0x2   :  { %s913_s19 = smov 0  }
   0x3 LB: > { %s23_s20 = sadd.s32 1, %s870_s17  ;;  %s26_s21 = sadd.s32 1, %s874_s18  ;;  %s878_s19 = sphi %s913_s19, %s14_s19   ;;  %s874_s18 = sphi %s911_s18, %s1091_s18   ;;  %s870_s17 = sphi %s909_s17, %s1090_s17   ;;  %s866_s16 = sphi %s907_s16, %s1089_s16   ;;  %s862_s15 = sphi %s905_s15, %s1088_s15  }
   0x4   : > { %p24_p0 = scmp.ge.s32.totalorder %s23_s20, 2  ;;  %p765_p1 = scmp.ge.s32.totalorder %s878_s19, 1 }
   0x5   : > { %p204_p2 = scmp.lt.s32.totalorder %s878_s19, 5 }
   0x6   : > { %s1093_s20 = smov (%p24_p0, %s23_s20), 0  ;;  %s1095_s21 = smov (!%p24_p0, %s26_s21), %s874_s18 }
   0x7   : > { %p205_p3 = pnand %p765_p1, %p204_p2  ;;  %p28_p4 = scmp.ge.s32.totalorder %s1095_s21, 2 }
   0x8   : > { %s941_s26 = sshll.u32 (!%p205_p3), %s862_s15, 1  ;;  %p249_p5 = scmp.lt.s32.totalorder (!%p205_p3), %s866_s16, 1 }
   0x9   : > { %s1097_s21 = smov (%p28_p4, %s1095_s21), 0  ;;  %208 = sbr.rel (%p205_p3) target bundleno = 252 (0xfc), region = 36 }
   0xa   : > { %p251_p6 = scmp.lt.s32.totalorder (!%p205_p3), %s941_s26, 5  ;;  %s797_s12 = sadd.s32 (!%p205_p3), 2, %s941_s26 }
   0xb   : > { %p262_p7 = scmp.lt.s32.totalorder (!%p205_p3), %s797_s12, 5  ;;  %p273_p8 = scmp.lt.s32.totalorder (!%p205_p3), %s941_s26, 3 }
   0xe   : > { %v773_v0 = vld [vmem:[%s1081_s2 + $0x4] sm:$0xf]  ;;  %vm348_vm0 = vcmask 1043456   ;;  %v285_v1 = vld [vmem:[%s1081_s2] sm:$0xf]  ;;  %s1099_s16 = smov (!%p249_p5, %s866_s16), 1 }
   0xf   : > { %v350_v2 = vsel %vm348_vm0, %v773_v0, 0  ;;  %v372_v3 = vsel %vm348_vm0, %v285_v1, 0  ;;  %s252_s27 = scalar_select %p251_p6, %s941_s26, 5  ;;  %vm290_vm1 = vcmask 1041408   ;;  %vm294_vm2 = vcmask 1043458  }
  0x10   : > { %359 = vmatpush.bf16.msra.mxu0 %v350_v2  ;;  %381 = vmatpush.bf16.msra.mxu1 %v372_v3  ;;  %s798_s28 = smul.u32 6, %s1099_s16  ;;  %vm304_vm3 = vsmask.f32 1280  ;;  %vm305_vm4 = vsmask.f32 3336  ;;  %s1101_s12 = smov (!%p262_p7, %s797_s12), 5 }
  0x11   : > { %v778_v4 = vld [vmem:[%s1081_s2 + $0x8] sm:$0xf]  ;;  %v780_v5 = vld [vmem:[%s1081_s2 + $0xc] sm:$0xf]  ;;  %vm307_vm5 = vsmask.f32 5392  ;;  %vm306_vm6 = vmor %vm304_vm3, %vm305_vm4 }
  0x12   : > { %s254_s29 = sadd.s32 %s798_s28, %s252_s27  ;;  %v415_v8 = vsel %vm348_vm0, %v778_v4, 0  ;;  %v441_v9 = vsel %vm348_vm0, %v780_v5, 0  ;;  %vm309_vm7 = vsmask.f32 7448  ;;  %vm308_vm8 = vmor %vm306_vm6, %vm307_vm5  ;;  %s265_s13 = sadd.s32 %s798_s28, %s1101_s12  ;;  %vm389_vm10 = vcmask 1040384  }
  0x13   : > { %s767_s30 = sshll.u32 %s254_s29, 2  ;;  %424 = vmatpush.bf16.msra.mxu2 %v415_v8  ;;  %450 = vmatpush.bf16.msra.mxu3 %v441_v9  ;;  %vm979_vm9 = vmor %vm308_vm8, %vm309_vm7  ;;  %s769_s14 = sshll.u32 %s265_s13, 2  ;;  %vm390_vm11 = vcmask 1042434   ;;  %v782_v37 = vld [vmem:[%s1081_s2 + $0x10] sm:$0xf]  ;;  %vm345_vm12 = vcmask 64512  }
  0x14   : > { %s256_s7 = scalar_lea.vmem %s1079_s0, %s767_s30  ;;  %v785_v38 = vld [vmem:[%s1081_s2 + $0x14] sm:$0xf]  ;;  %s267_s28 = scalar_lea.vmem %s1080_s1, %s769_s14  ;;  %v487_v39 = vsel %vm348_vm0, %v782_v37, 0  ;;  %vm391_vm13 = vmor %vm389_vm10, %vm390_vm11  ;;  %vm392_vm14 = vcmask 1044484   ;;  %vm394_vm3 = vcmask 1046534  }
  0x15   : > { %v281_v6 = vld [vmem:[%s256_s7] sm:$0x7]  ;;  %v961_v7 = vld [vmem:[%s256_s7 + $0x4] sm:$0x7]  ;;  %v518_v40 = vsel %vm348_vm0, %v785_v38, 0  ;;  %496 = vmatpush.bf16.msrb.mxu0 %v487_v39  ;;  %vm393_vm15 = vmor %vm391_vm13, %vm392_vm14  ;;  %s1103_s26 = smov (!%p273_p8, %s941_s26), 3 }
  0x16   : > { %v288_v10 = vrot.slane %v281_v6, 2  ;;  %v289_v11 = vrot.slane %v961_v7, 2  ;;  %527 = vmatpush.bf16.msrb.mxu1 %v518_v40  ;;  %v1003_v42 = vld [vmem:[%s267_s28] sm:$0x7]  ;;  %vm1008_vm4 = vmor %vm393_vm15, %vm394_vm3  ;;  %v787_v49 = vld [vmem:[%s1081_s2 + $0x18] sm:$0xf] }
  0x17   : > { %v458_v45 = vrot.slane %v1003_v42, 2  ;;  %v544_v52 = vsel %vm348_vm0, %v787_v49, 0  ;;  %v284_v54 = vld [vmem:[%s267_s28 + $0x4] sm:$0x7]  ;;  %v789_v3 = vld [vmem:[%s1081_s2 + $0x1c] sm:$0xf] }
  0x18   : > { %v293_v12 = vsel %vm290_vm1, %v281_v6, %v288_v10  ;;  %v295_v13 = vsel %vm294_vm2, %v281_v6, %v288_v10  ;;  %v971_v14 = vsel %vm290_vm1, %v961_v7, %v289_v11  ;;  %v301_v15 = vsel %vm294_vm2, %v961_v7, %v289_v11  ;;  %553 = vmatpush.bf16.msrb.mxu2 %v544_v52  ;;  %s771_s9 = sshll.u32 %s1099_s16, 2 }
  0x19   : > { %v297_v16 = vrot.slane %v295_v13, 2  ;;  %v303_v17 = vrot.slane %v301_v15, 2  ;;  %v311_v18 = vshrl.u32 %v293_v12, 16  ;;  %v314_v19 = vshll.u32 %v293_v12, 16  ;;  %s276_s12 = sadd.s32 %s771_s9, %s1103_s26 }
  0x1a   : > { %v324_v20 = vshrl.u32 %v971_v14, 16  ;;  %v327_v21 = vshll.u32 %v971_v14, 16  ;;  %v776_v43 = vrot.slane %v293_v12, 9  ;;  %v777_v47 = vrot.slane %v971_v14, 9  ;;  %s772_s13 = sshll.u32 %s276_s12, 1 }
  0x1b   : > { %v313_v22 = vrot.slane %v311_v18, 6  ;;  %v316_v23 = vrot.slane %v314_v19, 7  ;;  %v320_v24 = vshll.u32 %v297_v16, 16  ;;  %v333_v25 = vshll.u32 %v303_v17, 16  ;;  %v792_v19 = vld [vmem:[%s1081_s2 + $0x20] sm:$0xf]  ;;  %s278_s22 = scalar_lea.vmem %s1083_s4, %s772_s13 }
  0x1c   : > { %v326_v26 = vrot.slane %v324_v20, 6  ;;  %v329_v27 = vrot.slane %v327_v21, 7  ;;  %v398_v44 = vrot.slane %v297_v16, 7  ;;  %v402_v48 = vrot.slane %v303_v17, 7 }
  0x1d   : > { %v317_v28 = vor.u32 %v316_v23, %v313_v22  ;;  %v322_v29 = vrot.slane %v320_v24, 7  ;;  %v335_v32 = vrot.slane %v333_v25, 7  ;;  %v460_v51 = vsel %vm290_vm1, %v1003_v42, %v458_v45 }
  0x1e   : > { %v330_v31 = vor.u32 %v329_v27, %v326_v26  ;;  %v399_v50 = vsel %vm1008_vm4, %v776_v43, %v398_v44  ;;  %v403_v53 = vsel %vm1008_vm4, %v777_v47, %v402_v48  ;;  %v461_v56 = vsel %vm294_vm2, %v1003_v42, %v458_v45 }
  0x1f   : > { %v318_v33 = vrot.slane %v317_v28, 2  ;;  %v464_v57 = vshrl.u32 %v460_v51, 16  ;;  %v467_v58 = vshll.u32 %v460_v51, 16  ;;  %v561_v59 = vrot.slane %v284_v54, 2 }
  0x20   : > { %v331_v34 = vrot.slane %v330_v31, 2  ;;  %v463_v60 = vrot.slane %v461_v56, 2  ;;  %v590_v8 = vsel %vm348_vm0, %v789_v3, 0  ;;  %v621_v20 = vsel %vm348_vm0, %v792_v19, 0 }
  0x21   : > { %v323_v35 = vsel %vm979_vm9, %v318_v33, %v322_v29  ;;  %v563_v61 = vsel %vm290_vm1, %v284_v54, %v561_v59  ;;  %v466_v62 = vrot.slane %v464_v57, 6  ;;  %v469_v63 = vrot.slane %v467_v58, 7  ;;  %599 = vmatpush.bf16.msrb.mxu3 %v590_v8 }
  0x22   : > { %v989_v36 = vsel %vm979_vm9, %v331_v34, %v335_v32  ;;  %340 = vst [vmem:[#allocation1] ss:$4 sm:$0xff] %v323_v35  ;;  %v567_v0 = vshrl.u32 %v563_v61, 16  ;;  %v570_v1 = vshll.u32 %v563_v61, 16  ;;  %v564_v2 = vsel %vm294_vm2, %v284_v54, %v561_v59 }
  0x23   : > { %343 = vst [vmem:[#allocation1 + $0x1] ss:$4 sm:$0xff] %v989_v36  ;;  %v566_v4 = vrot.slane %v564_v2, 2  ;;  %v470_v10 = vor.u32 %v469_v63, %v466_v62  ;;  %v473_v11 = vshll.u32 %v463_v60, 16  ;;  %v791_v22 = vrot.slane %v563_v61, 9 }
  0x24   : > { %v569_v5 = vrot.slane %v567_v0, 6  ;;  %v784_v24 = vrot.slane %v460_v51, 9  ;;  %v506_v25 = vrot.slane %v463_v60, 7  ;;  %vm650_vm0 = vcmask 123904  }
  0x25   : > { %v576_v12 = vshll.u32 %v566_v4, 16  ;;  %v471_v16 = vrot.slane %v470_v10, 2  ;;  %v475_v17 = vrot.slane %v473_v11, 7  ;;  %v609_v23 = vrot.slane %v566_v4, 7 }
  0x26   : > { %v507_v27 = vsel %vm1008_vm4, %v784_v24, %v506_v25 }
  0x27   : > { %v578_v14 = vrot.slane %v576_v12, 7  ;;  %v476_v21 = vsel %vm979_vm9, %v471_v16, %v475_v17  ;;  %v610_v26 = vsel %vm1008_vm4, %v791_v22, %v609_v23 }
  0x2a   : > { %v344_v41 = vld.sshfl [vmem:[#allocation1] sm:$0xff pattern:$0x73625140] }
  0x2b   : > { %774 = vmatmul.msk.bf16.vlgmr.msra.gmra.mxu0 %vm345_vm12, %v344_v41  ;;  %365 = vst [vmem:[#allocation1] ss:$4 sm:$0xff] %v281_v6  ;;  %v572_v6 = vrot.slane %v570_v1, 7 }
  0x2c   : > { %367 = vst [vmem:[#allocation1 + $0x1] ss:$4 sm:$0xff] %v961_v7  ;;  %630 = vmatpush.bf16.msra.mxu0 %v621_v20 }
  0x2d   : > { %v573_v13 = vor.u32 %v572_v6, %v569_v5 }
  0x2f   : > { %v574_v15 = vrot.slane %v573_v13, 2 }
  0x31   : > { %v579_v18 = vsel %vm979_vm9, %v574_v15, %v578_v14 }
  0x33   : > { %v368_v55 = vld.sshfl [vmem:[#allocation1] sm:$0xff pattern:$0x73625140] }
  0x34   : > { %775 = vmatmul.msk.bf16.vlgmr.msra.gmra.mxu1 %vm345_vm12, %v368_v55  ;;  %407 = vst [vmem:[#allocation1] ss:$4 sm:$0xff] %v399_v50  ;;  %v839_v55 = vld [vmem:[%s1082_s3] ss:$0 sm:$0xff] }
  0x35   : > { %410 = vst [vmem:[#allocation1 + $0x1] ss:$4 sm:$0xff] %v403_v53 }
  0x3c   : > { %v411_v9 = vld.sshfl [vmem:[#allocation1] sm:$0xff pattern:$0x73625140] }
  0x3d   : > { %779 = vmatmul.msk.bf16.vlgmr.msra.gmra.mxu2 %vm345_vm12, %v411_v9  ;;  %433 = vst [vmem:[#allocation1] ss:$4 sm:$0xff] %v961_v7 }
  0x3e   : > { %436 = vst [vmem:[#allocation1 + $0x1] ss:$4 sm:$0xff] %v1003_v42 }
  0x45   : > { %v437_v7 = vld.sshfl [vmem:[#allocation1] sm:$0xff pattern:$0x73625140] }
  0x46   : > { %781 = vmatmul.msk.bf16.vlgmr.msra.gmra.mxu3 %vm345_vm12, %v437_v7  ;;  %479 = vst [vmem:[#allocation1] ss:$4 sm:$0xff] %v989_v36 }
  0x47   : > { %482 = vst [vmem:[#allocation1 + $0x1] ss:$4 sm:$0xff] %v476_v21 }
  0x4e   : > { %v483_v28 = vld.sshfl [vmem:[#allocation1] sm:$0xff pattern:$0x73625140] }
  0x4f   : > { %783 = vmatmul.msk.bf16.vlgmr.msrb.gmra.mxu0 %vm345_vm12, %v483_v28  ;;  %510 = vst [vmem:[#allocation1] ss:$4 sm:$0xff] %v403_v53 }
  0x50   : > { %513 = vst [vmem:[#allocation1 + $0x1] ss:$4 sm:$0xff] %v507_v27 }
  0x57   : > { %v514_v29 = vld.sshfl [vmem:[#allocation1] sm:$0xff pattern:$0x73625140] }
  0x58   : > { %786 = vmatmul.msk.bf16.vlgmr.msrb.gmra.mxu1 %vm345_vm12, %v514_v29  ;;  %536 = vst [vmem:[#allocation1] ss:$4 sm:$0xff] %v1003_v42 }
  0x59   : > { %539 = vst [vmem:[#allocation1 + $0x1] ss:$4 sm:$0xff] %v284_v54 }
  0x60   : > { %v540_v30 = vld.sshfl [vmem:[#allocation1] sm:$0xff pattern:$0x73625140] }
  0x61   : > { %788 = vmatmul.msk.bf16.vlgmr.msrb.gmra.mxu2 %vm345_vm12, %v540_v30  ;;  %582 = vst [vmem:[#allocation1] ss:$4 sm:$0xff] %v476_v21 }
  0x62   : > { %585 = vst [vmem:[#allocation1 + $0x1] ss:$4 sm:$0xff] %v579_v18 }
  0x69   : > { %v586_v31 = vld.sshfl [vmem:[#allocation1] sm:$0xff pattern:$0x73625140] }
  0x6a   : > { %790 = vmatmul.msk.bf16.vlgmr.msrb.gmra.mxu3 %vm345_vm12, %v586_v31  ;;  %613 = vst [vmem:[#allocation1] ss:$4 sm:$0xff] %v507_v27 }
  0x6b   : > { %616 = vst [vmem:[#allocation1 + $0x1] ss:$4 sm:$0xff] %v610_v26 }
  0x72   : > { %v617_v32 = vld.sshfl [vmem:[#allocation1] sm:$0xff pattern:$0x73625140] }
  0x73   : > { %793 = vmatmul.msk.bf16.vlgmr.msra.gmra.mxu0 %vm345_vm12, %v617_v32 }
  0xa8   : > { %v361_v33 = vpop.f32.mrf.mxu0 }
  0xb0   : > { %v363_v34 = vpop.f32.mrf.mxu0 }
  0xb1   : > { %v383_v35 = vpop.f32.mrf.mxu1 }
  0xb2   : > { %v384_v44 = vadd.f32 %v383_v35, %v361_v33 }
  0xb9   : > { %v385_v36 = vpop.f32.mrf.mxu1 }
  0xc0   : > { %v426_v37 = vpop.f32.mrf.mxu2 }
  0xc1   : > { %v430_v46 = vadd.f32 %v426_v37, %v384_v44 }
  0xc8   : > { %v428_v38 = vpop.f32.mrf.mxu2 }
  0xc9   : > { %v452_v39 = vpop.f32.mrf.mxu3 }
  0xca   : > { %v456_v47 = vadd.f32 %v452_v39, %v430_v46 }
  0xcc   : > { %v498_v40 = vpop.f32.mrf.mxu0 }
  0xcd   : > { %v502_v49 = vadd.f32 %v498_v40, %v456_v47 }
  0xd1   : > { %v454_v41 = vpop.f32.mrf.mxu3 }
  0xd4   : > { %v500_v42 = vpop.f32.mrf.mxu0 }
  0xd5   : > { %v529_v43 = vpop.f32.mrf.mxu1 }
  0xd6   : > { %v533_v50 = vadd.f32 %v529_v43, %v502_v49 }
  0xdd   : > { %v531_v45 = vpop.f32.mrf.mxu1 }
  0xe4   : > { %v555_v48 = vpop.f32.mrf.mxu2 }
  0xe5   : > { %v559_v51 = vadd.f32 %v555_v48, %v533_v50 }
  0xec   : > { %v557_v52 = vpop.f32.mrf.mxu2 }
  0xed   : > { %v601_v53 = vpop.f32.mrf.mxu3 }
  0xee   : > { %v605_v54 = vadd.f32 %v601_v53, %v559_v51 }
  0xf0   : > { %v632_v56 = vpop.f32.mrf.mxu0 }
  0xf1   : > { %v636_v57 = vadd.f32 %v632_v56, %v605_v54 }
  0xf3   : > { %v638_v58 = vrot.slane %v636_v57, 4  ;;  %v644_v59 = vadd.f32 %v839_v55, %v636_v57 }
  0xf5   : > { %v645_v60 = vadd.f32 %v839_v55, %v638_v58  ;;  %v646_v61 = vmax.f32 %v644_v59, 0.0  ;;  %v603_v62 = vpop.f32.mrf.mxu3 }
  0xf7   : > { %v647_v63 = vmax.f32 %v645_v60, 0.0  ;;  %v648_v0 = vpack.c.bf16 %v646_v61, %v646_v61 }
  0xf8   : > { %v634_v1 = vpop.f32.mrf.mxu0 }
  0xf9   : > { %v649_v2 = vpack.c.bf16 %v647_v63, %v647_v63  ;;  %651 = vst.msk [vmem:[%s278_s22] sm:$0x3] %vm650_vm0, %v648_v0 }
  0xfb   : > { %652 = vst.msk [vmem:[%s278_s22 + $0x2] sm:$0x3] %vm650_vm0, %v649_v2 }
  0xfc PF: > { %s14_s19 = sadd.s32 1, %s878_s19   ;;  %s1088_s15 = smov %s870_s17 }
  0xfd   : > { %p11_p9 = scmp.ge.s32.totalorder %s14_s19, 6   ;;  %s1089_s16 = smov %s874_s18 }
  0xfe   : > { %s1090_s17 = smov %s1093_s20  ;;  %s1091_s18 = smov %s1097_s21 }
  0xff   :  { %13 = sbr.rel (!%p11_p9) target bundleno = 3 (0x3), region = 86 }

// kernel: encoder_unet_forward.15
= control target key start
LH: loop header
LB: loop body
LE: loop exit
PB: predicated region body
PF: predicated region fallthrough
CT: control target
= control target key end

     0   :  { %s1093_s15 = smov 0   ;;  %s1095_s16 = smov 0   ;;  %s1291_s0 = inlined_call_operand.vmem [shape: bf16[2,4,4,32], index: 0, kind: input, shape index: {}, may-alias: {0,1}]   ;;  %s1292_s1 = inlined_call_operand.vmem [shape: bf16[2,4,4,32], index: 1, kind: input, shape index: {}, may-alias: {0,1}]   ;;  %s1293_s2 = inlined_call_operand.vmem [shape: bf16[9,32,32], index: 2, kind: input, shape index: {}]   ;;  %s1294_s3 = inlined_call_operand.vmem [shape: f32[1,32], index: 3, kind: input, shape index: {}]   ;;  %s1295_s4 = inlined_call_operand.vmem [shape: bf16[2,2,2,32], index: 4, kind: output, shape index: {}]  }
   0x1   :  { %s1097_s17 = smov 0  }
   0x2 LB: > { %s26_s18 = sadd.s32 1, %s1062_s16  ;;  %p872_p0 = scmp.ge.s32.totalorder %s1066_s17, 1  ;;  %s1066_s17 = sphi %s1097_s17, %s14_s17   ;;  %s1062_s16 = sphi %s1095_s16, %s1301_s16   ;;  %s1058_s15 = sphi %s1093_s15, %s1300_s15  }
   0x3   : > { %p28_p1 = scmp.ge.s32.totalorder %s26_s18, 2  ;;  %p204_p2 = scmp.lt.s32.totalorder %s1066_s17, 3 }
   0x5   : > { %s1303_s18 = smov (%p28_p1, %s26_s18), 0  ;;  %p205_p3 = pnand %p872_p0, %p204_p2 }
   0x6   : > { %p248_p4 = scmp.lt.s32.totalorder (!%p205_p3), %s1058_s15, 1 }
   0x7   : > { %208 = sbr.rel (%p205_p3) target bundleno = 270 (0x10e), region = 36 }
   0xc   : > { %v1003_v0 = vld [vmem:[%s1293_s2 + $0x18] sm:$0xff]  ;;  %v1001_v1 = vld [vmem:[%s1293_s2 + $0x8] sm:$0xff]  ;;  %v1002_v3 = vld [vmem:[%s1293_s2 + $0x10] sm:$0xff]  ;;  %s1305_s15 = smov (!%p248_p4, %s1058_s15), 1  ;;  %vm325_vm0 = vsmask.f32 256 }
   0xd   : > { %v1005_v2 = vld [vmem:[%s1293_s2 + $0x28] sm:$0xff]  ;;  %v1000_v4 = vld [vmem:[%s1293_s2] sm:$0xff]  ;;  %388 = vmatpush.bf16.msra.mxu0 %v1003_v0  ;;  %419 = vmatpush.bf16.msra.mxu1 %v1001_v1  ;;  %vm326_vm1 = vsmask.f32 1284  ;;  %vm328_vm3 = vsmask.f32 2312 }
   0xe   : > { %v1004_v5 = vld [vmem:[%s1293_s2 + $0x20] sm:$0xff]  ;;  %461 = vmatpush.bf16.msra.mxu2 %v1005_v2  ;;  %vm327_vm2 = vmor %vm325_vm0, %vm326_vm1  ;;  %vm330_vm4 = vsmask.f32 3340  ;;  %vm332_vm5 = vsmask.f32 4368  ;;  %s997_s5 = sshll.u32 %s1305_s15, 3 }
   0xf   : > { %vm329_vm6 = vmor %vm327_vm2, %vm328_vm3  ;;  %vm334_vm7 = vsmask.f32 5396  ;;  %s255_s8 = scalar_lea.vmem %s1291_s0, %s997_s5  ;;  %vm295_vm8 = vcmask 1040384   ;;  %vm299_vm9 = vcmask 1042434   ;;  %vm303_vm10 = vcmask 1041408   ;;  %v1007_v6 = vld [vmem:[%s1293_s2 + $0x38] sm:$0xff] }
  0x10   : > { %vm331_vm11 = vmor %vm329_vm6, %vm330_vm4  ;;  %v1138_v7 = vld [vmem:[%s255_s8] sm:$0x3]  ;;  %v1140_v8 = vld [vmem:[%s255_s8 + $0x2] sm:$0x3]  ;;  %vm305_vm12 = vcmask 1041409   ;;  %vm307_vm13 = vcmask 1043459   ;;  %499 = vmatpush.bf16.msra.mxu3 %v1007_v6 }
  0x11   : > { %389 = vmatpush.bf16.msra.mxu0 %v1002_v3  ;;  %420 = vmatpush.bf16.msra.mxu1 %v1000_v4  ;;  %vm333_vm14 = vmor %vm331_vm11, %vm332_vm5  ;;  %s999_s11 = sadd.s32 4, %s997_s5  ;;  %v289_v9 = vrot.slane %v1138_v7, 1  ;;  %v290_v10 = vrot.slane %v1138_v7, 2  ;;  %vm309_vm15 = vcmask 1042433   ;;  %vm336_vm1 = vsmask.f32 6424 }
  0x12   : > { %462 = vmatpush.bf16.msra.mxu2 %v1004_v5  ;;  %vm1146_vm0 = vmor %vm333_vm14, %vm334_vm7  ;;  %v291_v12 = vrot.slane %v1138_v7, 3  ;;  %v292_v13 = vrot.slane %v1140_v8, 1  ;;  %v293_v14 = vrot.slane %v1140_v8, 2  ;;  %v294_v15 = vrot.slane %v1140_v8, 3  ;;  %s1161_s14 = scalar_lea.vmem %s1292_s1, %s999_s11  ;;  %v1006_v50 = vld [vmem:[%s1293_s2 + $0x30] sm:$0xff]  ;;  %v1009_v55 = vld [vmem:[%s1293_s2 + $0x48] sm:$0xff] }
  0x13   : > { %v298_v16 = vsel %vm295_vm8, %v1138_v7, %v289_v9  ;;  %v306_v17 = vsel %vm305_vm12, %v1138_v7, %v289_v9  ;;  %vm338_vm2 = vsmask.f32 7452  ;;  %vm337_vm3 = vmor %vm1146_vm0, %vm336_vm1  ;;  %v1171_v22 = vld [vmem:[%s1161_s14 + $0x2] sm:$0x3]  ;;  %vm379_vm5 = vcmask 261120   ;;  %v1011_v56 = vld [vmem:[%s1293_s2 + $0x58] sm:$0xff] }
  0x14   : > { %v302_v18 = vsel %vm299_vm9, %v290_v10, %v291_v12  ;;  %v308_v19 = vsel %vm307_vm13, %v290_v10, %v291_v12  ;;  %v315_v20 = vsel %vm295_vm8, %v1140_v8, %v292_v13  ;;  %v318_v21 = vsel %vm299_vm9, %v293_v14, %v294_v15  ;;  %vm1181_vm4 = vmor %vm337_vm3, %vm338_vm2  ;;  %500 = vmatpush.bf16.msra.mxu3 %v1006_v50  ;;  %v1214_v54 = vld [vmem:[%s1161_s14] sm:$0x3]  ;;  %v1013_v57 = vld [vmem:[%s1293_s2 + $0x68] sm:$0xff]  ;;  %s877_s21 = sshll.u32 %s1305_s15, 1 }
  0x15   : > { %v304_v23 = vsel %vm303_vm10, %v298_v16, %v302_v18  ;;  %v310_v24 = vsel %vm309_vm15, %v306_v17, %v308_v19  ;;  %v319_v25 = vsel %vm303_vm10, %v315_v20, %v318_v21  ;;  %v320_v26 = vsel %vm305_vm12, %v1140_v8, %v292_v13  ;;  %560 = vmatpush.bf16.msrb.mxu0 %v1009_v55  ;;  %v1008_v59 = vld [vmem:[%s1293_s2 + $0x40] sm:$0xff]  ;;  %v1010_v60 = vld [vmem:[%s1293_s2 + $0x50] sm:$0xff]  ;;  %v1017_v20 = vld [vmem:[%s1293_s2 + $0x88] sm:$0xff]  ;;  %s276_s24 = scalar_lea.vmem %s1295_s4, %s877_s21 }
  0x16   : > { %v312_v27 = vrot.slane %v310_v24, 1  ;;  %v321_v28 = vsel %vm307_vm13, %v293_v14, %v294_v15  ;;  %v340_v29 = vshrl.u32 %v304_v23, 16  ;;  %v348_v32 = vshrl.u32 %v319_v25, 16  ;;  %603 = vmatpush.bf16.msrb.mxu1 %v1011_v56  ;;  %641 = vmatpush.bf16.msrb.mxu2 %v1013_v57  ;;  %v1012_v0 = vld [vmem:[%s1293_s2 + $0x60] sm:$0xff]  ;;  %v1015_v15 = vld [vmem:[%s1293_s2 + $0x78] sm:$0xff]  ;;  %v1014_v16 = vld [vmem:[%s1293_s2 + $0x70] sm:$0xff] }
  0x17   : > { %v322_v30 = vsel %vm309_vm15, %v320_v26, %v321_v28  ;;  %v650_v35 = vrot.slane %v1171_v22, 1  ;;  %v651_v36 = vrot.slane %v1171_v22, 2  ;;  %v652_v37 = vrot.slane %v1171_v22, 3  ;;  %v1016_v21 = vld [vmem:[%s1293_s2 + $0x80] sm:$0xff] }
  0x18   : > { %v324_v33 = vrot.slane %v322_v30, 1  ;;  %v345_v34 = vshll.u32 %v312_v27, 16  ;;  %v508_v61 = vrot.slane %v1214_v54, 1  ;;  %v509_v62 = vrot.slane %v1214_v54, 2  ;;  %702 = vmatpush.bf16.msrb.mxu3 %v1015_v15  ;;  %v1043_v50 = vld [vmem:[%s1294_s3] ss:$0 sm:$0xff] }
  0x19   : > { %v654_v40 = vsel %vm295_vm8, %v1171_v22, %v650_v35  ;;  %v657_v41 = vsel %vm299_vm9, %v651_v36, %v652_v37  ;;  %v659_v44 = vsel %vm305_vm12, %v1171_v22, %v650_v35  ;;  %v660_v45 = vsel %vm307_vm13, %v651_v36, %v652_v37  ;;  %561 = vmatpush.bf16.msrb.mxu0 %v1008_v59 }
  0x1a   : > { %v347_v38 = vsel %vm1181_vm4, %v340_v29, %v345_v34  ;;  %v353_v39 = vshll.u32 %v324_v33, 16  ;;  %v658_v43 = vsel %vm303_vm10, %v654_v40, %v657_v41  ;;  %v661_v46 = vsel %vm309_vm15, %v659_v44, %v660_v45  ;;  %604 = vmatpush.bf16.msrb.mxu1 %v1010_v60  ;;  %642 = vmatpush.bf16.msrb.mxu2 %v1012_v0 }
  0x1b   : > { %362 = vst [vmem:[#allocation1] ss:$9 sm:$0xff] %v347_v38  ;;  %v663_v47 = vrot.slane %v661_v46, 1  ;;  %v664_v48 = vshrl.u32 %v658_v43, 16  ;;  %v510_v63 = vrot.slane %v1214_v54, 3  ;;  %v517_v2 = vsel %vm305_vm12, %v1214_v54, %v508_v61 }
  0x1c   : > { %v355_v42 = vsel %vm1181_vm4, %v348_v32, %v353_v39  ;;  %v512_v5 = vsel %vm295_vm8, %v1214_v54, %v508_v61  ;;  %703 = vmatpush.bf16.msrb.mxu3 %v1014_v16  ;;  %vm766_vm6 = vcmask 253952  }
  0x1d   : > { %365 = vst [vmem:[#allocation1 + $0x1] ss:$9 sm:$0xff] %v355_v42  ;;  %v669_v49 = vshll.u32 %v663_v47, 16  ;;  %v518_v3 = vsel %vm307_vm13, %v509_v62, %v510_v63  ;;  %v515_v6 = vsel %vm299_vm9, %v509_v62, %v510_v63 }
  0x1e   : > { %v519_v4 = vsel %vm309_vm15, %v517_v2, %v518_v3  ;;  %v516_v10 = vsel %vm303_vm10, %v512_v5, %v515_v6 }
  0x1f   : > { %v1205_v51 = vsel %vm1181_vm4, %v664_v48, %v669_v49  ;;  %v522_v11 = vshrl.u32 %v516_v10, 16 }
  0x24   : > { %v366_v52 = vld [vmem:[#allocation1] sm:$0xff] }
  0x25   : > { %892 = vmatmul.msk.bf16.vlgmr.msra.gmra.mxu0 %vm379_vm5, %v366_v52  ;;  %395 = vst [vmem:[#allocation1] ss:$9 sm:$0xff] %v1138_v7 }
  0x26   : > { %397 = vst [vmem:[#allocation1 + $0x1] ss:$9 sm:$0xff] %v1140_v8  ;;  %745 = vmatpush.bf16.msra.mxu0 %v1017_v20 }
  0x27   : > { %429 = vst [vmem:[#allocation1 + $0x10] sm:$0xff] %v1140_v8 }
  0x2a   : > { %746 = vmatpush.bf16.msra.mxu0 %v1016_v21 }
  0x2d   : > { %v398_v53 = vld [vmem:[#allocation1] sm:$0xff] }
  0x2e   : > { %901 = vmatmul.msk.bf16.vlgmr.msra.gmra.mxu1 %vm379_vm5, %v398_v53  ;;  %426 = vst [vmem:[#allocation1] sm:$0xff] %v1138_v7  ;;  %v431_v58 = vld [vmem:[#allocation1 + $0x11] ss:$2 sm:$0xff]  ;;  %v521_v7 = vrot.slane %v519_v4, 1 }
  0x30   : > { %v527_v12 = vshll.u32 %v521_v7, 16 }
  0x32   : > { %v529_v13 = vsel %vm1181_vm4, %v522_v11, %v527_v12 }
  0x35   : > { %v428_v1 = vld [vmem:[#allocation1 + $0x1] ss:$2 sm:$0xff] }
  0x36   : > { %437 = vst [vmem:[#allocation1] ss:$9 sm:$0xff] %v428_v1 }
  0x37   : > { %439 = vst [vmem:[#allocation1 + $0x1] ss:$9 sm:$0xff] %v431_v58 }
  0x3e   : > { %v440_v9 = vld [vmem:[#allocation1] sm:$0xff] }
  0x3f   : > { %914 = vmatmul.msk.bf16.vlgmr.msra.gmra.mxu2 %vm379_vm5, %v440_v9  ;;  %474 = vst [vmem:[#allocation1] ss:$9 sm:$0xff] %v1140_v8 }
  0x40   : > { %477 = vst [vmem:[#allocation1 + $0x1] ss:$9 sm:$0xff] %v1214_v54 }
  0x47   : > { %v478_v14 = vld [vmem:[#allocation1] sm:$0xff] }
  0x48   : > { %927 = vmatmul.msk.bf16.vlgmr.msra.gmra.mxu3 %vm379_vm5, %v478_v14  ;;  %535 = vst [vmem:[#allocation1] ss:$9 sm:$0xff] %v355_v42 }
  0x49   : > { %538 = vst [vmem:[#allocation1 + $0x1] ss:$9 sm:$0xff] %v529_v13 }
  0x4a   : > { %571 = vst [vmem:[#allocation1 + $0x10] sm:$0xff] %v1214_v54 }
  0x50   : > { %v539_v17 = vld [vmem:[#allocation1] sm:$0xff] }
  0x51   : > { %941 = vmatmul.msk.bf16.vlgmr.msrb.gmra.mxu0 %vm379_vm5, %v539_v17  ;;  %568 = vst [vmem:[#allocation1] sm:$0xff] %v1140_v8  ;;  %v573_v18 = vld [vmem:[#allocation1 + $0x11] ss:$2 sm:$0xff] }
  0x58   : > { %v570_v19 = vld [vmem:[#allocation1 + $0x1] ss:$2 sm:$0xff] }
  0x59   : > { %579 = vst [vmem:[#allocation1] ss:$9 sm:$0xff] %v570_v19 }
  0x5a   : > { %581 = vst [vmem:[#allocation1 + $0x1] ss:$9 sm:$0xff] %v573_v18 }
  0x61   : > { %v582_v23 = vld [vmem:[#allocation1] sm:$0xff] }
  0x62   : > { %954 = vmatmul.msk.bf16.vlgmr.msrb.gmra.mxu1 %vm379_vm5, %v582_v23  ;;  %616 = vst [vmem:[#allocation1] ss:$9 sm:$0xff] %v1214_v54 }
  0x63   : > { %619 = vst [vmem:[#allocation1 + $0x1] ss:$9 sm:$0xff] %v1171_v22 }
  0x6a   : > { %v620_v8 = vld [vmem:[#allocation1] sm:$0xff] }
  0x6b   : > { %967 = vmatmul.msk.bf16.vlgmr.msrb.gmra.mxu2 %vm379_vm5, %v620_v8  ;;  %677 = vst [vmem:[#allocation1] ss:$9 sm:$0xff] %v529_v13 }
  0x6c   : > { %680 = vst [vmem:[#allocation1 + $0x1] ss:$9 sm:$0xff] %v1205_v51 }
  0x6d   : > { %713 = vst [vmem:[#allocation1 + $0x10] sm:$0xff] %v1171_v22 }
  0x73   : > { %v681_v24 = vld [vmem:[#allocation1] sm:$0xff] }
  0x74   : > { %981 = vmatmul.msk.bf16.vlgmr.msrb.gmra.mxu3 %vm379_vm5, %v681_v24  ;;  %710 = vst [vmem:[#allocation1] sm:$0xff] %v1214_v54  ;;  %v715_v25 = vld [vmem:[#allocation1 + $0x11] ss:$2 sm:$0xff] }
  0x7b   : > { %v712_v26 = vld [vmem:[#allocation1 + $0x1] ss:$2 sm:$0xff] }
  0x7c   : > { %721 = vst [vmem:[#allocation1] ss:$9 sm:$0xff] %v712_v26 }
  0x7d   : > { %723 = vst [vmem:[#allocation1 + $0x1] ss:$9 sm:$0xff] %v715_v25 }
  0x84   : > { %v724_v27 = vld [vmem:[#allocation1] sm:$0xff] }
  0x85   : > { %994 = vmatmul.msk.bf16.vlgmr.msra.gmra.mxu0 %vm379_vm5, %v724_v27 }
  0xa2   : > { %v391_v28 = vpop.f32.mrf.mxu0 }
  0xaa   : > { %v393_v29 = vpop.f32.mrf.mxu0 }
  0xab   : > { %v422_v30 = vpop.f32.mrf.mxu1 }
  0xac   : > { %v423_v31 = vadd.f32 %v422_v30, %v391_v28 }
  0xb3   : > { %v424_v32 = vpop.f32.mrf.mxu1 }
  0xc2   : > { %v464_v33 = vpop.f32.mrf.mxu2 }
  0xc3   : > { %v468_v41 = vadd.f32 %v464_v33, %v423_v31 }
  0xca   : > { %v466_v34 = vpop.f32.mrf.mxu2 }
  0xcb   : > { %v502_v22 = vpop.f32.mrf.mxu3 }
  0xcc   : > { %v506_v42 = vadd.f32 %v502_v22, %v468_v41 }
  0xce   : > { %v563_v35 = vpop.f32.mrf.mxu0 }
  0xcf   : > { %v567_v45 = vadd.f32 %v563_v35, %v506_v42 }
  0xd3   : > { %v504_v36 = vpop.f32.mrf.mxu3 }
  0xd6   : > { %v565_v37 = vpop.f32.mrf.mxu0 }
  0xdf   : > { %v606_v38 = vpop.f32.mrf.mxu1 }
  0xe0   : > { %v610_v46 = vadd.f32 %v606_v38, %v567_v45 }
  0xe7   : > { %v608_v39 = vpop.f32.mrf.mxu1 }
  0xee   : > { %v644_v40 = vpop.f32.mrf.mxu2 }
  0xef   : > { %v648_v47 = vadd.f32 %v644_v40, %v610_v46 }
  0xf6   : > { %v646_v43 = vpop.f32.mrf.mxu2 }
  0xf7   : > { %v705_v44 = vpop.f32.mrf.mxu3 }
  0xf8   : > { %v709_v49 = vadd.f32 %v705_v44, %v648_v47 }
  0xff   : > { %v707_v48 = vpop.f32.mrf.mxu3 }
 0x102   : > { %v748_v51 = vpop.f32.mrf.mxu0 }
 0x103   : > { %v752_v52 = vadd.f32 %v748_v51, %v709_v49 }
 0x105   : > { %v754_v53 = vrot.slane %v752_v52, 2  ;;  %v760_v54 = vadd.f32 %v1043_v50, %v752_v52 }
 0x107   : > { %v761_v55 = vadd.f32 %v1043_v50, %v754_v53  ;;  %v762_v56 = vmax.f32 %v760_v54, 0.0 }
 0x109   : > { %v763_v57 = vmax.f32 %v761_v55, 0.0  ;;  %v764_v58 = vpack.c.bf16 %v762_v56, %v762_v56 }
 0x10a   : > { %v750_v59 = vpop.f32.mrf.mxu0 }
 0x10b   : > { %v765_v60 = vpack.c.bf16 %v763_v57, %v763_v57  ;;  %767 = vst.msk [vmem:[%s276_s24] sm:$0x1] %vm766_vm6, %v764_v58 }
 0x10d   : > { %768 = vst.msk [vmem:[%s276_s24 + $0x1] sm:$0x1] %vm766_vm6, %v765_v60 }
 0x10e PF: > { %s14_s17 = sadd.s32 1, %s1066_s17   ;;  %s1300_s15 = smov %s1062_s16 }
 0x10f   : > { %p11_p5 = scmp.ge.s32.totalorder %s14_s17, 4   ;;  %s1301_s16 = smov %s1303_s18 }
 0x111   :  { %13 = sbr.rel (!%p11_p5) target bundleno = 2 (0x2), region = 92 }

</bundles_post_ra>
